<compile_context>
chip_gen: v7x
topology: tpu7x:2x2x1
jax: 0.10.0
libtpu: 0.0.40
codegen_flags: <defaults>
</compile_context>

<pallas_src>
import numpy as np
import jax
import jax.numpy as jnp
from jax import lax
from jax.experimental import pallas as pl
from jax.experimental.pallas import tpu as pltpu

# Static geometry implied by the PyTorch module (fc_fusion expects 64*8*8 per branch).
H, W = 32, 32                 # conv-1 spatial size
CIN = 3                       # both branches run with 3 input channels (audio padded 1->3)
C1, C2 = 32, 64               # conv-1 / conv-2 output channels
H1, W1 = H // 2, W // 2       # 16, 16 after pool-1
H2, W2 = H1 // 2, W1 // 2     # 8, 8   after pool-2
HID = 256                     # fusion hidden width
FEAT = H2 * W2 * C2           # 4096 features per branch
LANE1 = 128                   # conv-1 per-tap lane width (W*CIN = 96 zero-padded to 128)
LANE2 = W1 * C1               # conv-2 per-tap lane width (= 512, already 128-aligned)


# ---------------------------------------------------------------------------
# Kernel 1: full conv branch (conv3x3+ReLU+pool2, twice) for a block of `bs`
#           samples of one branch.  grid = (branch, n/bs), both "parallel".
# ---------------------------------------------------------------------------
def branch_conv_kernel(x_ref, band1_ref, b1_ref, band2_ref, b2_ref, feat_ref,
                       xp1_ref, xp2_ref):
    # x_ref:     (1, bs, H, LANE1)          f32   lane-packed NHWC rows, lanes 96..127 zero
    # band1_ref: (1, 3*LANE1, W*C1)         bf16  banded conv-1 weights (parity-split out cols)
    # b1_ref:    (1, 1, W*C1)               f32
    # band2_ref: (1, 3*LANE2, W1*C2)        bf16  banded conv-2 weights
    # b2_ref:    (1, 1, W1*C2)              f32
    # feat_ref:  (1, bs, H2, W2*C2)         bf16  (h, w, c)-ordered branch features
    # xp1_ref:   VMEM (bs, H+2, LANE1)      f32   vertically zero-padded conv-1 input
    # xp2_ref:   VMEM (bs, H1+2, LANE2)     f32   vertically zero-padded conv-2 input
    bs = x_ref.shape[1]

    # ---- conv-1 input: zero only the two vertical border rows, write interior once.
    zrow1 = jnp.zeros((bs, 1, LANE1), jnp.float32)
    xp1_ref[:, 0:1, :] = zrow1
    xp1_ref[:, H + 1:H + 2, :] = zrow1
    xp1_ref[:, 1:H + 1, :] = x_ref[0]

    # ---- conv-1 as ONE banded matmul: M = bs*H rows, K = 3 row taps x 128 lanes.
    a1 = jnp.concatenate([xp1_ref[:, dy:dy + H, :] for dy in range(3)], axis=2)
    a1 = a1.reshape(bs * H, 3 * LANE1)
    y1 = jnp.dot(a1.astype(jnp.bfloat16), band1_ref[0],
                 preferred_element_type=jnp.float32)            # (bs*H, W*C1)
    y1 = jnp.maximum(y1 + b1_ref[0], 0.0)                       # bias + ReLU

    # ---- maxpool-1 (2x2): row pairs, then lane-aligned parity-half column max.
    y1 = y1.reshape(bs, H1, 2, W * C1)
    y1 = jnp.maximum(y1[:, :, 0, :], y1[:, :, 1, :])            # (bs, H1, W*C1)
    p1 = jnp.maximum(y1[..., :W1 * C1], y1[..., W1 * C1:])      # (bs, H1, W1*C1)

    # ---- conv-2: same banded-matmul pattern (vertical pad only).
    zrow2 = jnp.zeros((bs, 1, LANE2), jnp.float32)
    xp2_ref[:, 0:1, :] = zrow2
    xp2_ref[:, H1 + 1:H1 + 2, :] = zrow2
    xp2_ref[:, 1:H1 + 1, :] = p1

    a2 = jnp.concatenate([xp2_ref[:, dy:dy + H1, :] for dy in range(3)], axis=2)
    a2 = a2.reshape(bs * H1, 3 * LANE2)
    y2 = jnp.dot(a2.astype(jnp.bfloat16), band2_ref[0],
                 preferred_element_type=jnp.float32)            # (bs*H1, W1*C2)
    y2 = jnp.maximum(y2 + b2_ref[0], 0.0)

    # ---- maxpool-2 (2x2) + flatten in (h, w, c) order; lane-dense bf16 store.
    y2 = y2.reshape(bs, H2, 2, W1 * C2)
    y2 = jnp.maximum(y2[:, :, 0, :], y2[:, :, 1, :])            # (bs, H2, W1*C2)
    p2 = jnp.maximum(y2[..., :W2 * C2], y2[..., W2 * C2:])      # (bs, H2, W2*C2)
    feat_ref[0] = p2.astype(feat_ref.dtype)


def branch_conv(x_all, prep, *, bs):
    nbr, n = x_all.shape[0], x_all.shape[1]
    assert n % bs == 0
    return pl.pallas_call(
        branch_conv_kernel,
        out_shape=jax.ShapeDtypeStruct((nbr, n, H2, W2 * C2), jnp.bfloat16),
        grid=(nbr, n // bs),
        in_specs=[
            pl.BlockSpec((1, bs, H, LANE1), lambda br, ib: (br, ib, 0, 0)),
            pl.BlockSpec((1, 3 * LANE1, W * C1), lambda br, ib: (br, 0, 0)),
            pl.BlockSpec((1, 1, W * C1), lambda br, ib: (br, 0, 0)),
            pl.BlockSpec((1, 3 * LANE2, W1 * C2), lambda br, ib: (br, 0, 0)),
            pl.BlockSpec((1, 1, W1 * C2), lambda br, ib: (br, 0, 0)),
        ],
        out_specs=pl.BlockSpec((1, bs, H2, W2 * C2), lambda br, ib: (br, ib, 0, 0)),
        scratch_shapes=[
            pltpu.VMEM((bs, H + 2, LANE1), jnp.float32),
            pltpu.VMEM((bs, H1 + 2, LANE2), jnp.float32),
        ],
        compiler_params=pltpu.CompilerParams(
            dimension_semantics=("parallel", "parallel"),
            vmem_limit_bytes=32 * 1024 * 1024),
    )(x_all, prep["band1"], prep["b1t"], prep["band2"], prep["b2t"])


# ---------------------------------------------------------------------------
# Kernel 2: fusion head  Linear(8192,256)+ReLU+Linear(256,NC).  The
#           audio/image concat is folded into a 2-step branch reduction; each
#           step streams one full per-branch (4096, 256) bf16 weight block.
# ---------------------------------------------------------------------------
def fusion_head_kernel(f_ref, w1_ref, b1_ref, w2_ref, b2_ref, o_ref, acc_ref):
    # f_ref:  (1, B, FEAT)   bf16   features of one branch
    # w1_ref: (1, FEAT, HID) bf16
    # b1_ref: (1, HID)       f32
    # w2_ref: (HID, NC)      bf16
    # b2_ref: (1, NC)        f32
    # o_ref:  (B, NC)        f32
    # acc_ref: VMEM (B, HID) f32    hidden-layer accumulator
    br = pl.program_id(0)

    @pl.when(br == 0)
    def _init():
        acc_ref[...] = jnp.zeros_like(acc_ref)

    acc_ref[...] += jnp.dot(f_ref[0], w1_ref[0],
                            preferred_element_type=jnp.float32)

    @pl.when(br == pl.num_programs(0) - 1)
    def _finalize():
        hid = jnp.maximum(acc_ref[...] + b1_ref[...], 0.0).astype(jnp.bfloat16)
        out = jnp.dot(hid, w2_ref[...], preferred_element_type=jnp.float32)
        o_ref[...] = (out + b2_ref[...]).astype(o_ref.dtype)


def fusion_head(feat, prep):
    nbr, b, kper = feat.shape                       # (2, B, 4096)
    assert kper == FEAT and nbr == 2
    nc = prep["f_w2"].shape[1]
    return pl.pallas_call(
        fusion_head_kernel,
        out_shape=jax.ShapeDtypeStruct((b, nc), jnp.float32),
        grid=(nbr,),
        in_specs=[
            pl.BlockSpec((1, b, kper), lambda br: (br, 0, 0)),
            pl.BlockSpec((1, kper, HID), lambda br: (br, 0, 0)),
            pl.BlockSpec((1, HID), lambda br: (0, 0)),
            pl.BlockSpec((HID, nc), lambda br: (0, 0)),
            pl.BlockSpec((1, nc), lambda br: (0, 0)),
        ],
        out_specs=pl.BlockSpec((b, nc), lambda br: (0, 0)),
        scratch_shapes=[pltpu.VMEM((b, HID), jnp.float32)],
        # Both steps reduce into the same accumulator -> "arbitrary".
        compiler_params=pltpu.CompilerParams(
            dimension_semantics=("arbitrary",)),
    )(feat, prep["f_w1k"], prep["f_b1"], prep["f_w2"], prep["f_b2"])


# ---------------------------------------------------------------------------
# Parameters: PyTorch-layout init + one-time conversion into kernel layouts.
# ---------------------------------------------------------------------------
def init_params(key, num_classes):
    """PyTorch-equivalent parameters (random init).  Conv weights are HWIO
    (3,3,Cin,Cout); fc weights are (in_features, out_features); f_w1's rows
    follow nn.Flatten on NCHW, i.e. (c, h, w) order per branch, audio first."""
    ks = jax.random.split(key, 12)
    w = lambda k, shape, s: jax.random.normal(k, shape, jnp.float32) * s
    return {
        "a_w1": w(ks[0], (3, 3, 1, C1), 0.10), "a_b1": w(ks[1], (C1,), 0.01),
        "a_w2": w(ks[2], (3, 3, C1, C2), 0.05), "a_b2": w(ks[3], (C2,), 0.01),
        "i_w1": w(ks[4], (3, 3, 3, C1), 0.10), "i_b1": w(ks[5], (C1,), 0.01),
        "i_w2": w(ks[6], (3, 3, C1, C2), 0.05), "i_b2": w(ks[7], (C2,), 0.01),
        "f_w1": w(ks[8], (2 * FEAT, HID), 0.02), "f_b1": w(ks[9], (HID,), 0.01),
        "f_w2": w(ks[10], (HID, num_classes), 0.05),
        "f_b2": w(ks[11], (num_classes,), 0.01),
    }


def _conv_band(w_hwio, width, lane_pad):
    """(3,3,Cin,Cout) -> (3*lane_pad, width*Cout) band so a SAME 3x3 conv on a
    lane-packed row of `width` pixels (Cin fastest) becomes
        out[h, :] = sum_dy rowpad[h+dy, :lane_pad] @ band[dy]
    with vertical padding explicit and horizontal padding folded into zero
    band entries.  Output pixel columns are parity-split (even pixels in the
    first half, odd in the second) so 2x column max-pooling is a lane-aligned
    max of the two halves."""
    w_hwio = np.asarray(w_hwio)
    kh, kw, cin, cout = w_hwio.shape
    half = width // 2
    band = np.zeros((kh, lane_pad, width * cout), np.float32)
    for dy in range(kh):
        for dx in range(kw):
            for wo in range(width):
                wi = wo + dx - 1                       # input pixel column
                if 0 <= wi < width:
                    og = (wo % 2) * half + wo // 2     # parity-split output group
                    band[dy, wi * cin:(wi + 1) * cin,
                         og * cout:(og + 1) * cout] = w_hwio[dy, dx]
    return band.reshape(kh * lane_pad, width * cout)


def prepare_params(p):
    """One-time (outside jit) conversion into kernel layouts: banded bf16 conv
    weights for both layers, lane-tiled biases, and f_w1 rows permuted from
    NCHW-flatten (c,h,w) order to the kernels' (h,w,c) feature order."""
    a_w1 = np.pad(np.asarray(p["a_w1"]), ((0, 0), (0, 0), (0, CIN - 1), (0, 0)))
    band1 = jnp.asarray(np.stack([_conv_band(a_w1, W, LANE1),
                                  _conv_band(p["i_w1"], W, LANE1)]),
                        dtype=jnp.bfloat16)                          # (2, 384, 1024)
    band2 = jnp.asarray(np.stack([_conv_band(p["a_w2"], W1, LANE2),
                                  _conv_band(p["i_w2"], W1, LANE2)]),
                        dtype=jnp.bfloat16)                          # (2, 1536, 1024)
    b1t = jnp.stack([jnp.tile(p["a_b1"], W), jnp.tile(p["i_b1"], W)])    # (2, 1024)
    b2t = jnp.stack([jnp.tile(p["a_b2"], W1), jnp.tile(p["i_b2"], W1)])  # (2, 1024)
    w1k = p["f_w1"].reshape(2, C2, H2, W2, HID)                      # (br, c, h, w, o)
    w1k = jnp.transpose(w1k, (0, 2, 3, 1, 4)).reshape(2, FEAT, HID)  # (br, h*w*c, o)
    return {
        "band1": band1,
        "b1t": b1t[:, None, :].astype(jnp.float32),                  # (2, 1, W*C1)
        "band2": band2,
        "b2t": b2t[:, None, :].astype(jnp.float32),                  # (2, 1, W1*C2)
        "f_w1k": w1k.astype(jnp.bfloat16),                           # (2, FEAT, HID)
        "f_b1": p["f_b1"].reshape(1, HID).astype(jnp.float32),
        "f_w2": p["f_w2"].astype(jnp.bfloat16),
        "f_b2": p["f_b2"].reshape(1, -1).astype(jnp.float32),
    }


# ---------------------------------------------------------------------------
# Forward (mode='both', use_ais=True, use_images=True, both inputs present)
# ---------------------------------------------------------------------------
def multimodal_classifier_forward(prep, audio_nchw, image_nchw, *, batch_block=8):
    n = audio_nchw.shape[0]
    assert audio_nchw.shape[2:] == (H, W) and image_nchw.shape[2:] == (H, W)
    bs = min(batch_block, n)
    n_pad = ((n + bs - 1) // bs) * bs

    # Tiny boundary glue: NCHW -> lane-packed NHWC rows (H, W*CIN), audio
    # channels zero-padded 1->3 so both branches share a single conv launch,
    # lanes padded 96->128 so conv-1 taps are 128-lane aligned, batch padded
    # to a multiple of the per-step sample block.
    a = jnp.transpose(audio_nchw, (0, 2, 3, 1))
    a = jnp.pad(a, ((0, 0), (0, 0), (0, 0), (0, CIN - audio_nchw.shape[1])))
    im = jnp.transpose(image_nchw, (0, 2, 3, 1))
    x_all = jnp.stack([a, im], axis=0).reshape(2, n, H, W * CIN)
    x_all = jnp.pad(x_all, ((0, 0), (0, n_pad - n), (0, 0), (0, LANE1 - W * CIN)))

    feat = branch_conv(x_all, prep, bs=bs)          # (2, n_pad, H2, W2*C2) bf16
    feat = feat.reshape(2, n_pad, FEAT)             # contiguous -> free reshape
    out = fusion_head(feat, prep)                   # (n_pad, num_classes)
    return out[:n]


# ---------------------------------------------------------------------------
# Pure-XLA f32 replica of the PyTorch forward (for in-script verification).
# ---------------------------------------------------------------------------
def reference_forward(p, audio_nchw, image_nchw):
    dn = ("NCHW", "HWIO", "NCHW")
    hi = lax.Precision.HIGHEST

    def branch(x, w1, b1, w2, b2):
        y = lax.conv_general_dilated(x, w1, (1, 1), "SAME",
                                     dimension_numbers=dn, precision=hi)
        y = jnp.maximum(y + b1[None, :, None, None], 0.0)
        y = lax.reduce_window(y, -jnp.inf, lax.max, (1, 1, 2, 2), (1, 1, 2, 2), "VALID")
        y = lax.conv_general_dilated(y, w2, (1, 1), "SAME",
                                     dimension_numbers=dn, precision=hi)
        y = jnp.maximum(y + b2[None, :, None, None], 0.0)
        y = lax.reduce_window(y, -jnp.inf, lax.max, (1, 1, 2, 2), (1, 1, 2, 2), "VALID")
        return y.reshape(y.shape[0], -1)            # nn.Flatten on NCHW

    af = branch(audio_nchw, p["a_w1"], p["a_b1"], p["a_w2"], p["a_b2"])
    imf = branch(image_nchw, p["i_w1"], p["i_b1"], p["i_w2"], p["i_b2"])
    fused = jnp.concatenate([af, imf], axis=1)
    hid = jnp.maximum(jnp.dot(fused, p["f_w1"], precision=hi) + p["f_b1"], 0.0)
    return jnp.dot(hid, p["f_w2"], precision=hi) + p["f_b2"]


if __name__ == "__main__":
    num_classes = 10
    batch = 2
    key = jax.random.PRNGKey(0)
    k_par, k_audio, k_image = jax.random.split(key, 3)

    params = init_params(k_par, num_classes)
    prep = prepare_params(params)                   # one-time layout prep

    audio = jax.random.normal(k_audio, (batch, 1, H, W), jnp.float32)   # NCHW
    image = jax.random.normal(k_image, (batch, 3, H, W), jnp.float32)   # NCHW

    fwd = jax.jit(multimodal_classifier_forward)
    out = jax.block_until_ready(fwd(prep, audio, image))
    assert out.shape == (batch, num_classes) and out.dtype == jnp.float32

    # Verify against the f32 XLA reference (kernels use bf16 MXU inputs with
    # f32 accumulation; expected deviation << 0.1 on O(0.5)-scale logits).
    ref = jax.block_until_ready(jax.jit(reference_forward)(params, audio, image))
    assert float(jnp.max(jnp.abs(out - ref))) < 0.1, "mismatch vs reference"

    print("KERNEL_OK")
</pallas_src>

<mosaic_0001>
module attributes {stable_mosaic.version = 11 : i64} {
  func.func @branch_conv_kernel(%arg0: i32, %arg1: i32, %arg2: memref<1x2x32x128xf32, #tpu.memory_space<vmem>>, %arg3: memref<1x384x1024xbf16, #tpu.memory_space<vmem>>, %arg4: memref<1x1x1024xf32, #tpu.memory_space<vmem>>, %arg5: memref<1x1536x1024xbf16, #tpu.memory_space<vmem>>, %arg6: memref<1x1x1024xf32, #tpu.memory_space<vmem>>, %arg7: memref<1x2x8x512xbf16, #tpu.memory_space<vmem>>, %arg8: memref<2x34x128xf32, #tpu.memory_space<vmem>>, %arg9: memref<2x18x512xf32, #tpu.memory_space<vmem>>) attributes {dimension_semantics = [#tpu.dimension_semantics<parallel>, #tpu.dimension_semantics<parallel>], iteration_bounds = array<i64: 2, 1>, scalar_prefetch = 0 : i64, scratch_operands = 2 : i64, tpu.core_type = #tpu.core_type<tc>, window_params = [{transform_indices = @transform_0, window_bounds = array<i64: 1, 2, 32, 128>}, {transform_indices = @transform_1, window_bounds = array<i64: 1, 384, 1024>}, {transform_indices = @transform_2, window_bounds = array<i64: 1, 1, 1024>}, {transform_indices = @transform_3, window_bounds = array<i64: 1, 1536, 1024>}, {transform_indices = @transform_4, window_bounds = array<i64: 1, 1, 1024>}, {transform_indices = @transform_5, window_bounds = array<i64: 1, 2, 8, 512>}]} {
    %cst = arith.constant 0.000000e+00 : f32
    %0 = vector.broadcast %cst : f32 to vector<2x1x128xf32>
    %c0 = arith.constant 0 : index
    %c0_0 = arith.constant 0 : index
    %c0_1 = arith.constant 0 : index
    %1 = vector.load %arg8[%c0, %c0_0, %c0_1] : memref<2x34x128xf32, #tpu.memory_space<vmem>>, vector<2x1x128xf32>
    tpu.vector_store %arg8[%c0, %c0_0, %c0_1], %0 {strides = array<i32>} : memref<2x34x128xf32, #tpu.memory_space<vmem>>, vector<2x1x128xf32>,
    %c0_2 = arith.constant 0 : index
    %c33 = arith.constant 33 : index
    %c0_3 = arith.constant 0 : index
    %2 = vector.load %arg8[%c0_2, %c33, %c0_3] : memref<2x34x128xf32, #tpu.memory_space<vmem>>, vector<2x1x128xf32>
    tpu.vector_store %arg8[%c0_2, %c33, %c0_3], %0 {strides = array<i32>} : memref<2x34x128xf32, #tpu.memory_space<vmem>>, vector<2x1x128xf32>,
    %c0_4 = arith.constant 0 : index
    %c0_5 = arith.constant 0 : index
    %c0_6 = arith.constant 0 : index
    %c0_7 = arith.constant 0 : index
    %3 = vector.load %arg2[%c0_4, %c0_5, %c0_6, %c0_7] : memref<1x2x32x128xf32, #tpu.memory_space<vmem>>, vector<1x2x32x128xf32>
    %4 = vector.shape_cast %3 : vector<1x2x32x128xf32> to vector<2x32x128xf32>
    %c0_8 = arith.constant 0 : index
    %c1 = arith.constant 1 : index
    %c0_9 = arith.constant 0 : index
    %5 = vector.load %arg8[%c0_8, %c1, %c0_9] : memref<2x34x128xf32, #tpu.memory_space<vmem>>, vector<2x32x128xf32>
    tpu.vector_store %arg8[%c0_8, %c1, %c0_9], %4 {strides = array<i32>} : memref<2x34x128xf32, #tpu.memory_space<vmem>>, vector<2x32x128xf32>,
    %c0_10 = arith.constant 0 : index
    %c0_11 = arith.constant 0 : index
    %c0_12 = arith.constant 0 : index
    %6 = vector.load %arg8[%c0_10, %c0_11, %c0_12] : memref<2x34x128xf32, #tpu.memory_space<vmem>>, vector<2x32x128xf32>
    %c0_13 = arith.constant 0 : index
    %c1_14 = arith.constant 1 : index
    %c0_15 = arith.constant 0 : index
    %7 = vector.load %arg8[%c0_13, %c1_14, %c0_15] : memref<2x34x128xf32, #tpu.memory_space<vmem>>, vector<2x32x128xf32>
    %c0_16 = arith.constant 0 : index
    %c2 = arith.constant 2 : index
    %c0_17 = arith.constant 0 : index
    %8 = vector.load %arg8[%c0_16, %c2, %c0_17] : memref<2x34x128xf32, #tpu.memory_space<vmem>>, vector<2x32x128xf32>
    %9 = tpu.concatenate %6, %7, %8 in 2 : vector<2x32x128xf32>, vector<2x32x128xf32>, vector<2x32x128xf32> -> vector<2x32x384xf32>
    %10 = vector.shape_cast %9 : vector<2x32x384xf32> to vector<64x384xf32>
    %11 = arith.truncf %10 : vector<64x384xf32> to vector<64x384xbf16>
    %c0_18 = arith.constant 0 : index
    %c0_19 = arith.constant 0 : index
    %c0_20 = arith.constant 0 : index
    %12 = vector.load %arg3[%c0_18, %c0_19, %c0_20] : memref<1x384x1024xbf16, #tpu.memory_space<vmem>>, vector<1x384x1024xbf16>
    %13 = vector.shape_cast %12 : vector<1x384x1024xbf16> to vector<384x1024xbf16>
    %cst_21 = arith.constant dense<0.000000e+00> : vector<64x1024xf32>
    %14 = tpu.matmul %11, %13, %cst_21 {dimension_numbers = #tpu.dot_dimension_numbers<[1], [0], [0], [1], [0, 0, 1, 1], [], []>} : vector<64x384xbf16>, vector<384x1024xbf16>, vector<64x1024xf32> -> vector<64x1024xf32>
    %c0_22 = arith.constant 0 : index
    %c0_23 = arith.constant 0 : index
    %c0_24 = arith.constant 0 : index
    %15 = vector.load %arg4[%c0_22, %c0_23, %c0_24] : memref<1x1x1024xf32, #tpu.memory_space<vmem>>, vector<1x1x1024xf32>
    %16 = vector.shape_cast %15 : vector<1x1x1024xf32> to vector<1x1024xf32>
    %17 = vector.broadcast %16 : vector<1x1024xf32> to vector<64x1024xf32>
    %18 = arith.addf %14, %17 : vector<64x1024xf32>
    %cst_25 = arith.constant 0.000000e+00 : f32
    %19 = vector.broadcast %cst_25 : f32 to vector<64x1024xf32>
    %20 = arith.maximumf %18, %19 : vector<64x1024xf32>
    %21 = vector.shape_cast %20 : vector<64x1024xf32> to vector<2x16x2x1024xf32>
    %22 = vector.extract_strided_slice %21 {offsets = [0, 0, 0, 0], sizes = [2, 16, 1, 1024], strides = [1, 1, 1, 1]} : vector<2x16x2x1024xf32> to vector<2x16x1x1024xf32>
    %23 = vector.shape_cast %22 : vector<2x16x1x1024xf32> to vector<2x16x1024xf32>
    %24 = vector.extract_strided_slice %21 {offsets = [0, 0, 1, 0], sizes = [2, 16, 1, 1024], strides = [1, 1, 1, 1]} : vector<2x16x2x1024xf32> to vector<2x16x1x1024xf32>
    %25 = vector.shape_cast %24 : vector<2x16x1x1024xf32> to vector<2x16x1024xf32>
    %26 = arith.maximumf %23, %25 : vector<2x16x1024xf32>
    %27 = vector.extract_strided_slice %26 {offsets = [0, 0, 0], sizes = [2, 16, 512], strides = [1, 1, 1]} : vector<2x16x1024xf32> to vector<2x16x512xf32>
    %28 = vector.extract_strided_slice %26 {offsets = [0, 0, 512], sizes = [2, 16, 512], strides = [1, 1, 1]} : vector<2x16x1024xf32> to vector<2x16x512xf32>
    %29 = arith.maximumf %27, %28 : vector<2x16x512xf32>
    %cst_26 = arith.constant 0.000000e+00 : f32
    %30 = vector.broadcast %cst_26 : f32 to vector<2x1x512xf32>
    %c0_27 = arith.constant 0 : index
    %c0_28 = arith.constant 0 : index
    %c0_29 = arith.constant 0 : index
    %31 = vector.load %arg9[%c0_27, %c0_28, %c0_29] : memref<2x18x512xf32, #tpu.memory_space<vmem>>, vector<2x1x512xf32>
    tpu.vector_store %arg9[%c0_27, %c0_28, %c0_29], %30 {strides = array<i32>} : memref<2x18x512xf32, #tpu.memory_space<vmem>>, vector<2x1x512xf32>,
    %c0_30 = arith.constant 0 : index
    %c17 = arith.constant 17 : index
    %c0_31 = arith.constant 0 : index
    %32 = vector.load %arg9[%c0_30, %c17, %c0_31] : memref<2x18x512xf32, #tpu.memory_space<vmem>>, vector<2x1x512xf32>
    tpu.vector_store %arg9[%c0_30, %c17, %c0_31], %30 {strides = array<i32>} : memref<2x18x512xf32, #tpu.memory_space<vmem>>, vector<2x1x512xf32>,
    %c0_32 = arith.constant 0 : index
    %c1_33 = arith.constant 1 : index
    %c0_34 = arith.constant 0 : index
    %33 = vector.load %arg9[%c0_32, %c1_33, %c0_34] : memref<2x18x512xf32, #tpu.memory_space<vmem>>, vector<2x16x512xf32>
    tpu.vector_store %arg9[%c0_32, %c1_33, %c0_34], %29 {strides = array<i32>} : memref<2x18x512xf32, #tpu.memory_space<vmem>>, vector<2x16x512xf32>,
    %c0_35 = arith.constant 0 : index
    %c0_36 = arith.constant 0 : index
    %c0_37 = arith.constant 0 : index
    %34 = vector.load %arg9[%c0_35, %c0_36, %c0_37] : memref<2x18x512xf32, #tpu.memory_space<vmem>>, vector<2x16x512xf32>
    %c0_38 = arith.constant 0 : index
    %c1_39 = arith.constant 1 : index
    %c0_40 = arith.constant 0 : index
    %35 = vector.load %arg9[%c0_38, %c1_39, %c0_40] : memref<2x18x512xf32, #tpu.memory_space<vmem>>, vector<2x16x512xf32>
    %c0_41 = arith.constant 0 : index
    %c2_42 = arith.constant 2 : index
    %c0_43 = arith.constant 0 : index
    %36 = vector.load %arg9[%c0_41, %c2_42, %c0_43] : memref<2x18x512xf32, #tpu.memory_space<vmem>>, vector<2x16x512xf32>
    %37 = tpu.concatenate %34, %35, %36 in 2 : vector<2x16x512xf32>, vector<2x16x512xf32>, vector<2x16x512xf32> -> vector<2x16x1536xf32>
    %38 = vector.shape_cast %37 : vector<2x16x1536xf32> to vector<32x1536xf32>
    %39 = arith.truncf %38 : vector<32x1536xf32> to vector<32x1536xbf16>
    %c0_44 = arith.constant 0 : index
    %c0_45 = arith.constant 0 : index
    %c0_46 = arith.constant 0 : index
    %40 = vector.load %arg5[%c0_44, %c0_45, %c0_46] : memref<1x1536x1024xbf16, #tpu.memory_space<vmem>>, vector<1x1536x1024xbf16>
    %41 = vector.shape_cast %40 : vector<1x1536x1024xbf16> to vector<1536x1024xbf16>
    %cst_47 = arith.constant dense<0.000000e+00> : vector<32x1024xf32>
    %42 = tpu.matmul %39, %41, %cst_47 {dimension_numbers = #tpu.dot_dimension_numbers<[1], [0], [0], [1], [0, 0, 1, 1], [], []>} : vector<32x1536xbf16>, vector<1536x1024xbf16>, vector<32x1024xf32> -> vector<32x1024xf32>
    %c0_48 = arith.constant 0 : index
    %c0_49 = arith.constant 0 : index
    %c0_50 = arith.constant 0 : index
    %43 = vector.load %arg6[%c0_48, %c0_49, %c0_50] : memref<1x1x1024xf32, #tpu.memory_space<vmem>>, vector<1x1x1024xf32>
    %44 = vector.shape_cast %43 : vector<1x1x1024xf32> to vector<1x1024xf32>
    %45 = vector.broadcast %44 : vector<1x1024xf32> to vector<32x1024xf32>
    %46 = arith.addf %42, %45 : vector<32x1024xf32>
    %cst_51 = arith.constant 0.000000e+00 : f32
    %47 = vector.broadcast %cst_51 : f32 to vector<32x1024xf32>
    %48 = arith.maximumf %46, %47 : vector<32x1024xf32>
    %49 = vector.shape_cast %48 : vector<32x1024xf32> to vector<2x8x2x1024xf32>
    %50 = vector.extract_strided_slice %49 {offsets = [0, 0, 0, 0], sizes = [2, 8, 1, 1024], strides = [1, 1, 1, 1]} : vector<2x8x2x1024xf32> to vector<2x8x1x1024xf32>
    %51 = vector.shape_cast %50 : vector<2x8x1x1024xf32> to vector<2x8x1024xf32>
    %52 = vector.extract_strided_slice %49 {offsets = [0, 0, 1, 0], sizes = [2, 8, 1, 1024], strides = [1, 1, 1, 1]} : vector<2x8x2x1024xf32> to vector<2x8x1x1024xf32>
    %53 = vector.shape_cast %52 : vector<2x8x1x1024xf32> to vector<2x8x1024xf32>
    %54 = arith.maximumf %51, %53 : vector<2x8x1024xf32>
    %55 = vector.extract_strided_slice %54 {offsets = [0, 0, 0], sizes = [2, 8, 512], strides = [1, 1, 1]} : vector<2x8x1024xf32> to vector<2x8x512xf32>
    %56 = vector.extract_strided_slice %54 {offsets = [0, 0, 512], sizes = [2, 8, 512], strides = [1, 1, 1]} : vector<2x8x1024xf32> to vector<2x8x512xf32>
    %57 = arith.maximumf %55, %56 : vector<2x8x512xf32>
    %58 = arith.truncf %57 : vector<2x8x512xf32> to vector<2x8x512xbf16>
    %c0_52 = arith.constant 0 : index
    %c0_53 = arith.constant 0 : index
    %c0_54 = arith.constant 0 : index
    %c0_55 = arith.constant 0 : index
    %59 = vector.load %arg7[%c0_52, %c0_53, %c0_54, %c0_55] : memref<1x2x8x512xbf16, #tpu.memory_space<vmem>>, vector<1x2x8x512xbf16>
    %60 = vector.shape_cast %59 : vector<1x2x8x512xbf16> to vector<2x8x512xbf16>
    %61 = vector.shape_cast %58 : vector<2x8x512xbf16> to vector<1x2x8x512xbf16>
    tpu.vector_store %arg7[%c0_52, %c0_53, %c0_54, %c0_55], %61 {strides = array<i32>} : memref<1x2x8x512xbf16, #tpu.memory_space<vmem>>, vector<1x2x8x512xbf16>,
    return
  }
  func.func @transform_0(%arg0: i32, %arg1: i32) -> (i32, i32, i32, i32) {
    %c0_i32 = arith.constant 0 : i32
    %c0_i32_0 = arith.constant 0 : i32
    %c0_i32_1 = arith.constant 0 : i32
    return %arg0, %arg1, %c0_i32, %c0_i32_0 : i32, i32, i32, i32
  }
  func.func @transform_1(%arg0: i32, %arg1: i32) -> (i32, i32, i32) {
    %c0_i32 = arith.constant 0 : i32
    %c0_i32_0 = arith.constant 0 : i32
    %c0_i32_1 = arith.constant 0 : i32
    return %arg0, %c0_i32, %c0_i32_0 : i32, i32, i32
  }
  func.func @transform_2(%arg0: i32, %arg1: i32) -> (i32, i32, i32) {
    %c0_i32 = arith.constant 0 : i32
    %c0_i32_0 = arith.constant 0 : i32
    %c0_i32_1 = arith.constant 0 : i32
    return %arg0, %c0_i32, %c0_i32_0 : i32, i32, i32
  }
  func.func @transform_3(%arg0: i32, %arg1: i32) -> (i32, i32, i32) {
    %c0_i32 = arith.constant 0 : i32
    %c0_i32_0 = arith.constant 0 : i32
    %c0_i32_1 = arith.constant 0 : i32
    return %arg0, %c0_i32, %c0_i32_0 : i32, i32, i32
  }
  func.func @transform_4(%arg0: i32, %arg1: i32) -> (i32, i32, i32) {
    %c0_i32 = arith.constant 0 : i32
    %c0_i32_0 = arith.constant 0 : i32
    %c0_i32_1 = arith.constant 0 : i32
    return %arg0, %c0_i32, %c0_i32_0 : i32, i32, i32
  }
  func.func @transform_5(%arg0: i32, %arg1: i32) -> (i32, i32, i32, i32) {
    %c0_i32 = arith.constant 0 : i32
    %c0_i32_0 = arith.constant 0 : i32
    %c0_i32_1 = arith.constant 0 : i32
    return %arg0, %arg1, %c0_i32, %c0_i32_0 : i32, i32, i32, i32
  }
}

module attributes {stable_mosaic.version = 11 : i64} {
  func.func @fusion_head_kernel(%arg0: i32, %arg1: memref<1x2x4096xbf16, #tpu.memory_space<vmem>>, %arg2: memref<1x4096x256xbf16, #tpu.memory_space<vmem>>, %arg3: memref<1x256xf32, #tpu.memory_space<vmem>>, %arg4: memref<256x10xbf16, #tpu.memory_space<vmem>>, %arg5: memref<1x10xf32, #tpu.memory_space<vmem>>, %arg6: memref<2x10xf32, #tpu.memory_space<vmem>>, %arg7: memref<2x256xf32, #tpu.memory_space<vmem>>) attributes {dimension_semantics = [#tpu.dimension_semantics<arbitrary>], iteration_bounds = array<i64: 2>, scalar_prefetch = 0 : i64, scratch_operands = 1 : i64, tpu.core_type = #tpu.core_type<tc>, window_params = [{transform_indices = @transform_0, window_bounds = array<i64: 1, 2, 4096>}, {transform_indices = @transform_1, window_bounds = array<i64: 1, 4096, 256>}, {pipeline_mode = #tpu.pipeline_mode<synchronous>, transform_indices = @transform_2, window_bounds = array<i64: 1, 256>}, {pipeline_mode = #tpu.pipeline_mode<synchronous>, transform_indices = @transform_3, window_bounds = array<i64: 256, 10>}, {pipeline_mode = #tpu.pipeline_mode<synchronous>, transform_indices = @transform_4, window_bounds = array<i64: 1, 10>}, {pipeline_mode = #tpu.pipeline_mode<synchronous>, transform_indices = @transform_5, window_bounds = array<i64: 2, 10>}]} {
    %c0_i32 = arith.constant 0 : i32
    %0 = arith.cmpi eq, %arg0, %c0_i32 : i32
    %1 = arith.extui %0 : i1 to i32
    %c0_i32_0 = arith.constant 0 : i32
    %2 = arith.cmpi ne, %1, %c0_i32_0 : i32
    scf.if %2 {
      %cst_11 = arith.constant 0.000000e+00 : f32
      %14 = vector.broadcast %cst_11 : f32 to vector<2x256xf32>
      %c0_12 = arith.constant 0 : index
      %c0_13 = arith.constant 0 : index
      %15 = vector.load %arg7[%c0_12, %c0_13] : memref<2x256xf32, #tpu.memory_space<vmem>>, vector<2x256xf32>
      tpu.vector_store %arg7[%c0_12, %c0_13], %14 {strides = array<i32>} : memref<2x256xf32, #tpu.memory_space<vmem>>, vector<2x256xf32>,
    } else {
    }
    %c0 = arith.constant 0 : index
    %c0_1 = arith.constant 0 : index
    %3 = vector.load %arg7[%c0, %c0_1] : memref<2x256xf32, #tpu.memory_space<vmem>>, vector<2x256xf32>
    %c0_2 = arith.constant 0 : index
    %c0_3 = arith.constant 0 : index
    %c0_4 = arith.constant 0 : index
    %4 = vector.load %arg1[%c0_2, %c0_3, %c0_4] : memref<1x2x4096xbf16, #tpu.memory_space<vmem>>, vector<1x2x4096xbf16>
    %5 = vector.shape_cast %4 : vector<1x2x4096xbf16> to vector<2x4096xbf16>
    %c0_5 = arith.constant 0 : index
    %c0_6 = arith.constant 0 : index
    %c0_7 = arith.constant 0 : index
    %6 = vector.load %arg2[%c0_5, %c0_6, %c0_7] : memref<1x4096x256xbf16, #tpu.memory_space<vmem>>, vector<1x4096x256xbf16>
    %7 = vector.shape_cast %6 : vector<1x4096x256xbf16> to vector<4096x256xbf16>
    %cst = arith.constant dense<0.000000e+00> : vector<2x256xf32>
    %8 = tpu.matmul %5, %7, %cst {dimension_numbers = #tpu.dot_dimension_numbers<[1], [0], [0], [1], [0, 0, 1, 1], [], []>} : vector<2x4096xbf16>, vector<4096x256xbf16>, vector<2x256xf32> -> vector<2x256xf32>
    %9 = arith.addf %3, %8 : vector<2x256xf32>
    %c0_8 = arith.constant 0 : index
    %c0_9 = arith.constant 0 : index
    %10 = vector.load %arg7[%c0_8, %c0_9] : memref<2x256xf32, #tpu.memory_space<vmem>>, vector<2x256xf32>
    tpu.vector_store %arg7[%c0_8, %c0_9], %9 {strides = array<i32>} : memref<2x256xf32, #tpu.memory_space<vmem>>, vector<2x256xf32>,
    %c1_i32 = arith.constant 1 : i32
    %11 = arith.cmpi eq, %arg0, %c1_i32 : i32
    %12 = arith.extui %11 : i1 to i32
    %c0_i32_10 = arith.constant 0 : i32
    %13 = arith.cmpi ne, %12, %c0_i32_10 : i32
    scf.if %13 {
      %c0_11 = arith.constant 0 : index
      %c0_12 = arith.constant 0 : index
      %14 = vector.load %arg7[%c0_11, %c0_12] : memref<2x256xf32, #tpu.memory_space<vmem>>, vector<2x256xf32>
      %c0_13 = arith.constant 0 : index
      %c0_14 = arith.constant 0 : index
      %15 = vector.load %arg3[%c0_13, %c0_14] : memref<1x256xf32, #tpu.memory_space<vmem>>, vector<1x256xf32>
      %16 = vector.broadcast %15 : vector<1x256xf32> to vector<2x256xf32>
      %17 = arith.addf %14, %16 : vector<2x256xf32>
      %cst_15 = arith.constant 0.000000e+00 : f32
      %18 = vector.broadcast %cst_15 : f32 to vector<2x256xf32>
      %19 = arith.maximumf %17, %18 : vector<2x256xf32>
      %20 = arith.truncf %19 : vector<2x256xf32> to vector<2x256xbf16>
      %c0_16 = arith.constant 0 : index
      %c0_17 = arith.constant 0 : index
      %21 = vector.load %arg4[%c0_16, %c0_17] : memref<256x10xbf16, #tpu.memory_space<vmem>>, vector<256x10xbf16>
      %cst_18 = arith.constant dense<0.000000e+00> : vector<2x10xf32>
      %22 = tpu.matmul %20, %21, %cst_18 {dimension_numbers = #tpu.dot_dimension_numbers<[1], [0], [0], [1], [0, 0, 1, 1], [], []>} : vector<2x256xbf16>, vector<256x10xbf16>, vector<2x10xf32> -> vector<2x10xf32>
      %c0_19 = arith.constant 0 : index
      %c0_20 = arith.constant 0 : index
      %23 = vector.load %arg5[%c0_19, %c0_20] : memref<1x10xf32, #tpu.memory_space<vmem>>, vector<1x10xf32>
      %24 = vector.broadcast %23 : vector<1x10xf32> to vector<2x10xf32>
      %25 = arith.addf %22, %24 : vector<2x10xf32>
      %c0_21 = arith.constant 0 : index
      %c0_22 = arith.constant 0 : index
      %26 = vector.load %arg6[%c0_21, %c0_22] : memref<2x10xf32, #tpu.memory_space<vmem>>, vector<2x10xf32>
      tpu.vector_store %arg6[%c0_21, %c0_22], %25 {strides = array<i32>} : memref<2x10xf32, #tpu.memory_space<vmem>>, vector<2x10xf32>,
    } else {
    }
    return
  }
  func.func @transform_0(%arg0: i32) -> (i32, i32, i32) {
    %c0_i32 = arith.constant 0 : i32
    %c0_i32_0 = arith.constant 0 : i32
    %c0_i32_1 = arith.constant 0 : i32
    return %arg0, %c0_i32, %c0_i32_0 : i32, i32, i32
  }
  func.func @transform_1(%arg0: i32) -> (i32, i32, i32) {
    %c0_i32 = arith.constant 0 : i32
    %c0_i32_0 = arith.constant 0 : i32
    %c0_i32_1 = arith.constant 0 : i32
    return %arg0, %c0_i32, %c0_i32_0 : i32, i32, i32
  }
  func.func @transform_2(%arg0: i32) -> (i32, i32) {
    %c0_i32 = arith.constant 0 : i32
    %c0_i32_0 = arith.constant 0 : i32
    %c0_i32_1 = arith.constant 0 : i32
    return %c0_i32, %c0_i32_0 : i32, i32
  }
  func.func @transform_3(%arg0: i32) -> (i32, i32) {
    %c0_i32 = arith.constant 0 : i32
    %c0_i32_0 = arith.constant 0 : i32
    %c0_i32_1 = arith.constant 0 : i32
    return %c0_i32, %c0_i32_0 : i32, i32
  }
  func.func @transform_4(%arg0: i32) -> (i32, i32) {
    %c0_i32 = arith.constant 0 : i32
    %c0_i32_0 = arith.constant 0 : i32
    %c0_i32_1 = arith.constant 0 : i32
    return %c0_i32, %c0_i32_0 : i32, i32
  }
  func.func @transform_5(%arg0: i32) -> (i32, i32) {
    %c0_i32 = arith.constant 0 : i32
    %c0_i32_0 = arith.constant 0 : i32
    %c0_i32_1 = arith.constant 0 : i32
    return %c0_i32, %c0_i32_0 : i32, i32
  }
}

</mosaic_0001>

<bundles_post_ra>
// kernel: multimodal_classifier_forward.3
= control target key start
LH: loop header
LB: loop body
LE: loop exit
PB: predicated region body
PF: predicated region fallthrough
CT: control target
= control target key end

     0   :  { %10 = vsyncpa [#allocation4], 0  ;;  %s5987_s18 = smov 0   ;;  %s6759_s0 = inlined_call_operand.vmem [shape: bf16[2,2,4096], index: 0, kind: input, shape index: {}]   ;;  %s6760_s1 = inlined_call_operand.vmem [shape: bf16[2,4096,256], index: 1, kind: input, shape index: {}]   ;;  %s6761_s2 = inlined_call_operand.vmem [shape: f32[1,256], index: 2, kind: input, shape index: {}]   ;;  %s6762_s3 = inlined_call_operand.vmem [shape: bf16[256,10], index: 3, kind: input, shape index: {}]   ;;  %s6763_s4 = inlined_call_operand.vmem [shape: f32[1,10], index: 4, kind: input, shape index: {}]   ;;  %s6764_s5 = inlined_call_operand.hbm [shape: f32[2,10], index: 5, kind: output, shape index: {}]  }
   0x1 LB: > { %s5993_s19 = sadd.s32 4294967295, %s5951_s18   ;;  %p4489_p0 = scmp.ge.s32.totalorder %s5951_s18, 1  ;;  %s5951_s18 = sphi %s5987_s18, %s16_s18  }
   0x2   : > { %p192_p1 = scmp.lt.s32.totalorder %s5951_s18, 3 }
   0x4   : > { %p193_p2 = pnand %p4489_p0, %p192_p1 }
   0x5   : > { %p219_p3 = scmp.lt.s32.totalorder (!%p193_p2), %s5993_s19, 1  ;;  %p4493_p4 = scmp.ne.s32.totalorder (!%p193_p2), %s5993_s19, 0 }
   0x6   : > { %196 = sbr.rel (%p193_p2) target bundleno = 1018 (0x3fa), region = 40 }
   0xd   : > { %s220_s20 = scalar_select %p219_p3, %s5993_s19, 1 }
   0xe   : > { %232 = sbr.rel (%p4493_p4) target bundleno = 21 (0x15), region = 44  ;;  %v5953_v0 = vmov (!%p4493_p4), 0.0  }
   0xf   : > { %s4490_s21 = sshll.u32 %s220_s20, 5  ;;  %s5028_s22 = sshll.u32 %s220_s20, 12  ;;  %233 = vst [vmem:[#allocation2] sm:$0xf] (!%p4493_p4), %v5953_v0 }
  0x10   : > { %s6002_s25 = scalar_lea.vmem %s6759_s0, %s4490_s21  ;;  %s6007_s28 = scalar_lea.vmem %s6760_s1, %s5028_s22 }
  0x15 PF: > { %v5127_v1 = vld [vmem:[%s6007_s28 + $0x4] ss:$8 sps:$4 sm:$0xff]   ;;  %v5131_v3 = vld [vmem:[%s6007_s28] ss:$8 sps:$4 sm:$0xff]   ;;  %v5133_v5 = vld [vmem:[%s6007_s28 + $0x14] ss:$8 sps:$4 sm:$0xff]   ;;  %v759_v39 = vlaneseq }
  0x16   : > { %v5129_v2 = vld [vmem:[%s6007_s28 + $0x804] ss:$8 sps:$4 sm:$0xff]   ;;  %3543 = vmatprep.subr.bf16.mxu1 %v5127_v1  ;;  %v5132_v4 = vld [vmem:[%s6007_s28 + $0x800] ss:$8 sps:$4 sm:$0xff]   ;;  %v5135_v6 = vld [vmem:[%s6007_s28 + $0x814] ss:$8 sps:$4 sm:$0xff]  }
  0x17   : > { %3871 = vmatprep.subr.bf16.mxu0 %v5129_v2  ;;  %3544 = vmatpush1.bf16.msra.mxu1 %v5131_v3  ;;  %v5137_v7 = vld [vmem:[%s6007_s28 + $0x10] ss:$8 sps:$4 sm:$0xff]   ;;  %v5139_v9 = vld [vmem:[%s6007_s28 + $0x24] ss:$8 sps:$4 sm:$0xff]   ;;  %v5143_v11 = vld [vmem:[%s6007_s28 + $0x20] ss:$8 sps:$4 sm:$0xff]  }
  0x18   : > { %3872 = vmatpush1.bf16.msra.mxu0 %v5132_v4  ;;  %3545 = vmatprep.subr.bf16.mxu1 %v5133_v5  ;;  %v5138_v8 = vld [vmem:[%s6007_s28 + $0x810] ss:$8 sps:$4 sm:$0xff]   ;;  %v5141_v10 = vld [vmem:[%s6007_s28 + $0x824] ss:$8 sps:$4 sm:$0xff]   ;;  %v5144_v12 = vld [vmem:[%s6007_s28 + $0x820] ss:$8 sps:$4 sm:$0xff]  }
  0x19   : > { %3873 = vmatprep.subr.bf16.mxu0 %v5135_v6  ;;  %v5145_v13 = vld [vmem:[%s6007_s28 + $0x34] ss:$8 sps:$4 sm:$0xff]   ;;  %v5149_v15 = vld [vmem:[%s6007_s28 + $0x30] ss:$8 sps:$4 sm:$0xff]   ;;  %v5151_v17 = vld [vmem:[%s6007_s28 + $0x44] ss:$8 sps:$4 sm:$0xff]  }
  0x1a   : > { %v5147_v14 = vld [vmem:[%s6007_s28 + $0x834] ss:$8 sps:$4 sm:$0xff]   ;;  %v5150_v16 = vld [vmem:[%s6007_s28 + $0x830] ss:$8 sps:$4 sm:$0xff]   ;;  %v5153_v18 = vld [vmem:[%s6007_s28 + $0x844] ss:$8 sps:$4 sm:$0xff]  }
  0x1b   : > { %3546 = vmatpush1.bf16.msra.mxu1 %v5137_v7  ;;  %v5155_v19 = vld [vmem:[%s6007_s28 + $0x40] ss:$8 sps:$4 sm:$0xff]   ;;  %v5157_v21 = vld [vmem:[%s6007_s28 + $0x54] ss:$8 sps:$4 sm:$0xff]   ;;  %v5161_v23 = vld [vmem:[%s6007_s28 + $0x50] ss:$8 sps:$4 sm:$0xff]  }
  0x1c   : > { %3874 = vmatpush1.bf16.msra.mxu0 %v5138_v8  ;;  %3547 = vmatprep.subr.bf16.mxu1 %v5139_v9  ;;  %v5156_v20 = vld [vmem:[%s6007_s28 + $0x840] ss:$8 sps:$4 sm:$0xff]   ;;  %v5159_v22 = vld [vmem:[%s6007_s28 + $0x854] ss:$8 sps:$4 sm:$0xff]   ;;  %v5162_v24 = vld [vmem:[%s6007_s28 + $0x850] ss:$8 sps:$4 sm:$0xff]  }
  0x1d   : > { %3875 = vmatprep.subr.bf16.mxu0 %v5141_v10  ;;  %v5163_v25 = vld [vmem:[%s6007_s28 + $0x64] ss:$8 sps:$4 sm:$0xff]   ;;  %v5167_v27 = vld [vmem:[%s6007_s28 + $0x60] ss:$8 sps:$4 sm:$0xff]   ;;  %v5169_v29 = vld [vmem:[%s6007_s28 + $0x74] ss:$8 sps:$4 sm:$0xff]  }
  0x1e   : > { %v5165_v26 = vld [vmem:[%s6007_s28 + $0x864] ss:$8 sps:$4 sm:$0xff]   ;;  %v5168_v28 = vld [vmem:[%s6007_s28 + $0x860] ss:$8 sps:$4 sm:$0xff]   ;;  %v5171_v30 = vld [vmem:[%s6007_s28 + $0x874] ss:$8 sps:$4 sm:$0xff]  }
  0x1f   : > { %3548 = vmatpush1.bf16.msra.mxu1 %v5143_v11  ;;  %v5173_v31 = vld [vmem:[%s6007_s28 + $0x70] ss:$8 sps:$4 sm:$0xff]   ;;  %v5175_v33 = vld [vmem:[%s6007_s28 + $0x84] ss:$8 sps:$4 sm:$0xff]   ;;  %v5179_v35 = vld [vmem:[%s6007_s28 + $0x80] ss:$8 sps:$4 sm:$0xff]  }
  0x20   : > { %3876 = vmatpush1.bf16.msra.mxu0 %v5144_v12  ;;  %3549 = vmatprep.subr.bf16.mxu1 %v5145_v13  ;;  %v5174_v32 = vld [vmem:[%s6007_s28 + $0x870] ss:$8 sps:$4 sm:$0xff]   ;;  %v5177_v34 = vld [vmem:[%s6007_s28 + $0x884] ss:$8 sps:$4 sm:$0xff]   ;;  %v5180_v36 = vld [vmem:[%s6007_s28 + $0x880] ss:$8 sps:$4 sm:$0xff]  }
  0x21   : > { %3877 = vmatprep.subr.bf16.mxu0 %v5147_v14  ;;  %v5954_v37 = vmov 1966171168   ;;  %v5181_v40 = vld [vmem:[%s6007_s28 + $0x94] ss:$8 sps:$4 sm:$0xff]   ;;  %v5185_v42 = vld [vmem:[%s6007_s28 + $0x90] ss:$8 sps:$4 sm:$0xff]  }
  0x22   : > { %v757_v38 = vunpack.c.l.s4 %v5954_v37  ;;  %v5183_v41 = vld [vmem:[%s6007_s28 + $0x894] ss:$8 sps:$4 sm:$0xff]   ;;  %v6049_v44 = vshrl.u32 %v759_v39, 7  ;;  %v5186_v45 = vld [vmem:[%s6007_s28 + $0x890] ss:$8 sps:$4 sm:$0xff]   ;;  %v6062_v53 = vld [vmem:[%s6002_s25] sm:$0xff] }
  0x23   : > { %3550 = vmatpush1.bf16.msra.mxu1 %v5149_v15  ;;  %v5187_v46 = vld [vmem:[%s6007_s28 + $0xa4] ss:$8 sps:$4 sm:$0xff]   ;;  %v5191_v48 = vld [vmem:[%s6007_s28 + $0xa0] ss:$8 sps:$4 sm:$0xff]   ;;  %v5193_v51 = vld [vmem:[%s6007_s28 + $0xb4] ss:$8 sps:$4 sm:$0xff]  }
  0x24   : > { %3878 = vmatpush1.bf16.msra.mxu0 %v5150_v16  ;;  %3551 = vmatprep.subr.bf16.mxu1 %v5151_v17  ;;  %v758_v43 = vunpack.c.0.s8 %v757_v38  ;;  %v5189_v47 = vld [vmem:[%s6007_s28 + $0x8a4] ss:$8 sps:$4 sm:$0xff]   ;;  %v5192_v49 = vld [vmem:[%s6007_s28 + $0x8a0] ss:$8 sps:$4 sm:$0xff]   ;;  %v5195_v52 = vld [vmem:[%s6007_s28 + $0x8b4] ss:$8 sps:$4 sm:$0xff]  }
  0x25   : > { %3879 = vmatprep.subr.bf16.mxu0 %v5153_v18  ;;  %v5197_v54 = vld [vmem:[%s6007_s28 + $0xb0] ss:$8 sps:$4 sm:$0xff]   ;;  %v5199_v58 = vld [vmem:[%s6007_s28 + $0xc4] ss:$8 sps:$4 sm:$0xff]   ;;  %v5203_v0 = vld [vmem:[%s6007_s28 + $0xc0] ss:$8 sps:$4 sm:$0xff]  }
  0x26   : > { %v6057_v50 = vsub.s32 %v758_v43, %v6049_v44  ;;  %v5198_v56 = vld [vmem:[%s6007_s28 + $0x8b0] ss:$8 sps:$4 sm:$0xff]   ;;  %v5201_v59 = vld [vmem:[%s6007_s28 + $0x8c4] ss:$8 sps:$4 sm:$0xff]   ;;  %v5204_v1 = vld [vmem:[%s6007_s28 + $0x8c0] ss:$8 sps:$4 sm:$0xff]  }
  0x27   : > { %3552 = vmatpush1.bf16.msra.mxu1 %v5155_v19  ;;  %v6069_v57 = vld [vmem:[%s6002_s25 + $0x10] sm:$0xff]  ;;  %v5211_v7 = vld [vmem:[%s6007_s28 + $0xe4] ss:$8 sps:$4 sm:$0xff]   ;;  %v5215_v9 = vld [vmem:[%s6007_s28 + $0xe0] ss:$8 sps:$4 sm:$0xff]   ;;  %p5006_p5 = scmp.ne.s32.totalorder %s5993_s19, 1 }
  0x28   : > { %3880 = vmatpush1.bf16.msra.mxu0 %v5156_v20  ;;  %3553 = vmatprep.subr.bf16.mxu1 %v5157_v21  ;;  %v762_v55 = vrot.slane %v6062_v53, %v6057_v50  ;;  %v860_v61 = vrot.slane %v6069_v57, %v6057_v50  ;;  %v5205_v2 = vld [vmem:[%s6007_s28 + $0xd4] ss:$8 sps:$4 sm:$0xff]   ;;  %v5209_v5 = vld [vmem:[%s6007_s28 + $0xd0] ss:$8 sps:$4 sm:$0xff]   ;;  %v5213_v8 = vld [vmem:[%s6007_s28 + $0x8e4] ss:$8 sps:$4 sm:$0xff]  }
  0x29   : > { %3881 = vmatprep.subr.bf16.mxu0 %v5159_v22  ;;  %v5207_v3 = vld [vmem:[%s6007_s28 + $0x8d4] ss:$8 sps:$4 sm:$0xff]   ;;  %v5210_v6 = vld [vmem:[%s6007_s28 + $0x8d0] ss:$8 sps:$4 sm:$0xff]   ;;  %v5216_v10 = vld [vmem:[%s6007_s28 + $0x8e0] ss:$8 sps:$4 sm:$0xff]  }
  0x2a   : > { %v770_v60 = vcombine.high %v762_v55, %v762_v55  ;;  %v868_v63 = vcombine.high %v860_v61, %v860_v61  ;;  %v5217_v11 = vld [vmem:[%s6007_s28 + $0xf4] ss:$8 sps:$4 sm:$0xff]   ;;  %v5221_v13 = vld [vmem:[%s6007_s28 + $0xf0] ss:$8 sps:$4 sm:$0xff]   ;;  %v5226_v15 = vld [vmem:[%s6007_s28 + $0x104] ss:$8 sps:$4 sm:$0xff]   ;;  %v6094_v17 = vrot.slane %v762_v55, %v6057_v50  ;;  %v6097_v18 = vrot.slane %v860_v61, %v6057_v50 }
  0x2b   : > { %3554 = vmatpush1.bf16.msra.mxu1 %v5161_v23  ;;  %v5219_v12 = vld [vmem:[%s6007_s28 + $0x8f4] ss:$8 sps:$4 sm:$0xff]   ;;  %v5222_v14 = vld [vmem:[%s6007_s28 + $0x8f0] ss:$8 sps:$4 sm:$0xff]   ;;  %v5230_v16 = vld [vmem:[%s6007_s28 + $0x904] ss:$8 sps:$4 sm:$0xff]  }
  0x2c   : > { %3882 = vmatpush1.bf16.msra.mxu0 %v5162_v24  ;;  %3555 = vmatprep.subr.bf16.mxu1 %v5163_v25  ;;  %v792_v62 = vrot.slane %v770_v60, %v6057_v50  ;;  %v890_v4 = vrot.slane %v868_v63, %v6057_v50  ;;  %v5224_v19 = vld [vmem:[%s6007_s28 + $0x100] ss:$8 sps:$4 sm:$0xff]   ;;  %v5233_v21 = vld [vmem:[%s6007_s28 + $0x114] ss:$8 sps:$4 sm:$0xff]   ;;  %v5231_v25 = vld [vmem:[%s6007_s28 + $0x110] ss:$8 sps:$4 sm:$0xff]  }
  0x2d   : > { %3883 = vmatprep.subr.bf16.mxu0 %v5165_v26  ;;  %v5228_v20 = vld [vmem:[%s6007_s28 + $0x900] ss:$8 sps:$4 sm:$0xff]   ;;  %v5236_v22 = vld [vmem:[%s6007_s28 + $0x914] ss:$8 sps:$4 sm:$0xff]   ;;  %v5234_v26 = vld [vmem:[%s6007_s28 + $0x910] ss:$8 sps:$4 sm:$0xff]  }
  0x2e   : > { %3575 = vmatprep.mubr.bf16.mxu1 %v792_v62  ;;  %3903 = vmatprep.mubr.bf16.mxu0 %v890_v4  ;;  %v802_v23 = vcombine.high %v792_v62, %v792_v62  ;;  %v900_v24 = vcombine.high %v890_v4, %v890_v4  ;;  %v5249_v37 = vld [vmem:[%s6007_s28 + $0x140] ss:$8 sps:$4 sm:$0xff]   ;;  %v5257_v39 = vld [vmem:[%s6007_s28 + $0x154] ss:$8 sps:$4 sm:$0xff]   ;;  %v5263_v43 = vld [vmem:[%s6007_s28 + $0x164] ss:$8 sps:$4 sm:$0xff]  }
  0x2f   : > { %3556 = vmatpush1.bf16.msra.mxu1 %v5167_v27  ;;  %v5239_v27 = vld [vmem:[%s6007_s28 + $0x124] ss:$8 sps:$4 sm:$0xff]   ;;  %v5252_v38 = vld [vmem:[%s6007_s28 + $0x940] ss:$8 sps:$4 sm:$0xff]   ;;  %v5284_v60 = vld [vmem:[%s6007_s28 + $0x994] ss:$8 sps:$4 sm:$0xff]  }
  0x30   : > { %3884 = vmatpush1.bf16.msra.mxu0 %v5168_v28  ;;  %3557 = vmatprep.subr.bf16.mxu1 %v5169_v29  ;;  %v5242_v28 = vld [vmem:[%s6007_s28 + $0x924] ss:$8 sps:$4 sm:$0xff]   ;;  %v5237_v29 = vld [vmem:[%s6007_s28 + $0x120] ss:$8 sps:$4 sm:$0xff]   ;;  %v5279_v61 = vld [vmem:[%s6007_s28 + $0x190] ss:$8 sps:$4 sm:$0xff]  }
  0x31   : > { %3885 = vmatprep.subr.bf16.mxu0 %v5171_v30  ;;  %v5240_v30 = vld [vmem:[%s6007_s28 + $0x920] ss:$8 sps:$4 sm:$0xff]   ;;  %v5278_v55 = vld [vmem:[%s6007_s28 + $0x984] ss:$8 sps:$4 sm:$0xff]   ;;  %v5282_v62 = vld [vmem:[%s6007_s28 + $0x990] ss:$8 sps:$4 sm:$0xff]  }
  0x32   : > { %v5287_v63 = vld [vmem:[%s6007_s28 + $0x1a4] ss:$8 sps:$4 sm:$0xff]   ;;  %v5296_v4 = vld [vmem:[%s6007_s28 + $0x9b4] ss:$8 sps:$4 sm:$0xff]   ;;  %vm4426_vm0 = vcmask (!%p5006_p5), 74752  }
  0x33   : > { %3558 = vmatpush1.bf16.msra.mxu1 %v5173_v31  ;;  %v5245_v31 = vld [vmem:[%s6007_s28 + $0x134] ss:$8 sps:$4 sm:$0xff]  }
  0x34   : > { %3886 = vmatpush1.bf16.msra.mxu0 %v5174_v32  ;;  %3559 = vmatprep.subr.bf16.mxu1 %v5175_v33  ;;  %v5248_v32 = vld [vmem:[%s6007_s28 + $0x934] ss:$8 sps:$4 sm:$0xff]   ;;  %v5243_v33 = vld [vmem:[%s6007_s28 + $0x130] ss:$8 sps:$4 sm:$0xff]  }
  0x35   : > { %3887 = vmatprep.subr.bf16.mxu0 %v5177_v34  ;;  %v5246_v34 = vld [vmem:[%s6007_s28 + $0x930] ss:$8 sps:$4 sm:$0xff]  }
  0x37   : > { %3560 = vmatpush1.bf16.msra.mxu1 %v5179_v35  ;;  %v5251_v35 = vld [vmem:[%s6007_s28 + $0x144] ss:$8 sps:$4 sm:$0xff]  }
  0x38   : > { %3888 = vmatpush1.bf16.msra.mxu0 %v5180_v36  ;;  %3561 = vmatprep.subr.bf16.mxu1 %v5181_v40  ;;  %v5254_v36 = vld [vmem:[%s6007_s28 + $0x944] ss:$8 sps:$4 sm:$0xff]   ;;  %v5260_v40 = vld [vmem:[%s6007_s28 + $0x954] ss:$8 sps:$4 sm:$0xff]  }
  0x39   : > { %3889 = vmatprep.subr.bf16.mxu0 %v5183_v41  ;;  %v5255_v41 = vld [vmem:[%s6007_s28 + $0x150] ss:$8 sps:$4 sm:$0xff]  }
  0x3b   : > { %3562 = vmatpush1.bf16.msra.mxu1 %v5185_v42  ;;  %v5258_v42 = vld [vmem:[%s6007_s28 + $0x950] ss:$8 sps:$4 sm:$0xff]  }
  0x3c   : > { %3890 = vmatpush1.bf16.msra.mxu0 %v5186_v45  ;;  %3563 = vmatprep.subr.bf16.mxu1 %v5187_v46  ;;  %v5266_v45 = vld [vmem:[%s6007_s28 + $0x964] ss:$8 sps:$4 sm:$0xff]   ;;  %v5261_v46 = vld [vmem:[%s6007_s28 + $0x160] ss:$8 sps:$4 sm:$0xff]  }
  0x3d   : > { %3891 = vmatprep.subr.bf16.mxu0 %v5189_v47  ;;  %v5264_v47 = vld [vmem:[%s6007_s28 + $0x960] ss:$8 sps:$4 sm:$0xff]  }
  0x3f   : > { %3564 = vmatpush1.bf16.msra.mxu1 %v5191_v48  ;;  %v5269_v48 = vld [vmem:[%s6007_s28 + $0x174] ss:$8 sps:$4 sm:$0xff]  }
  0x40   : > { %3892 = vmatpush1.bf16.msra.mxu0 %v5192_v49  ;;  %3565 = vmatprep.subr.bf16.mxu1 %v5193_v51  ;;  %v5272_v49 = vld [vmem:[%s6007_s28 + $0x974] ss:$8 sps:$4 sm:$0xff]   ;;  %v5267_v51 = vld [vmem:[%s6007_s28 + $0x170] ss:$8 sps:$4 sm:$0xff]  }
  0x41   : > { %3893 = vmatprep.subr.bf16.mxu0 %v5195_v52  ;;  %v5270_v52 = vld [vmem:[%s6007_s28 + $0x970] ss:$8 sps:$4 sm:$0xff]  }
  0x43   : > { %3566 = vmatpush1.bf16.msra.mxu1 %v5197_v54  ;;  %v5275_v54 = vld [vmem:[%s6007_s28 + $0x184] ss:$8 sps:$4 sm:$0xff]  }
  0x44   : > { %3894 = vmatpush1.bf16.msra.mxu0 %v5198_v56  ;;  %3567 = vmatprep.subr.bf16.mxu1 %v5199_v58  ;;  %v5273_v56 = vld [vmem:[%s6007_s28 + $0x180] ss:$8 sps:$4 sm:$0xff]  }
  0x45   : > { %3895 = vmatprep.subr.bf16.mxu0 %v5201_v59  ;;  %v5276_v58 = vld [vmem:[%s6007_s28 + $0x980] ss:$8 sps:$4 sm:$0xff]   ;;  %v5281_v59 = vld [vmem:[%s6007_s28 + $0x194] ss:$8 sps:$4 sm:$0xff]  }
  0x47   : > { %3568 = vmatpush1.bf16.msra.mxu1 %v5203_v0  ;;  %v5290_v0 = vld [vmem:[%s6007_s28 + $0x9a4] ss:$8 sps:$4 sm:$0xff]  }
  0x48   : > { %3896 = vmatpush1.bf16.msra.mxu0 %v5204_v1  ;;  %3569 = vmatprep.subr.bf16.mxu1 %v5205_v2  ;;  %v5285_v1 = vld [vmem:[%s6007_s28 + $0x1a0] ss:$8 sps:$4 sm:$0xff]  }
  0x49   : > { %3897 = vmatprep.subr.bf16.mxu0 %v5207_v3  ;;  %v5288_v2 = vld [vmem:[%s6007_s28 + $0x9a0] ss:$8 sps:$4 sm:$0xff]   ;;  %v5293_v3 = vld [vmem:[%s6007_s28 + $0x1b4] ss:$8 sps:$4 sm:$0xff]  }
  0x4b   : > { %3570 = vmatpush1.bf16.msra.mxu1 %v5209_v5  ;;  %v5291_v5 = vld [vmem:[%s6007_s28 + $0x1b0] ss:$8 sps:$4 sm:$0xff]  }
  0x4c   : > { %3898 = vmatpush1.bf16.msra.mxu0 %v5210_v6  ;;  %3571 = vmatprep.subr.bf16.mxu1 %v5211_v7  ;;  %v5294_v6 = vld [vmem:[%s6007_s28 + $0x9b0] ss:$8 sps:$4 sm:$0xff]   ;;  %v5299_v7 = vld [vmem:[%s6007_s28 + $0x1c4] ss:$8 sps:$4 sm:$0xff]  }
  0x4d   : > { %3899 = vmatprep.subr.bf16.mxu0 %v5213_v8  ;;  %v5302_v8 = vld [vmem:[%s6007_s28 + $0x9c4] ss:$8 sps:$4 sm:$0xff]  }
  0x4f   : > { %3572 = vmatpush1.bf16.msra.mxu1 %v5215_v9  ;;  %v5297_v9 = vld [vmem:[%s6007_s28 + $0x1c0] ss:$8 sps:$4 sm:$0xff]  }
  0x50   : > { %3900 = vmatpush1.bf16.msra.mxu0 %v5216_v10  ;;  %3573 = vmatprep.subr.bf16.mxu1 %v5217_v11  ;;  %v5300_v10 = vld [vmem:[%s6007_s28 + $0x9c0] ss:$8 sps:$4 sm:$0xff]   ;;  %v5305_v11 = vld [vmem:[%s6007_s28 + $0x1d4] ss:$8 sps:$4 sm:$0xff]  }
  0x51   : > { %3901 = vmatprep.subr.bf16.mxu0 %v5219_v12  ;;  %v5308_v12 = vld [vmem:[%s6007_s28 + $0x9d4] ss:$8 sps:$4 sm:$0xff]  }
  0x53   : > { %3574 = vmatpush1.bf16.msra.mxu1 %v5221_v13  ;;  %v5303_v13 = vld [vmem:[%s6007_s28 + $0x1d0] ss:$8 sps:$4 sm:$0xff]  }
  0x54   : > { %3902 = vmatpush1.bf16.msra.mxu0 %v5222_v14  ;;  %3584 = vmatprep.subr.bf16.mxu1 %v5226_v15  ;;  %v5306_v14 = vld [vmem:[%s6007_s28 + $0x9d0] ss:$8 sps:$4 sm:$0xff]   ;;  %v5311_v15 = vld [vmem:[%s6007_s28 + $0x1e4] ss:$8 sps:$4 sm:$0xff]  }
  0x55   : > { %3912 = vmatprep.subr.bf16.mxu0 %v5230_v16  ;;  %v5314_v16 = vld [vmem:[%s6007_s28 + $0x9e4] ss:$8 sps:$4 sm:$0xff]  }
  0x56   : > { %3576 = vmatmul.mubr.bf16.vlgmr.msra.gmra.mrb[0].mxu1 %v6094_v17 }
  0x57   : > { %3904 = vmatmul.mubr.bf16.vlgmr.msra.gmra.mrb[0].mxu0 %v6097_v18  ;;  %3585 = vmatpush1.bf16.msra.mxu1 %v5224_v19  ;;  %v755_v19 = vcombine.high %v6062_v53, %v6062_v53  ;;  %v5315_v53 = vld [vmem:[%s6007_s28 + $0x1f0] ss:$8 sps:$4 sm:$0xff]  }
  0x58   : > { %3913 = vmatpush1.bf16.msra.mxu0 %v5228_v20  ;;  %3586 = vmatprep.subr.bf16.mxu1 %v5233_v21  ;;  %v853_v20 = vcombine.high %v6069_v57, %v6069_v57  ;;  %v5309_v21 = vld [vmem:[%s6007_s28 + $0x1e0] ss:$8 sps:$4 sm:$0xff]   ;;  %v5318_v57 = vld [vmem:[%s6007_s28 + $0x9f0] ss:$8 sps:$4 sm:$0xff]  }
  0x59   : > { %3914 = vmatprep.subr.bf16.mxu0 %v5236_v22  ;;  %3616 = vmatprep.mubr.bf16.mxu1 %v802_v23  ;;  %v5312_v22 = vld [vmem:[%s6007_s28 + $0x9e0] ss:$8 sps:$4 sm:$0xff]   ;;  %v5317_v23 = vld [vmem:[%s6007_s28 + $0x1f4] ss:$8 sps:$4 sm:$0xff]  }
  0x5a   : > { %3944 = vmatprep.mubr.bf16.mxu0 %v900_v24  ;;  %v5320_v24 = vld [vmem:[%s6007_s28 + $0x9f4] ss:$8 sps:$4 sm:$0xff]  }
  0x5b   : > { %3587 = vmatpush1.bf16.msra.mxu1 %v5231_v25  ;;  %v6166_v25 = vrot.slane %v755_v19, %v6057_v50  ;;  %v5387_v19 = vld [vmem:[%s6007_s28 + $0x2b0] ss:$8 sps:$4 sm:$0xff]  }
  0x5c   : > { %3915 = vmatpush1.bf16.msra.mxu0 %v5234_v26  ;;  %3588 = vmatprep.subr.bf16.mxu1 %v5239_v27  ;;  %v6169_v26 = vrot.slane %v853_v20, %v6057_v50  ;;  %v5323_v27 = vld [vmem:[%s6007_s28 + $0x204] ss:$8 sps:$4 sm:$0xff]   ;;  %v5390_v20 = vld [vmem:[%s6007_s28 + $0xab0] ss:$8 sps:$4 sm:$0xff]  }
  0x5d   : > { %3916 = vmatprep.subr.bf16.mxu0 %v5242_v28  ;;  %v5326_v28 = vld [vmem:[%s6007_s28 + $0xa04] ss:$8 sps:$4 sm:$0xff]  }
  0x5f   : > { %3589 = vmatpush1.bf16.msra.mxu1 %v5237_v29  ;;  %v771_v29 = vcombine.high %v6166_v25, %v6166_v25 }
  0x60   : > { %3917 = vmatpush1.bf16.msra.mxu0 %v5240_v30  ;;  %3590 = vmatprep.subr.bf16.mxu1 %v5245_v31  ;;  %v869_v30 = vcombine.high %v6169_v26, %v6169_v26  ;;  %v800_v31 = vcombine.high %v6094_v17, %v6094_v17 }
  0x61   : > { %3918 = vmatprep.subr.bf16.mxu0 %v5248_v32  ;;  %v898_v32 = vcombine.high %v6097_v18, %v6097_v18  ;;  %v5327_v18 = vld [vmem:[%s6007_s28 + $0x210] ss:$8 sps:$4 sm:$0xff]  }
  0x62   : > { %v6191_v17 = vrot.slane %v869_v30, %v6057_v50  ;;  %v5410_v30 = vld [vmem:[%s6007_s28 + $0xae4] ss:$8 sps:$4 sm:$0xff]  }
  0x63   : > { %3591 = vmatpush1.bf16.msra.mxu1 %v5243_v33  ;;  %v5321_v33 = vld [vmem:[%s6007_s28 + $0x200] ss:$8 sps:$4 sm:$0xff]  }
  0x64   : > { %3919 = vmatpush1.bf16.msra.mxu0 %v5246_v34  ;;  %3592 = vmatprep.subr.bf16.mxu1 %v5251_v35  ;;  %v5324_v34 = vld [vmem:[%s6007_s28 + $0xa00] ss:$8 sps:$4 sm:$0xff]   ;;  %v5329_v35 = vld [vmem:[%s6007_s28 + $0x214] ss:$8 sps:$4 sm:$0xff]  }
  0x65   : > { %3920 = vmatprep.subr.bf16.mxu0 %v5254_v36  ;;  %v5332_v36 = vld [vmem:[%s6007_s28 + $0xa14] ss:$8 sps:$4 sm:$0xff]  }
  0x67   : > { %3593 = vmatpush1.bf16.msra.mxu1 %v5249_v37  ;;  %v6188_v37 = vrot.slane %v771_v29, %v6057_v50  ;;  %v5407_v29 = vld [vmem:[%s6007_s28 + $0x2e4] ss:$8 sps:$4 sm:$0xff]  }
  0x68   : > { %3921 = vmatpush1.bf16.msra.mxu0 %v5252_v38  ;;  %3594 = vmatprep.subr.bf16.mxu1 %v5257_v39  ;;  %v5330_v38 = vld [vmem:[%s6007_s28 + $0xa10] ss:$8 sps:$4 sm:$0xff]   ;;  %v5335_v39 = vld [vmem:[%s6007_s28 + $0x224] ss:$8 sps:$4 sm:$0xff]  }
  0x69   : > { %3922 = vmatprep.subr.bf16.mxu0 %v5260_v40  ;;  %v5338_v40 = vld [vmem:[%s6007_s28 + $0xa24] ss:$8 sps:$4 sm:$0xff]  }
  0x6b   : > { %3595 = vmatpush1.bf16.msra.mxu1 %v5255_v41  ;;  %v5333_v41 = vld [vmem:[%s6007_s28 + $0x220] ss:$8 sps:$4 sm:$0xff]  }
  0x6c   : > { %3923 = vmatpush1.bf16.msra.mxu0 %v5258_v42  ;;  %3596 = vmatprep.subr.bf16.mxu1 %v5263_v43  ;;  %v5336_v42 = vld [vmem:[%s6007_s28 + $0xa20] ss:$8 sps:$4 sm:$0xff]   ;;  %v5341_v43 = vld [vmem:[%s6007_s28 + $0x234] ss:$8 sps:$4 sm:$0xff]  }
  0x6d   : > { %3924 = vmatprep.subr.bf16.mxu0 %v5266_v45  ;;  %v5344_v45 = vld [vmem:[%s6007_s28 + $0xa34] ss:$8 sps:$4 sm:$0xff]  }
  0x6f   : > { %3597 = vmatpush1.bf16.msra.mxu1 %v5261_v46  ;;  %v5339_v46 = vld [vmem:[%s6007_s28 + $0x230] ss:$8 sps:$4 sm:$0xff]  }
  0x70   : > { %3925 = vmatpush1.bf16.msra.mxu0 %v5264_v47  ;;  %3598 = vmatprep.subr.bf16.mxu1 %v5269_v48  ;;  %v5342_v47 = vld [vmem:[%s6007_s28 + $0xa30] ss:$8 sps:$4 sm:$0xff]   ;;  %v5347_v48 = vld [vmem:[%s6007_s28 + $0x244] ss:$8 sps:$4 sm:$0xff]  }
  0x71   : > { %3926 = vmatprep.subr.bf16.mxu0 %v5272_v49  ;;  %v5350_v49 = vld [vmem:[%s6007_s28 + $0xa44] ss:$8 sps:$4 sm:$0xff]  }
  0x73   : > { %3599 = vmatpush1.bf16.msra.mxu1 %v5267_v51  ;;  %v5345_v51 = vld [vmem:[%s6007_s28 + $0x240] ss:$8 sps:$4 sm:$0xff]  }
  0x74   : > { %3927 = vmatpush1.bf16.msra.mxu0 %v5270_v52  ;;  %3600 = vmatprep.subr.bf16.mxu1 %v5275_v54  ;;  %v5348_v52 = vld [vmem:[%s6007_s28 + $0xa40] ss:$8 sps:$4 sm:$0xff]   ;;  %v5353_v54 = vld [vmem:[%s6007_s28 + $0x254] ss:$8 sps:$4 sm:$0xff]  }
  0x75   : > { %3928 = vmatprep.subr.bf16.mxu0 %v5278_v55  ;;  %v5356_v55 = vld [vmem:[%s6007_s28 + $0xa54] ss:$8 sps:$4 sm:$0xff]  }
  0x77   : > { %3601 = vmatpush1.bf16.msra.mxu1 %v5273_v56  ;;  %v5351_v56 = vld [vmem:[%s6007_s28 + $0x250] ss:$8 sps:$4 sm:$0xff]  }
  0x78   : > { %3929 = vmatpush1.bf16.msra.mxu0 %v5276_v58  ;;  %3602 = vmatprep.subr.bf16.mxu1 %v5281_v59  ;;  %v5354_v58 = vld [vmem:[%s6007_s28 + $0xa50] ss:$8 sps:$4 sm:$0xff]   ;;  %v5359_v59 = vld [vmem:[%s6007_s28 + $0x264] ss:$8 sps:$4 sm:$0xff]  }
  0x79   : > { %3930 = vmatprep.subr.bf16.mxu0 %v5284_v60  ;;  %v5362_v60 = vld [vmem:[%s6007_s28 + $0xa64] ss:$8 sps:$4 sm:$0xff]  }
  0x7b   : > { %3603 = vmatpush1.bf16.msra.mxu1 %v5279_v61  ;;  %v5357_v61 = vld [vmem:[%s6007_s28 + $0x260] ss:$8 sps:$4 sm:$0xff]  }
  0x7c   : > { %3931 = vmatpush1.bf16.msra.mxu0 %v5282_v62  ;;  %3604 = vmatprep.subr.bf16.mxu1 %v5287_v63  ;;  %v5360_v62 = vld [vmem:[%s6007_s28 + $0xa60] ss:$8 sps:$4 sm:$0xff]   ;;  %v5365_v63 = vld [vmem:[%s6007_s28 + $0x274] ss:$8 sps:$4 sm:$0xff]  }
  0x7d   : > { %3932 = vmatprep.subr.bf16.mxu0 %v5290_v0  ;;  %v5368_v0 = vld [vmem:[%s6007_s28 + $0xa74] ss:$8 sps:$4 sm:$0xff]  }
  0x7f   : > { %3605 = vmatpush1.bf16.msra.mxu1 %v5285_v1  ;;  %v5363_v1 = vld [vmem:[%s6007_s28 + $0x270] ss:$8 sps:$4 sm:$0xff]  }
  0x80   : > { %3933 = vmatpush1.bf16.msra.mxu0 %v5288_v2  ;;  %3606 = vmatprep.subr.bf16.mxu1 %v5293_v3  ;;  %v5366_v2 = vld [vmem:[%s6007_s28 + $0xa70] ss:$8 sps:$4 sm:$0xff]   ;;  %v5371_v3 = vld [vmem:[%s6007_s28 + $0x284] ss:$8 sps:$4 sm:$0xff]  }
  0x81   : > { %3934 = vmatprep.subr.bf16.mxu0 %v5296_v4  ;;  %v5374_v4 = vld [vmem:[%s6007_s28 + $0xa84] ss:$8 sps:$4 sm:$0xff]  }
  0x83   : > { %3607 = vmatpush1.bf16.msra.mxu1 %v5291_v5  ;;  %v5369_v5 = vld [vmem:[%s6007_s28 + $0x280] ss:$8 sps:$4 sm:$0xff]  }
  0x84   : > { %3935 = vmatpush1.bf16.msra.mxu0 %v5294_v6  ;;  %3608 = vmatprep.subr.bf16.mxu1 %v5299_v7  ;;  %v5372_v6 = vld [vmem:[%s6007_s28 + $0xa80] ss:$8 sps:$4 sm:$0xff]   ;;  %v5377_v7 = vld [vmem:[%s6007_s28 + $0x294] ss:$8 sps:$4 sm:$0xff]  }
  0x85   : > { %3936 = vmatprep.subr.bf16.mxu0 %v5302_v8  ;;  %v5380_v8 = vld [vmem:[%s6007_s28 + $0xa94] ss:$8 sps:$4 sm:$0xff]  }
  0x87   : > { %3609 = vmatpush1.bf16.msra.mxu1 %v5297_v9  ;;  %v5375_v9 = vld [vmem:[%s6007_s28 + $0x290] ss:$8 sps:$4 sm:$0xff]  }
  0x88   : > { %3937 = vmatpush1.bf16.msra.mxu0 %v5300_v10  ;;  %3610 = vmatprep.subr.bf16.mxu1 %v5305_v11  ;;  %v5378_v10 = vld [vmem:[%s6007_s28 + $0xa90] ss:$8 sps:$4 sm:$0xff]   ;;  %v5383_v11 = vld [vmem:[%s6007_s28 + $0x2a4] ss:$8 sps:$4 sm:$0xff]  }
  0x89   : > { %3938 = vmatprep.subr.bf16.mxu0 %v5308_v12  ;;  %v5386_v12 = vld [vmem:[%s6007_s28 + $0xaa4] ss:$8 sps:$4 sm:$0xff]  }
  0x8b   : > { %3611 = vmatpush1.bf16.msra.mxu1 %v5303_v13  ;;  %v5381_v13 = vld [vmem:[%s6007_s28 + $0x2a0] ss:$8 sps:$4 sm:$0xff]  }
  0x8c   : > { %3939 = vmatpush1.bf16.msra.mxu0 %v5306_v14  ;;  %3612 = vmatprep.subr.bf16.mxu1 %v5311_v15  ;;  %v5384_v14 = vld [vmem:[%s6007_s28 + $0xaa0] ss:$8 sps:$4 sm:$0xff]   ;;  %v5389_v15 = vld [vmem:[%s6007_s28 + $0x2b4] ss:$8 sps:$4 sm:$0xff]  }
  0x8d   : > { %3940 = vmatprep.subr.bf16.mxu0 %v5314_v16  ;;  %v5392_v16 = vld [vmem:[%s6007_s28 + $0xab4] ss:$8 sps:$4 sm:$0xff]  }
  0x8f   : > { %3613 = vmatpush1.bf16.msra.mxu1 %v5309_v21  ;;  %v5395_v21 = vld [vmem:[%s6007_s28 + $0x2c4] ss:$8 sps:$4 sm:$0xff]  }
  0x90   : > { %3941 = vmatpush1.bf16.msra.mxu0 %v5312_v22  ;;  %3614 = vmatprep.subr.bf16.mxu1 %v5317_v23  ;;  %v5398_v22 = vld [vmem:[%s6007_s28 + $0xac4] ss:$8 sps:$4 sm:$0xff]   ;;  %v5393_v23 = vld [vmem:[%s6007_s28 + $0x2c0] ss:$8 sps:$4 sm:$0xff]  }
  0x91   : > { %3942 = vmatprep.subr.bf16.mxu0 %v5320_v24  ;;  %v5396_v24 = vld [vmem:[%s6007_s28 + $0xac0] ss:$8 sps:$4 sm:$0xff]  }
  0x93   : > { %3615 = vmatpush1.bf16.msra.mxu1 %v5315_v53  ;;  %v5401_v53 = vld [vmem:[%s6007_s28 + $0x2d4] ss:$8 sps:$4 sm:$0xff]  }
  0x94   : > { %3943 = vmatpush1.bf16.msra.mxu0 %v5318_v57  ;;  %3625 = vmatprep.subr.bf16.mxu1 %v5323_v27  ;;  %v5404_v57 = vld [vmem:[%s6007_s28 + $0xad4] ss:$8 sps:$4 sm:$0xff]   ;;  %v5399_v27 = vld [vmem:[%s6007_s28 + $0x2d0] ss:$8 sps:$4 sm:$0xff]  }
  0x95   : > { %3953 = vmatprep.subr.bf16.mxu0 %v5326_v28  ;;  %v5402_v28 = vld [vmem:[%s6007_s28 + $0xad0] ss:$8 sps:$4 sm:$0xff]  }
  0x96   : > { %3617 = vmatmul.mubr.bf16.vlgmr.msra.gmra.mrb[0].mxu1 %v800_v31  ;;  %v5405_v31 = vld [vmem:[%s6007_s28 + $0x2e0] ss:$8 sps:$4 sm:$0xff]  }
  0x97   : > { %3945 = vmatmul.mubr.bf16.vlgmr.msra.gmra.mrb[0].mxu0 %v898_v32  ;;  %3626 = vmatpush1.bf16.msra.mxu1 %v5321_v33  ;;  %v5408_v32 = vld [vmem:[%s6007_s28 + $0xae0] ss:$8 sps:$4 sm:$0xff]   ;;  %v5413_v33 = vld [vmem:[%s6007_s28 + $0x2f4] ss:$8 sps:$4 sm:$0xff]  }
  0x98   : > { %3954 = vmatpush1.bf16.msra.mxu0 %v5324_v34  ;;  %3627 = vmatprep.subr.bf16.mxu1 %v5329_v35  ;;  %v5416_v34 = vld [vmem:[%s6007_s28 + $0xaf4] ss:$8 sps:$4 sm:$0xff]   ;;  %v5411_v35 = vld [vmem:[%s6007_s28 + $0x2f0] ss:$8 sps:$4 sm:$0xff]  }
  0x99   : > { %3955 = vmatprep.subr.bf16.mxu0 %v5332_v36  ;;  %3657 = vmatprep.mubr.bf16.mxu1 %v6188_v37  ;;  %v5414_v36 = vld [vmem:[%s6007_s28 + $0xaf0] ss:$8 sps:$4 sm:$0xff]  }
  0x9a   : > { %3985 = vmatprep.mubr.bf16.mxu0 %v6191_v17 }
  0x9b   : > { %3628 = vmatpush1.bf16.msra.mxu1 %v5327_v18  ;;  %v5419_v18 = vld [vmem:[%s6007_s28 + $0x304] ss:$8 sps:$4 sm:$0xff]  }
  0x9c   : > { %3956 = vmatpush1.bf16.msra.mxu0 %v5330_v38  ;;  %3629 = vmatprep.subr.bf16.mxu1 %v5335_v39  ;;  %v5422_v38 = vld [vmem:[%s6007_s28 + $0xb04] ss:$8 sps:$4 sm:$0xff]   ;;  %v6257_v39 = vrot.slane %v6166_v25, %v6057_v50  ;;  %v803_v25 = vcombine.high %v6188_v37, %v6188_v37 }
  0x9d   : > { %3957 = vmatprep.subr.bf16.mxu0 %v5338_v40  ;;  %v6261_v40 = vrot.slane %v6169_v26, %v6057_v50  ;;  %v5423_v26 = vld [vmem:[%s6007_s28 + $0x310] ss:$8 sps:$4 sm:$0xff]   ;;  %v5431_v37 = vld [vmem:[%s6007_s28 + $0x324] ss:$8 sps:$4 sm:$0xff]  }
  0x9f   : > { %3630 = vmatpush1.bf16.msra.mxu1 %v5333_v41  ;;  %v5417_v41 = vld [vmem:[%s6007_s28 + $0x300] ss:$8 sps:$4 sm:$0xff]  }
  0xa0   : > { %3958 = vmatpush1.bf16.msra.mxu0 %v5336_v42  ;;  %3631 = vmatprep.subr.bf16.mxu1 %v5341_v43  ;;  %v5420_v42 = vld [vmem:[%s6007_s28 + $0xb00] ss:$8 sps:$4 sm:$0xff]   ;;  %v5425_v43 = vld [vmem:[%s6007_s28 + $0x314] ss:$8 sps:$4 sm:$0xff]  }
  0xa1   : > { %3959 = vmatprep.subr.bf16.mxu0 %v5344_v45  ;;  %v5428_v45 = vld [vmem:[%s6007_s28 + $0xb14] ss:$8 sps:$4 sm:$0xff]  }
  0xa3   : > { %3632 = vmatpush1.bf16.msra.mxu1 %v5339_v46  ;;  %v901_v46 = vcombine.high %v6191_v17, %v6191_v17  ;;  %v5429_v17 = vld [vmem:[%s6007_s28 + $0x320] ss:$8 sps:$4 sm:$0xff]  }
  0xa4   : > { %3960 = vmatpush1.bf16.msra.mxu0 %v5342_v47  ;;  %3633 = vmatprep.subr.bf16.mxu1 %v5347_v48  ;;  %v5426_v47 = vld [vmem:[%s6007_s28 + $0xb10] ss:$8 sps:$4 sm:$0xff]   ;;  %v5434_v48 = vld [vmem:[%s6007_s28 + $0xb24] ss:$8 sps:$4 sm:$0xff]  }
  0xa5   : > { %3961 = vmatprep.subr.bf16.mxu0 %v5350_v49  ;;  %v5432_v49 = vld [vmem:[%s6007_s28 + $0xb20] ss:$8 sps:$4 sm:$0xff]  }
  0xa7   : > { %3634 = vmatpush1.bf16.msra.mxu1 %v5345_v51  ;;  %v5437_v51 = vld [vmem:[%s6007_s28 + $0x334] ss:$8 sps:$4 sm:$0xff]  }
  0xa8   : > { %3962 = vmatpush1.bf16.msra.mxu0 %v5348_v52  ;;  %3635 = vmatprep.subr.bf16.mxu1 %v5353_v54  ;;  %v5440_v52 = vld [vmem:[%s6007_s28 + $0xb34] ss:$8 sps:$4 sm:$0xff]   ;;  %v5435_v54 = vld [vmem:[%s6007_s28 + $0x330] ss:$8 sps:$4 sm:$0xff]  }
  0xa9   : > { %3963 = vmatprep.subr.bf16.mxu0 %v5356_v55  ;;  %v5438_v55 = vld [vmem:[%s6007_s28 + $0xb30] ss:$8 sps:$4 sm:$0xff]  }
  0xab   : > { %3636 = vmatpush1.bf16.msra.mxu1 %v5351_v56  ;;  %v5443_v56 = vld [vmem:[%s6007_s28 + $0x344] ss:$8 sps:$4 sm:$0xff]  }
  0xac   : > { %3964 = vmatpush1.bf16.msra.mxu0 %v5354_v58  ;;  %3637 = vmatprep.subr.bf16.mxu1 %v5359_v59  ;;  %v5446_v58 = vld [vmem:[%s6007_s28 + $0xb44] ss:$8 sps:$4 sm:$0xff]   ;;  %v5441_v59 = vld [vmem:[%s6007_s28 + $0x340] ss:$8 sps:$4 sm:$0xff]  }
  0xad   : > { %3965 = vmatprep.subr.bf16.mxu0 %v5362_v60  ;;  %v5444_v60 = vld [vmem:[%s6007_s28 + $0xb40] ss:$8 sps:$4 sm:$0xff]  }
  0xaf   : > { %3638 = vmatpush1.bf16.msra.mxu1 %v5357_v61  ;;  %v5449_v61 = vld [vmem:[%s6007_s28 + $0x354] ss:$8 sps:$4 sm:$0xff]  }
  0xb0   : > { %3966 = vmatpush1.bf16.msra.mxu0 %v5360_v62  ;;  %3639 = vmatprep.subr.bf16.mxu1 %v5365_v63  ;;  %v5452_v62 = vld [vmem:[%s6007_s28 + $0xb54] ss:$8 sps:$4 sm:$0xff]   ;;  %v5447_v63 = vld [vmem:[%s6007_s28 + $0x350] ss:$8 sps:$4 sm:$0xff]  }
  0xb1   : > { %3967 = vmatprep.subr.bf16.mxu0 %v5368_v0  ;;  %v5450_v0 = vld [vmem:[%s6007_s28 + $0xb50] ss:$8 sps:$4 sm:$0xff]  }
  0xb3   : > { %3640 = vmatpush1.bf16.msra.mxu1 %v5363_v1  ;;  %v5455_v1 = vld [vmem:[%s6007_s28 + $0x364] ss:$8 sps:$4 sm:$0xff]  }
  0xb4   : > { %3968 = vmatpush1.bf16.msra.mxu0 %v5366_v2  ;;  %3641 = vmatprep.subr.bf16.mxu1 %v5371_v3  ;;  %v5458_v2 = vld [vmem:[%s6007_s28 + $0xb64] ss:$8 sps:$4 sm:$0xff]   ;;  %v5453_v3 = vld [vmem:[%s6007_s28 + $0x360] ss:$8 sps:$4 sm:$0xff]  }
  0xb5   : > { %3969 = vmatprep.subr.bf16.mxu0 %v5374_v4  ;;  %v5456_v4 = vld [vmem:[%s6007_s28 + $0xb60] ss:$8 sps:$4 sm:$0xff]  }
  0xb7   : > { %3642 = vmatpush1.bf16.msra.mxu1 %v5369_v5  ;;  %v5461_v5 = vld [vmem:[%s6007_s28 + $0x374] ss:$8 sps:$4 sm:$0xff]  }
  0xb8   : > { %3970 = vmatpush1.bf16.msra.mxu0 %v5372_v6  ;;  %3643 = vmatprep.subr.bf16.mxu1 %v5377_v7  ;;  %v5464_v6 = vld [vmem:[%s6007_s28 + $0xb74] ss:$8 sps:$4 sm:$0xff]   ;;  %v5459_v7 = vld [vmem:[%s6007_s28 + $0x370] ss:$8 sps:$4 sm:$0xff]  }
  0xb9   : > { %3971 = vmatprep.subr.bf16.mxu0 %v5380_v8  ;;  %v5462_v8 = vld [vmem:[%s6007_s28 + $0xb70] ss:$8 sps:$4 sm:$0xff]  }
  0xbb   : > { %3644 = vmatpush1.bf16.msra.mxu1 %v5375_v9  ;;  %v5467_v9 = vld [vmem:[%s6007_s28 + $0x384] ss:$8 sps:$4 sm:$0xff]  }
  0xbc   : > { %3972 = vmatpush1.bf16.msra.mxu0 %v5378_v10  ;;  %3645 = vmatprep.subr.bf16.mxu1 %v5383_v11  ;;  %v5470_v10 = vld [vmem:[%s6007_s28 + $0xb84] ss:$8 sps:$4 sm:$0xff]   ;;  %v5465_v11 = vld [vmem:[%s6007_s28 + $0x380] ss:$8 sps:$4 sm:$0xff]  }
  0xbd   : > { %3973 = vmatprep.subr.bf16.mxu0 %v5386_v12  ;;  %v5468_v12 = vld [vmem:[%s6007_s28 + $0xb80] ss:$8 sps:$4 sm:$0xff]  }
  0xbf   : > { %3646 = vmatpush1.bf16.msra.mxu1 %v5381_v13  ;;  %v5473_v13 = vld [vmem:[%s6007_s28 + $0x394] ss:$8 sps:$4 sm:$0xff]  }
  0xc0   : > { %3974 = vmatpush1.bf16.msra.mxu0 %v5384_v14  ;;  %3647 = vmatprep.subr.bf16.mxu1 %v5389_v15  ;;  %v5476_v14 = vld [vmem:[%s6007_s28 + $0xb94] ss:$8 sps:$4 sm:$0xff]   ;;  %v5471_v15 = vld [vmem:[%s6007_s28 + $0x390] ss:$8 sps:$4 sm:$0xff]  }
  0xc1   : > { %3975 = vmatprep.subr.bf16.mxu0 %v5392_v16  ;;  %v5474_v16 = vld [vmem:[%s6007_s28 + $0xb90] ss:$8 sps:$4 sm:$0xff]  }
  0xc3   : > { %3648 = vmatpush1.bf16.msra.mxu1 %v5387_v19  ;;  %v5479_v19 = vld [vmem:[%s6007_s28 + $0x3a4] ss:$8 sps:$4 sm:$0xff]  }
  0xc4   : > { %3976 = vmatpush1.bf16.msra.mxu0 %v5390_v20  ;;  %3649 = vmatprep.subr.bf16.mxu1 %v5395_v21  ;;  %v5482_v20 = vld [vmem:[%s6007_s28 + $0xba4] ss:$8 sps:$4 sm:$0xff]   ;;  %v5477_v21 = vld [vmem:[%s6007_s28 + $0x3a0] ss:$8 sps:$4 sm:$0xff]  }
  0xc5   : > { %3977 = vmatprep.subr.bf16.mxu0 %v5398_v22  ;;  %v5480_v22 = vld [vmem:[%s6007_s28 + $0xba0] ss:$8 sps:$4 sm:$0xff]  }
  0xc7   : > { %3650 = vmatpush1.bf16.msra.mxu1 %v5393_v23  ;;  %v5485_v23 = vld [vmem:[%s6007_s28 + $0x3b4] ss:$8 sps:$4 sm:$0xff]  }
  0xc8   : > { %3978 = vmatpush1.bf16.msra.mxu0 %v5396_v24  ;;  %3651 = vmatprep.subr.bf16.mxu1 %v5401_v53  ;;  %v5488_v24 = vld [vmem:[%s6007_s28 + $0xbb4] ss:$8 sps:$4 sm:$0xff]   ;;  %v5483_v53 = vld [vmem:[%s6007_s28 + $0x3b0] ss:$8 sps:$4 sm:$0xff]  }
  0xc9   : > { %3979 = vmatprep.subr.bf16.mxu0 %v5404_v57  ;;  %v5486_v57 = vld [vmem:[%s6007_s28 + $0xbb0] ss:$8 sps:$4 sm:$0xff]  }
  0xcb   : > { %3652 = vmatpush1.bf16.msra.mxu1 %v5399_v27  ;;  %v5491_v27 = vld [vmem:[%s6007_s28 + $0x3c4] ss:$8 sps:$4 sm:$0xff]  }
  0xcc   : > { %3980 = vmatpush1.bf16.msra.mxu0 %v5402_v28  ;;  %3653 = vmatprep.subr.bf16.mxu1 %v5407_v29  ;;  %v5494_v28 = vld [vmem:[%s6007_s28 + $0xbc4] ss:$8 sps:$4 sm:$0xff]   ;;  %v5489_v29 = vld [vmem:[%s6007_s28 + $0x3c0] ss:$8 sps:$4 sm:$0xff]  }
  0xcd   : > { %3981 = vmatprep.subr.bf16.mxu0 %v5410_v30  ;;  %v5492_v30 = vld [vmem:[%s6007_s28 + $0xbc0] ss:$8 sps:$4 sm:$0xff]  }
  0xcf   : > { %3654 = vmatpush1.bf16.msra.mxu1 %v5405_v31  ;;  %v5497_v31 = vld [vmem:[%s6007_s28 + $0x3d4] ss:$8 sps:$4 sm:$0xff]  }
  0xd0   : > { %3982 = vmatpush1.bf16.msra.mxu0 %v5408_v32  ;;  %3655 = vmatprep.subr.bf16.mxu1 %v5413_v33  ;;  %v5500_v32 = vld [vmem:[%s6007_s28 + $0xbd4] ss:$8 sps:$4 sm:$0xff]   ;;  %v5495_v33 = vld [vmem:[%s6007_s28 + $0x3d0] ss:$8 sps:$4 sm:$0xff]  }
  0xd1   : > { %3983 = vmatprep.subr.bf16.mxu0 %v5416_v34  ;;  %v5498_v34 = vld [vmem:[%s6007_s28 + $0xbd0] ss:$8 sps:$4 sm:$0xff]  }
  0xd3   : > { %3656 = vmatpush1.bf16.msra.mxu1 %v5411_v35  ;;  %v5503_v35 = vld [vmem:[%s6007_s28 + $0x3e4] ss:$8 sps:$4 sm:$0xff]  }
  0xd4   : > { %3984 = vmatpush1.bf16.msra.mxu0 %v5414_v36  ;;  %3666 = vmatprep.subr.bf16.mxu1 %v5419_v18  ;;  %v5506_v36 = vld [vmem:[%s6007_s28 + $0xbe4] ss:$8 sps:$4 sm:$0xff]   ;;  %v5501_v18 = vld [vmem:[%s6007_s28 + $0x3e0] ss:$8 sps:$4 sm:$0xff]  }
  0xd5   : > { %3994 = vmatprep.subr.bf16.mxu0 %v5422_v38  ;;  %v5504_v38 = vld [vmem:[%s6007_s28 + $0xbe0] ss:$8 sps:$4 sm:$0xff]  }
  0xd6   : > { %3658 = vmatmul.mubr.bf16.vlgmr.msra.gmra.mrb[0].mxu1 %v6257_v39 }
  0xd7   : > { %3986 = vmatmul.mubr.bf16.vlgmr.msra.gmra.mrb[0].mxu0 %v6261_v40  ;;  %3667 = vmatpush1.bf16.msra.mxu1 %v5417_v41  ;;  %v6328_v41 = vld [vmem:[%s6002_s25 + $0x8] sm:$0xff] }
  0xd8   : > { %3995 = vmatpush1.bf16.msra.mxu0 %v5420_v42  ;;  %3668 = vmatprep.subr.bf16.mxu1 %v5425_v43  ;;  %v6331_v42 = vld [vmem:[%s6002_s25 + $0x18] sm:$0xff] }
  0xd9   : > { %3996 = vmatprep.subr.bf16.mxu0 %v5428_v45  ;;  %3698 = vmatprep.mubr.bf16.mxu1 %v803_v25  ;;  %v5509_v43 = vld [vmem:[%s6007_s28 + $0x3f4] ss:$8 sps:$4 sm:$0xff]   ;;  %v6337_v25 = vrot.slane %v6328_v41, %v6057_v50 }
  0xda   : > { %4026 = vmatprep.mubr.bf16.mxu0 %v901_v46  ;;  %v5512_v45 = vld [vmem:[%s6007_s28 + $0xbf4] ss:$8 sps:$4 sm:$0xff]   ;;  %v6341_v46 = vrot.slane %v6331_v42, %v6057_v50 }
  0xdb   : > { %3669 = vmatpush1.bf16.msra.mxu1 %v5423_v26  ;;  %v5507_v26 = vld [vmem:[%s6007_s28 + $0x3f0] ss:$8 sps:$4 sm:$0xff]  }
  0xdc   : > { %3997 = vmatpush1.bf16.msra.mxu0 %v5426_v47  ;;  %3670 = vmatprep.subr.bf16.mxu1 %v5431_v37  ;;  %v5510_v47 = vld [vmem:[%s6007_s28 + $0xbf0] ss:$8 sps:$4 sm:$0xff]   ;;  %v5515_v37 = vld [vmem:[%s6007_s28 + $0x404] ss:$8 sps:$4 sm:$0xff]  }
  0xdd   : > { %3998 = vmatprep.subr.bf16.mxu0 %v5434_v48  ;;  %v5518_v48 = vld [vmem:[%s6007_s28 + $0xc04] ss:$8 sps:$4 sm:$0xff]  }
  0xdf   : > { %3671 = vmatpush1.bf16.msra.mxu1 %v5429_v17  ;;  %v819_v17 = vcombine.high %v6337_v25, %v6337_v25 }
  0xe0   : > { %3999 = vmatpush1.bf16.msra.mxu0 %v5432_v49  ;;  %3672 = vmatprep.subr.bf16.mxu1 %v5437_v51  ;;  %v917_v49 = vcombine.high %v6341_v46, %v6341_v46  ;;  %v5513_v51 = vld [vmem:[%s6007_s28 + $0x400] ss:$8 sps:$4 sm:$0xff]  }
  0xe1   : > { %4000 = vmatprep.subr.bf16.mxu0 %v5440_v52  ;;  %v5516_v52 = vld [vmem:[%s6007_s28 + $0xc00] ss:$8 sps:$4 sm:$0xff]  }
  0xe3   : > { %3673 = vmatpush1.bf16.msra.mxu1 %v5435_v54  ;;  %v801_v54 = vcombine.high %v6257_v39, %v6257_v39  ;;  %v5519_v39 = vld [vmem:[%s6007_s28 + $0x410] ss:$8 sps:$4 sm:$0xff]  }
  0xe4   : > { %4001 = vmatpush1.bf16.msra.mxu0 %v5438_v55  ;;  %3674 = vmatprep.subr.bf16.mxu1 %v5443_v56  ;;  %v899_v55 = vcombine.high %v6261_v40, %v6261_v40  ;;  %v5521_v56 = vld [vmem:[%s6007_s28 + $0x414] ss:$8 sps:$4 sm:$0xff]   ;;  %v5522_v40 = vld [vmem:[%s6007_s28 + $0xc10] ss:$8 sps:$4 sm:$0xff]  }
  0xe5   : > { %4002 = vmatprep.subr.bf16.mxu0 %v5446_v58  ;;  %v5524_v58 = vld [vmem:[%s6007_s28 + $0xc14] ss:$8 sps:$4 sm:$0xff]  }
  0xe7   : > { %3675 = vmatpush1.bf16.msra.mxu1 %v5441_v59  ;;  %v6360_v59 = vrot.slane %v819_v17, %v6057_v50  ;;  %v5591_v17 = vld [vmem:[%s6007_s28 + $0x4d0] ss:$8 sps:$4 sm:$0xff]  }
  0xe8   : > { %4003 = vmatpush1.bf16.msra.mxu0 %v5444_v60  ;;  %3676 = vmatprep.subr.bf16.mxu1 %v5449_v61  ;;  %v6363_v60 = vrot.slane %v917_v49, %v6057_v50  ;;  %v5527_v61 = vld [vmem:[%s6007_s28 + $0x424] ss:$8 sps:$4 sm:$0xff]   ;;  %v5594_v49 = vld [vmem:[%s6007_s28 + $0xcd0] ss:$8 sps:$4 sm:$0xff]  }
  0xe9   : > { %4004 = vmatprep.subr.bf16.mxu0 %v5452_v62  ;;  %v5530_v62 = vld [vmem:[%s6007_s28 + $0xc24] ss:$8 sps:$4 sm:$0xff]  }
  0xeb   : > { %3677 = vmatpush1.bf16.msra.mxu1 %v5447_v63  ;;  %v5525_v63 = vld [vmem:[%s6007_s28 + $0x420] ss:$8 sps:$4 sm:$0xff]  }
  0xec   : > { %4005 = vmatpush1.bf16.msra.mxu0 %v5450_v0  ;;  %3678 = vmatprep.subr.bf16.mxu1 %v5455_v1  ;;  %v5528_v0 = vld [vmem:[%s6007_s28 + $0xc20] ss:$8 sps:$4 sm:$0xff]   ;;  %v5533_v1 = vld [vmem:[%s6007_s28 + $0x434] ss:$8 sps:$4 sm:$0xff]  }
  0xed   : > { %4006 = vmatprep.subr.bf16.mxu0 %v5458_v2  ;;  %v5536_v2 = vld [vmem:[%s6007_s28 + $0xc34] ss:$8 sps:$4 sm:$0xff]  }
  0xef   : > { %3679 = vmatpush1.bf16.msra.mxu1 %v5453_v3  ;;  %v5531_v3 = vld [vmem:[%s6007_s28 + $0x430] ss:$8 sps:$4 sm:$0xff]  }
  0xf0   : > { %4007 = vmatpush1.bf16.msra.mxu0 %v5456_v4  ;;  %3680 = vmatprep.subr.bf16.mxu1 %v5461_v5  ;;  %v5534_v4 = vld [vmem:[%s6007_s28 + $0xc30] ss:$8 sps:$4 sm:$0xff]   ;;  %v5539_v5 = vld [vmem:[%s6007_s28 + $0x444] ss:$8 sps:$4 sm:$0xff]  }
  0xf1   : > { %4008 = vmatprep.subr.bf16.mxu0 %v5464_v6  ;;  %v5542_v6 = vld [vmem:[%s6007_s28 + $0xc44] ss:$8 sps:$4 sm:$0xff]  }
  0xf3   : > { %3681 = vmatpush1.bf16.msra.mxu1 %v5459_v7  ;;  %v5537_v7 = vld [vmem:[%s6007_s28 + $0x440] ss:$8 sps:$4 sm:$0xff]  }
  0xf4   : > { %4009 = vmatpush1.bf16.msra.mxu0 %v5462_v8  ;;  %3682 = vmatprep.subr.bf16.mxu1 %v5467_v9  ;;  %v5540_v8 = vld [vmem:[%s6007_s28 + $0xc40] ss:$8 sps:$4 sm:$0xff]   ;;  %v5545_v9 = vld [vmem:[%s6007_s28 + $0x454] ss:$8 sps:$4 sm:$0xff]  }
  0xf5   : > { %4010 = vmatprep.subr.bf16.mxu0 %v5470_v10  ;;  %v5548_v10 = vld [vmem:[%s6007_s28 + $0xc54] ss:$8 sps:$4 sm:$0xff]  }
  0xf7   : > { %3683 = vmatpush1.bf16.msra.mxu1 %v5465_v11  ;;  %v5543_v11 = vld [vmem:[%s6007_s28 + $0x450] ss:$8 sps:$4 sm:$0xff]  }
  0xf8   : > { %4011 = vmatpush1.bf16.msra.mxu0 %v5468_v12  ;;  %3684 = vmatprep.subr.bf16.mxu1 %v5473_v13  ;;  %v5546_v12 = vld [vmem:[%s6007_s28 + $0xc50] ss:$8 sps:$4 sm:$0xff]   ;;  %v5551_v13 = vld [vmem:[%s6007_s28 + $0x464] ss:$8 sps:$4 sm:$0xff]  }
  0xf9   : > { %4012 = vmatprep.subr.bf16.mxu0 %v5476_v14  ;;  %v5554_v14 = vld [vmem:[%s6007_s28 + $0xc64] ss:$8 sps:$4 sm:$0xff]  }
  0xfb   : > { %3685 = vmatpush1.bf16.msra.mxu1 %v5471_v15  ;;  %v5549_v15 = vld [vmem:[%s6007_s28 + $0x460] ss:$8 sps:$4 sm:$0xff]  }
  0xfc   : > { %4013 = vmatpush1.bf16.msra.mxu0 %v5474_v16  ;;  %3686 = vmatprep.subr.bf16.mxu1 %v5479_v19  ;;  %v5552_v16 = vld [vmem:[%s6007_s28 + $0xc60] ss:$8 sps:$4 sm:$0xff]   ;;  %v5557_v19 = vld [vmem:[%s6007_s28 + $0x474] ss:$8 sps:$4 sm:$0xff]  }
  0xfd   : > { %4014 = vmatprep.subr.bf16.mxu0 %v5482_v20  ;;  %v5560_v20 = vld [vmem:[%s6007_s28 + $0xc74] ss:$8 sps:$4 sm:$0xff]  }
  0xff   : > { %3687 = vmatpush1.bf16.msra.mxu1 %v5477_v21  ;;  %v5555_v21 = vld [vmem:[%s6007_s28 + $0x470] ss:$8 sps:$4 sm:$0xff]  }
 0x100   : > { %4015 = vmatpush1.bf16.msra.mxu0 %v5480_v22  ;;  %3688 = vmatprep.subr.bf16.mxu1 %v5485_v23  ;;  %v5558_v22 = vld [vmem:[%s6007_s28 + $0xc70] ss:$8 sps:$4 sm:$0xff]   ;;  %v5563_v23 = vld [vmem:[%s6007_s28 + $0x484] ss:$8 sps:$4 sm:$0xff]  }
 0x101   : > { %4016 = vmatprep.subr.bf16.mxu0 %v5488_v24  ;;  %v5566_v24 = vld [vmem:[%s6007_s28 + $0xc84] ss:$8 sps:$4 sm:$0xff]  }
 0x103   : > { %3689 = vmatpush1.bf16.msra.mxu1 %v5483_v53  ;;  %v5561_v53 = vld [vmem:[%s6007_s28 + $0x480] ss:$8 sps:$4 sm:$0xff]  }
 0x104   : > { %4017 = vmatpush1.bf16.msra.mxu0 %v5486_v57  ;;  %3690 = vmatprep.subr.bf16.mxu1 %v5491_v27  ;;  %v5564_v57 = vld [vmem:[%s6007_s28 + $0xc80] ss:$8 sps:$4 sm:$0xff]   ;;  %v5569_v27 = vld [vmem:[%s6007_s28 + $0x494] ss:$8 sps:$4 sm:$0xff]  }
 0x105   : > { %4018 = vmatprep.subr.bf16.mxu0 %v5494_v28  ;;  %v5572_v28 = vld [vmem:[%s6007_s28 + $0xc94] ss:$8 sps:$4 sm:$0xff]  }
 0x107   : > { %3691 = vmatpush1.bf16.msra.mxu1 %v5489_v29  ;;  %v5567_v29 = vld [vmem:[%s6007_s28 + $0x490] ss:$8 sps:$4 sm:$0xff]  }
 0x108   : > { %4019 = vmatpush1.bf16.msra.mxu0 %v5492_v30  ;;  %3692 = vmatprep.subr.bf16.mxu1 %v5497_v31  ;;  %v5570_v30 = vld [vmem:[%s6007_s28 + $0xc90] ss:$8 sps:$4 sm:$0xff]   ;;  %v5575_v31 = vld [vmem:[%s6007_s28 + $0x4a4] ss:$8 sps:$4 sm:$0xff]  }
 0x109   : > { %4020 = vmatprep.subr.bf16.mxu0 %v5500_v32  ;;  %v5578_v32 = vld [vmem:[%s6007_s28 + $0xca4] ss:$8 sps:$4 sm:$0xff]  }
 0x10b   : > { %3693 = vmatpush1.bf16.msra.mxu1 %v5495_v33  ;;  %v5573_v33 = vld [vmem:[%s6007_s28 + $0x4a0] ss:$8 sps:$4 sm:$0xff]  }
 0x10c   : > { %4021 = vmatpush1.bf16.msra.mxu0 %v5498_v34  ;;  %3694 = vmatprep.subr.bf16.mxu1 %v5503_v35  ;;  %v5576_v34 = vld [vmem:[%s6007_s28 + $0xca0] ss:$8 sps:$4 sm:$0xff]   ;;  %v5581_v35 = vld [vmem:[%s6007_s28 + $0x4b4] ss:$8 sps:$4 sm:$0xff]  }
 0x10d   : > { %4022 = vmatprep.subr.bf16.mxu0 %v5506_v36  ;;  %v5584_v36 = vld [vmem:[%s6007_s28 + $0xcb4] ss:$8 sps:$4 sm:$0xff]  }
 0x10f   : > { %3695 = vmatpush1.bf16.msra.mxu1 %v5501_v18  ;;  %v5579_v18 = vld [vmem:[%s6007_s28 + $0x4b0] ss:$8 sps:$4 sm:$0xff]  }
 0x110   : > { %4023 = vmatpush1.bf16.msra.mxu0 %v5504_v38  ;;  %3696 = vmatprep.subr.bf16.mxu1 %v5509_v43  ;;  %v5582_v38 = vld [vmem:[%s6007_s28 + $0xcb0] ss:$8 sps:$4 sm:$0xff]   ;;  %v5587_v43 = vld [vmem:[%s6007_s28 + $0x4c4] ss:$8 sps:$4 sm:$0xff]  }
 0x111   : > { %4024 = vmatprep.subr.bf16.mxu0 %v5512_v45  ;;  %v5590_v45 = vld [vmem:[%s6007_s28 + $0xcc4] ss:$8 sps:$4 sm:$0xff]  }
 0x113   : > { %3697 = vmatpush1.bf16.msra.mxu1 %v5507_v26  ;;  %v5585_v26 = vld [vmem:[%s6007_s28 + $0x4c0] ss:$8 sps:$4 sm:$0xff]  }
 0x114   : > { %4025 = vmatpush1.bf16.msra.mxu0 %v5510_v47  ;;  %3707 = vmatprep.subr.bf16.mxu1 %v5515_v37  ;;  %v5588_v47 = vld [vmem:[%s6007_s28 + $0xcc0] ss:$8 sps:$4 sm:$0xff]   ;;  %v5593_v37 = vld [vmem:[%s6007_s28 + $0x4d4] ss:$8 sps:$4 sm:$0xff]  }
 0x115   : > { %4035 = vmatprep.subr.bf16.mxu0 %v5518_v48  ;;  %v5596_v48 = vld [vmem:[%s6007_s28 + $0xcd4] ss:$8 sps:$4 sm:$0xff]  }
 0x116   : > { %3699 = vmatmul.mubr.bf16.vlgmr.msra.gmra.mrb[0].mxu1 %v801_v54  ;;  %v5597_v54 = vld [vmem:[%s6007_s28 + $0x4e0] ss:$8 sps:$4 sm:$0xff]  }
 0x117   : > { %4027 = vmatmul.mubr.bf16.vlgmr.msra.gmra.mrb[0].mxu0 %v899_v55  ;;  %3708 = vmatpush1.bf16.msra.mxu1 %v5513_v51  ;;  %v5599_v51 = vld [vmem:[%s6007_s28 + $0x4e4] ss:$8 sps:$4 sm:$0xff]   ;;  %v5600_v55 = vld [vmem:[%s6007_s28 + $0xce0] ss:$8 sps:$4 sm:$0xff]  }
 0x118   : > { %4036 = vmatpush1.bf16.msra.mxu0 %v5516_v52  ;;  %3709 = vmatprep.subr.bf16.mxu1 %v5521_v56  ;;  %v5602_v52 = vld [vmem:[%s6007_s28 + $0xce4] ss:$8 sps:$4 sm:$0xff]   ;;  %v5605_v56 = vld [vmem:[%s6007_s28 + $0x4f4] ss:$8 sps:$4 sm:$0xff]  }
 0x119   : > { %4037 = vmatprep.subr.bf16.mxu0 %v5524_v58  ;;  %3739 = vmatprep.mubr.bf16.mxu1 %v6360_v59  ;;  %v5608_v58 = vld [vmem:[%s6007_s28 + $0xcf4] ss:$8 sps:$4 sm:$0xff]  }
 0x11a   : > { %4067 = vmatprep.mubr.bf16.mxu0 %v6363_v60 }
 0x11b   : > { %3710 = vmatpush1.bf16.msra.mxu1 %v5519_v39  ;;  %v5603_v39 = vld [vmem:[%s6007_s28 + $0x4f0] ss:$8 sps:$4 sm:$0xff]  }
 0x11c   : > { %4038 = vmatpush1.bf16.msra.mxu0 %v5522_v40  ;;  %3711 = vmatprep.subr.bf16.mxu1 %v5527_v61  ;;  %v5606_v40 = vld [vmem:[%s6007_s28 + $0xcf0] ss:$8 sps:$4 sm:$0xff]   ;;  %v5611_v61 = vld [vmem:[%s6007_s28 + $0x504] ss:$8 sps:$4 sm:$0xff]  }
 0x11d   : > { %4039 = vmatprep.subr.bf16.mxu0 %v5530_v62  ;;  %v5614_v62 = vld [vmem:[%s6007_s28 + $0xd04] ss:$8 sps:$4 sm:$0xff]  }
 0x11f   : > { %3712 = vmatpush1.bf16.msra.mxu1 %v5525_v63  ;;  %v6429_v63 = vrot.slane %v6337_v25, %v6057_v50  ;;  %v851_v25 = vcombine.high %v6360_v59, %v6360_v59  ;;  %v5623_v59 = vld [vmem:[%s6007_s28 + $0x524] ss:$8 sps:$4 sm:$0xff]  }
 0x120   : > { %4040 = vmatpush1.bf16.msra.mxu0 %v5528_v0  ;;  %3713 = vmatprep.subr.bf16.mxu1 %v5533_v1  ;;  %v6433_v0 = vrot.slane %v6341_v46, %v6057_v50  ;;  %v5609_v1 = vld [vmem:[%s6007_s28 + $0x500] ss:$8 sps:$4 sm:$0xff]   ;;  %v5615_v46 = vld [vmem:[%s6007_s28 + $0x510] ss:$8 sps:$4 sm:$0xff]  }
 0x121   : > { %4041 = vmatprep.subr.bf16.mxu0 %v5536_v2  ;;  %v5612_v2 = vld [vmem:[%s6007_s28 + $0xd00] ss:$8 sps:$4 sm:$0xff]  }
 0x123   : > { %3714 = vmatpush1.bf16.msra.mxu1 %v5531_v3  ;;  %v5617_v3 = vld [vmem:[%s6007_s28 + $0x514] ss:$8 sps:$4 sm:$0xff]  }
 0x124   : > { %4042 = vmatpush1.bf16.msra.mxu0 %v5534_v4  ;;  %3715 = vmatprep.subr.bf16.mxu1 %v5539_v5  ;;  %v5620_v4 = vld [vmem:[%s6007_s28 + $0xd14] ss:$8 sps:$4 sm:$0xff]   ;;  %v949_v5 = vcombine.high %v6363_v60, %v6363_v60  ;;  %v5621_v60 = vld [vmem:[%s6007_s28 + $0x520] ss:$8 sps:$4 sm:$0xff]  }
 0x125   : > { %4043 = vmatprep.subr.bf16.mxu0 %v5542_v6  ;;  %v5618_v6 = vld [vmem:[%s6007_s28 + $0xd10] ss:$8 sps:$4 sm:$0xff]  }
 0x127   : > { %3716 = vmatpush1.bf16.msra.mxu1 %v5537_v7  ;;  %v5626_v7 = vld [vmem:[%s6007_s28 + $0xd24] ss:$8 sps:$4 sm:$0xff]  }
 0x128   : > { %4044 = vmatpush1.bf16.msra.mxu0 %v5540_v8  ;;  %3717 = vmatprep.subr.bf16.mxu1 %v5545_v9  ;;  %v5624_v8 = vld [vmem:[%s6007_s28 + $0xd20] ss:$8 sps:$4 sm:$0xff]   ;;  %v5629_v9 = vld [vmem:[%s6007_s28 + $0x534] ss:$8 sps:$4 sm:$0xff]  }
 0x129   : > { %4045 = vmatprep.subr.bf16.mxu0 %v5548_v10  ;;  %v5632_v10 = vld [vmem:[%s6007_s28 + $0xd34] ss:$8 sps:$4 sm:$0xff]  }
 0x12b   : > { %3718 = vmatpush1.bf16.msra.mxu1 %v5543_v11  ;;  %v5627_v11 = vld [vmem:[%s6007_s28 + $0x530] ss:$8 sps:$4 sm:$0xff]  }
 0x12c   : > { %4046 = vmatpush1.bf16.msra.mxu0 %v5546_v12  ;;  %3719 = vmatprep.subr.bf16.mxu1 %v5551_v13  ;;  %v5630_v12 = vld [vmem:[%s6007_s28 + $0xd30] ss:$8 sps:$4 sm:$0xff]   ;;  %v5635_v13 = vld [vmem:[%s6007_s28 + $0x544] ss:$8 sps:$4 sm:$0xff]  }
 0x12d   : > { %4047 = vmatprep.subr.bf16.mxu0 %v5554_v14  ;;  %v5638_v14 = vld [vmem:[%s6007_s28 + $0xd44] ss:$8 sps:$4 sm:$0xff]  }
 0x12f   : > { %3720 = vmatpush1.bf16.msra.mxu1 %v5549_v15  ;;  %v5633_v15 = vld [vmem:[%s6007_s28 + $0x540] ss:$8 sps:$4 sm:$0xff]  }
 0x130   : > { %4048 = vmatpush1.bf16.msra.mxu0 %v5552_v16  ;;  %3721 = vmatprep.subr.bf16.mxu1 %v5557_v19  ;;  %v5636_v16 = vld [vmem:[%s6007_s28 + $0xd40] ss:$8 sps:$4 sm:$0xff]   ;;  %v5641_v19 = vld [vmem:[%s6007_s28 + $0x554] ss:$8 sps:$4 sm:$0xff]  }
 0x131   : > { %4049 = vmatprep.subr.bf16.mxu0 %v5560_v20  ;;  %v5644_v20 = vld [vmem:[%s6007_s28 + $0xd54] ss:$8 sps:$4 sm:$0xff]  }
 0x133   : > { %3722 = vmatpush1.bf16.msra.mxu1 %v5555_v21  ;;  %v5639_v21 = vld [vmem:[%s6007_s28 + $0x550] ss:$8 sps:$4 sm:$0xff]  }
 0x134   : > { %4050 = vmatpush1.bf16.msra.mxu0 %v5558_v22  ;;  %3723 = vmatprep.subr.bf16.mxu1 %v5563_v23  ;;  %v5642_v22 = vld [vmem:[%s6007_s28 + $0xd50] ss:$8 sps:$4 sm:$0xff]   ;;  %v5647_v23 = vld [vmem:[%s6007_s28 + $0x564] ss:$8 sps:$4 sm:$0xff]  }
 0x135   : > { %4051 = vmatprep.subr.bf16.mxu0 %v5566_v24  ;;  %v5650_v24 = vld [vmem:[%s6007_s28 + $0xd64] ss:$8 sps:$4 sm:$0xff]  }
 0x137   : > { %3724 = vmatpush1.bf16.msra.mxu1 %v5561_v53  ;;  %v5645_v53 = vld [vmem:[%s6007_s28 + $0x560] ss:$8 sps:$4 sm:$0xff]  }
 0x138   : > { %4052 = vmatpush1.bf16.msra.mxu0 %v5564_v57  ;;  %3725 = vmatprep.subr.bf16.mxu1 %v5569_v27  ;;  %v5648_v57 = vld [vmem:[%s6007_s28 + $0xd60] ss:$8 sps:$4 sm:$0xff]   ;;  %v5653_v27 = vld [vmem:[%s6007_s28 + $0x574] ss:$8 sps:$4 sm:$0xff]  }
 0x139   : > { %4053 = vmatprep.subr.bf16.mxu0 %v5572_v28  ;;  %v5656_v28 = vld [vmem:[%s6007_s28 + $0xd74] ss:$8 sps:$4 sm:$0xff]  }
 0x13b   : > { %3726 = vmatpush1.bf16.msra.mxu1 %v5567_v29  ;;  %v5651_v29 = vld [vmem:[%s6007_s28 + $0x570] ss:$8 sps:$4 sm:$0xff]  }
 0x13c   : > { %4054 = vmatpush1.bf16.msra.mxu0 %v5570_v30  ;;  %3727 = vmatprep.subr.bf16.mxu1 %v5575_v31  ;;  %v5654_v30 = vld [vmem:[%s6007_s28 + $0xd70] ss:$8 sps:$4 sm:$0xff]   ;;  %v5659_v31 = vld [vmem:[%s6007_s28 + $0x584] ss:$8 sps:$4 sm:$0xff]  }
 0x13d   : > { %4055 = vmatprep.subr.bf16.mxu0 %v5578_v32  ;;  %v5662_v32 = vld [vmem:[%s6007_s28 + $0xd84] ss:$8 sps:$4 sm:$0xff]  }
 0x13f   : > { %3728 = vmatpush1.bf16.msra.mxu1 %v5573_v33  ;;  %v5657_v33 = vld [vmem:[%s6007_s28 + $0x580] ss:$8 sps:$4 sm:$0xff]  }
 0x140   : > { %4056 = vmatpush1.bf16.msra.mxu0 %v5576_v34  ;;  %3729 = vmatprep.subr.bf16.mxu1 %v5581_v35  ;;  %v5660_v34 = vld [vmem:[%s6007_s28 + $0xd80] ss:$8 sps:$4 sm:$0xff]   ;;  %v5665_v35 = vld [vmem:[%s6007_s28 + $0x594] ss:$8 sps:$4 sm:$0xff]  }
 0x141   : > { %4057 = vmatprep.subr.bf16.mxu0 %v5584_v36  ;;  %v5668_v36 = vld [vmem:[%s6007_s28 + $0xd94] ss:$8 sps:$4 sm:$0xff]  }
 0x143   : > { %3730 = vmatpush1.bf16.msra.mxu1 %v5579_v18  ;;  %v5663_v18 = vld [vmem:[%s6007_s28 + $0x590] ss:$8 sps:$4 sm:$0xff]  }
 0x144   : > { %4058 = vmatpush1.bf16.msra.mxu0 %v5582_v38  ;;  %3731 = vmatprep.subr.bf16.mxu1 %v5587_v43  ;;  %v5666_v38 = vld [vmem:[%s6007_s28 + $0xd90] ss:$8 sps:$4 sm:$0xff]   ;;  %v5671_v43 = vld [vmem:[%s6007_s28 + $0x5a4] ss:$8 sps:$4 sm:$0xff]  }
 0x145   : > { %4059 = vmatprep.subr.bf16.mxu0 %v5590_v45  ;;  %v5674_v45 = vld [vmem:[%s6007_s28 + $0xda4] ss:$8 sps:$4 sm:$0xff]  }
 0x147   : > { %3732 = vmatpush1.bf16.msra.mxu1 %v5585_v26  ;;  %v5669_v26 = vld [vmem:[%s6007_s28 + $0x5a0] ss:$8 sps:$4 sm:$0xff]  }
 0x148   : > { %4060 = vmatpush1.bf16.msra.mxu0 %v5588_v47  ;;  %3733 = vmatprep.subr.bf16.mxu1 %v5593_v37  ;;  %v5672_v47 = vld [vmem:[%s6007_s28 + $0xda0] ss:$8 sps:$4 sm:$0xff]   ;;  %v5677_v37 = vld [vmem:[%s6007_s28 + $0x5b4] ss:$8 sps:$4 sm:$0xff]  }
 0x149   : > { %4061 = vmatprep.subr.bf16.mxu0 %v5596_v48  ;;  %v5680_v48 = vld [vmem:[%s6007_s28 + $0xdb4] ss:$8 sps:$4 sm:$0xff]  }
 0x14b   : > { %3734 = vmatpush1.bf16.msra.mxu1 %v5591_v17  ;;  %v5675_v17 = vld [vmem:[%s6007_s28 + $0x5b0] ss:$8 sps:$4 sm:$0xff]  }
 0x14c   : > { %4062 = vmatpush1.bf16.msra.mxu0 %v5594_v49  ;;  %3735 = vmatprep.subr.bf16.mxu1 %v5599_v51  ;;  %v5678_v49 = vld [vmem:[%s6007_s28 + $0xdb0] ss:$8 sps:$4 sm:$0xff]   ;;  %v5683_v51 = vld [vmem:[%s6007_s28 + $0x5c4] ss:$8 sps:$4 sm:$0xff]  }
 0x14d   : > { %4063 = vmatprep.subr.bf16.mxu0 %v5602_v52  ;;  %v5686_v52 = vld [vmem:[%s6007_s28 + $0xdc4] ss:$8 sps:$4 sm:$0xff]  }
 0x14f   : > { %3736 = vmatpush1.bf16.msra.mxu1 %v5597_v54  ;;  %v5681_v54 = vld [vmem:[%s6007_s28 + $0x5c0] ss:$8 sps:$4 sm:$0xff]  }
 0x150   : > { %4064 = vmatpush1.bf16.msra.mxu0 %v5600_v55  ;;  %3737 = vmatprep.subr.bf16.mxu1 %v5605_v56  ;;  %v5684_v55 = vld [vmem:[%s6007_s28 + $0xdc0] ss:$8 sps:$4 sm:$0xff]   ;;  %v5689_v56 = vld [vmem:[%s6007_s28 + $0x5d4] ss:$8 sps:$4 sm:$0xff]  }
 0x151   : > { %4065 = vmatprep.subr.bf16.mxu0 %v5608_v58  ;;  %v5692_v58 = vld [vmem:[%s6007_s28 + $0xdd4] ss:$8 sps:$4 sm:$0xff]  }
 0x153   : > { %3738 = vmatpush1.bf16.msra.mxu1 %v5603_v39  ;;  %v5687_v39 = vld [vmem:[%s6007_s28 + $0x5d0] ss:$8 sps:$4 sm:$0xff]  }
 0x154   : > { %4066 = vmatpush1.bf16.msra.mxu0 %v5606_v40  ;;  %3748 = vmatprep.subr.bf16.mxu1 %v5611_v61  ;;  %v5690_v40 = vld [vmem:[%s6007_s28 + $0xdd0] ss:$8 sps:$4 sm:$0xff]   ;;  %v5695_v61 = vld [vmem:[%s6007_s28 + $0x5e4] ss:$8 sps:$4 sm:$0xff]  }
 0x155   : > { %4076 = vmatprep.subr.bf16.mxu0 %v5614_v62  ;;  %v5698_v62 = vld [vmem:[%s6007_s28 + $0xde4] ss:$8 sps:$4 sm:$0xff]  }
 0x156   : > { %3740 = vmatmul.mubr.bf16.vlgmr.msra.gmra.mrb[0].mxu1 %v6429_v63 }
 0x157   : > { %4068 = vmatmul.mubr.bf16.vlgmr.msra.gmra.mrb[0].mxu0 %v6433_v0  ;;  %3749 = vmatpush1.bf16.msra.mxu1 %v5609_v1  ;;  %v804_v1 = vcombine.high %v6328_v41, %v6328_v41  ;;  %v5699_v41 = vld [vmem:[%s6007_s28 + $0x5f0] ss:$8 sps:$4 sm:$0xff]  }
 0x158   : > { %4077 = vmatpush1.bf16.msra.mxu0 %v5612_v2  ;;  %3750 = vmatprep.subr.bf16.mxu1 %v5617_v3  ;;  %v902_v2 = vcombine.high %v6331_v42, %v6331_v42  ;;  %v5693_v3 = vld [vmem:[%s6007_s28 + $0x5e0] ss:$8 sps:$4 sm:$0xff]   ;;  %v5702_v42 = vld [vmem:[%s6007_s28 + $0xdf0] ss:$8 sps:$4 sm:$0xff]  }
 0x159   : > { %4078 = vmatprep.subr.bf16.mxu0 %v5620_v4  ;;  %3780 = vmatprep.mubr.bf16.mxu1 %v851_v25  ;;  %v5696_v4 = vld [vmem:[%s6007_s28 + $0xde0] ss:$8 sps:$4 sm:$0xff]   ;;  %v5701_v25 = vld [vmem:[%s6007_s28 + $0x5f4] ss:$8 sps:$4 sm:$0xff]  }
 0x15a   : > { %4108 = vmatprep.mubr.bf16.mxu0 %v949_v5  ;;  %v5704_v5 = vld [vmem:[%s6007_s28 + $0xdf4] ss:$8 sps:$4 sm:$0xff]  }
 0x15b   : > { %3751 = vmatpush1.bf16.msra.mxu1 %v5615_v46  ;;  %v6506_v46 = vrot.slane %v804_v1, %v6057_v50  ;;  %v5771_v1 = vld [vmem:[%s6007_s28 + $0x6b0] ss:$8 sps:$4 sm:$0xff]  }
 0x15c   : > { %4079 = vmatpush1.bf16.msra.mxu0 %v5618_v6  ;;  %3752 = vmatprep.subr.bf16.mxu1 %v5623_v59  ;;  %v6509_v6 = vrot.slane %v902_v2, %v6057_v50  ;;  %v5707_v59 = vld [vmem:[%s6007_s28 + $0x604] ss:$8 sps:$4 sm:$0xff]   ;;  %v5774_v2 = vld [vmem:[%s6007_s28 + $0xeb0] ss:$8 sps:$4 sm:$0xff]  }
 0x15d   : > { %4080 = vmatprep.subr.bf16.mxu0 %v5626_v7  ;;  %v5710_v7 = vld [vmem:[%s6007_s28 + $0xe04] ss:$8 sps:$4 sm:$0xff]  }
 0x15f   : > { %3753 = vmatpush1.bf16.msra.mxu1 %v5621_v60  ;;  %v820_v60 = vcombine.high %v6506_v46, %v6506_v46 }
 0x160   : > { %4081 = vmatpush1.bf16.msra.mxu0 %v5624_v8  ;;  %3754 = vmatprep.subr.bf16.mxu1 %v5629_v9  ;;  %v918_v8 = vcombine.high %v6509_v6, %v6509_v6  ;;  %v849_v9 = vcombine.high %v6429_v63, %v6429_v63 }
 0x161   : > { %4082 = vmatprep.subr.bf16.mxu0 %v5632_v10  ;;  %v947_v10 = vcombine.high %v6433_v0, %v6433_v0  ;;  %v5711_v0 = vld [vmem:[%s6007_s28 + $0x610] ss:$8 sps:$4 sm:$0xff]  }
 0x162   : > { %v6531_v63 = vrot.slane %v918_v8, %v6057_v50  ;;  %v5794_v8 = vld [vmem:[%s6007_s28 + $0xee4] ss:$8 sps:$4 sm:$0xff]  }
 0x163   : > { %3755 = vmatpush1.bf16.msra.mxu1 %v5627_v11  ;;  %v5705_v11 = vld [vmem:[%s6007_s28 + $0x600] ss:$8 sps:$4 sm:$0xff]  }
 0x164   : > { %4083 = vmatpush1.bf16.msra.mxu0 %v5630_v12  ;;  %3756 = vmatprep.subr.bf16.mxu1 %v5635_v13  ;;  %v5708_v12 = vld [vmem:[%s6007_s28 + $0xe00] ss:$8 sps:$4 sm:$0xff]   ;;  %v5713_v13 = vld [vmem:[%s6007_s28 + $0x614] ss:$8 sps:$4 sm:$0xff]  }
 0x165   : > { %4084 = vmatprep.subr.bf16.mxu0 %v5638_v14  ;;  %v5716_v14 = vld [vmem:[%s6007_s28 + $0xe14] ss:$8 sps:$4 sm:$0xff]  }
 0x167   : > { %3757 = vmatpush1.bf16.msra.mxu1 %v5633_v15  ;;  %v6528_v15 = vrot.slane %v820_v60, %v6057_v50  ;;  %v5791_v60 = vld [vmem:[%s6007_s28 + $0x6e4] ss:$8 sps:$4 sm:$0xff]  }
 0x168   : > { %4085 = vmatpush1.bf16.msra.mxu0 %v5636_v16  ;;  %3758 = vmatprep.subr.bf16.mxu1 %v5641_v19  ;;  %v5714_v16 = vld [vmem:[%s6007_s28 + $0xe10] ss:$8 sps:$4 sm:$0xff]   ;;  %v5719_v19 = vld [vmem:[%s6007_s28 + $0x624] ss:$8 sps:$4 sm:$0xff]  }
 0x169   : > { %4086 = vmatprep.subr.bf16.mxu0 %v5644_v20  ;;  %v5722_v20 = vld [vmem:[%s6007_s28 + $0xe24] ss:$8 sps:$4 sm:$0xff]  }
 0x16b   : > { %3759 = vmatpush1.bf16.msra.mxu1 %v5639_v21  ;;  %v5717_v21 = vld [vmem:[%s6007_s28 + $0x620] ss:$8 sps:$4 sm:$0xff]  }
 0x16c   : > { %4087 = vmatpush1.bf16.msra.mxu0 %v5642_v22  ;;  %3760 = vmatprep.subr.bf16.mxu1 %v5647_v23  ;;  %v5720_v22 = vld [vmem:[%s6007_s28 + $0xe20] ss:$8 sps:$4 sm:$0xff]   ;;  %v5725_v23 = vld [vmem:[%s6007_s28 + $0x634] ss:$8 sps:$4 sm:$0xff]  }
 0x16d   : > { %4088 = vmatprep.subr.bf16.mxu0 %v5650_v24  ;;  %v5728_v24 = vld [vmem:[%s6007_s28 + $0xe34] ss:$8 sps:$4 sm:$0xff]  }
 0x16f   : > { %3761 = vmatpush1.bf16.msra.mxu1 %v5645_v53  ;;  %v5723_v53 = vld [vmem:[%s6007_s28 + $0x630] ss:$8 sps:$4 sm:$0xff]  }
 0x170   : > { %4089 = vmatpush1.bf16.msra.mxu0 %v5648_v57  ;;  %3762 = vmatprep.subr.bf16.mxu1 %v5653_v27  ;;  %v5726_v57 = vld [vmem:[%s6007_s28 + $0xe30] ss:$8 sps:$4 sm:$0xff]   ;;  %v5731_v27 = vld [vmem:[%s6007_s28 + $0x644] ss:$8 sps:$4 sm:$0xff]  }
 0x171   : > { %4090 = vmatprep.subr.bf16.mxu0 %v5656_v28  ;;  %v5734_v28 = vld [vmem:[%s6007_s28 + $0xe44] ss:$8 sps:$4 sm:$0xff]  }
 0x173   : > { %3763 = vmatpush1.bf16.msra.mxu1 %v5651_v29  ;;  %v5729_v29 = vld [vmem:[%s6007_s28 + $0x640] ss:$8 sps:$4 sm:$0xff]  }
 0x174   : > { %4091 = vmatpush1.bf16.msra.mxu0 %v5654_v30  ;;  %3764 = vmatprep.subr.bf16.mxu1 %v5659_v31  ;;  %v5732_v30 = vld [vmem:[%s6007_s28 + $0xe40] ss:$8 sps:$4 sm:$0xff]   ;;  %v5737_v31 = vld [vmem:[%s6007_s28 + $0x654] ss:$8 sps:$4 sm:$0xff]  }
 0x175   : > { %4092 = vmatprep.subr.bf16.mxu0 %v5662_v32  ;;  %v5740_v32 = vld [vmem:[%s6007_s28 + $0xe54] ss:$8 sps:$4 sm:$0xff]  }
 0x177   : > { %3765 = vmatpush1.bf16.msra.mxu1 %v5657_v33  ;;  %v5735_v33 = vld [vmem:[%s6007_s28 + $0x650] ss:$8 sps:$4 sm:$0xff]  }
 0x178   : > { %4093 = vmatpush1.bf16.msra.mxu0 %v5660_v34  ;;  %3766 = vmatprep.subr.bf16.mxu1 %v5665_v35  ;;  %v5738_v34 = vld [vmem:[%s6007_s28 + $0xe50] ss:$8 sps:$4 sm:$0xff]   ;;  %v5743_v35 = vld [vmem:[%s6007_s28 + $0x664] ss:$8 sps:$4 sm:$0xff]  }
 0x179   : > { %4094 = vmatprep.subr.bf16.mxu0 %v5668_v36  ;;  %v5746_v36 = vld [vmem:[%s6007_s28 + $0xe64] ss:$8 sps:$4 sm:$0xff]  }
 0x17b   : > { %3767 = vmatpush1.bf16.msra.mxu1 %v5663_v18  ;;  %v5741_v18 = vld [vmem:[%s6007_s28 + $0x660] ss:$8 sps:$4 sm:$0xff]  }
 0x17c   : > { %4095 = vmatpush1.bf16.msra.mxu0 %v5666_v38  ;;  %3768 = vmatprep.subr.bf16.mxu1 %v5671_v43  ;;  %v5744_v38 = vld [vmem:[%s6007_s28 + $0xe60] ss:$8 sps:$4 sm:$0xff]   ;;  %v5749_v43 = vld [vmem:[%s6007_s28 + $0x674] ss:$8 sps:$4 sm:$0xff]  }
 0x17d   : > { %4096 = vmatprep.subr.bf16.mxu0 %v5674_v45  ;;  %v5752_v45 = vld [vmem:[%s6007_s28 + $0xe74] ss:$8 sps:$4 sm:$0xff]  }
 0x17f   : > { %3769 = vmatpush1.bf16.msra.mxu1 %v5669_v26  ;;  %v5747_v26 = vld [vmem:[%s6007_s28 + $0x670] ss:$8 sps:$4 sm:$0xff]  }
 0x180   : > { %4097 = vmatpush1.bf16.msra.mxu0 %v5672_v47  ;;  %3770 = vmatprep.subr.bf16.mxu1 %v5677_v37  ;;  %v5750_v47 = vld [vmem:[%s6007_s28 + $0xe70] ss:$8 sps:$4 sm:$0xff]   ;;  %v5755_v37 = vld [vmem:[%s6007_s28 + $0x684] ss:$8 sps:$4 sm:$0xff]  }
 0x181   : > { %4098 = vmatprep.subr.bf16.mxu0 %v5680_v48  ;;  %v5758_v48 = vld [vmem:[%s6007_s28 + $0xe84] ss:$8 sps:$4 sm:$0xff]  }
 0x183   : > { %3771 = vmatpush1.bf16.msra.mxu1 %v5675_v17  ;;  %v5753_v17 = vld [vmem:[%s6007_s28 + $0x680] ss:$8 sps:$4 sm:$0xff]  }
 0x184   : > { %4099 = vmatpush1.bf16.msra.mxu0 %v5678_v49  ;;  %3772 = vmatprep.subr.bf16.mxu1 %v5683_v51  ;;  %v5756_v49 = vld [vmem:[%s6007_s28 + $0xe80] ss:$8 sps:$4 sm:$0xff]   ;;  %v5761_v51 = vld [vmem:[%s6007_s28 + $0x694] ss:$8 sps:$4 sm:$0xff]  }
 0x185   : > { %4100 = vmatprep.subr.bf16.mxu0 %v5686_v52  ;;  %v5764_v52 = vld [vmem:[%s6007_s28 + $0xe94] ss:$8 sps:$4 sm:$0xff]  }
 0x187   : > { %3773 = vmatpush1.bf16.msra.mxu1 %v5681_v54  ;;  %v5759_v54 = vld [vmem:[%s6007_s28 + $0x690] ss:$8 sps:$4 sm:$0xff]  }
 0x188   : > { %4101 = vmatpush1.bf16.msra.mxu0 %v5684_v55  ;;  %3774 = vmatprep.subr.bf16.mxu1 %v5689_v56  ;;  %v5762_v55 = vld [vmem:[%s6007_s28 + $0xe90] ss:$8 sps:$4 sm:$0xff]   ;;  %v5767_v56 = vld [vmem:[%s6007_s28 + $0x6a4] ss:$8 sps:$4 sm:$0xff]  }
 0x189   : > { %4102 = vmatprep.subr.bf16.mxu0 %v5692_v58  ;;  %v5770_v58 = vld [vmem:[%s6007_s28 + $0xea4] ss:$8 sps:$4 sm:$0xff]  }
 0x18b   : > { %3775 = vmatpush1.bf16.msra.mxu1 %v5687_v39  ;;  %v5765_v39 = vld [vmem:[%s6007_s28 + $0x6a0] ss:$8 sps:$4 sm:$0xff]  }
 0x18c   : > { %4103 = vmatpush1.bf16.msra.mxu0 %v5690_v40  ;;  %3776 = vmatprep.subr.bf16.mxu1 %v5695_v61  ;;  %v5768_v40 = vld [vmem:[%s6007_s28 + $0xea0] ss:$8 sps:$4 sm:$0xff]   ;;  %v5773_v61 = vld [vmem:[%s6007_s28 + $0x6b4] ss:$8 sps:$4 sm:$0xff]  }
 0x18d   : > { %4104 = vmatprep.subr.bf16.mxu0 %v5698_v62  ;;  %v5776_v62 = vld [vmem:[%s6007_s28 + $0xeb4] ss:$8 sps:$4 sm:$0xff]  }
 0x18f   : > { %3777 = vmatpush1.bf16.msra.mxu1 %v5693_v3  ;;  %v5779_v3 = vld [vmem:[%s6007_s28 + $0x6c4] ss:$8 sps:$4 sm:$0xff]  }
 0x190   : > { %4105 = vmatpush1.bf16.msra.mxu0 %v5696_v4  ;;  %3778 = vmatprep.subr.bf16.mxu1 %v5701_v25  ;;  %v5782_v4 = vld [vmem:[%s6007_s28 + $0xec4] ss:$8 sps:$4 sm:$0xff]   ;;  %v5777_v25 = vld [vmem:[%s6007_s28 + $0x6c0] ss:$8 sps:$4 sm:$0xff]  }
 0x191   : > { %4106 = vmatprep.subr.bf16.mxu0 %v5704_v5  ;;  %v5780_v5 = vld [vmem:[%s6007_s28 + $0xec0] ss:$8 sps:$4 sm:$0xff]  }
 0x193   : > { %3779 = vmatpush1.bf16.msra.mxu1 %v5699_v41  ;;  %v5785_v41 = vld [vmem:[%s6007_s28 + $0x6d4] ss:$8 sps:$4 sm:$0xff]  }
 0x194   : > { %4107 = vmatpush1.bf16.msra.mxu0 %v5702_v42  ;;  %3789 = vmatprep.subr.bf16.mxu1 %v5707_v59  ;;  %v5788_v42 = vld [vmem:[%s6007_s28 + $0xed4] ss:$8 sps:$4 sm:$0xff]   ;;  %v5783_v59 = vld [vmem:[%s6007_s28 + $0x6d0] ss:$8 sps:$4 sm:$0xff]  }
 0x195   : > { %4117 = vmatprep.subr.bf16.mxu0 %v5710_v7  ;;  %v5786_v7 = vld [vmem:[%s6007_s28 + $0xed0] ss:$8 sps:$4 sm:$0xff]  }
 0x196   : > { %3781 = vmatmul.mubr.bf16.vlgmr.msra.gmra.mrb[0].mxu1 %v849_v9  ;;  %v5789_v9 = vld [vmem:[%s6007_s28 + $0x6e0] ss:$8 sps:$4 sm:$0xff]  }
 0x197   : > { %4109 = vmatmul.mubr.bf16.vlgmr.msra.gmra.mrb[0].mxu0 %v947_v10  ;;  %3790 = vmatpush1.bf16.msra.mxu1 %v5705_v11  ;;  %v5792_v10 = vld [vmem:[%s6007_s28 + $0xee0] ss:$8 sps:$4 sm:$0xff]   ;;  %v5797_v11 = vld [vmem:[%s6007_s28 + $0x6f4] ss:$8 sps:$4 sm:$0xff]  }
 0x198   : > { %4118 = vmatpush1.bf16.msra.mxu0 %v5708_v12  ;;  %3791 = vmatprep.subr.bf16.mxu1 %v5713_v13  ;;  %v5800_v12 = vld [vmem:[%s6007_s28 + $0xef4] ss:$8 sps:$4 sm:$0xff]   ;;  %v5795_v13 = vld [vmem:[%s6007_s28 + $0x6f0] ss:$8 sps:$4 sm:$0xff]  }
 0x199   : > { %4119 = vmatprep.subr.bf16.mxu0 %v5716_v14  ;;  %3821 = vmatprep.mubr.bf16.mxu1 %v6528_v15  ;;  %v5798_v14 = vld [vmem:[%s6007_s28 + $0xef0] ss:$8 sps:$4 sm:$0xff]  }
 0x19a   : > { %4149 = vmatprep.mubr.bf16.mxu0 %v6531_v63 }
 0x19b   : > { %3792 = vmatpush1.bf16.msra.mxu1 %v5711_v0  ;;  %v5804_v0 = vld [vmem:[%s6007_s28 + $0x704] ss:$8 sps:$4 sm:$0xff]  }
 0x19c   : > { %4120 = vmatpush1.bf16.msra.mxu0 %v5714_v16  ;;  %3793 = vmatprep.subr.bf16.mxu1 %v5719_v19  ;;  %v5808_v16 = vld [vmem:[%s6007_s28 + $0xf04] ss:$8 sps:$4 sm:$0xff]   ;;  %v6597_v19 = vrot.slane %v6506_v46, %v6057_v50  ;;  %v852_v46 = vcombine.high %v6528_v15, %v6528_v15 }
 0x19d   : > { %4121 = vmatprep.subr.bf16.mxu0 %v5722_v20  ;;  %v6601_v20 = vrot.slane %v6509_v6, %v6057_v50  ;;  %v5809_v50 = vld [vmem:[%s6007_s28 + $0x710] ss:$8 sps:$4 sm:$0xff]   ;;  %v5817_v15 = vld [vmem:[%s6007_s28 + $0x724] ss:$8 sps:$4 sm:$0xff]  }
 0x19e   : > { %v5812_v6 = vld [vmem:[%s6007_s28 + $0xf10] ss:$8 sps:$4 sm:$0xff]  }
 0x19f   : > { %3794 = vmatpush1.bf16.msra.mxu1 %v5717_v21  ;;  %v5802_v21 = vld [vmem:[%s6007_s28 + $0x700] ss:$8 sps:$4 sm:$0xff]  }
 0x1a0   : > { %4122 = vmatpush1.bf16.msra.mxu0 %v5720_v22  ;;  %3795 = vmatprep.subr.bf16.mxu1 %v5725_v23  ;;  %v5806_v22 = vld [vmem:[%s6007_s28 + $0xf00] ss:$8 sps:$4 sm:$0xff]   ;;  %v5811_v23 = vld [vmem:[%s6007_s28 + $0x714] ss:$8 sps:$4 sm:$0xff]  }
 0x1a1   : > { %4123 = vmatprep.subr.bf16.mxu0 %v5728_v24  ;;  %v5814_v24 = vld [vmem:[%s6007_s28 + $0xf14] ss:$8 sps:$4 sm:$0xff]  }
 0x1a3   : > { %3796 = vmatpush1.bf16.msra.mxu1 %v5723_v53  ;;  %v950_v53 = vcombine.high %v6531_v63, %v6531_v63  ;;  %v5815_v63 = vld [vmem:[%s6007_s28 + $0x720] ss:$8 sps:$4 sm:$0xff]  }
 0x1a4   : > { %4124 = vmatpush1.bf16.msra.mxu0 %v5726_v57  ;;  %3797 = vmatprep.subr.bf16.mxu1 %v5731_v27  ;;  %v5820_v57 = vld [vmem:[%s6007_s28 + $0xf24] ss:$8 sps:$4 sm:$0xff]   ;;  %v5818_v27 = vld [vmem:[%s6007_s28 + $0xf20] ss:$8 sps:$4 sm:$0xff]  }
 0x1a5   : > { %4125 = vmatprep.subr.bf16.mxu0 %v5734_v28  ;;  %v5823_v28 = vld [vmem:[%s6007_s28 + $0x734] ss:$8 sps:$4 sm:$0xff]  }
 0x1a7   : > { %3798 = vmatpush1.bf16.msra.mxu1 %v5729_v29  ;;  %v5826_v29 = vld [vmem:[%s6007_s28 + $0xf34] ss:$8 sps:$4 sm:$0xff]  }
 0x1a8   : > { %4126 = vmatpush1.bf16.msra.mxu0 %v5732_v30  ;;  %3799 = vmatprep.subr.bf16.mxu1 %v5737_v31  ;;  %v5821_v30 = vld [vmem:[%s6007_s28 + $0x730] ss:$8 sps:$4 sm:$0xff]  }
 0x1a9   : > { %4127 = vmatprep.subr.bf16.mxu0 %v5740_v32  ;;  %v5824_v31 = vld [vmem:[%s6007_s28 + $0xf30] ss:$8 sps:$4 sm:$0xff]   ;;  %v5829_v32 = vld [vmem:[%s6007_s28 + $0x744] ss:$8 sps:$4 sm:$0xff]  }
 0x1ab   : > { %3800 = vmatpush1.bf16.msra.mxu1 %v5735_v33  ;;  %v5832_v33 = vld [vmem:[%s6007_s28 + $0xf44] ss:$8 sps:$4 sm:$0xff]  }
 0x1ac   : > { %4128 = vmatpush1.bf16.msra.mxu0 %v5738_v34  ;;  %3801 = vmatprep.subr.bf16.mxu1 %v5743_v35  ;;  %v5827_v34 = vld [vmem:[%s6007_s28 + $0x740] ss:$8 sps:$4 sm:$0xff]  }
 0x1ad   : > { %4129 = vmatprep.subr.bf16.mxu0 %v5746_v36  ;;  %v5830_v35 = vld [vmem:[%s6007_s28 + $0xf40] ss:$8 sps:$4 sm:$0xff]   ;;  %v5835_v36 = vld [vmem:[%s6007_s28 + $0x754] ss:$8 sps:$4 sm:$0xff]  }
 0x1af   : > { %3802 = vmatpush1.bf16.msra.mxu1 %v5741_v18  ;;  %v5838_v18 = vld [vmem:[%s6007_s28 + $0xf54] ss:$8 sps:$4 sm:$0xff]  }
 0x1b0   : > { %4130 = vmatpush1.bf16.msra.mxu0 %v5744_v38  ;;  %3803 = vmatprep.subr.bf16.mxu1 %v5749_v43  ;;  %v5833_v38 = vld [vmem:[%s6007_s28 + $0x750] ss:$8 sps:$4 sm:$0xff]  }
 0x1b1   : > { %4131 = vmatprep.subr.bf16.mxu0 %v5752_v45  ;;  %v5836_v43 = vld [vmem:[%s6007_s28 + $0xf50] ss:$8 sps:$4 sm:$0xff]   ;;  %v5841_v45 = vld [vmem:[%s6007_s28 + $0x764] ss:$8 sps:$4 sm:$0xff]  }
 0x1b3   : > { %3804 = vmatpush1.bf16.msra.mxu1 %v5747_v26  ;;  %v5844_v26 = vld [vmem:[%s6007_s28 + $0xf64] ss:$8 sps:$4 sm:$0xff]  }
 0x1b4   : > { %4132 = vmatpush1.bf16.msra.mxu0 %v5750_v47  ;;  %3805 = vmatprep.subr.bf16.mxu1 %v5755_v37  ;;  %v5839_v47 = vld [vmem:[%s6007_s28 + $0x760] ss:$8 sps:$4 sm:$0xff]  }
 0x1b5   : > { %4133 = vmatprep.subr.bf16.mxu0 %v5758_v48  ;;  %v5842_v37 = vld [vmem:[%s6007_s28 + $0xf60] ss:$8 sps:$4 sm:$0xff]   ;;  %v5847_v48 = vld [vmem:[%s6007_s28 + $0x774] ss:$8 sps:$4 sm:$0xff]  }
 0x1b7   : > { %3806 = vmatpush1.bf16.msra.mxu1 %v5753_v17  ;;  %v5850_v17 = vld [vmem:[%s6007_s28 + $0xf74] ss:$8 sps:$4 sm:$0xff]  }
 0x1b8   : > { %4134 = vmatpush1.bf16.msra.mxu0 %v5756_v49  ;;  %3807 = vmatprep.subr.bf16.mxu1 %v5761_v51  ;;  %v5845_v49 = vld [vmem:[%s6007_s28 + $0x770] ss:$8 sps:$4 sm:$0xff]  }
 0x1b9   : > { %4135 = vmatprep.subr.bf16.mxu0 %v5764_v52  ;;  %v5848_v51 = vld [vmem:[%s6007_s28 + $0xf70] ss:$8 sps:$4 sm:$0xff]   ;;  %v5853_v52 = vld [vmem:[%s6007_s28 + $0x784] ss:$8 sps:$4 sm:$0xff]  }
 0x1bb   : > { %3808 = vmatpush1.bf16.msra.mxu1 %v5759_v54  ;;  %v5856_v54 = vld [vmem:[%s6007_s28 + $0xf84] ss:$8 sps:$4 sm:$0xff]  }
 0x1bc   : > { %4136 = vmatpush1.bf16.msra.mxu0 %v5762_v55  ;;  %3809 = vmatprep.subr.bf16.mxu1 %v5767_v56  ;;  %v5851_v55 = vld [vmem:[%s6007_s28 + $0x780] ss:$8 sps:$4 sm:$0xff]  }
 0x1bd   : > { %4137 = vmatprep.subr.bf16.mxu0 %v5770_v58  ;;  %v5854_v56 = vld [vmem:[%s6007_s28 + $0xf80] ss:$8 sps:$4 sm:$0xff]   ;;  %v5859_v58 = vld [vmem:[%s6007_s28 + $0x794] ss:$8 sps:$4 sm:$0xff]  }
 0x1bf   : > { %3810 = vmatpush1.bf16.msra.mxu1 %v5765_v39  ;;  %v5862_v39 = vld [vmem:[%s6007_s28 + $0xf94] ss:$8 sps:$4 sm:$0xff]  }
 0x1c0   : > { %4138 = vmatpush1.bf16.msra.mxu0 %v5768_v40  ;;  %3811 = vmatprep.subr.bf16.mxu1 %v5773_v61  ;;  %v5857_v40 = vld [vmem:[%s6007_s28 + $0x790] ss:$8 sps:$4 sm:$0xff]  }
 0x1c1   : > { %4139 = vmatprep.subr.bf16.mxu0 %v5776_v62  ;;  %v5860_v61 = vld [vmem:[%s6007_s28 + $0xf90] ss:$8 sps:$4 sm:$0xff]   ;;  %v5865_v62 = vld [vmem:[%s6007_s28 + $0x7a4] ss:$8 sps:$4 sm:$0xff]  }
 0x1c3   : > { %3812 = vmatpush1.bf16.msra.mxu1 %v5771_v1  ;;  %v5868_v1 = vld [vmem:[%s6007_s28 + $0xfa4] ss:$8 sps:$4 sm:$0xff]  }
 0x1c4   : > { %4140 = vmatpush1.bf16.msra.mxu0 %v5774_v2  ;;  %3813 = vmatprep.subr.bf16.mxu1 %v5779_v3  ;;  %v5863_v2 = vld [vmem:[%s6007_s28 + $0x7a0] ss:$8 sps:$4 sm:$0xff]  }
 0x1c5   : > { %4141 = vmatprep.subr.bf16.mxu0 %v5782_v4  ;;  %v5866_v3 = vld [vmem:[%s6007_s28 + $0xfa0] ss:$8 sps:$4 sm:$0xff]   ;;  %v5871_v4 = vld [vmem:[%s6007_s28 + $0x7b4] ss:$8 sps:$4 sm:$0xff]  }
 0x1c7   : > { %3814 = vmatpush1.bf16.msra.mxu1 %v5777_v25  ;;  %v5874_v25 = vld [vmem:[%s6007_s28 + $0xfb4] ss:$8 sps:$4 sm:$0xff]  }
 0x1c8   : > { %4142 = vmatpush1.bf16.msra.mxu0 %v5780_v5  ;;  %3815 = vmatprep.subr.bf16.mxu1 %v5785_v41  ;;  %v5869_v5 = vld [vmem:[%s6007_s28 + $0x7b0] ss:$8 sps:$4 sm:$0xff]  }
 0x1c9   : > { %4143 = vmatprep.subr.bf16.mxu0 %v5788_v42  ;;  %v5872_v41 = vld [vmem:[%s6007_s28 + $0xfb0] ss:$8 sps:$4 sm:$0xff]   ;;  %v5877_v42 = vld [vmem:[%s6007_s28 + $0x7c4] ss:$8 sps:$4 sm:$0xff]  }
 0x1cb   : > { %3816 = vmatpush1.bf16.msra.mxu1 %v5783_v59  ;;  %v5880_v59 = vld [vmem:[%s6007_s28 + $0xfc4] ss:$8 sps:$4 sm:$0xff]  }
 0x1cc   : > { %4144 = vmatpush1.bf16.msra.mxu0 %v5786_v7  ;;  %3817 = vmatprep.subr.bf16.mxu1 %v5791_v60  ;;  %v5875_v7 = vld [vmem:[%s6007_s28 + $0x7c0] ss:$8 sps:$4 sm:$0xff]  }
 0x1cd   : > { %4145 = vmatprep.subr.bf16.mxu0 %v5794_v8  ;;  %v5878_v60 = vld [vmem:[%s6007_s28 + $0xfc0] ss:$8 sps:$4 sm:$0xff]   ;;  %v5883_v8 = vld [vmem:[%s6007_s28 + $0x7d4] ss:$8 sps:$4 sm:$0xff]  }
 0x1cf   : > { %3818 = vmatpush1.bf16.msra.mxu1 %v5789_v9  ;;  %v5886_v9 = vld [vmem:[%s6007_s28 + $0xfd4] ss:$8 sps:$4 sm:$0xff]  }
 0x1d0   : > { %4146 = vmatpush1.bf16.msra.mxu0 %v5792_v10  ;;  %3819 = vmatprep.subr.bf16.mxu1 %v5797_v11  ;;  %v5881_v10 = vld [vmem:[%s6007_s28 + $0x7d0] ss:$8 sps:$4 sm:$0xff]  }
 0x1d1   : > { %4147 = vmatprep.subr.bf16.mxu0 %v5800_v12  ;;  %v5884_v11 = vld [vmem:[%s6007_s28 + $0xfd0] ss:$8 sps:$4 sm:$0xff]   ;;  %v5889_v12 = vld [vmem:[%s6007_s28 + $0x7e4] ss:$8 sps:$4 sm:$0xff]  }
 0x1d3   : > { %3820 = vmatpush1.bf16.msra.mxu1 %v5795_v13  ;;  %v5892_v13 = vld [vmem:[%s6007_s28 + $0xfe4] ss:$8 sps:$4 sm:$0xff]  }
 0x1d4   : > { %4148 = vmatpush1.bf16.msra.mxu0 %v5798_v14  ;;  %3830 = vmatprep.subr.bf16.mxu1 %v5804_v0  ;;  %v5887_v14 = vld [vmem:[%s6007_s28 + $0x7e0] ss:$8 sps:$4 sm:$0xff]  }
 0x1d5   : > { %4158 = vmatprep.subr.bf16.mxu0 %v5808_v16  ;;  %v5890_v0 = vld [vmem:[%s6007_s28 + $0xfe0] ss:$8 sps:$4 sm:$0xff]   ;;  %v5895_v16 = vld [vmem:[%s6007_s28 + $0x7f4] ss:$8 sps:$4 sm:$0xff]  }
 0x1d6   : > { %3822 = vmatmul.mubr.bf16.vlgmr.msra.gmra.mrb[0].mxu1 %v6597_v19 }
 0x1d7   : > { %4150 = vmatmul.mubr.bf16.vlgmr.msra.gmra.mrb[0].mxu0 %v6601_v20  ;;  %3831 = vmatpush1.bf16.msra.mxu1 %v5802_v21  ;;  %v5898_v21 = vld [vmem:[%s6007_s28 + $0xff4] ss:$8 sps:$4 sm:$0xff]  }
 0x1d8   : > { %4159 = vmatpush1.bf16.msra.mxu0 %v5806_v22  ;;  %3832 = vmatprep.subr.bf16.mxu1 %v5811_v23  ;;  %v5893_v22 = vld [vmem:[%s6007_s28 + $0x7f0] ss:$8 sps:$4 sm:$0xff]  }
 0x1d9   : > { %4160 = vmatprep.subr.bf16.mxu0 %v5814_v24  ;;  %3862 = vmatprep.mubr.bf16.mxu1 %v852_v46  ;;  %v5896_v23 = vld [vmem:[%s6007_s28 + $0xff0] ss:$8 sps:$4 sm:$0xff]   ;;  %v850_v24 = vcombine.high %v6597_v19, %v6597_v19  ;;  %v948_v46 = vcombine.high %v6601_v20, %v6601_v20 }
 0x1da   : > { %4190 = vmatprep.mubr.bf16.mxu0 %v950_v53  ;;  %v5955_v53 = vmov 1983009808  }
 0x1db   : > { %3833 = vmatpush1.bf16.msra.mxu1 %v5809_v50  ;;  %v4203_v50 = vunpack.c.l.s4 %v5955_v53 }
 0x1dc   : > { %4161 = vmatpush1.bf16.msra.mxu0 %v5812_v6  ;;  %3834 = vmatprep.subr.bf16.mxu1 %v5817_v15 }
 0x1dd   : > { %4162 = vmatprep.subr.bf16.mxu0 %v5820_v57  ;;  %v4204_v6 = vunpack.c.0.s8 %v4203_v50 }
 0x1df   : > { %3835 = vmatpush1.bf16.msra.mxu1 %v5815_v63 }
 0x1e0   : > { %4163 = vmatpush1.bf16.msra.mxu0 %v5818_v27  ;;  %3836 = vmatprep.subr.bf16.mxu1 %v5823_v28 }
 0x1e1   : > { %4164 = vmatprep.subr.bf16.mxu0 %v5826_v29 }
 0x1e3   : > { %3837 = vmatpush1.bf16.msra.mxu1 %v5821_v30  ;;  %v4207_v30 = vsub.s32 %v4204_v6, %v6049_v44 }
 0x1e4   : > { %4165 = vmatpush1.bf16.msra.mxu0 %v5824_v31  ;;  %3838 = vmatprep.subr.bf16.mxu1 %v5829_v32 }
 0x1e5   : > { %4166 = vmatprep.subr.bf16.mxu0 %v5832_v33 }
 0x1e7   : > { %3839 = vmatpush1.bf16.msra.mxu1 %v5827_v34  ;;  %v234_v34 = vld [vmem:[#allocation2] sm:$0xf] }
 0x1e8   : > { %4167 = vmatpush1.bf16.msra.mxu0 %v5830_v35  ;;  %3840 = vmatprep.subr.bf16.mxu1 %v5835_v36 }
 0x1e9   : > { %4168 = vmatprep.subr.bf16.mxu0 %v5838_v18  ;;  %v5899_v18 = vld [vmem:[%s6762_s3 + $0x40] sm:$0xff] (!%p5006_p5)  }
 0x1eb   : > { %3841 = vmatpush1.bf16.msra.mxu1 %v5833_v38  ;;  %v5900_v38 = vld [vmem:[%s6762_s3] sm:$0xff] (!%p5006_p5)  }
 0x1ec   : > { %4169 = vmatpush1.bf16.msra.mxu0 %v5836_v43  ;;  %3842 = vmatprep.subr.bf16.mxu1 %v5841_v45  ;;  %v5901_v43 = vld [vmem:[%s6762_s3 + $0x48] sm:$0xff] (!%p5006_p5)  }
 0x1ed   : > { %4170 = vmatprep.subr.bf16.mxu0 %v5844_v26  ;;  %v5902_v45 = vld [vmem:[%s6762_s3 + $0x8] sm:$0xff] (!%p5006_p5)   ;;  %v5903_v26 = vld [vmem:[%s6762_s3 + $0x50] sm:$0xff] (!%p5006_p5)  }
 0x1ef   : > { %3843 = vmatpush1.bf16.msra.mxu1 %v5839_v47  ;;  %v5904_v47 = vld [vmem:[%s6762_s3 + $0x10] sm:$0xff] (!%p5006_p5)  }
 0x1f0   : > { %4171 = vmatpush1.bf16.msra.mxu0 %v5842_v37  ;;  %3844 = vmatprep.subr.bf16.mxu1 %v5847_v48  ;;  %v5905_v37 = vld [vmem:[%s6762_s3 + $0x58] sm:$0xff] (!%p5006_p5)  }
 0x1f1   : > { %4172 = vmatprep.subr.bf16.mxu0 %v5850_v17  ;;  %v5906_v48 = vld [vmem:[%s6762_s3 + $0x18] sm:$0xff] (!%p5006_p5)   ;;  %v5907_v17 = vld [vmem:[%s6762_s3 + $0x60] sm:$0xff] (!%p5006_p5)  }
 0x1f3   : > { %3845 = vmatpush1.bf16.msra.mxu1 %v5845_v49  ;;  %v4221_v49 = vsub.s32 (!%p5006_p5), 0, %v6049_v44 }
 0x1f4   : > { %4173 = vmatpush1.bf16.msra.mxu0 %v5848_v51  ;;  %3846 = vmatprep.subr.bf16.mxu1 %v5853_v52  ;;  %v4225_v51 = vsub.s32 (!%p5006_p5), 1, %v6049_v44  ;;  %v5908_v52 = vld [vmem:[%s6762_s3 + $0x20] sm:$0xff] (!%p5006_p5)   ;;  %v5910_v44 = vld [vmem:[%s6762_s3 + $0x28] sm:$0xff] (!%p5006_p5)  }
 0x1f5   : > { %4174 = vmatprep.subr.bf16.mxu0 %v5856_v54  ;;  %v5909_v54 = vld [vmem:[%s6762_s3 + $0x68] sm:$0xff] (!%p5006_p5)  }
 0x1f7   : > { %3847 = vmatpush1.bf16.msra.mxu1 %v5851_v55  ;;  %v4217_v55 = vld [vmem:[%s6761_s2] sm:$0x3] (!%p5006_p5) }
 0x1f8   : > { %4175 = vmatpush1.bf16.msra.mxu0 %v5854_v56  ;;  %3848 = vmatprep.subr.bf16.mxu1 %v5859_v58  ;;  %v4222_v56 = vrot.slane (!%p5006_p5), %v4217_v55, %v4221_v49  ;;  %v4226_v58 = vrot.slane (!%p5006_p5), %v4217_v55, %v4225_v51 }
 0x1f9   : > { %4176 = vmatprep.subr.bf16.mxu0 %v5862_v39 }
 0x1fa   : > { %v4227_v39 = vcombine.low (!%p5006_p5), %v4222_v56, %v4226_v58 }
 0x1fb   : > { %3849 = vmatpush1.bf16.msra.mxu1 %v5857_v40  ;;  %v5911_v40 = vld [vmem:[%s6762_s3 + $0x70] sm:$0xff] (!%p5006_p5)  }
 0x1fc   : > { %4177 = vmatpush1.bf16.msra.mxu0 %v5860_v61  ;;  %3850 = vmatprep.subr.bf16.mxu1 %v5865_v62  ;;  %v4234_v62 = vrot.slane (!%p5006_p5), %v4227_v39, %v4207_v30 }
 0x1fd   : > { %4178 = vmatprep.subr.bf16.mxu0 %v5868_v1  ;;  %v5912_v1 = vld [vmem:[%s6762_s3 + $0x30] sm:$0xff] (!%p5006_p5)  }
 0x1ff   : > { %3851 = vmatpush1.bf16.msra.mxu1 %v5863_v2 }
 0x200   : > { %4179 = vmatpush1.bf16.msra.mxu0 %v5866_v3  ;;  %3852 = vmatprep.subr.bf16.mxu1 %v5871_v4  ;;  %v5913_v3 = vld [vmem:[%s6762_s3 + $0x78] sm:$0xff] (!%p5006_p5)  }
 0x201   : > { %4180 = vmatprep.subr.bf16.mxu0 %v5874_v25  ;;  %v5914_v25 = vld [vmem:[%s6762_s3 + $0x38] sm:$0xff] (!%p5006_p5)  }
 0x203   : > { %3853 = vmatpush1.bf16.msra.mxu1 %v5869_v5 }
 0x204   : > { %4181 = vmatpush1.bf16.msra.mxu0 %v5872_v41  ;;  %3854 = vmatprep.subr.bf16.mxu1 %v5877_v42 }
 0x205   : > { %4182 = vmatprep.subr.bf16.mxu0 %v5880_v59 }
 0x207   : > { %3855 = vmatpush1.bf16.msra.mxu1 %v5875_v7 }
 0x208   : > { %4183 = vmatpush1.bf16.msra.mxu0 %v5878_v60  ;;  %3856 = vmatprep.subr.bf16.mxu1 %v5883_v8  ;;  %v5007_v60 = vld [vmem:[%s6763_s4] ss:$0 sm:$0xff] (!%p5006_p5) }
 0x209   : > { %4184 = vmatprep.subr.bf16.mxu0 %v5886_v9 }
 0x20b   : > { %3857 = vmatpush1.bf16.msra.mxu1 %v5881_v10 }
 0x20c   : > { %4185 = vmatpush1.bf16.msra.mxu0 %v5884_v11  ;;  %3858 = vmatprep.subr.bf16.mxu1 %v5889_v12 }
 0x20d   : > { %4186 = vmatprep.subr.bf16.mxu0 %v5892_v13 }
 0x20f   : > { %3859 = vmatpush1.bf16.msra.mxu1 %v5887_v14 }
 0x210   : > { %4187 = vmatpush1.bf16.msra.mxu0 %v5890_v0  ;;  %3860 = vmatprep.subr.bf16.mxu1 %v5895_v16 }
 0x211   : > { %4188 = vmatprep.subr.bf16.mxu0 %v5898_v21 }
 0x213   : > { %3861 = vmatpush1.bf16.msra.mxu1 %v5893_v22 }
 0x214   : > { %4189 = vmatpush1.bf16.msra.mxu0 %v5896_v23 }
 0x215   : > { %5029 = vmatprep.subr.bf16.mxu0 (!%p5006_p5), %v5899_v18 }
 0x216   : > { %3863 = vmatmul.mubr.bf16.vlgmr.msra.gmra.mrb[0].mxu1 %v850_v24 }
 0x217   : > { %4191 = vmatmul.mubr.bf16.vlgmr.msra.gmra.mrb[0].mxu0 %v948_v46 }
 0x218   : > { %5030 = vmatpush3.bf16.msra.mxu0 (!%p5006_p5), %v5900_v38 }
 0x219   : > { %5031 = vmatprep.subr.bf16.mxu0 (!%p5006_p5), %v5901_v43 }
 0x21c   : > { %5032 = vmatpush3.bf16.msra.mxu0 (!%p5006_p5), %v5902_v45 }
 0x21d   : > { %5033 = vmatprep.subr.bf16.mxu0 (!%p5006_p5), %v5903_v26 }
 0x220   : > { %5034 = vmatpush3.bf16.msra.mxu0 (!%p5006_p5), %v5904_v47 }
 0x221   : > { %5035 = vmatprep.subr.bf16.mxu0 (!%p5006_p5), %v5905_v37 }
 0x224   : > { %5036 = vmatpush3.bf16.msra.mxu0 (!%p5006_p5), %v5906_v48 }
 0x225   : > { %5037 = vmatprep.subr.bf16.mxu0 (!%p5006_p5), %v5907_v17 }
 0x228   : > { %5038 = vmatpush3.bf16.msra.mxu0 (!%p5006_p5), %v5908_v52 }
 0x229   : > { %5039 = vmatprep.subr.bf16.mxu0 (!%p5006_p5), %v5909_v54 }
 0x22c   : > { %5040 = vmatpush3.bf16.msra.mxu0 (!%p5006_p5), %v5910_v44 }
 0x22d   : > { %5041 = vmatprep.subr.bf16.mxu0 (!%p5006_p5), %v5911_v40 }
 0x230   : > { %5042 = vmatpush3.bf16.msra.mxu0 (!%p5006_p5), %v5912_v1 }
 0x231   : > { %5043 = vmatprep.subr.bf16.mxu0 (!%p5006_p5), %v5913_v3 }
 0x234   : > { %5044 = vmatpush3.bf16.msra.mxu0 (!%p5006_p5), %v5914_v25 }
 0x2e9   : > { %v3864_v15 = vpop.f32.mrb[0].mxu1 }
 0x2ea   : > { %v4192_v57 = vpop.f32.mrb[0].mxu0  ;;  %v3866_v27 = vpop.f32.mrb[1].mxu1 }
 0x2eb   : > { %v5051_v63 = vadd.f32 %v4192_v57, %v3864_v15  ;;  %v4194_v28 = vpop.f32.mrb[1].mxu0  ;;  %v3868_v31 = vpop.f32.mrb[2].mxu1 }
 0x2ec   : > { %v5052_v29 = vadd.f32 %v4194_v28, %v3866_v27  ;;  %v4196_v19 = vpop.f32.mrb[2].mxu0  ;;  %v3869_v32 = vpop.f32.mrb[3].mxu1 }
 0x2ed   : > { %v4197_v33 = vpop.f32.mrb[3].mxu0 }
 0x2ee   : > { %v4201_v20 = vcombine.low %v5051_v63, %v5052_v29  ;;  %4215 = sbr.rel (%p5006_p5) target bundleno = 993 (0x3e1), region = 48 }
 0x2f0   : > { %v4208_v35 = vrot.slane %v4201_v20, %v4207_v30 }
 0x2f2   : > { %v4210_v36 = vadd.f32 %v4208_v35, %v234_v34 }
 0x2f4   : > { %4211 = vst [vmem:[#allocation2] sm:$0xf] %v4210_v36 }
 0x2fb   : > { %v4216_v61 = vld [vmem:[#allocation2] sm:$0xf] }
 0x2fc   : > { %v4236_v2 = vadd.f32 %v4234_v62, %v4216_v61 }
 0x2fe   : > { %v4237_v4 = vmax.f32 %v4236_v2, 0.0 }
 0x300   : > { %v4245_v5 = vrot.slane %v4237_v4, %v4207_v30 }
 0x302   : > { %v4246_v41 = vcombine.high %v4245_v5, %v4245_v5  ;;  %v4249_v42 = vpack.c.bf16 %v4245_v5, %v4245_v5 }
 0x304   : > { %v4250_v59 = vpack.c.bf16 %v4246_v41, %v4246_v41 }
 0x306   : > { %4418 = vmatprep.mubr.bf16.mxu0 %v4250_v59 }
 0x307   : > { %4419 = vmatmul.mubr.bf16.vlgmr.msra.gmra.mrb[0].mxu0 %v4249_v42 }
 0x3da   : > { %v5045_v7 = vpop.f32.mrb[0].mxu0 }
 0x3db   : > { %v5046_v8 = vpop.f32.mrb[1].mxu0 }
 0x3dc   : > { %v5047_v9 = vadd.f32 %v5046_v8, %v5045_v7  ;;  %v5048_v10 = vpop.f32.mrb[2].mxu0 }
 0x3dd   : > { %v5049_v11 = vpop.f32.mrb[3].mxu0 }
 0x3de   : > { %v4421_v12 = vadd.f32 %v5047_v9, %v5007_v60 }
 0x3e0   : > { %4427 = vst.msk [vmem:[#allocation3] sm:$0x3] %vm4426_vm0, %v4421_v12 }
 0x3e1 PF: > { %p5113_p6 = scmp.eq.s32.totalorder %s5993_s19, 1  ;;  %s5956_s17 = smov [#allocation3]  }
 0x3e2   : > { %s4435_s20 = sshll.u32 %s5956_s17, 4  ;;  %s4436_s20 = int_to_ptr.vmem [resolvable:$true] %s4435_s20 }
 0x3e3   : > { %s5915_s21 = scalar_lea.vmem %s4436_s20, 32  ;;  %p5922_p10 = scmp.lt.s32.totalorder %s4436_s20, %s4436_s20 }
 0x3e4   : > { %p5916_p7 = scmp.ne.s32.totalorder %s4436_s20, %s5915_s21  ;;  %p5923_p11 = scmp.lt.s32.totalorder %s5915_s21, %s5915_s21 }
 0x3e6   : > { %p5917_p8 = pnand %p5916_p7, %p5113_p6  ;;  %p5924_p12 = por %p5923_p11, %p5922_p10 }
 0x3e8   : > { %p5918_p9 = pneg %p5917_p8 }
 0x3ea   : > { %p5925_p13 = pnand %p5924_p12, %p5918_p9 }
 0x3ec   : > { %5928 = shalt.err (!%p5925_p13)
}
 0x3ed   : > { %s5929_s24 = scalar_lea.hbm %s6764_s5, 32 }
 0x3ee   : > { %p5930_p0 = scmp.ne.s32.totalorder %s6764_s5, %s5929_s24  ;;  %p5935_p3 = scmp.lt.u32.totalorder %s5929_s24, %s6764_s5 }
 0x3f0   : > { %p5931_p1 = pnand %p5930_p0, %p5113_p6 }
 0x3f2   : > { %p5932_p2 = pneg %p5931_p1 }
 0x3f4   : > { %p5937_p4 = pnand %p5935_p3, %p5932_p2 }
 0x3f6   : > { %5940 = shalt.err (!%p5937_p4)
}
 0x3f7   : > { %5110 = dma.vmem_to_hbm [thread:$0]  (%p5113_p6), %s4436_s20, 32, %s6764_s5, [#allocation4]  }
 0x3f8   : > { %5946 = dma.done.wait (%p5113_p6), [#allocation4], 32  }
 0x3f9   : > { %5948 = vsyncadd (%p5113_p6), [#allocation4], 4294967264 }
 0x3fa PF: > { %s16_s18 = sadd.s32 1, %s5951_s18  }
 0x3fb   : > { %p13_p5 = scmp.ge.s32.totalorder %s16_s18, 4  }
 0x3fd   :  { %15 = sbr.rel (!%p13_p5) target bundleno = 1 (0x1), region = 78 }
 0x404   :  { %4448 = vsyncpa [#allocation4], 1 }
 0x405   :  { %4450 = vsyncpa [#allocation4 + $0x1], 1 }

// kernel: multimodal_classifier_forward.2
= control target key start
LH: loop header
LB: loop body
LE: loop exit
PB: predicated region body
PF: predicated region fallthrough
CT: control target
= control target key end

     0   :  { %s16424_s0 = inlined_call_operand.vmem [shape: f32[2,2,32,128], index: 0, kind: input, shape index: {}]   ;;  %s16425_s1 = inlined_call_operand.hbm [shape: bf16[2,384,1024], index: 1, kind: input, shape index: {}]   ;;  %s16426_s2 = inlined_call_operand.hbm [shape: f32[2,1,1024], index: 2, kind: input, shape index: {}]   ;;  %s16427_s3 = inlined_call_operand.hbm [shape: bf16[2,1536,1024], index: 3, kind: input, shape index: {}]   ;;  %s16428_s4 = inlined_call_operand.hbm [shape: f32[2,1,1024], index: 4, kind: input, shape index: {}]   ;;  %s16429_s5 = inlined_call_operand.vmem [shape: bf16[2,2,8,512], index: 5, kind: output, shape index: {}]  }
   0x1   :  { %16445 = sst [smem:[#allocation39_spill]] %s16425_s1 }
   0x2   :  { %10 = vsyncpa [#allocation5], 0 }
   0x3   :  { %12 = vsyncpa [#allocation5 + $0x1], 0 }
   0x4   :  { %13 = vsyncpa [#allocation7], 0 }
   0x5   :  { %15 = vsyncpa [#allocation7 + $0x1], 0 }
   0x6   :  { %16 = vsyncpa [#allocation10], 0 }
   0x7   :  { %18 = vsyncpa [#allocation10 + $0x1], 0  ;;  %s13409_s18 = smov 0   ;;  %s13411_s19 = smov 0  }
   0x8   :  { %s13413_s20 = smov 0   ;;  %s13415_s21 = smov 0  }
   0x9   :  { %s13417_s22 = smov 0   ;;  %s13419_s23 = smov 0  }
   0xa LB: > { %s16431_s24 = sadd.s32 4294967295, %s13368_s23   ;;  %s36_s25 = sadd.s32 1, %s13364_s22  ;;  %s13368_s23 = sphi %s13419_s23, %s24_s23   ;;  %s13364_s22 = sphi %s13417_s22, %s16546_s22   ;;  %s13360_s21 = sphi %s13415_s21, %s16545_s21   ;;  %s13356_s20 = sphi %s13413_s20, %s16544_s20   ;;  %s13352_s19 = sphi %s13411_s19, %s16543_s19   ;;  %s13348_s18 = sphi %s13409_s18, %s16542_s18  }
   0xb   : > { %p38_p0 = scmp.ge.s32.totalorder %s36_s25, 2  ;;  %s71_s26 = sadd.s32 1, %s13356_s20 }
   0xc   : > { %p78_p1 = scmp.ne.s32.totalorder %s13356_s20, %s13352_s19  ;;  %p79_p2 = scmp.eq.s32.totalorder %s13368_s23, 0 }
   0xd   : > { %s16548_s25 = smov (%p38_p0, %s36_s25), 0  ;;  %p84_p4 = scmp.ne.s32.totalorder %s13352_s19, %s13348_s18 }
   0xe   : > { %p80_p3 = por %p79_p2, %p78_p1  ;;  %s68_s27 = ssub.s32 %s13364_s22, %s16548_s25 }
   0xf   : > { %p85_p5 = scmp.eq.s32.totalorder %s16431_s24, 0  ;;  %p69_p6 = scmp.eq.s32.totalorder %s68_s27, 0 }
  0x10   : > { %p13132_p8 = scmp.lt.s32.totalorder %s13368_s23, 2  ;;  %s13459_s30 = sand.u32 1, %s13356_s20  }
  0x11   : > { %p13450_p7 = por %p85_p5, %p84_p4  ;;  %s249_s7 = sand.u32 1, %s13368_s23  }
  0x12   : > { %s13456_s29 = scalar_select %p69_p6, %s13356_s20, %s71_s26  }
  0x13   : > { %s16446_s28 = scalar_select %p13450_p7, 1, 0 }
  0x14   : > { %p13461_p9 = pnand %p13132_p8, %p80_p3  ;;  %s16432_s8 = sshll.u32 %s13459_s30, 3 }
  0x15   : > { %s16433_s9 = sshll.u32 %s13364_s22, 7  ;;  %s253_s13 = scalar_lea.vmem [#allocation6], %s16432_s8 }
  0x16   : > { %s16447_s6 = scalar_select %p13461_p9, 1, 0 }
  0x17   : > { %s13473_s12 = scalar_lea.hbm %s16426_s2, %s16433_s9  ;;  %s261_s14 = sshll.u32 %s253_s13, 4  ;;  %s13477_s14 = int_to_ptr.vmem [resolvable:$true] %s261_s14 }
  0x18   : > { %s13480_s15 = scalar_lea.sflag [#allocation7], %s249_s7  ;;  %s13190_s16 = scalar_lea.hbm %s13473_s12, 128 }
  0x19   : > { %p13191_p11 = scmp.ne.s32.totalorder %s13473_s12, %s13190_s16  ;;  %p13486_p12 = pneg %p13461_p9 }
  0x1a   : > { %s13195_s27 = scalar_lea.hbm %s16426_s2, 256  ;;  %p13196_p1 = scmp.lt.u32.totalorder %s13473_s12, %s16426_s2 }
  0x1b   : > { %p13193_p13 = pnand %p13486_p12, %p13191_p11  ;;  %p13197_p2 = scmp.lt.u32.totalorder %s13195_s27, %s13190_s16 }
  0x1c   : > { %p13199_p4 = scmp.lt.u32.totalorder %s13190_s16, %s13473_s12 }
  0x1d   : > { %p13194_p0 = pneg %p13193_p13  ;;  %p13198_p3 = por %p13197_p2, %p13196_p1 }
  0x1f   : > { %p13200_p5 = por %p13199_p4, %p13198_p3 }
  0x21   : > { %p13201_p6 = pnand %p13200_p5, %p13194_p0 }
  0x23   : > { %13204 = shalt.err (!%p13201_p6)
}
  0x24   : > { %s13205_s7 = scalar_lea.vmem %s13477_s14, 128  ;;  %s13370_s13 = smov [#allocation6]  }
  0x25   : > { %p13206_p8 = scmp.ne.s32.totalorder %s13477_s14, %s13205_s7  ;;  %s13210_s18 = sshll.u32 %s13370_s13, 4  ;;  %s13211_s18 = int_to_ptr.vmem [resolvable:$false] %s13210_s18 }
  0x26   : > { %s13212_s26 = scalar_lea.vmem %s13211_s18, 256  ;;  %p13213_p10 = scmp.lt.s32.totalorder %s13477_s14, %s13211_s18 }
  0x27   : > { %p13208_p11 = pnand %p13206_p8, %p13486_p12  ;;  %p13214_p7 = scmp.lt.s32.totalorder %s13212_s26, %s13205_s7 }
  0x29   : > { %p13209_p13 = pneg %p13208_p11  ;;  %p13215_p1 = por %p13214_p7, %p13213_p10 }
  0x2b   : > { %p13216_p2 = pnand %p13215_p1, %p13209_p13 }
  0x2d   : > { %13219 = shalt.err (!%p13216_p2)
}
  0x2e   : > { %13125 = dma.hbm_to_vmem [thread:$0]  (!%p13461_p9), %s13473_s12, 128, %s13477_s14, %s13480_s15  }
  0x2f   : > { %p306_p0 = scmp.lt.s32.totalorder %s13368_s23, 3  ;;  %p16449_p3 = scmp.ge.s32.totalorder %s13368_s23, 1 }
  0x30   : > { %s13105_s27 = smul.u32 1536, %s13459_s30  ;;  %s16451_s1 = sld [smem:[#allocation39_spill]] }
  0x31   : > { %p13513_p4 = pnand %p16449_p3, %p306_p0  ;;  %s13106_s10 = smul.u32 24576, %s13364_s22 }
  0x32   : > { %s232_s18 = scalar_lea.vmem [#allocation4], %s13105_s27  ;;  %s13107_s12 = smul.u32 6144, %s13459_s30 }
  0x33   : > { %s16450_s16 = scalar_select %p13513_p4, 1, 0 }
  0x34   : > { %s239_s26 = sshll.u32 %s232_s18, 4  ;;  %s229_s14 = scalar_lea.sflag [#allocation5], %s13459_s30  ;;  %s13524_s26 = int_to_ptr.vmem [resolvable:$true] %s239_s26 }
  0x36   : > { %s13522_s13 = scalar_lea.hbm %s16451_s1, %s13106_s10  ;;  %s13225_s10 = scalar_lea.hbm %s16451_s1, 49152 }
  0x37   : > { %s13220_s24 = scalar_lea.hbm %s13522_s13, 24576  ;;  %p13226_p6 = scmp.lt.u32.totalorder %s13522_s13, %s16451_s1 }
  0x38   : > { %p13221_p7 = scmp.ne.s32.totalorder %s13522_s13, %s13220_s24  ;;  %p13227_p8 = scmp.lt.u32.totalorder %s13225_s10, %s13220_s24 }
  0x39   : > { %p13229_p13 = scmp.lt.u32.totalorder %s13220_s24, %s13522_s13 }
  0x3a   : > { %p13223_p10 = pnand %p13221_p7, %p13486_p12  ;;  %p13228_p11 = por %p13227_p8, %p13226_p6 }
  0x3c   : > { %p13224_p5 = pneg %p13223_p10  ;;  %p13230_p1 = por %p13229_p13, %p13228_p11 }
  0x3e   : > { %p13231_p2 = pnand %p13230_p1, %p13224_p5 }
  0x40   : > { %13234 = shalt.err (!%p13231_p2)
}
  0x41   : > { %s13235_s27 = scalar_lea.vmem %s13524_s26, 24576  ;;  %s13371_s8 = smov [#allocation4]  }
  0x42   : > { %p13236_p0 = scmp.ne.s32.totalorder %s13524_s26, %s13235_s27  ;;  %s13240_s9 = sshll.u32 %s13371_s8, 4  ;;  %s13241_s9 = int_to_ptr.vmem [resolvable:$false] %s13240_s9 }
  0x43   : > { %s13242_s18 = scalar_lea.vmem %s13241_s9, 49152  ;;  %p13243_p10 = scmp.lt.s32.totalorder %s13524_s26, %s13241_s9 }
  0x44   : > { %p13238_p3 = pnand %p13236_p0, %p13486_p12  ;;  %p13244_p4 = scmp.lt.s32.totalorder %s13242_s18, %s13235_s27 }
  0x46   : > { %p13239_p7 = pneg %p13238_p3  ;;  %p13245_p6 = por %p13244_p4, %p13243_p10 }
  0x48   : > { %p13246_p8 = pnand %p13245_p6, %p13239_p7 }
  0x4a   : > { %13249 = shalt.err (!%p13246_p8)
}
  0x4b   : > { %s13372_s24 = smov 512   ;;  %s13373_s10 = smov 32  }
  0x4c   : > { %13122 = dma.hbm_to_vmem [thread:$0]  (!%p13461_p9), %s13522_s13, 24576, %s13524_s26, %s229_s14, %s13372_s24, %s13372_s24, %s13373_s10  }
  0x4d   : > { %s13108_s11 = smul.u32 98304, %s13364_s22  ;;  %s272_s7 = scalar_lea.vmem [#allocation8], %s13107_s12 }
  0x4e   : > { %s279_s27 = sshll.u32 %s272_s7, 4  ;;  %s13255_s12 = scalar_lea.hbm %s16427_s3, 196608  ;;  %s13562_s27 = int_to_ptr.vmem [resolvable:$true] %s279_s27 }
  0x4f   : > { %s13560_s18 = scalar_lea.hbm %s16427_s3, %s13108_s11 }
  0x50   : > { %s13250_s1 = scalar_lea.hbm %s13560_s18, 98304  ;;  %p13256_p13 = scmp.lt.u32.totalorder %s13560_s18, %s16427_s3 }
  0x51   : > { %p13251_p4 = scmp.ne.s32.totalorder %s13560_s18, %s13250_s1  ;;  %p13257_p1 = scmp.lt.u32.totalorder %s13255_s12, %s13250_s1 }
  0x52   : > { %p13259_p0 = scmp.lt.u32.totalorder %s13250_s1, %s13560_s18 }
  0x53   : > { %p13253_p5 = pnand %p13251_p4, %p13486_p12  ;;  %p13258_p2 = por %p13257_p1, %p13256_p13 }
  0x55   : > { %p13254_p11 = pneg %p13253_p5  ;;  %p13260_p3 = por %p13259_p0, %p13258_p2 }
  0x57   : > { %p13261_p7 = pnand %p13260_p3, %p13254_p11 }
  0x59   : > { %13264 = shalt.err (!%p13261_p7)
}
  0x5a   : > { %s13265_s11 = scalar_lea.vmem %s13562_s27, 98304  ;;  %s13374_s8 = smov [#allocation8]  }
  0x5b   : > { %p13266_p10 = scmp.ne.s32.totalorder %s13562_s27, %s13265_s11  ;;  %s13270_s9 = sshll.u32 %s13374_s8, 4  ;;  %s13271_s9 = int_to_ptr.vmem [resolvable:$false] %s13270_s9 }
  0x5c   : > { %s13272_s13 = scalar_lea.vmem %s13271_s9, 196608  ;;  %p13273_p4 = scmp.lt.s32.totalorder %s13562_s27, %s13271_s9 }
  0x5d   : > { %p13268_p6 = pnand %p13266_p10, %p13486_p12  ;;  %p13274_p5 = scmp.lt.s32.totalorder %s13272_s13, %s13265_s11 }
  0x5f   : > { %p13269_p8 = pneg %p13268_p6  ;;  %p13275_p13 = por %p13274_p5, %p13273_p4 }
  0x61   : > { %p13276_p1 = pnand %p13275_p13, %p13269_p8 }
  0x63   : > { %13279 = shalt.err (!%p13276_p1)
}
  0x64   : > { %13128 = dma.hbm_to_vmem [thread:$0]  (!%p13461_p9), %s13560_s18, 98304, %s13562_s27, %s13480_s15, %s13372_s24, %s13372_s24, %s13373_s10  }
  0x65   : > { %s16452_s1 = sshll.u32 %s13364_s22, 7  ;;  %s16453_s7 = sshll.u32 %s13459_s30, 3 }
  0x66   : > { %s13594_s14 = scalar_lea.hbm %s16428_s4, %s16452_s1  ;;  %s293_s11 = scalar_lea.vmem [#allocation9], %s16453_s7 }
  0x67   : > { %s301_s8 = sshll.u32 %s293_s11, 4  ;;  %s290_s9 = scalar_lea.sflag [#allocation10], %s13459_s30  ;;  %s302_s8 = int_to_ptr.vmem [resolvable:$true] %s301_s8 }
  0x68   : > { %s13280_s13 = scalar_lea.hbm %s13594_s14, 128  ;;  %s13285_s10 = scalar_lea.hbm %s16428_s4, 256 }
  0x69   : > { %p13281_p11 = scmp.ne.s32.totalorder %s13594_s14, %s13280_s13  ;;  %p13286_p3 = scmp.lt.u32.totalorder %s13594_s14, %s16428_s4 }
  0x6a   : > { %p13287_p7 = scmp.lt.u32.totalorder %s13285_s10, %s13280_s13  ;;  %p13289_p6 = scmp.lt.u32.totalorder %s13280_s13, %s13594_s14 }
  0x6b   : > { %p13283_p2 = pnand %p13281_p11, %p13486_p12 }
  0x6c   : > { %p13288_p10 = por %p13287_p7, %p13286_p3 }
  0x6d   : > { %p13284_p0 = pneg %p13283_p2 }
  0x6e   : > { %p13290_p8 = por %p13289_p6, %p13288_p10 }
  0x70   : > { %p13291_p4 = pnand %p13290_p8, %p13284_p0 }
  0x72   : > { %13294 = shalt.err (!%p13291_p4)
}
  0x73   : > { %s13295_s30 = scalar_lea.vmem %s302_s8, 128  ;;  %s13375_s1 = smov [#allocation9]  }
  0x74   : > { %p13296_p5 = scmp.ne.s32.totalorder %s302_s8, %s13295_s30  ;;  %s13300_s26 = sshll.u32 %s13375_s1, 4  ;;  %s13301_s26 = int_to_ptr.vmem [resolvable:$false] %s13300_s26 }
  0x75   : > { %s13302_s12 = scalar_lea.vmem %s13301_s26, 256  ;;  %p13303_p11 = scmp.lt.s32.totalorder %s302_s8, %s13301_s26 }
  0x76   : > { %p13298_p13 = pnand %p13296_p5, %p13486_p12  ;;  %p13304_p2 = scmp.lt.s32.totalorder %s13302_s12, %s13295_s30 }
  0x78   : > { %p13299_p1 = pneg %p13298_p13  ;;  %p13305_p9 = por %p13304_p2, %p13303_p11 }
  0x7a   : > { %p13306_p3 = pnand %p13305_p9, %p13299_p1 }
  0x7c   : > { %13309 = shalt.err (!%p13306_p3)
}
  0x7d   : > { %p16454_p7 = scmp.ne.s32.totalorder %s16447_s6, 0  ;;  %p16455_p0 = scmp.ne.s32.totalorder %s16450_s16, 0 }
  0x7f   : > { %13131 = dma.hbm_to_vmem [thread:$0]  (!%p16454_p7), %s13594_s14, 128, %s302_s8, %s290_s9  }
  0x80   : > { %310 = sbr.rel (%p16455_p0) target bundleno = 1709 (0x6ad), region = 40 }
  0x87   : > { %s312_s17 = sand.u32 1, %s13352_s19   ;;  %p16456_p12 = scmp.ne.s32.totalorder %s16446_s28, 0 }
  0x88   : > { %s13109_s7 = smul.u32 1536, %s312_s17  ;;  %s313_s11 = scalar_lea.sflag [#allocation5], %s312_s17 }
  0x8a   : > { %s13619_s13 = scalar_lea.vmem [#allocation4], %s13109_s7 }
  0x8b   : > { %13335 = dma.done.wait (%p16456_p12), %s313_s11, 24576  }
  0x8c   : > { %13337 = vsyncadd (%p16456_p12), %s313_s11, 4294942720  ;;  %s16457_s15 = sadd.s32 4294967295, %s13368_s23   ;;  %s11653_s14 = sshll.u32 %s312_s17, 3 }
  0x8d   : > { %s321_s6 = sand.u32 1, %s16457_s15   ;;  %s13627_s16 = scalar_lea.vmem [#allocation6], %s11653_s14 }
  0x8e   : > { %s322_s8 = scalar_lea.sflag [#allocation7], %s321_s6 }
  0x8f   : > { %13339 = dma.done.wait (%p16456_p12), %s322_s8, 98432  }
  0x90   : > { %13341 = vsyncadd (%p16456_p12), %s322_s8, 4294868864  ;;  %s13110_s9 = smul.u32 6144, %s312_s17  ;;  %s340_s10 = scalar_lea.sflag [#allocation10], %s312_s17 }
  0x91   : > { %s13635_s27 = scalar_lea.vmem [#allocation9], %s11653_s14 }
  0x92   : > { %s13633_s24 = scalar_lea.vmem [#allocation8], %s13110_s9 }
  0x93   : > { %13343 = dma.done.wait (%p16456_p12), %s340_s10, 128  }
  0x94   : > { %13345 = vsyncadd (%p16456_p12), %s340_s10, 4294967168  ;;  %v13376_v0 = vmov 0.0   ;;  %v479_v1 = vld [vmem:[%s13619_s13] sm:$0xff]  ;;  %v480_v3 = vld [vmem:[%s13619_s13 + $0x8] sm:$0xff]  ;;  %p401_p9 = scmp.lt.s32.totalorder %s13360_s21, 1  ;;  %vm3872_vm1 = vcmask 1042434  }
  0x95   : > { %423 = vst [vmem:[#allocation2] sm:$0x1] %v13376_v0  ;;  %424 = vst [vmem:[#allocation2 + $0x28] sm:$0x1] %v13376_v0  ;;  %v483_v2 = vld [vmem:[%s13619_s13 + $0x20] sm:$0xff]  ;;  %v484_v5 = vld [vmem:[%s13619_s13 + $0x28] sm:$0xff] }
  0x96   : > { %425 = vst [vmem:[#allocation2 + $0x21] sm:$0x1] %v13376_v0  ;;  %426 = vst [vmem:[#allocation2 + $0x49] sm:$0x1] %v13376_v0  ;;  %v11660_v4 = vcombine.high %v479_v1, %v483_v2  ;;  %v11659_v6 = vcombine.low %v479_v1, %v483_v2  ;;  %v487_v7 = vld [vmem:[%s13619_s13 + $0x40] sm:$0xff]  ;;  %v11662_v9 = vcombine.high %v480_v3, %v484_v5  ;;  %v488_v12 = vld [vmem:[%s13619_s13 + $0x48] sm:$0xff] }
  0x97   : > { %v491_v8 = vld [vmem:[%s13619_s13 + $0x60] sm:$0xff]  ;;  %v11661_v10 = vcombine.low %v480_v3, %v484_v5  ;;  %v492_v13 = vld [vmem:[%s13619_s13 + $0x68] sm:$0xff]  ;;  %s16550_s21 = smov (!%p401_p9, %s13360_s21), 1  ;;  %vm3874_vm2 = vcmask 1043459   ;;  %vm3876_vm3 = vcmask 1044484   ;;  %vm3878_vm4 = vcmask 1045509  }
  0x98   : > { %v11668_v11 = vcombine.high %v487_v7, %v491_v8  ;;  %v495_v14 = vld [vmem:[%s13619_s13 + $0x80] sm:$0xff]  ;;  %1673 = vmatprep.subr.bf16.mxu0 %v11660_v4  ;;  %v11670_v15 = vcombine.high %v488_v12, %v492_v13  ;;  %v496_v17 = vld [vmem:[%s13619_s13 + $0x88] sm:$0xff]  ;;  %1819 = vmatprep.subr.bf16.mxu1 %v11662_v9  ;;  %v11667_v19 = vcombine.low %v487_v7, %v491_v8  ;;  %s12751_s28 = sshll.u32 %s16550_s21, 6  ;;  %vm3880_vm5 = vcmask 1046534   ;;  %s12752_s26 = sshll.u32 %s16550_s21, 5 }
  0x99   : > { %v499_v16 = vld [vmem:[%s13619_s13 + $0xa0] sm:$0xff]  ;;  %v500_v18 = vld [vmem:[%s13619_s13 + $0xa8] sm:$0xff]  ;;  %1674 = vmatpush1.bf16.msra.mxu0 %v11659_v6  ;;  %1820 = vmatpush1.bf16.msra.mxu1 %v11661_v10  ;;  %v11669_v20 = vcombine.low %v488_v12, %v492_v13  ;;  %s13679_s1 = scalar_lea.vmem %s16424_s0, %s12751_s28  ;;  %vm3882_vm6 = vcmask 1047559   ;;  %vm3902_vm7 = vcmask 1041409   ;;  %vm4103_vm8 = vcmask 1046528   ;;  %s16266_s17 = scalar_lea.vmem %s16429_s5, %s12752_s26 }
  0x9a   : > { %1675 = vmatprep.subr.bf16.mxu0 %v11668_v11  ;;  %v11676_v21 = vcombine.high %v495_v14, %v499_v16  ;;  %1821 = vmatprep.subr.bf16.mxu1 %v11670_v15  ;;  %v11678_v22 = vcombine.high %v496_v17, %v500_v18  ;;  %v503_v23 = vld [vmem:[%s13619_s13 + $0xc0] sm:$0xff]  ;;  %v504_v25 = vld [vmem:[%s13619_s13 + $0xc8] sm:$0xff]  ;;  %v11675_v27 = vcombine.low %v495_v14, %v499_v16  ;;  %v427_v54 = vld [vmem:[%s13679_s1] sm:$0xff]  ;;  %vm4176_vm9 = vcmask 1045504  }
  0x9b   : > { %v507_v24 = vld [vmem:[%s13619_s13 + $0xe0] sm:$0xff]  ;;  %v508_v26 = vld [vmem:[%s13619_s13 + $0xe8] sm:$0xff]  ;;  %v11677_v28 = vcombine.low %v496_v17, %v500_v18  ;;  %v428_v55 = vld [vmem:[%s13679_s1 + $0x8] sm:$0xff]  ;;  %435 = vst [vmem:[#allocation2 + $0x1] sm:$0xff] %v427_v54 }
  0x9c   : > { %v11684_v29 = vcombine.high %v503_v23, %v507_v24  ;;  %v11686_v30 = vcombine.high %v504_v25, %v508_v26  ;;  %v511_v31 = vld [vmem:[%s13619_s13 + $0x100] sm:$0xff]  ;;  %v512_v33 = vld [vmem:[%s13619_s13 + $0x108] sm:$0xff]  ;;  %v11683_v35 = vcombine.low %v503_v23, %v507_v24  ;;  %v11685_v36 = vcombine.low %v504_v25, %v508_v26  ;;  %436 = vst [vmem:[#allocation2 + $0x9] sm:$0xff] %v428_v55  ;;  %v13706_v10 = vld [vmem:[%s13679_s1 + $0x20] sm:$0xff] }
  0x9d   : > { %1676 = vmatpush1.bf16.msra.mxu0 %v11667_v19  ;;  %1822 = vmatpush1.bf16.msra.mxu1 %v11669_v20  ;;  %v515_v32 = vld [vmem:[%s13619_s13 + $0x120] sm:$0xff]  ;;  %v516_v34 = vld [vmem:[%s13619_s13 + $0x128] sm:$0xff]  ;;  %v13687_v59 = vpack.c.bf16 %v428_v55, %v427_v54  ;;  %v13709_v11 = vld [vmem:[%s13679_s1 + $0x28] sm:$0xff]  ;;  %439 = vst [vmem:[#allocation2 + $0x29] sm:$0xff] %v13706_v10 }
  0x9e   : > { %1677 = vmatprep.subr.bf16.mxu0 %v11676_v21  ;;  %1823 = vmatprep.subr.bf16.mxu1 %v11678_v22  ;;  %v11692_v37 = vcombine.high %v511_v31, %v515_v32  ;;  %v11694_v38 = vcombine.high %v512_v33, %v516_v34  ;;  %v519_v39 = vld [vmem:[%s13619_s13 + $0x140] sm:$0xff]  ;;  %v520_v41 = vld [vmem:[%s13619_s13 + $0x148] sm:$0xff]  ;;  %v11691_v43 = vcombine.low %v511_v31, %v515_v32 }
  0x9f   : > { %v523_v40 = vld [vmem:[%s13619_s13 + $0x160] sm:$0xff]  ;;  %v524_v42 = vld [vmem:[%s13619_s13 + $0x168] sm:$0xff]  ;;  %v11693_v44 = vcombine.low %v512_v33, %v516_v34  ;;  %1705 = vmatprep.mubr.bf16.mxu0 %v13687_v59  ;;  %1851 = vmatprep.mubr.bf16.mxu1 %v13687_v59  ;;  %440 = vst [vmem:[#allocation2 + $0x31] sm:$0xff] %v13709_v11 }
  0xa0   : > { %v11700_v45 = vcombine.high %v519_v39, %v523_v40  ;;  %v11702_v46 = vcombine.high %v520_v41, %v524_v42  ;;  %v527_v47 = vld [vmem:[%s13619_s13 + $0x180] sm:$0xff]  ;;  %v528_v49 = vld [vmem:[%s13619_s13 + $0x188] sm:$0xff]  ;;  %v11699_v51 = vcombine.low %v519_v39, %v523_v40  ;;  %v11701_v52 = vcombine.low %v520_v41, %v524_v42 }
  0xa1   : > { %1678 = vmatpush1.bf16.msra.mxu0 %v11675_v27  ;;  %1824 = vmatpush1.bf16.msra.mxu1 %v11677_v28  ;;  %v531_v48 = vld [vmem:[%s13619_s13 + $0x1a0] sm:$0xff]  ;;  %v532_v50 = vld [vmem:[%s13619_s13 + $0x1a8] sm:$0xff] }
  0xa2   : > { %1679 = vmatprep.subr.bf16.mxu0 %v11684_v29  ;;  %1825 = vmatprep.subr.bf16.mxu1 %v11686_v30  ;;  %v11708_v53 = vcombine.high %v527_v47, %v531_v48  ;;  %v11710_v56 = vcombine.high %v528_v49, %v532_v50  ;;  %v535_v57 = vld [vmem:[%s13619_s13 + $0x1c0] sm:$0xff]  ;;  %v536_v60 = vld [vmem:[%s13619_s13 + $0x1c8] sm:$0xff]  ;;  %v11707_v62 = vcombine.low %v527_v47, %v531_v48 }
  0xa3   : > { %v539_v58 = vld [vmem:[%s13619_s13 + $0x1e0] sm:$0xff]  ;;  %v540_v61 = vld [vmem:[%s13619_s13 + $0x1e8] sm:$0xff]  ;;  %v11709_v1 = vcombine.low %v528_v49, %v532_v50 }
  0xa4   : > { %v13693_v63 = vld [vmem:[%s13679_s1 + $0x10] sm:$0xff]  ;;  %v11716_v2 = vcombine.high %v535_v57, %v539_v58  ;;  %v13696_v3 = vld [vmem:[%s13679_s1 + $0x18] sm:$0xff]  ;;  %v11718_v4 = vcombine.high %v536_v60, %v540_v61  ;;  %v11715_v9 = vcombine.low %v535_v57, %v539_v58  ;;  %v11717_v12 = vcombine.low %v536_v60, %v540_v61 }
  0xa5   : > { %1680 = vmatpush1.bf16.msra.mxu0 %v11683_v35  ;;  %1826 = vmatpush1.bf16.msra.mxu1 %v11685_v36  ;;  %437 = vst [vmem:[#allocation2 + $0x11] sm:$0xff] %v13693_v63  ;;  %v543_v5 = vld [vmem:[%s13619_s13 + $0x200] sm:$0xff]  ;;  %438 = vst [vmem:[#allocation2 + $0x19] sm:$0xff] %v13696_v3  ;;  %v544_v7 = vld [vmem:[%s13619_s13 + $0x208] sm:$0xff] }
  0xa6   : > { %1681 = vmatprep.subr.bf16.mxu0 %v11692_v37  ;;  %1827 = vmatprep.subr.bf16.mxu1 %v11694_v38  ;;  %v547_v6 = vld [vmem:[%s13619_s13 + $0x220] sm:$0xff]  ;;  %v548_v8 = vld [vmem:[%s13619_s13 + $0x228] sm:$0xff] }
  0xa7   : > { %v11724_v13 = vcombine.high %v543_v5, %v547_v6  ;;  %v11726_v14 = vcombine.high %v544_v7, %v548_v8  ;;  %v551_v15 = vld [vmem:[%s13619_s13 + $0x240] sm:$0xff]  ;;  %v552_v17 = vld [vmem:[%s13619_s13 + $0x248] sm:$0xff]  ;;  %v11723_v19 = vcombine.low %v543_v5, %v547_v6  ;;  %v11725_v22 = vcombine.low %v544_v7, %v548_v8 }
  0xa8   : > { %v555_v16 = vld [vmem:[%s13619_s13 + $0x260] sm:$0xff]  ;;  %v556_v18 = vld [vmem:[%s13619_s13 + $0x268] sm:$0xff] }
  0xa9   : > { %1682 = vmatpush1.bf16.msra.mxu0 %v11691_v43  ;;  %1828 = vmatpush1.bf16.msra.mxu1 %v11693_v44  ;;  %v13718_v20 = vld [vmem:[%s13679_s1 + $0x30] sm:$0xff]  ;;  %v13721_v21 = vld [vmem:[%s13679_s1 + $0x38] sm:$0xff]  ;;  %v11732_v23 = vcombine.high %v551_v15, %v555_v16  ;;  %v11734_v24 = vcombine.high %v552_v17, %v556_v18  ;;  %v11731_v29 = vcombine.low %v551_v15, %v555_v16 }
  0xaa   : > { %1683 = vmatprep.subr.bf16.mxu0 %v11700_v45  ;;  %1829 = vmatprep.subr.bf16.mxu1 %v11702_v46  ;;  %441 = vst [vmem:[#allocation2 + $0x39] sm:$0xff] %v13718_v20  ;;  %442 = vst [vmem:[#allocation2 + $0x41] sm:$0xff] %v13721_v21  ;;  %v559_v25 = vld [vmem:[%s13619_s13 + $0x280] sm:$0xff]  ;;  %v560_v27 = vld [vmem:[%s13619_s13 + $0x288] sm:$0xff]  ;;  %v11733_v30 = vcombine.low %v552_v17, %v556_v18 }
  0xab   : > { %v563_v26 = vld [vmem:[%s13619_s13 + $0x2a0] sm:$0xff]  ;;  %v564_v28 = vld [vmem:[%s13619_s13 + $0x2a8] sm:$0xff] }
  0xac   : > { %v11740_v31 = vcombine.high %v559_v25, %v563_v26  ;;  %v11742_v32 = vcombine.high %v560_v27, %v564_v28  ;;  %v567_v33 = vld [vmem:[%s13619_s13 + $0x2c0] sm:$0xff]  ;;  %v568_v35 = vld [vmem:[%s13619_s13 + $0x2c8] sm:$0xff]  ;;  %v11739_v37 = vcombine.low %v559_v25, %v563_v26  ;;  %v11741_v38 = vcombine.low %v560_v27, %v564_v28 }
  0xad   : > { %1684 = vmatpush1.bf16.msra.mxu0 %v11699_v51  ;;  %1830 = vmatpush1.bf16.msra.mxu1 %v11701_v52  ;;  %v571_v34 = vld [vmem:[%s13619_s13 + $0x2e0] sm:$0xff]  ;;  %v572_v36 = vld [vmem:[%s13619_s13 + $0x2e8] sm:$0xff] }
  0xae   : > { %1685 = vmatprep.subr.bf16.mxu0 %v11708_v53  ;;  %1831 = vmatprep.subr.bf16.mxu1 %v11710_v56  ;;  %v11748_v39 = vcombine.high %v567_v33, %v571_v34  ;;  %v11750_v40 = vcombine.high %v568_v35, %v572_v36  ;;  %v575_v41 = vld [vmem:[%s13619_s13 + $0x300] sm:$0xff]  ;;  %v576_v43 = vld [vmem:[%s13619_s13 + $0x308] sm:$0xff]  ;;  %v11747_v45 = vcombine.low %v567_v33, %v571_v34 }
  0xaf   : > { %v579_v42 = vld [vmem:[%s13619_s13 + $0x320] sm:$0xff]  ;;  %v580_v44 = vld [vmem:[%s13619_s13 + $0x328] sm:$0xff]  ;;  %v11749_v46 = vcombine.low %v568_v35, %v572_v36  ;;  %v13761_v36 = vpack.c.bf16 %v13696_v3, %v13693_v63 }
  0xb0   : > { %v11756_v47 = vcombine.high %v575_v41, %v579_v42  ;;  %v11758_v48 = vcombine.high %v576_v43, %v580_v44  ;;  %v583_v49 = vld [vmem:[%s13619_s13 + $0x340] sm:$0xff]  ;;  %v584_v51 = vld [vmem:[%s13619_s13 + $0x348] sm:$0xff]  ;;  %v11755_v53 = vcombine.low %v575_v41, %v579_v42  ;;  %v11757_v54 = vcombine.low %v576_v43, %v580_v44 }
  0xb1   : > { %1686 = vmatpush1.bf16.msra.mxu0 %v11707_v62  ;;  %1832 = vmatpush1.bf16.msra.mxu1 %v11709_v1  ;;  %v587_v50 = vld [vmem:[%s13619_s13 + $0x360] sm:$0xff]  ;;  %v588_v52 = vld [vmem:[%s13619_s13 + $0x368] sm:$0xff] }
  0xb2   : > { %1687 = vmatprep.subr.bf16.mxu0 %v11716_v2  ;;  %1833 = vmatprep.subr.bf16.mxu1 %v11718_v4  ;;  %v11764_v55 = vcombine.high %v583_v49, %v587_v50  ;;  %v11766_v56 = vcombine.high %v584_v51, %v588_v52  ;;  %v591_v57 = vld [vmem:[%s13619_s13 + $0x380] sm:$0xff]  ;;  %v592_v60 = vld [vmem:[%s13619_s13 + $0x388] sm:$0xff]  ;;  %v11763_v62 = vcombine.low %v583_v49, %v587_v50 }
  0xb3   : > { %v595_v58 = vld [vmem:[%s13619_s13 + $0x3a0] sm:$0xff]  ;;  %v596_v61 = vld [vmem:[%s13619_s13 + $0x3a8] sm:$0xff]  ;;  %v11765_v1 = vcombine.low %v584_v51, %v588_v52 }
  0xb4   : > { %v11772_v2 = vcombine.high %v591_v57, %v595_v58  ;;  %v11774_v4 = vcombine.high %v592_v60, %v596_v61  ;;  %v599_v5 = vld [vmem:[%s13619_s13 + $0x3c0] sm:$0xff]  ;;  %v600_v7 = vld [vmem:[%s13619_s13 + $0x3c8] sm:$0xff] }
  0xb5   : > { %1688 = vmatpush1.bf16.msra.mxu0 %v11715_v9  ;;  %1834 = vmatpush1.bf16.msra.mxu1 %v11717_v12  ;;  %v603_v6 = vld [vmem:[%s13619_s13 + $0x3e0] sm:$0xff]  ;;  %v604_v8 = vld [vmem:[%s13619_s13 + $0x3e8] sm:$0xff]  ;;  %v11771_v9 = vcombine.low %v591_v57, %v595_v58  ;;  %v11773_v12 = vcombine.low %v592_v60, %v596_v61  ;;  %v447_v61 = vld [vmem:[#allocation2 + $0x28] sm:$0xff] }
  0xb6   : > { %1689 = vmatprep.subr.bf16.mxu0 %v11724_v13  ;;  %1835 = vmatprep.subr.bf16.mxu1 %v11726_v14  ;;  %v11780_v13 = vcombine.high %v599_v5, %v603_v6  ;;  %v11782_v14 = vcombine.high %v600_v7, %v604_v8  ;;  %v607_v15 = vld [vmem:[%s13619_s13 + $0x400] sm:$0xff]  ;;  %v608_v17 = vld [vmem:[%s13619_s13 + $0x408] sm:$0xff] }
  0xb7   : > { %v611_v16 = vld [vmem:[%s13619_s13 + $0x420] sm:$0xff]  ;;  %v612_v18 = vld [vmem:[%s13619_s13 + $0x428] sm:$0xff] }
  0xb8   : > { %v11788_v25 = vcombine.high %v607_v15, %v611_v16  ;;  %v11790_v26 = vcombine.high %v608_v17, %v612_v18  ;;  %v615_v27 = vld [vmem:[%s13619_s13 + $0x440] sm:$0xff]  ;;  %v11789_v33 = vcombine.low %v608_v17, %v612_v18  ;;  %v446_v43 = vld [vmem:[#allocation2 + $0x18] sm:$0xff] }
  0xb9   : > { %1690 = vmatpush1.bf16.msra.mxu0 %v11723_v19  ;;  %1836 = vmatpush1.bf16.msra.mxu1 %v11725_v22  ;;  %v11779_v19 = vcombine.low %v599_v5, %v603_v6  ;;  %v443_v22 = vld [vmem:[#allocation2] sm:$0xff]  ;;  %v619_v28 = vld [vmem:[%s13619_s13 + $0x460] sm:$0xff]  ;;  %v636_v49 = vld [vmem:[%s13619_s13 + $0x4e8] sm:$0xff] }
  0xba   : > { %1691 = vmatprep.subr.bf16.mxu0 %v11732_v23  ;;  %1837 = vmatprep.subr.bf16.mxu1 %v11734_v24  ;;  %v444_v23 = vld [vmem:[#allocation2 + $0x8] sm:$0xff]  ;;  %v11781_v24 = vcombine.low %v600_v7, %v604_v8  ;;  %v11796_v34 = vcombine.high %v615_v27, %v619_v28  ;;  %v11795_v41 = vcombine.low %v615_v27, %v619_v28  ;;  %v445_v42 = vld [vmem:[#allocation2 + $0x10] sm:$0xff]  ;;  %v640_v57 = vld [vmem:[%s13619_s13 + $0x508] sm:$0xff] }
  0xbb   : > { %v644_v58 = vld [vmem:[%s13619_s13 + $0x528] sm:$0xff] }
  0xbc   : > { %v648_v6 = vld [vmem:[%s13619_s13 + $0x548] sm:$0xff] }
  0xbd   : > { %1692 = vmatpush1.bf16.msra.mxu0 %v11731_v29  ;;  %1838 = vmatpush1.bf16.msra.mxu1 %v11733_v30  ;;  %v13755_v29 = vpack.c.bf16 %v444_v23, %v443_v22  ;;  %v616_v30 = vld [vmem:[%s13619_s13 + $0x448] sm:$0xff]  ;;  %v450_v23 = vld [vmem:[#allocation2 + $0x40] sm:$0xff] }
  0xbe   : > { %1693 = vmatprep.subr.bf16.mxu0 %v11740_v31  ;;  %1839 = vmatprep.subr.bf16.mxu1 %v11742_v32  ;;  %v620_v31 = vld [vmem:[%s13619_s13 + $0x468] sm:$0xff]  ;;  %v11787_v32 = vcombine.low %v607_v15, %v611_v16  ;;  %v655_v15 = vld [vmem:[%s13619_s13 + $0x580] sm:$0xff] }
  0xbf   : > { %v11798_v35 = vcombine.high %v616_v30, %v620_v31  ;;  %v11797_v63 = vcombine.low %v616_v30, %v620_v31  ;;  %v652_v7 = vld [vmem:[%s13619_s13 + $0x568] sm:$0xff]  ;;  %v659_v16 = vld [vmem:[%s13619_s13 + $0x5a0] sm:$0xff] }
  0xc0   : > { %v656_v17 = vld [vmem:[%s13619_s13 + $0x588] sm:$0xff]  ;;  %v11835_v31 = vcombine.low %v655_v15, %v659_v16 }
  0xc1   : > { %1694 = vmatpush1.bf16.msra.mxu0 %v11739_v37  ;;  %1840 = vmatpush1.bf16.msra.mxu1 %v11741_v38  ;;  %v623_v37 = vld [vmem:[%s13619_s13 + $0x480] sm:$0xff]  ;;  %v660_v18 = vld [vmem:[%s13619_s13 + $0x5a8] sm:$0xff] }
  0xc2   : > { %1695 = vmatprep.subr.bf16.mxu0 %v11748_v39  ;;  %1841 = vmatprep.subr.bf16.mxu1 %v11750_v40  ;;  %v627_v38 = vld [vmem:[%s13619_s13 + $0x4a0] sm:$0xff]  ;;  %v624_v39 = vld [vmem:[%s13619_s13 + $0x488] sm:$0xff] }
  0xc3   : > { %v628_v40 = vld [vmem:[%s13619_s13 + $0x4a8] sm:$0xff]  ;;  %v11804_v3 = vcombine.high %v623_v37, %v627_v38  ;;  %v11803_v50 = vcombine.low %v623_v37, %v627_v38  ;;  %v485_v37 = vld [vmem:[%s13619_s13 + $0x30] sm:$0xff]  ;;  %v482_v38 = vld [vmem:[%s13619_s13 + $0x18] sm:$0xff] }
  0xc4   : > { %v11806_v44 = vcombine.high %v624_v39, %v628_v40  ;;  %v11805_v51 = vcombine.low %v624_v39, %v628_v40  ;;  %v449_v22 = vld [vmem:[#allocation2 + $0x38] sm:$0xff]  ;;  %v486_v39 = vld [vmem:[%s13619_s13 + $0x38] sm:$0xff] }
  0xc5   : > { %1696 = vmatpush1.bf16.msra.mxu0 %v11747_v45  ;;  %1842 = vmatpush1.bf16.msra.mxu1 %v11749_v46  ;;  %v631_v45 = vld [vmem:[%s13619_s13 + $0x4c0] sm:$0xff]  ;;  %v13809_v27 = vpack.c.bf16 %v450_v23, %v449_v22  ;;  %v664_v28 = vld [vmem:[%s13619_s13 + $0x5c8] sm:$0xff]  ;;  %v518_v22 = vld [vmem:[%s13619_s13 + $0x138] sm:$0xff] }
  0xc6   : > { %1697 = vmatprep.subr.bf16.mxu0 %v11756_v47  ;;  %1843 = vmatprep.subr.bf16.mxu1 %v11758_v48  ;;  %v635_v46 = vld [vmem:[%s13619_s13 + $0x4e0] sm:$0xff]  ;;  %v13773_v47 = vpack.c.bf16 %v446_v43, %v445_v42  ;;  %v632_v48 = vld [vmem:[%s13619_s13 + $0x4c8] sm:$0xff] }
  0xc7   : > { %v11812_v52 = vcombine.high %v631_v45, %v635_v46  ;;  %v11811_v60 = vcombine.low %v631_v45, %v635_v46  ;;  %v668_v30 = vld [vmem:[%s13619_s13 + $0x5e8] sm:$0xff]  ;;  %v460_v42 = vld [vmem:[#allocation2 + $0xa] sm:$0xff]  ;;  %v489_v45 = vld [vmem:[%s13619_s13 + $0x50] sm:$0xff] }
  0xc8   : > { %v11845_v43 = vcombine.low %v664_v28, %v668_v30  ;;  %v493_v46 = vld [vmem:[%s13619_s13 + $0x70] sm:$0xff] }
  0xc9   : > { %1698 = vmatpush1.bf16.msra.mxu0 %v11755_v53  ;;  %1844 = vmatpush1.bf16.msra.mxu1 %v11757_v54  ;;  %v11814_v53 = vcombine.high %v632_v48, %v636_v49  ;;  %v13779_v54 = vpack.c.bf16 %v13709_v11, %v13706_v10  ;;  %v11813_v10 = vcombine.low %v632_v48, %v636_v49  ;;  %v490_v49 = vld [vmem:[%s13619_s13 + $0x58] sm:$0xff] }
  0xca   : > { %1699 = vmatprep.subr.bf16.mxu0 %v11764_v55  ;;  %1845 = vmatprep.subr.bf16.mxu1 %v11766_v56  ;;  %v639_v55 = vld [vmem:[%s13619_s13 + $0x500] sm:$0xff] }
  0xcb   : > { %v643_v56 = vld [vmem:[%s13619_s13 + $0x520] sm:$0xff] }
  0xcc   : > { %v11820_v11 = vcombine.high %v639_v55, %v643_v56  ;;  %v11819_v8 = vcombine.low %v639_v55, %v643_v56  ;;  %v497_v56 = vld [vmem:[%s13619_s13 + $0x90] sm:$0xff] }
  0xcd   : > { %1700 = vmatpush1.bf16.msra.mxu0 %v11763_v62  ;;  %1846 = vmatpush1.bf16.msra.mxu1 %v11765_v1  ;;  %v448_v62 = vld [vmem:[#allocation2 + $0x30] sm:$0xff]  ;;  %v11822_v1 = vcombine.high %v640_v57, %v644_v58 }
  0xce   : > { %1701 = vmatprep.subr.bf16.mxu0 %v11772_v2  ;;  %1847 = vmatprep.subr.bf16.mxu1 %v11774_v4  ;;  %v647_v2 = vld [vmem:[%s13619_s13 + $0x540] sm:$0xff]  ;;  %v13791_v5 = vpack.c.bf16 %v448_v62, %v447_v61  ;;  %v11671_v61 = vcombine.low %v489_v45, %v493_v46 }
  0xcf   : > { %v651_v4 = vld [vmem:[%s13619_s13 + $0x560] sm:$0xff] }
  0xd0   : > { %v461_v62 = vld [vmem:[#allocation2 + $0x12] sm:$0xff] }
  0xd1   : > { %1702 = vmatpush1.bf16.msra.mxu0 %v11771_v9  ;;  %1848 = vmatpush1.bf16.msra.mxu1 %v11773_v12  ;;  %v11821_v9 = vcombine.low %v640_v57, %v644_v58  ;;  %v11828_v12 = vcombine.high %v647_v2, %v651_v4  ;;  %v501_v57 = vld [vmem:[%s13619_s13 + $0xb0] sm:$0xff]  ;;  %v498_v58 = vld [vmem:[%s13619_s13 + $0x98] sm:$0xff] }
  0xd2   : > { %1703 = vmatprep.subr.bf16.mxu0 %v11780_v13  ;;  %1849 = vmatprep.subr.bf16.mxu1 %v11782_v14  ;;  %v11830_v13 = vcombine.high %v648_v6, %v652_v7  ;;  %v13797_v14 = vpack.c.bf16 %v13721_v21, %v13718_v20  ;;  %v11829_v20 = vcombine.low %v648_v6, %v652_v7  ;;  %v509_v6 = vld [vmem:[%s13619_s13 + $0xf0] sm:$0xff] }
  0xd3   : > { %v11836_v21 = vcombine.high %v655_v15, %v659_v16 }
  0xd5   : > { %1704 = vmatpush1.bf16.msra.mxu0 %v11779_v19  ;;  %1850 = vmatpush1.bf16.msra.mxu1 %v11781_v24  ;;  %v11827_v19 = vcombine.low %v647_v2, %v651_v4  ;;  %v11838_v24 = vcombine.high %v656_v17, %v660_v18  ;;  %v505_v4 = vld [vmem:[%s13619_s13 + $0xd0] sm:$0xff] }
  0xd6   : > { %1746 = vmatprep.subr.bf16.mxu0 %v11788_v25  ;;  %1892 = vmatprep.subr.bf16.mxu1 %v11790_v26  ;;  %v663_v25 = vld [vmem:[%s13619_s13 + $0x5c0] sm:$0xff]  ;;  %v11688_v15 = vcombine.high %v505_v4, %v509_v6  ;;  %v11687_v23 = vcombine.low %v505_v4, %v509_v6 }
  0xd7   : > { %v667_v26 = vld [vmem:[%s13619_s13 + $0x5e0] sm:$0xff] }
  0xd8   : > { %1706 = vmatmul.mubr.bf16.vlgmr.msra.gmra.mrb[0].mxu0 %v13755_v29  ;;  %1852 = vmatmul.mubr.bf16.vlgmr.msra.gmra.mrb[0].mxu1 %v13755_v29  ;;  %v11843_v40 = vcombine.low %v663_v25, %v667_v26 }
  0xd9   : > { %1747 = vmatpush1.bf16.msra.mxu0 %v11787_v32  ;;  %1893 = vmatpush1.bf16.msra.mxu1 %v11789_v33  ;;  %v11837_v32 = vcombine.low %v656_v17, %v660_v18  ;;  %v11844_v33 = vcombine.high %v663_v25, %v667_v26  ;;  %v513_v17 = vld [vmem:[%s13619_s13 + $0x110] sm:$0xff] }
  0xda   : > { %1748 = vmatprep.subr.bf16.mxu0 %v11796_v34  ;;  %1894 = vmatprep.subr.bf16.mxu1 %v11798_v35  ;;  %v11846_v34 = vcombine.high %v664_v28, %v668_v30  ;;  %v481_v35 = vld [vmem:[%s13619_s13 + $0x10] sm:$0xff] }
  0xdb   : > { %1715 = vmatprep.mubr.bf16.mxu0 %v13761_v36  ;;  %1861 = vmatprep.mubr.bf16.mxu1 %v13761_v36  ;;  %v517_v18 = vld [vmem:[%s13619_s13 + $0x130] sm:$0xff] }
  0xdc   : > { %v11696_v25 = vcombine.high %v513_v17, %v517_v18  ;;  %v521_v28 = vld [vmem:[%s13619_s13 + $0x150] sm:$0xff] }
  0xdd   : > { %1749 = vmatpush1.bf16.msra.mxu0 %v11795_v41  ;;  %1895 = vmatpush1.bf16.msra.mxu1 %v11797_v63  ;;  %v459_v41 = vld [vmem:[#allocation2 + $0x2] sm:$0xff]  ;;  %v11664_v63 = vcombine.high %v481_v35, %v485_v37 }
  0xde   : > { %1750 = vmatprep.subr.bf16.mxu0 %v11804_v3  ;;  %1896 = vmatprep.subr.bf16.mxu1 %v11806_v44  ;;  %v13377_v3 = vmov 0   ;;  %v11666_v44 = vcombine.high %v482_v38, %v486_v39  ;;  %v13823_v48 = vpack.c.bf16 %v460_v42, %v459_v41  ;;  %v525_v30 = vld [vmem:[%s13619_s13 + $0x170] sm:$0xff]  ;;  %v530_v41 = vld [vmem:[%s13619_s13 + $0x198] sm:$0xff] }
  0xdf   : > { %v534_v42 = vld [vmem:[%s13619_s13 + $0x1b8] sm:$0xff] }
  0xe0   : > { %1716 = vmatmul.mubr.bf16.gmra.mrb[4].mxu0 %v13773_v47  ;;  %1862 = vmatmul.mubr.bf16.gmra.mrb[4].mxu1 %v13773_v47 }
  0xe1   : > { %1751 = vmatpush1.bf16.msra.mxu0 %v11803_v50  ;;  %1897 = vmatpush1.bf16.msra.mxu1 %v11805_v51  ;;  %v494_v50 = vld [vmem:[%s13619_s13 + $0x78] sm:$0xff]  ;;  %v11663_v51 = vcombine.low %v481_v35, %v485_v37  ;;  %v11704_v37 = vcombine.high %v521_v28, %v525_v30 }
  0xe2   : > { %1752 = vmatprep.subr.bf16.mxu0 %v11812_v52  ;;  %1898 = vmatprep.subr.bf16.mxu1 %v11814_v53  ;;  %v11665_v52 = vcombine.low %v482_v38, %v486_v39  ;;  %v11672_v53 = vcombine.high %v489_v45, %v493_v46  ;;  %v11674_v55 = vcombine.high %v490_v49, %v494_v50  ;;  %v529_v39 = vld [vmem:[%s13619_s13 + $0x190] sm:$0xff] }
  0xe3   : > { %1725 = vmatprep.mubr.bf16.mxu0 %v13779_v54  ;;  %1871 = vmatprep.mubr.bf16.mxu1 %v13779_v54 }
  0xe5   : > { %1753 = vmatpush1.bf16.msra.mxu0 %v11811_v60  ;;  %1899 = vmatpush1.bf16.msra.mxu1 %v11813_v10  ;;  %v502_v60 = vld [vmem:[%s13619_s13 + $0xb8] sm:$0xff]  ;;  %v462_v10 = vld [vmem:[#allocation2 + $0x1a] sm:$0xff] }
  0xe6   : > { %1754 = vmatprep.subr.bf16.mxu0 %v11820_v11  ;;  %1900 = vmatprep.subr.bf16.mxu1 %v11822_v1  ;;  %v11673_v11 = vcombine.low %v490_v49, %v494_v50  ;;  %v11680_v1 = vcombine.high %v497_v56, %v501_v57  ;;  %v11682_v2 = vcombine.high %v498_v58, %v502_v60  ;;  %v537_v50 = vld [vmem:[%s13619_s13 + $0x1d0] sm:$0xff] }
  0xe7   : > { %v13837_v7 = vpack.c.bf16 %v462_v10, %v461_v62  ;;  %v11714_v49 = vcombine.high %v530_v41, %v534_v42  ;;  %v549_v62 = vld [vmem:[%s13619_s13 + $0x230] sm:$0xff]  ;;  %v546_v10 = vld [vmem:[%s13619_s13 + $0x218] sm:$0xff] }
  0xe8   : > { %1726 = vmatmul.mubr.bf16.gmra.mrb[8].mxu0 %v13791_v5  ;;  %1872 = vmatmul.mubr.bf16.gmra.mrb[8].mxu1 %v13791_v5 }
  0xe9   : > { %1755 = vmatpush1.bf16.msra.mxu0 %v11819_v8  ;;  %1901 = vmatpush1.bf16.msra.mxu1 %v11821_v9  ;;  %v506_v8 = vld [vmem:[%s13619_s13 + $0xd8] sm:$0xff] }
  0xea   : > { %1756 = vmatprep.subr.bf16.mxu0 %v11828_v12  ;;  %1902 = vmatprep.subr.bf16.mxu1 %v11830_v13  ;;  %v510_v9 = vld [vmem:[%s13619_s13 + $0xf8] sm:$0xff]  ;;  %v11679_v12 = vcombine.low %v497_v56, %v501_v57  ;;  %v11681_v13 = vcombine.low %v498_v58, %v502_v60  ;;  %v11713_v57 = vcombine.low %v530_v41, %v534_v42 }
  0xeb   : > { %1735 = vmatprep.mubr.bf16.mxu0 %v13797_v14  ;;  %1881 = vmatprep.mubr.bf16.mxu1 %v13797_v14  ;;  %v11690_v16 = vcombine.high %v506_v8, %v510_v9  ;;  %v582_v41 = vld [vmem:[%s13619_s13 + $0x338] sm:$0xff] }
  0xed   : > { %1757 = vmatpush1.bf16.msra.mxu0 %v11827_v19  ;;  %1903 = vmatpush1.bf16.msra.mxu1 %v11829_v20  ;;  %v514_v19 = vld [vmem:[%s13619_s13 + $0x118] sm:$0xff] }
  0xee   : > { %1758 = vmatprep.subr.bf16.mxu0 %v11836_v21  ;;  %1904 = vmatprep.subr.bf16.mxu1 %v11838_v24  ;;  %v463_v20 = vld [vmem:[#allocation2 + $0x2a] sm:$0xff]  ;;  %v464_v21 = vld [vmem:[#allocation2 + $0x32] sm:$0xff]  ;;  %v11689_v24 = vcombine.low %v506_v8, %v510_v9  ;;  %v11698_v26 = vcombine.high %v514_v19, %v518_v22  ;;  %v11697_v35 = vcombine.low %v514_v19, %v518_v22  ;;  %v553_v8 = vld [vmem:[%s13619_s13 + $0x250] sm:$0xff] }
  0xef   : > { %v557_v9 = vld [vmem:[%s13619_s13 + $0x270] sm:$0xff] }
  0xf0   : > { %1736 = vmatmul.mubr.bf16.gmra.mrb[12].mxu0 %v13809_v27  ;;  %1882 = vmatmul.mubr.bf16.gmra.mrb[12].mxu1 %v13809_v27  ;;  %v561_v19 = vld [vmem:[%s13619_s13 + $0x290] sm:$0xff] }
  0xf1   : > { %1759 = vmatpush1.bf16.msra.mxu0 %v11835_v31  ;;  %1905 = vmatpush1.bf16.msra.mxu1 %v11837_v32  ;;  %v13851_v31 = vpack.c.bf16 %v464_v21, %v463_v20  ;;  %v522_v32 = vld [vmem:[%s13619_s13 + $0x158] sm:$0xff]  ;;  %v565_v22 = vld [vmem:[%s13619_s13 + $0x2b0] sm:$0xff]  ;;  %v11735_v21 = vcombine.low %v553_v8, %v557_v9 }
  0xf2   : > { %1760 = vmatprep.subr.bf16.mxu0 %v11844_v33  ;;  %1906 = vmatprep.subr.bf16.mxu1 %v11846_v34  ;;  %v526_v33 = vld [vmem:[%s13619_s13 + $0x178] sm:$0xff]  ;;  %v11695_v34 = vcombine.low %v513_v17, %v517_v18  ;;  %v11736_v17 = vcombine.high %v553_v8, %v557_v9 }
  0xf3   : > { %1778 = vmatprep.mubr.bf16.mxu0 %v13377_v3  ;;  %1924 = vmatprep.mubr.bf16.mxu1 %v13377_v3  ;;  %v11706_v38 = vcombine.high %v522_v32, %v526_v33  ;;  %v11705_v45 = vcombine.low %v522_v32, %v526_v33  ;;  %v566_v20 = vld [vmem:[%s13619_s13 + $0x2b8] sm:$0xff]  ;;  %v11743_v33 = vcombine.low %v561_v19, %v565_v22 }
  0xf4   : > { %v574_v32 = vld [vmem:[%s13619_s13 + $0x2f8] sm:$0xff] }
  0xf5   : > { %1761 = vmatpush1.bf16.msra.mxu0 %v11843_v40  ;;  %1907 = vmatpush1.bf16.msra.mxu1 %v11845_v43  ;;  %v533_v40 = vld [vmem:[%s13619_s13 + $0x1b0] sm:$0xff]  ;;  %v11703_v43 = vcombine.low %v521_v28, %v525_v30  ;;  %v570_v30 = vld [vmem:[%s13619_s13 + $0x2d8] sm:$0xff] }
  0xf6   : > { %1965 = vmatprep.subr.bf16.mxu0 %v11664_v63  ;;  %2111 = vmatprep.subr.bf16.mxu1 %v11666_v44  ;;  %v465_v63 = vld [vmem:[#allocation2 + $0x3a] sm:$0xff]  ;;  %v466_v44 = vld [vmem:[#allocation2 + $0x42] sm:$0xff]  ;;  %v11712_v46 = vcombine.high %v529_v39, %v533_v40  ;;  %v11711_v56 = vcombine.low %v529_v39, %v533_v40 }
  0xf7   : > { %v573_v28 = vld [vmem:[%s13619_s13 + $0x2f0] sm:$0xff]  ;;  %v578_v40 = vld [vmem:[%s13619_s13 + $0x318] sm:$0xff] }
  0xf8   : > { %1779 = vmatmul.mubr.bf16.vlgmr.msra.gmra.mrb[0].mxu0 %v13823_v48  ;;  %1925 = vmatmul.mubr.bf16.vlgmr.msra.gmra.mrb[0].mxu1 %v13823_v48  ;;  %v581_v39 = vld [vmem:[%s13619_s13 + $0x330] sm:$0xff]  ;;  %v606_v8 = vld [vmem:[%s13619_s13 + $0x3f8] sm:$0xff] }
  0xf9   : > { %1966 = vmatpush1.bf16.msra.mxu0 %v11663_v51  ;;  %2112 = vmatpush1.bf16.msra.mxu1 %v11665_v52  ;;  %v541_v51 = vld [vmem:[%s13619_s13 + $0x1f0] sm:$0xff]  ;;  %v13865_v52 = vpack.c.bf16 %v466_v44, %v465_v63  ;;  %v11762_v44 = vcombine.high %v578_v40, %v582_v41 }
  0xfa   : > { %1967 = vmatprep.subr.bf16.mxu0 %v11672_v53  ;;  %2113 = vmatprep.subr.bf16.mxu1 %v11674_v55  ;;  %v538_v53 = vld [vmem:[%s13619_s13 + $0x1d8] sm:$0xff]  ;;  %v11720_v58 = vcombine.high %v537_v50, %v541_v51 }
  0xfb   : > { %1788 = vmatprep.mubr.bf16.mxu0 %v13377_v3  ;;  %1934 = vmatprep.mubr.bf16.mxu1 %v13377_v3  ;;  %v542_v55 = vld [vmem:[%s13619_s13 + $0x1f8] sm:$0xff] }
  0xfc   : > { %v11722_v60 = vcombine.high %v538_v53, %v542_v55 }
  0xfd   : > { %1968 = vmatpush1.bf16.msra.mxu0 %v11671_v61  ;;  %2114 = vmatpush1.bf16.msra.mxu1 %v11673_v11  ;;  %v545_v61 = vld [vmem:[%s13619_s13 + $0x210] sm:$0xff]  ;;  %v550_v11 = vld [vmem:[%s13619_s13 + $0x238] sm:$0xff] }
  0xfe   : > { %1969 = vmatprep.subr.bf16.mxu0 %v11680_v1  ;;  %2115 = vmatprep.subr.bf16.mxu1 %v11682_v2  ;;  %v11719_v1 = vcombine.low %v537_v50, %v541_v51  ;;  %v11721_v2 = vcombine.low %v538_v53, %v542_v55  ;;  %v11728_v4 = vcombine.high %v545_v61, %v549_v62  ;;  %v590_v50 = vld [vmem:[%s13619_s13 + $0x378] sm:$0xff] }
  0xff   : > { %v11730_v6 = vcombine.high %v546_v10, %v550_v11  ;;  %v11761_v53 = vcombine.low %v578_v40, %v582_v41 }
 0x100   : > { %1789 = vmatmul.mubr.bf16.gmra.mrb[4].mxu0 %v13837_v7  ;;  %1935 = vmatmul.mubr.bf16.gmra.mrb[4].mxu1 %v13837_v7 }
 0x101   : > { %1970 = vmatpush1.bf16.msra.mxu0 %v11679_v12  ;;  %2116 = vmatpush1.bf16.msra.mxu1 %v11681_v13  ;;  %v554_v12 = vld [vmem:[%s13619_s13 + $0x258] sm:$0xff] }
 0x102   : > { %1971 = vmatprep.subr.bf16.mxu0 %v11688_v15  ;;  %2117 = vmatprep.subr.bf16.mxu1 %v11690_v16  ;;  %v558_v13 = vld [vmem:[%s13619_s13 + $0x278] sm:$0xff]  ;;  %v11727_v15 = vcombine.low %v545_v61, %v549_v62  ;;  %v11729_v16 = vcombine.low %v546_v10, %v550_v11 }
 0x103   : > { %1798 = vmatprep.mubr.bf16.mxu0 %v13377_v3  ;;  %1944 = vmatprep.mubr.bf16.mxu1 %v13377_v3  ;;  %v11738_v18 = vcombine.high %v554_v12, %v558_v13  ;;  %v598_v61 = vld [vmem:[%s13619_s13 + $0x3b8] sm:$0xff] }
 0x105   : > { %1972 = vmatpush1.bf16.msra.mxu0 %v11687_v23  ;;  %2118 = vmatpush1.bf16.msra.mxu1 %v11689_v24  ;;  %v562_v23 = vld [vmem:[%s13619_s13 + $0x298] sm:$0xff]  ;;  %v11744_v24 = vcombine.high %v561_v19, %v565_v22 }
 0x106   : > { %1973 = vmatprep.subr.bf16.mxu0 %v11696_v25  ;;  %2119 = vmatprep.subr.bf16.mxu1 %v11698_v26  ;;  %v11746_v25 = vcombine.high %v562_v23, %v566_v20  ;;  %v569_v26 = vld [vmem:[%s13619_s13 + $0x2d0] sm:$0xff]  ;;  %v614_v19 = vld [vmem:[%s13619_s13 + $0x438] sm:$0xff] }
 0x107   : > { %v11751_v42 = vcombine.low %v569_v26, %v573_v28 }
 0x108   : > { %1799 = vmatmul.mubr.bf16.gmra.mrb[8].mxu0 %v13851_v31  ;;  %1945 = vmatmul.mubr.bf16.gmra.mrb[8].mxu1 %v13851_v31 }
 0x109   : > { %1974 = vmatpush1.bf16.msra.mxu0 %v11695_v34  ;;  %2120 = vmatpush1.bf16.msra.mxu1 %v11697_v35  ;;  %v11745_v34 = vcombine.low %v562_v23, %v566_v20  ;;  %v11752_v35 = vcombine.high %v569_v26, %v573_v28  ;;  %v622_v26 = vld [vmem:[%s13619_s13 + $0x478] sm:$0xff] }
 0x10a   : > { %1975 = vmatprep.subr.bf16.mxu0 %v11704_v37  ;;  %2121 = vmatprep.subr.bf16.mxu1 %v11706_v38  ;;  %v11754_v37 = vcombine.high %v570_v30, %v574_v32  ;;  %v577_v38 = vld [vmem:[%s13619_s13 + $0x310] sm:$0xff] }
 0x10b   : > { %1808 = vmatprep.mubr.bf16.mxu0 %v13377_v3  ;;  %1954 = vmatprep.mubr.bf16.mxu1 %v13377_v3  ;;  %v11760_v63 = vcombine.high %v577_v38, %v581_v39  ;;  %v11759_v51 = vcombine.low %v577_v38, %v581_v39  ;;  %v630_v38 = vld [vmem:[%s13619_s13 + $0x4b8] sm:$0xff] }
 0x10d   : > { %1976 = vmatpush1.bf16.msra.mxu0 %v11703_v43  ;;  %2122 = vmatpush1.bf16.msra.mxu1 %v11705_v45  ;;  %v11753_v43 = vcombine.low %v570_v30, %v574_v32  ;;  %v585_v45 = vld [vmem:[%s13619_s13 + $0x350] sm:$0xff] }
 0x10e   : > { %1977 = vmatprep.subr.bf16.mxu0 %v11712_v46  ;;  %2123 = vmatprep.subr.bf16.mxu1 %v11714_v49  ;;  %v589_v46 = vld [vmem:[%s13619_s13 + $0x370] sm:$0xff]  ;;  %v586_v49 = vld [vmem:[%s13619_s13 + $0x358] sm:$0xff] }
 0x10f   : > { %v11768_v55 = vcombine.high %v585_v45, %v589_v46  ;;  %v11767_v62 = vcombine.low %v585_v45, %v589_v46  ;;  %v11769_v10 = vcombine.low %v586_v49, %v590_v50 }
 0x110   : > { %1809 = vmatmul.mubr.bf16.gmra.mrb[12].mxu0 %v13865_v52  ;;  %1955 = vmatmul.mubr.bf16.gmra.mrb[12].mxu1 %v13865_v52 }
 0x111   : > { %1978 = vmatpush1.bf16.msra.mxu0 %v11711_v56  ;;  %2124 = vmatpush1.bf16.msra.mxu1 %v11713_v57  ;;  %v11770_v56 = vcombine.high %v586_v49, %v590_v50  ;;  %v593_v57 = vld [vmem:[%s13619_s13 + $0x390] sm:$0xff] }
 0x112   : > { %1979 = vmatprep.subr.bf16.mxu0 %v11720_v58  ;;  %2125 = vmatprep.subr.bf16.mxu1 %v11722_v60  ;;  %v597_v58 = vld [vmem:[%s13619_s13 + $0x3b0] sm:$0xff]  ;;  %v594_v60 = vld [vmem:[%s13619_s13 + $0x398] sm:$0xff] }
 0x113   : > { %1997 = vmatprep.mubr.bf16.mxu0 %v13687_v59  ;;  %2143 = vmatprep.mubr.bf16.mxu1 %v13687_v59  ;;  %v11737_v59 = vcombine.low %v554_v12, %v558_v13  ;;  %v11776_v11 = vcombine.high %v593_v57, %v597_v58  ;;  %v11775_v9 = vcombine.low %v593_v57, %v597_v58 }
 0x114   : > { %v11777_v12 = vcombine.low %v594_v60, %v598_v61 }
 0x115   : > { %1980 = vmatpush1.bf16.msra.mxu0 %v11719_v1  ;;  %2126 = vmatpush1.bf16.msra.mxu1 %v11721_v2  ;;  %v11778_v1 = vcombine.high %v594_v60, %v598_v61  ;;  %v601_v2 = vld [vmem:[%s13619_s13 + $0x3d0] sm:$0xff] }
 0x116   : > { %1981 = vmatprep.subr.bf16.mxu0 %v11728_v4  ;;  %2127 = vmatprep.subr.bf16.mxu1 %v11730_v6  ;;  %v605_v4 = vld [vmem:[%s13619_s13 + $0x3f0] sm:$0xff]  ;;  %v602_v6 = vld [vmem:[%s13619_s13 + $0x3d8] sm:$0xff] }
 0x117   : > { %v11784_v13 = vcombine.high %v601_v2, %v605_v4  ;;  %v11783_v22 = vcombine.low %v601_v2, %v605_v4  ;;  %v11785_v23 = vcombine.low %v602_v6, %v606_v8  ;;  %v649_v61 = vld [vmem:[%s13619_s13 + $0x550] sm:$0xff] }
 0x119   : > { %1982 = vmatpush1.bf16.msra.mxu0 %v11727_v15  ;;  %2128 = vmatpush1.bf16.msra.mxu1 %v11729_v16  ;;  %v11786_v15 = vcombine.high %v602_v6, %v606_v8  ;;  %v609_v16 = vld [vmem:[%s13619_s13 + $0x410] sm:$0xff] }
 0x11a   : > { %1983 = vmatprep.subr.bf16.mxu0 %v11736_v17  ;;  %2129 = vmatprep.subr.bf16.mxu1 %v11738_v18  ;;  %v613_v17 = vld [vmem:[%s13619_s13 + $0x430] sm:$0xff]  ;;  %v610_v18 = vld [vmem:[%s13619_s13 + $0x418] sm:$0xff] }
 0x11b   : > { %v11792_v20 = vcombine.high %v609_v16, %v613_v17  ;;  %v11791_v28 = vcombine.low %v609_v16, %v613_v17  ;;  %v11793_v30 = vcombine.low %v610_v18, %v614_v19  ;;  %v657_v6 = vld [vmem:[%s13619_s13 + $0x590] sm:$0xff] }
 0x11c   : > { %v661_v8 = vld [vmem:[%s13619_s13 + $0x5b0] sm:$0xff] }
 0x11d   : > { %1984 = vmatpush1.bf16.msra.mxu0 %v11735_v21  ;;  %2130 = vmatpush1.bf16.msra.mxu1 %v11737_v59  ;;  %v11794_v21 = vcombine.high %v610_v18, %v614_v19  ;;  %v617_v59 = vld [vmem:[%s13619_s13 + $0x450] sm:$0xff]  ;;  %v666_v19 = vld [vmem:[%s13619_s13 + $0x5d8] sm:$0xff] }
 0x11e   : > { %1985 = vmatprep.subr.bf16.mxu0 %v11744_v24  ;;  %2131 = vmatprep.subr.bf16.mxu1 %v11746_v25  ;;  %v621_v24 = vld [vmem:[%s13619_s13 + $0x470] sm:$0xff]  ;;  %v618_v25 = vld [vmem:[%s13619_s13 + $0x458] sm:$0xff] }
 0x11f   : > { %v11800_v32 = vcombine.high %v617_v59, %v621_v24  ;;  %v11799_v39 = vcombine.low %v617_v59, %v621_v24  ;;  %v11801_v40 = vcombine.low %v618_v25, %v622_v26  ;;  %v665_v17 = vld [vmem:[%s13619_s13 + $0x5d0] sm:$0xff] }
 0x120   : > { %v669_v18 = vld [vmem:[%s13619_s13 + $0x5f0] sm:$0xff] }
 0x121   : > { %1986 = vmatpush1.bf16.msra.mxu0 %v11743_v33  ;;  %2132 = vmatpush1.bf16.msra.mxu1 %v11745_v34  ;;  %v11802_v33 = vcombine.high %v618_v25, %v622_v26  ;;  %v625_v34 = vld [vmem:[%s13619_s13 + $0x490] sm:$0xff]  ;;  %v11847_v59 = vcombine.low %v665_v17, %v669_v18 }
 0x122   : > { %1987 = vmatprep.subr.bf16.mxu0 %v11752_v35  ;;  %2133 = vmatprep.subr.bf16.mxu1 %v11754_v37  ;;  %v629_v35 = vld [vmem:[%s13619_s13 + $0x4b0] sm:$0xff]  ;;  %v626_v37 = vld [vmem:[%s13619_s13 + $0x498] sm:$0xff] }
 0x123   : > { %v11808_v41 = vcombine.high %v625_v34, %v629_v35  ;;  %v11807_v45 = vcombine.low %v625_v34, %v629_v35  ;;  %v11809_v46 = vcombine.low %v626_v37, %v630_v38  ;;  %v4265_v26 = vld [vmem:[%s13633_s24 + $0x40] sm:$0xff]  ;;  %v4270_v34 = vld [vmem:[%s13633_s24 + $0x68] sm:$0xff] }
 0x124   : > { %v4273_v35 = vld [vmem:[%s13633_s24 + $0x80] sm:$0xff] }
 0x125   : > { %1988 = vmatpush1.bf16.msra.mxu0 %v11751_v42  ;;  %2134 = vmatpush1.bf16.msra.mxu1 %v11753_v43  ;;  %v11810_v42 = vcombine.high %v626_v37, %v630_v38  ;;  %v633_v43 = vld [vmem:[%s13619_s13 + $0x4d0] sm:$0xff]  ;;  %v4274_v38 = vld [vmem:[%s13633_s24 + $0x88] sm:$0xff] }
 0x126   : > { %1989 = vmatprep.subr.bf16.mxu0 %v11760_v63  ;;  %2135 = vmatprep.subr.bf16.mxu1 %v11762_v44  ;;  %v637_v63 = vld [vmem:[%s13619_s13 + $0x4f0] sm:$0xff]  ;;  %v634_v44 = vld [vmem:[%s13619_s13 + $0x4d8] sm:$0xff] }
 0x127   : > { %v11816_v49 = vcombine.high %v633_v43, %v637_v63  ;;  %v4277_v37 = vld [vmem:[%s13633_s24 + $0xa0] sm:$0xff] }
 0x129   : > { %1990 = vmatpush1.bf16.msra.mxu0 %v11759_v51  ;;  %2136 = vmatpush1.bf16.msra.mxu1 %v11761_v53  ;;  %v641_v51 = vld [vmem:[%s13619_s13 + $0x510] sm:$0xff] }
 0x12a   : > { %1991 = vmatprep.subr.bf16.mxu0 %v11768_v55  ;;  %2137 = vmatprep.subr.bf16.mxu1 %v11770_v56  ;;  %v645_v53 = vld [vmem:[%s13619_s13 + $0x530] sm:$0xff]  ;;  %v642_v55 = vld [vmem:[%s13619_s13 + $0x518] sm:$0xff]  ;;  %v11815_v56 = vcombine.low %v633_v43, %v637_v63 }
 0x12b   : > { %v11824_v58 = vcombine.high %v641_v51, %v645_v53  ;;  %v4281_v63 = vld [vmem:[%s13633_s24 + $0xc0] sm:$0xff] }
 0x12d   : > { %1992 = vmatpush1.bf16.msra.mxu0 %v11767_v62  ;;  %2138 = vmatpush1.bf16.msra.mxu1 %v11769_v10  ;;  %v653_v62 = vld [vmem:[%s13619_s13 + $0x570] sm:$0xff]  ;;  %v650_v10 = vld [vmem:[%s13619_s13 + $0x558] sm:$0xff] }
 0x12e   : > { %1993 = vmatprep.subr.bf16.mxu0 %v11776_v11  ;;  %2139 = vmatprep.subr.bf16.mxu1 %v11778_v1  ;;  %v11823_v11 = vcombine.low %v641_v51, %v645_v53  ;;  %v11832_v2 = vcombine.high %v649_v61, %v653_v62  ;;  %v4289_v53 = vld [vmem:[%s13633_s24 + $0x100] sm:$0xff] }
 0x131   : > { %1994 = vmatpush1.bf16.msra.mxu0 %v11775_v9  ;;  %2140 = vmatpush1.bf16.msra.mxu1 %v11777_v12  ;;  %v658_v9 = vld [vmem:[%s13619_s13 + $0x598] sm:$0xff]  ;;  %v11831_v12 = vcombine.low %v649_v61, %v653_v62 }
 0x132   : > { %1995 = vmatprep.subr.bf16.mxu0 %v11784_v13  ;;  %2141 = vmatprep.subr.bf16.mxu1 %v11786_v15  ;;  %v11840_v15 = vcombine.high %v657_v6, %v661_v8 }
 0x135   : > { %1996 = vmatpush1.bf16.msra.mxu0 %v11783_v22  ;;  %2142 = vmatpush1.bf16.msra.mxu1 %v11785_v23  ;;  %v670_v22 = vld [vmem:[%s13619_s13 + $0x5f8] sm:$0xff]  ;;  %v11839_v23 = vcombine.low %v657_v6, %v661_v8 }
 0x136   : > { %2038 = vmatprep.subr.bf16.mxu0 %v11792_v20  ;;  %2184 = vmatprep.subr.bf16.mxu1 %v11794_v21  ;;  %v11848_v20 = vcombine.high %v665_v17, %v669_v18  ;;  %v11850_v21 = vcombine.high %v666_v19, %v670_v22  ;;  %v11849_v24 = vcombine.low %v666_v19, %v670_v22  ;;  %v673_v22 = vlaneseq }
 0x138   : > { %1998 = vmatmul.mubr.bf16.vlgmr.msra.gmra.mrb[16].mxu0 %v13755_v29  ;;  %2144 = vmatmul.mubr.bf16.vlgmr.msra.gmra.mrb[16].mxu1 %v13755_v29  ;;  %v638_v29 = vld [vmem:[%s13619_s13 + $0x4f8] sm:$0xff]  ;;  %vm3315_vm0 = vcmp.lt.s32.totalorder %v673_v22, 512 }
 0x139   : > { %2039 = vmatpush1.bf16.msra.mxu0 %v11791_v28  ;;  %2185 = vmatpush1.bf16.msra.mxu1 %v11793_v30  ;;  %v11818_v50 = vcombine.high %v634_v44, %v638_v29  ;;  %v11817_v57 = vcombine.low %v634_v44, %v638_v29  ;;  %v4269_v28 = vld [vmem:[%s13633_s24 + $0x60] sm:$0xff]  ;;  %v4282_v29 = vld [vmem:[%s13633_s24 + $0xc8] sm:$0xff]  ;;  %3317 = vst.msk [vmem:[#allocation3] ss:$8 sm:$0xf] %vm3315_vm0, %v13376_v0 }
 0x13a   : > { %2040 = vmatprep.subr.bf16.mxu0 %v11800_v32  ;;  %2186 = vmatprep.subr.bf16.mxu1 %v11802_v33  ;;  %v11924_v33 = vcombine.high %v4265_v26, %v4269_v28  ;;  %v4285_v44 = vld [vmem:[%s13633_s24 + $0xe0] sm:$0xff]  ;;  %3320 = vst.msk [vmem:[#allocation3 + $0x60] ss:$8 sm:$0xf] %vm3315_vm0, %v13376_v0 }
 0x13b   : > { %2007 = vmatprep.mubr.bf16.mxu0 %v13761_v36  ;;  %2153 = vmatprep.mubr.bf16.mxu1 %v13761_v36  ;;  %v646_v36 = vld [vmem:[%s13619_s13 + $0x538] sm:$0xff]  ;;  %3323 = vst.msk [vmem:[#allocation3 + $0x41] ss:$8 sm:$0xf] %vm3315_vm0, %v13376_v0 }
 0x13c   : > { %v11826_v60 = vcombine.high %v642_v55, %v646_v36  ;;  %v11825_v1 = vcombine.low %v642_v55, %v646_v36  ;;  %v4293_v55 = vld [vmem:[%s13633_s24 + $0x120] sm:$0xff]  ;;  %v4290_v36 = vld [vmem:[%s13633_s24 + $0x108] sm:$0xff]  ;;  %3326 = vst.msk [vmem:[#allocation3 + $0xa1] ss:$8 sm:$0xf] %vm3315_vm0, %v13376_v0 }
 0x13d   : > { %2041 = vmatpush1.bf16.msra.mxu0 %v11799_v39  ;;  %2187 = vmatpush1.bf16.msra.mxu1 %v11801_v40  ;;  %v4278_v39 = vld [vmem:[%s13633_s24 + $0xa8] sm:$0xff]  ;;  %v11923_v40 = vcombine.low %v4265_v26, %v4269_v28  ;;  %v11947_v62 = vcombine.low %v4289_v53, %v4293_v55  ;;  %v13378_v28 = vmov 1983009808  }
 0x13e   : > { %2042 = vmatprep.subr.bf16.mxu0 %v11808_v41  ;;  %2188 = vmatprep.subr.bf16.mxu1 %v11810_v42  ;;  %v11932_v42 = vcombine.high %v4273_v35, %v4277_v37  ;;  %v11934_v43 = vcombine.high %v4274_v38, %v4278_v39 }
 0x140   : > { %2008 = vmatmul.mubr.bf16.gmra.mrb[20].mxu0 %v13773_v47  ;;  %2154 = vmatmul.mubr.bf16.gmra.mrb[20].mxu1 %v13773_v47  ;;  %v654_v47 = vld [vmem:[%s13619_s13 + $0x578] sm:$0xff] }
 0x141   : > { %2043 = vmatpush1.bf16.msra.mxu0 %v11807_v45  ;;  %2189 = vmatpush1.bf16.msra.mxu1 %v11809_v46  ;;  %v11834_v4 = vcombine.high %v650_v10, %v654_v47  ;;  %v11833_v13 = vcombine.low %v650_v10, %v654_v47  ;;  %v4286_v45 = vld [vmem:[%s13633_s24 + $0xe8] sm:$0xff]  ;;  %v11931_v46 = vcombine.low %v4273_v35, %v4277_v37  ;;  %v4297_v47 = vld [vmem:[%s13633_s24 + $0x140] sm:$0xff] }
 0x142   : > { %2044 = vmatprep.subr.bf16.mxu0 %v11816_v49  ;;  %2190 = vmatprep.subr.bf16.mxu1 %v11818_v50  ;;  %v11933_v49 = vcombine.low %v4274_v38, %v4278_v39  ;;  %v11940_v50 = vcombine.high %v4281_v63, %v4285_v44  ;;  %v11942_v51 = vcombine.high %v4282_v29, %v4286_v45 }
 0x143   : > { %2017 = vmatprep.mubr.bf16.mxu0 %v13779_v54  ;;  %2163 = vmatprep.mubr.bf16.mxu1 %v13779_v54  ;;  %v662_v54 = vld [vmem:[%s13619_s13 + $0x5b8] sm:$0xff] }
 0x144   : > { %v11842_v16 = vcombine.high %v658_v9, %v662_v54 }
 0x145   : > { %2045 = vmatpush1.bf16.msra.mxu0 %v11815_v56  ;;  %2191 = vmatpush1.bf16.msra.mxu1 %v11817_v57  ;;  %v4294_v56 = vld [vmem:[%s13633_s24 + $0x128] sm:$0xff]  ;;  %v11939_v57 = vcombine.low %v4281_v63, %v4285_v44 }
 0x146   : > { %2046 = vmatprep.subr.bf16.mxu0 %v11824_v58  ;;  %2192 = vmatprep.subr.bf16.mxu1 %v11826_v60  ;;  %v11941_v58 = vcombine.low %v4282_v29, %v4286_v45  ;;  %v11948_v60 = vcombine.high %v4289_v53, %v4293_v55  ;;  %v11950_v61 = vcombine.high %v4290_v36, %v4294_v56 }
 0x147   : > { %v11949_v10 = vcombine.low %v4290_v36, %v4294_v56 }
 0x148   : > { %2018 = vmatmul.mubr.bf16.gmra.mrb[24].mxu0 %v13791_v5  ;;  %2164 = vmatmul.mubr.bf16.gmra.mrb[24].mxu1 %v13791_v5  ;;  %v11841_v5 = vcombine.low %v658_v9, %v662_v54  ;;  %v4305_v54 = vld [vmem:[%s13633_s24 + $0x180] sm:$0xff] }
 0x149   : > { %2047 = vmatpush1.bf16.msra.mxu0 %v11823_v11  ;;  %2193 = vmatpush1.bf16.msra.mxu1 %v11825_v1  ;;  %v4301_v11 = vld [vmem:[%s13633_s24 + $0x160] sm:$0xff]  ;;  %v4298_v1 = vld [vmem:[%s13633_s24 + $0x148] sm:$0xff] }
 0x14a   : > { %2048 = vmatprep.subr.bf16.mxu0 %v11832_v2  ;;  %2194 = vmatprep.subr.bf16.mxu1 %v11834_v4  ;;  %v11956_v2 = vcombine.high %v4297_v47, %v4301_v11  ;;  %v4302_v4 = vld [vmem:[%s13633_s24 + $0x168] sm:$0xff]  ;;  %v11955_v6 = vcombine.low %v4297_v47, %v4301_v11 }
 0x14b   : > { %2027 = vmatprep.mubr.bf16.mxu0 %v13797_v14  ;;  %2173 = vmatprep.mubr.bf16.mxu1 %v13797_v14  ;;  %v4257_v14 = vld [vmem:[%s13633_s24] sm:$0xff]  ;;  %v11957_v8 = vcombine.low %v4298_v1, %v4302_v4  ;;  %v11958_v9 = vcombine.high %v4298_v1, %v4302_v4 }
 0x14d   : > { %2049 = vmatpush1.bf16.msra.mxu0 %v11831_v12  ;;  %2195 = vmatpush1.bf16.msra.mxu1 %v11833_v13  ;;  %v4309_v12 = vld [vmem:[%s13633_s24 + $0x1a0] sm:$0xff]  ;;  %v4306_v13 = vld [vmem:[%s13633_s24 + $0x188] sm:$0xff] }
 0x14e   : > { %2050 = vmatprep.subr.bf16.mxu0 %v11840_v15  ;;  %2196 = vmatprep.subr.bf16.mxu1 %v11842_v16  ;;  %v11964_v15 = vcombine.high %v4305_v54, %v4309_v12  ;;  %v4310_v16 = vld [vmem:[%s13633_s24 + $0x1a8] sm:$0xff]  ;;  %v11963_v17 = vcombine.low %v4305_v54, %v4309_v12 }
 0x14f   : > { %v11965_v18 = vcombine.low %v4306_v13, %v4310_v16  ;;  %v11966_v19 = vcombine.high %v4306_v13, %v4310_v16 }
 0x150   : > { %2028 = vmatmul.mubr.bf16.gmra.mrb[28].mxu0 %v13809_v27  ;;  %2174 = vmatmul.mubr.bf16.gmra.mrb[28].mxu1 %v13809_v27  ;;  %v4261_v27 = vld [vmem:[%s13633_s24 + $0x20] sm:$0xff] }
 0x151   : > { %2051 = vmatpush1.bf16.msra.mxu0 %v11839_v23  ;;  %2197 = vmatpush1.bf16.msra.mxu1 %v11841_v5  ;;  %v11916_v25 = vcombine.high %v4257_v14, %v4261_v27  ;;  %v13996_v23 = vshrl.u32 %v673_v22, 7  ;;  %v4313_v5 = vld [vmem:[%s13633_s24 + $0x1c0] sm:$0xff]  ;;  %v4374_v22 = vld [vmem:[%s13633_s24 + $0x3a8] sm:$0xff] }
 0x152   : > { %2052 = vmatprep.subr.bf16.mxu0 %v11848_v20  ;;  %2198 = vmatprep.subr.bf16.mxu1 %v11850_v21  ;;  %v4317_v20 = vld [vmem:[%s13633_s24 + $0x1e0] sm:$0xff]  ;;  %v4314_v21 = vld [vmem:[%s13633_s24 + $0x1c8] sm:$0xff] }
 0x153   : > { %2070 = vmatprep.mubr.bf16.mxu0 %v13377_v3  ;;  %2216 = vmatprep.mubr.bf16.mxu1 %v13377_v3  ;;  %16458 = vst [vmem:[#allocation14_spill] sm:$0xff] %v13996_v23 }
 0x155   : > { %2053 = vmatpush1.bf16.msra.mxu0 %v11847_v59  ;;  %2199 = vmatpush1.bf16.msra.mxu1 %v11849_v24  ;;  %v14002_v59 = vsub.s32 0, %v13996_v23  ;;  %v14005_v24 = vsub.s32 2, %v13996_v23 }
 0x156   : > { %8907 = vmatprep.subr.bf16.mxu0 %v11916_v25  ;;  %v11971_v25 = vcombine.low %v4313_v5, %v4317_v20 }
 0x158   : > { %2071 = vmatmul.mubr.bf16.vlgmr.msra.gmra.mrb[16].mxu0 %v13823_v48  ;;  %2217 = vmatmul.mubr.bf16.vlgmr.msra.gmra.mrb[16].mxu1 %v13823_v48  ;;  %v4258_v48 = vld [vmem:[%s13633_s24 + $0x8] sm:$0xff] }
 0x159   : > { %2080 = vmatprep.mubr.bf16.mxu0 %v13377_v3  ;;  %2226 = vmatprep.mubr.bf16.mxu1 %v13377_v3 }
 0x160   : > { %2081 = vmatmul.mubr.bf16.gmra.mrb[20].mxu0 %v13837_v7  ;;  %2227 = vmatmul.mubr.bf16.gmra.mrb[20].mxu1 %v13837_v7  ;;  %v11915_v7 = vcombine.low %v4257_v14, %v4261_v27  ;;  %v11972_v14 = vcombine.high %v4313_v5, %v4317_v20  ;;  %v4318_v27 = vld [vmem:[%s13633_s24 + $0x1e8] sm:$0xff] }
 0x161   : > { %2090 = vmatprep.mubr.bf16.mxu0 %v13377_v3  ;;  %2236 = vmatprep.mubr.bf16.mxu1 %v13377_v3  ;;  %v11974_v26 = vcombine.high %v4314_v21, %v4318_v27 }
 0x162   : > { %8908 = vmatpush1.bf16.msra.mxu0 %v11915_v7  ;;  %v16436_v7 = vsub.s32 1, %v13996_v23 }
 0x163   : > { %8909 = vmatprep.subr.bf16.mxu0 %v11924_v33 }
 0x166   : > { %8910 = vmatpush1.bf16.msra.mxu0 %v11923_v40 }
 0x167   : > { %8911 = vmatprep.subr.bf16.mxu0 %v11932_v42 }
 0x168   : > { %2091 = vmatmul.mubr.bf16.gmra.mrb[24].mxu0 %v13851_v31  ;;  %2237 = vmatmul.mubr.bf16.gmra.mrb[24].mxu1 %v13851_v31  ;;  %v4262_v31 = vld [vmem:[%s13633_s24 + $0x28] sm:$0xff] }
 0x169   : > { %2100 = vmatprep.mubr.bf16.mxu0 %v13377_v3  ;;  %2246 = vmatprep.mubr.bf16.mxu1 %v13377_v3  ;;  %v11917_v30 = vcombine.low %v4258_v48, %v4262_v31  ;;  %v11918_v32 = vcombine.high %v4258_v48, %v4262_v31  ;;  %v4266_v3 = vld [vmem:[%s13633_s24 + $0x48] sm:$0xff]  ;;  %v14009_v48 = vld [vmem:[%s13627_s16] sm:$0xff]  ;;  %v11973_v31 = vcombine.low %v4314_v21, %v4318_v27 }
 0x16a   : > { %v11925_v41 = vcombine.low %v4266_v3, %v4270_v34  ;;  %8912 = vmatpush1.bf16.msra.mxu0 %v11931_v46  ;;  %v14015_v33 = vrot.slane %v14009_v48, %v14002_v59 }
 0x16b   : > { %9225 = vmatprep.subr.bf16.mxu1 %v11918_v32  ;;  %8913 = vmatprep.subr.bf16.mxu0 %v11940_v50  ;;  %v16435_v32 = vsub.s32 3, %v13996_v23 }
 0x16c   : > { %9226 = vmatpush1.bf16.msra.mxu1 %v11917_v30  ;;  %v2390_v30 = vunpack.c.l.s4 %v13378_v28 }
 0x16e   : > { %8914 = vmatpush1.bf16.msra.mxu0 %v11939_v57  ;;  %v2391_v35 = vunpack.c.0.s8 %v2390_v30  ;;  %v4321_v57 = vld [vmem:[%s13633_s24 + $0x200] sm:$0xff] }
 0x16f   : > { %8915 = vmatprep.subr.bf16.mxu0 %v11948_v60 }
 0x170   : > { %2101 = vmatmul.mubr.bf16.gmra.mrb[28].mxu0 %v13865_v52  ;;  %2247 = vmatmul.mubr.bf16.gmra.mrb[28].mxu1 %v13865_v52  ;;  %v11926_v52 = vcombine.high %v4266_v3, %v4270_v34  ;;  %v14019_v3 = vrot.slane %v14009_v48, %v14005_v24  ;;  %v14024_v34 = vrot.slane %v14009_v48, %v16436_v7 }
 0x171   : > { %v14035_v29 = vsub.s32 %v2391_v35, %v13996_v23 }
 0x172   : > { %9227 = vmatprep.subr.bf16.mxu1 %v11926_v52  ;;  %8916 = vmatpush1.bf16.msra.mxu0 %v11947_v62  ;;  %v14029_v52 = vrot.slane %v14009_v48, %v16435_v32  ;;  %v14232_v32 = vld [vmem:[%s13633_s24 + $0x428] sm:$0xff] }
 0x173   : > { %9228 = vmatpush1.bf16.msra.mxu1 %v11925_v41  ;;  %8917 = vmatprep.subr.bf16.mxu0 %v11956_v2  ;;  %16463 = vst [vmem:[#allocation19_spill] sm:$0xff] %v14232_v32 }
 0x174   : > { %9229 = vmatprep.subr.bf16.mxu1 %v11934_v43 }
 0x176   : > { %8918 = vmatpush1.bf16.msra.mxu0 %v11955_v6 }
 0x177   : > { %9230 = vmatpush1.bf16.msra.mxu1 %v11933_v49  ;;  %8919 = vmatprep.subr.bf16.mxu0 %v11964_v15 }
 0x178   : > { %9231 = vmatprep.subr.bf16.mxu1 %v11942_v51 }
 0x17a   : > { %8920 = vmatpush1.bf16.msra.mxu0 %v11963_v17 }
 0x17b   : > { %9232 = vmatpush1.bf16.msra.mxu1 %v11941_v58  ;;  %8921 = vmatprep.subr.bf16.mxu0 %v11972_v14  ;;  %v4325_v58 = vld [vmem:[%s13633_s24 + $0x220] sm:$0xff] }
 0x17c   : > { %9233 = vmatprep.subr.bf16.mxu1 %v11950_v61 }
 0x17e   : > { %8922 = vmatpush1.bf16.msra.mxu0 %v11971_v25 }
 0x17f   : > { %9234 = vmatpush1.bf16.msra.mxu1 %v11949_v10  ;;  %v11980_v10 = vcombine.high %v4321_v57, %v4325_v58 }
 0x180   : > { %9235 = vmatprep.subr.bf16.mxu1 %v11958_v9  ;;  %v11979_v9 = vcombine.low %v4321_v57, %v4325_v58 }
 0x181   : > { %8923 = vmatprep.subr.bf16.mxu0 %v11980_v10 }
 0x182   : > { %8924 = vmatpush1.bf16.msra.mxu0 %v11979_v9 }
 0x183   : > { %9236 = vmatpush1.bf16.msra.mxu1 %v11957_v8 }
 0x184   : > { %9237 = vmatprep.subr.bf16.mxu1 %v11966_v19 }
 0x187   : > { %9238 = vmatpush1.bf16.msra.mxu1 %v11965_v18 }
 0x188   : > { %9239 = vmatprep.subr.bf16.mxu1 %v11974_v26 }
 0x18b   : > { %9240 = vmatpush1.bf16.msra.mxu1 %v11973_v31 }
 0x1cb   : > { %v1780_v37 = vpop.f32.mrb[0].mxu0  ;;  %v1926_v39 = vpop.f32.mrb[0].mxu1 }
 0x1cc   : > { %v12785_v38 = vadd.f32 %v1780_v37, %v14015_v33  ;;  %v1782_v40 = vpop.f32.mrb[1].mxu0  ;;  %v12801_v41 = vadd.f32 %v1926_v39, %v14019_v3  ;;  %v1928_v43 = vpop.f32.mrb[1].mxu1 }
 0x1cd   : > { %v12786_v42 = vadd.f32 %v1782_v40, %v14024_v34  ;;  %v1784_v63 = vpop.f32.mrb[2].mxu0  ;;  %v12802_v45 = vadd.f32 %v1928_v43, %v14029_v52  ;;  %v1930_v49 = vpop.f32.mrb[2].mxu1 }
 0x1ce   : > { %v2257_v44 = vmax.f32 %v12785_v38, 0.0  ;;  %v12787_v46 = vadd.f32 %v1784_v63, %v14015_v33  ;;  %v1786_v50 = vpop.f32.mrb[3].mxu0  ;;  %v2259_v51 = vmax.f32 %v12801_v41, 0.0  ;;  %v12803_v55 = vadd.f32 %v1930_v49, %v14019_v3  ;;  %v1932_v56 = vpop.f32.mrb[3].mxu1 }
 0x1cf   : > { %v2258_v53 = vmax.f32 %v12786_v42, 0.0  ;;  %v12788_v36 = vadd.f32 %v1786_v50, %v14024_v34  ;;  %v2260_v60 = vmax.f32 %v12802_v45, 0.0  ;;  %v12804_v62 = vadd.f32 %v1932_v56, %v14029_v52 }
 0x1d0   : > { %v2265_v61 = vmax.f32 %v12787_v46, 0.0  ;;  %v2267_v1 = vmax.f32 %v12803_v55, 0.0 }
 0x1d1   : > { %v2385_v47 = vcombine.low %v2257_v44, %v2258_v53  ;;  %v2386_v11 = vcombine.high %v2257_v44, %v2258_v53  ;;  %v2266_v2 = vmax.f32 %v12788_v36, 0.0  ;;  %v2387_v4 = vcombine.low %v2259_v51, %v2260_v60 }
 0x1d2   : > { %v2388_v6 = vcombine.high %v2259_v51, %v2260_v60  ;;  %v2268_v8 = vmax.f32 %v12804_v62, 0.0 }
 0x1d3   : > { %v2395_v54 = vrot.slane %v2385_v47, %v14035_v29  ;;  %v2402_v12 = vrot.slane %v2386_v11, %v14035_v29  ;;  %v2457_v13 = vcombine.low %v2265_v61, %v2266_v2  ;;  %v2458_v15 = vcombine.high %v2265_v61, %v2266_v2  ;;  %v1790_v16 = vpop.f32.mrb[4].mxu0  ;;  %v1936_v20 = vpop.f32.mrb[4].mxu1 }
 0x1d4   : > { %v2409_v17 = vrot.slane %v2387_v4, %v14035_v29  ;;  %v2416_v18 = vrot.slane %v2388_v6, %v14035_v29  ;;  %v2459_v19 = vcombine.low %v2267_v1, %v2268_v8  ;;  %v2460_v5 = vcombine.high %v2267_v1, %v2268_v8  ;;  %v1792_v21 = vpop.f32.mrb[5].mxu0  ;;  %v1938_v25 = vpop.f32.mrb[5].mxu1 }
 0x1d5   : > { %v2467_v14 = vrot.slane %v2457_v13, %v14035_v29  ;;  %v2474_v27 = vrot.slane %v2458_v15, %v14035_v29  ;;  %v1794_v31 = vpop.f32.mrb[6].mxu0  ;;  %v1940_v37 = vpop.f32.mrb[6].mxu1  ;;  %v12789_v41 = vadd.f32 %v1790_v16, %v14015_v33  ;;  %v12805_v42 = vadd.f32 %v1936_v20, %v14019_v3 }
 0x1d6   : > { %v14050_v26 = vcombine.low %v2395_v54, %v2409_v17  ;;  %v14052_v28 = vcombine.high %v2395_v54, %v2409_v17  ;;  %v14054_v30 = vcombine.low %v2402_v12, %v2416_v18  ;;  %v14056_v35 = vcombine.high %v2402_v12, %v2416_v18  ;;  %v1796_v38 = vpop.f32.mrb[7].mxu0  ;;  %v1942_v43 = vpop.f32.mrb[7].mxu1 }
 0x1d7   : > { %v2481_v39 = vrot.slane %v2459_v19, %v14035_v29  ;;  %v2488_v40 = vrot.slane %v2460_v5, %v14035_v29  ;;  %v2273_v49 = vmax.f32 %v12789_v41, 0.0  ;;  %v2275_v50 = vmax.f32 %v12805_v42, 0.0 }
 0x1d8   : > { %v12790_v53 = vadd.f32 %v1792_v21, %v14024_v34  ;;  %v12806_v55 = vadd.f32 %v1938_v25, %v14029_v52  ;;  %v12791_v36 = vadd.f32 %v1794_v31, %v14015_v33  ;;  %v12807_v56 = vadd.f32 %v1940_v37, %v14019_v3 }
 0x1d9   : > { %v14062_v63 = vcombine.low %v2467_v14, %v2481_v39  ;;  %v14064_v44 = vcombine.high %v2467_v14, %v2481_v39  ;;  %v14066_v45 = vcombine.low %v2474_v27, %v2488_v40  ;;  %v14068_v46 = vcombine.high %v2474_v27, %v2488_v40 }
 0x1da   : > { %v2274_v62 = vmax.f32 %v12790_v53, 0.0  ;;  %v2276_v10 = vmax.f32 %v12806_v55, 0.0  ;;  %v2281_v1 = vmax.f32 %v12791_v36, 0.0  ;;  %v2283_v2 = vmax.f32 %v12807_v56, 0.0 }
 0x1db   : > { %v1800_v51 = vpop.f32.mrb[8].mxu0  ;;  %v1946_v57 = vpop.f32.mrb[8].mxu1  ;;  %v12792_v4 = vadd.f32 %v1796_v38, %v14024_v34  ;;  %v12808_v6 = vadd.f32 %v1942_v43, %v14029_v52  ;;  %v11861_v7 = vrot.slane %v14064_v44, 9 }
 0x1dc   : > { %v1802_v58 = vpop.f32.mrb[9].mxu0  ;;  %v1948_v60 = vpop.f32.mrb[9].mxu1  ;;  %v2529_v9 = vcombine.low %v2273_v49, %v2274_v62  ;;  %v2530_v54 = vcombine.high %v2273_v49, %v2274_v62  ;;  %v2531_v12 = vcombine.low %v2275_v50, %v2276_v10  ;;  %v2532_v13 = vcombine.high %v2275_v50, %v2276_v10 }
 0x1dd   : > { %v1804_v61 = vpop.f32.mrb[10].mxu0  ;;  %v1950_v47 = vpop.f32.mrb[10].mxu1  ;;  %v2282_v15 = vmax.f32 %v12792_v4, 0.0  ;;  %v2284_v16 = vmax.f32 %v12808_v6, 0.0  ;;  %v12793_v17 = vadd.f32 %v1800_v51, %v14015_v33  ;;  %v12809_v18 = vadd.f32 %v1946_v57, %v14019_v3 }
 0x1de   : > { %v1806_v11 = vpop.f32.mrb[11].mxu0  ;;  %v1952_v8 = vpop.f32.mrb[11].mxu1  ;;  %v2539_v19 = vrot.slane %v2529_v9, %v14035_v29  ;;  %v2546_v5 = vrot.slane %v2530_v54, %v14035_v29  ;;  %v2553_v20 = vrot.slane %v2531_v12, %v14035_v29  ;;  %v2560_v21 = vrot.slane %v2532_v13, %v14035_v29 }
 0x1df   : > { %v2601_v14 = vcombine.low %v2281_v1, %v2282_v15  ;;  %v2602_v27 = vcombine.high %v2281_v1, %v2282_v15  ;;  %v2603_v25 = vcombine.low %v2283_v2, %v2284_v16  ;;  %v2604_v31 = vcombine.high %v2283_v2, %v2284_v16 }
 0x1e0   : > { %v14082_v38 = vcombine.low %v2539_v19, %v2553_v20  ;;  %v14084_v39 = vcombine.high %v2539_v19, %v2553_v20  ;;  %v14086_v40 = vcombine.low %v2546_v5, %v2560_v21  ;;  %v14088_v41 = vcombine.high %v2546_v5, %v2560_v21 }
 0x1e1   : > { %v2611_v49 = vrot.slane %v2601_v14, %v14035_v29  ;;  %v2618_v50 = vrot.slane %v2602_v27, %v14035_v29  ;;  %v2625_v51 = vrot.slane %v2603_v25, %v14035_v29  ;;  %v2632_v53 = vrot.slane %v2604_v31, %v14035_v29 }
 0x1e2   : > { %v2289_v6 = vmax.f32 %v12793_v17, 0.0  ;;  %v2291_v9 = vmax.f32 %v12809_v18, 0.0  ;;  %v12794_v54 = vadd.f32 %v1802_v58, %v14024_v34  ;;  %v12810_v12 = vadd.f32 %v1948_v60, %v14029_v52 }
 0x1e3   : > { %v1810_v37 = vpop.f32.mrb[12].mxu0  ;;  %v1956_v42 = vpop.f32.mrb[12].mxu1  ;;  %v14094_v62 = vcombine.low %v2611_v49, %v2625_v51  ;;  %v14096_v10 = vcombine.high %v2611_v49, %v2625_v51  ;;  %v14098_v1 = vcombine.low %v2618_v50, %v2632_v53  ;;  %v14100_v2 = vcombine.high %v2618_v50, %v2632_v53 }
 0x1e4   : > { %v1812_v43 = vpop.f32.mrb[13].mxu0  ;;  %v1958_v55 = vpop.f32.mrb[13].mxu1  ;;  %v12795_v13 = vadd.f32 %v1804_v61, %v14015_v33  ;;  %v12811_v15 = vadd.f32 %v1950_v47, %v14019_v3  ;;  %v2290_v16 = vmax.f32 %v12794_v54, 0.0  ;;  %v2292_v19 = vmax.f32 %v12810_v12, 0.0 }
 0x1e5   : > { %v1814_v36 = vpop.f32.mrb[14].mxu0  ;;  %v1960_v56 = vpop.f32.mrb[14].mxu1  ;;  %v12796_v21 = vadd.f32 %v1806_v11, %v14024_v34  ;;  %v12812_v14 = vadd.f32 %v1952_v8, %v14029_v52  ;;  %v12797_v27 = vadd.f32 %v1810_v37, %v14015_v33  ;;  %v12813_v17 = vadd.f32 %v1956_v42, %v14019_v3 }
 0x1e6   : > { %v1816_v57 = vpop.f32.mrb[15].mxu0  ;;  %v1962_v4 = vpop.f32.mrb[15].mxu1  ;;  %v2297_v5 = vmax.f32 %v12795_v13, 0.0  ;;  %v2299_v20 = vmax.f32 %v12811_v15, 0.0  ;;  %v2673_v18 = vcombine.low %v2289_v6, %v2290_v16  ;;  %v2674_v58 = vcombine.high %v2289_v6, %v2290_v16 }
 0x1e7   : > { %v2675_v25 = vcombine.low %v2291_v9, %v2292_v19  ;;  %v2676_v60 = vcombine.high %v2291_v9, %v2292_v19  ;;  %v2298_v31 = vmax.f32 %v12796_v21, 0.0  ;;  %v2300_v61 = vmax.f32 %v12812_v14, 0.0 }
 0x1e8   : > { %v2683_v47 = vrot.slane %v2673_v18, %v14035_v29  ;;  %v2690_v49 = vrot.slane %v2674_v58, %v14035_v29  ;;  %v2305_v14 = vmax.f32 %v12797_v27, 0.0  ;;  %v2307_v18 = vmax.f32 %v12813_v17, 0.0 }
 0x1e9   : > { %v2697_v50 = vrot.slane %v2675_v25, %v14035_v29  ;;  %v2704_v11 = vrot.slane %v2676_v60, %v14035_v29  ;;  %v2745_v51 = vcombine.low %v2297_v5, %v2298_v31  ;;  %v2746_v8 = vcombine.high %v2297_v5, %v2298_v31 }
 0x1ea   : > { %v2747_v53 = vcombine.low %v2299_v20, %v2300_v61  ;;  %v2748_v37 = vcombine.high %v2299_v20, %v2300_v61  ;;  %v12798_v58 = vadd.f32 %v1812_v43, %v14024_v34  ;;  %v12814_v25 = vadd.f32 %v1958_v55, %v14029_v52  ;;  %v4322_v61 = vld [vmem:[%s13633_s24 + $0x208] sm:$0xff] }
 0x1eb   : > { %v14114_v54 = vcombine.low %v2683_v47, %v2697_v50  ;;  %v14116_v42 = vcombine.high %v2683_v47, %v2697_v50  ;;  %v14118_v6 = vcombine.low %v2690_v49, %v2704_v11  ;;  %v14120_v9 = vcombine.high %v2690_v49, %v2704_v11  ;;  %v4326_v47 = vld [vmem:[%s13633_s24 + $0x228] sm:$0xff] }
 0x1ec   : > { %v2755_v12 = vrot.slane %v2745_v51, %v14035_v29  ;;  %v2762_v13 = vrot.slane %v2746_v8, %v14035_v29  ;;  %v2769_v15 = vrot.slane %v2747_v53, %v14035_v29  ;;  %v2776_v16 = vrot.slane %v2748_v37, %v14035_v29 }
 0x1ed   : > { %v12799_v60 = vadd.f32 %v1814_v36, %v14015_v33  ;;  %v12815_v31 = vadd.f32 %v1960_v56, %v14019_v3  ;;  %v2306_v49 = vmax.f32 %v12798_v58, 0.0  ;;  %v2308_v50 = vmax.f32 %v12814_v25, 0.0 }
 0x1ee   : > { %v14126_v19 = vcombine.low %v2755_v12, %v2769_v15  ;;  %v14128_v5 = vcombine.high %v2755_v12, %v2769_v15  ;;  %v14130_v20 = vcombine.low %v2762_v13, %v2776_v16  ;;  %v14132_v21 = vcombine.high %v2762_v13, %v2776_v16 }
 0x1ef   : > { %v2313_v11 = vmax.f32 %v12799_v60, 0.0  ;;  %v2315_v51 = vmax.f32 %v12815_v31, 0.0  ;;  %v12800_v8 = vadd.f32 %v1816_v57, %v14024_v34  ;;  %v12816_v53 = vadd.f32 %v1962_v4, %v14029_v52 }
 0x1f0   : > { %v11981_v27 = vcombine.low %v4322_v61, %v4326_v47  ;;  %v2817_v17 = vcombine.low %v2305_v14, %v2306_v49  ;;  %v2818_v37 = vcombine.high %v2305_v14, %v2306_v49  ;;  %v2819_v43 = vcombine.low %v2307_v18, %v2308_v50  ;;  %v4333_v49 = vld [vmem:[%s13633_s24 + $0x260] sm:$0xff] }
 0x1f1   : > { %v2820_v12 = vcombine.high %v2307_v18, %v2308_v50  ;;  %v2314_v55 = vmax.f32 %v12800_v8, 0.0  ;;  %v2316_v13 = vmax.f32 %v12816_v53, 0.0  ;;  %v11982_v33 = vcombine.high %v4322_v61, %v4326_v47  ;;  %v4329_v47 = vld [vmem:[%s13633_s24 + $0x240] sm:$0xff]  ;;  %v4330_v53 = vld [vmem:[%s13633_s24 + $0x248] sm:$0xff] }
 0x1f2   : > { %v2827_v3 = vrot.slane %v2817_v17, %v14035_v29  ;;  %v2834_v36 = vrot.slane %v2818_v37, %v14035_v29  ;;  %v2841_v56 = vrot.slane %v2819_v43, %v14035_v29  ;;  %v4337_v17 = vld [vmem:[%s13633_s24 + $0x280] sm:$0xff]  ;;  %v11987_v37 = vcombine.low %v4329_v47, %v4333_v49 }
 0x1f3   : > { %v2848_v15 = vrot.slane %v2820_v12, %v14035_v29  ;;  %v2889_v34 = vcombine.low %v2313_v11, %v2314_v55  ;;  %v2890_v52 = vcombine.high %v2313_v11, %v2314_v55  ;;  %v2891_v57 = vcombine.low %v2315_v51, %v2316_v13  ;;  %9241 = vmatprep.subr.bf16.mxu1 %v11982_v33  ;;  %v4341_v43 = vld [vmem:[%s13633_s24 + $0x2a0] sm:$0xff]  ;;  %v4338_v12 = vld [vmem:[%s13633_s24 + $0x288] sm:$0xff] }
 0x1f4   : > { %v2892_v4 = vcombine.high %v2315_v51, %v2316_v13  ;;  %v14146_v16 = vcombine.low %v2827_v3, %v2841_v56  ;;  %v14148_v14 = vcombine.high %v2827_v3, %v2841_v56  ;;  %9242 = vmatpush1.bf16.msra.mxu1 %v11981_v27  ;;  %v4334_v27 = vld [vmem:[%s13633_s24 + $0x268] sm:$0xff]  ;;  %v11988_v13 = vcombine.high %v4329_v47, %v4333_v49  ;;  %v4349_v56 = vld [vmem:[%s13633_s24 + $0x2e0] sm:$0xff] }
 0x1f5   : > { %v14150_v18 = vcombine.low %v2834_v36, %v2848_v15  ;;  %v14152_v58 = vcombine.high %v2834_v36, %v2848_v15  ;;  %v2899_v25 = vrot.slane %v2889_v34, %v14035_v29  ;;  %v2906_v60 = vrot.slane %v2890_v52, %v14035_v29  ;;  %v4342_v55 = vld [vmem:[%s13633_s24 + $0x2a8] sm:$0xff]  ;;  %v4345_v36 = vld [vmem:[%s13633_s24 + $0x2c0] sm:$0xff] }
 0x1f6   : > { %v2913_v31 = vrot.slane %v2891_v57, %v14035_v29  ;;  %v2920_v61 = vrot.slane %v2892_v4, %v14035_v29  ;;  %v11989_v33 = vcombine.low %v4330_v53, %v4334_v27  ;;  %v11990_v3 = vcombine.high %v4330_v53, %v4334_v27  ;;  %v4346_v15 = vld [vmem:[%s13633_s24 + $0x2c8] sm:$0xff]  ;;  %8925 = vmatprep.subr.bf16.mxu0 %v11988_v13  ;;  %v4357_v47 = vld [vmem:[%s13633_s24 + $0x320] sm:$0xff] }
 0x1f7   : > { %v4350_v34 = vld [vmem:[%s13633_s24 + $0x2e8] sm:$0xff]  ;;  %v11996_v52 = vcombine.high %v4337_v17, %v4341_v43  ;;  %v11998_v57 = vcombine.high %v4338_v12, %v4342_v55  ;;  %8926 = vmatpush1.bf16.msra.mxu0 %v11987_v37  ;;  %v11995_v4 = vcombine.low %v4337_v17, %v4341_v43  ;;  %v12003_v53 = vcombine.low %v4345_v36, %v4349_v56  ;;  %v4361_v43 = vld [vmem:[%s13633_s24 + $0x340] sm:$0xff] }
 0x1f8   : > { %v14160_v50 = vcombine.low %v2899_v25, %v2913_v31  ;;  %v14162_v11 = vcombine.high %v2899_v25, %v2913_v31  ;;  %v14164_v51 = vcombine.low %v2906_v60, %v2920_v61  ;;  %v14166_v8 = vcombine.high %v2906_v60, %v2920_v61  ;;  %9243 = vmatprep.subr.bf16.mxu1 %v11990_v3  ;;  %v4353_v61 = vld [vmem:[%s13633_s24 + $0x300] sm:$0xff]  ;;  %v4354_v49 = vld [vmem:[%s13633_s24 + $0x308] sm:$0xff] }
 0x1f9   : > { %9244 = vmatpush1.bf16.msra.mxu1 %v11989_v33  ;;  %v11997_v25 = vcombine.low %v4338_v12, %v4342_v55  ;;  %8927 = vmatprep.subr.bf16.mxu0 %v11996_v52  ;;  %v12004_v60 = vcombine.high %v4345_v36, %v4349_v56  ;;  %v12006_v31 = vcombine.high %v4346_v15, %v4350_v34  ;;  %v4358_v13 = vld [vmem:[%s13633_s24 + $0x328] sm:$0xff]  ;;  %v4365_v12 = vld [vmem:[%s13633_s24 + $0x360] sm:$0xff] }
 0x1fa   : > { %9245 = vmatprep.subr.bf16.mxu1 %v11998_v57  ;;  %v12005_v27 = vcombine.low %v4346_v15, %v4350_v34  ;;  %v12012_v17 = vcombine.high %v4353_v61, %v4357_v47  ;;  %v12014_v37 = vcombine.high %v4354_v49, %v4358_v13  ;;  %v4362_v55 = vld [vmem:[%s13633_s24 + $0x348] sm:$0xff]  ;;  %v12011_v33 = vcombine.low %v4353_v61, %v4357_v47  ;;  %v4369_v15 = vld [vmem:[%s13633_s24 + $0x380] sm:$0xff] }
 0x1fb   : > { %8928 = vmatpush1.bf16.msra.mxu0 %v11995_v4  ;;  %v12013_v3 = vcombine.low %v4354_v49, %v4358_v13  ;;  %v4366_v52 = vld [vmem:[%s13633_s24 + $0x368] sm:$0xff]  ;;  %v12020_v36 = vcombine.high %v4361_v43, %v4365_v12  ;;  %v4373_v34 = vld [vmem:[%s13633_s24 + $0x3a0] sm:$0xff]  ;;  %v12019_v4 = vcombine.low %v4361_v43, %v4365_v12  ;;  %v14196_v61 = vsub.s32 4, %v13996_v23 }
 0x1fc   : > { %8929 = vmatprep.subr.bf16.mxu0 %v12004_v60  ;;  %v12022_v56 = vcombine.high %v4362_v55, %v4366_v52  ;;  %v4370_v57 = vld [vmem:[%s13633_s24 + $0x388] sm:$0xff]  ;;  %v12028_v60 = vcombine.high %v4369_v15, %v4373_v34  ;;  %v14199_v47 = vsub.s32 6, %v13996_v23  ;;  %v4377_v49 = vld [vmem:[%s13633_s24 + $0x3c0] sm:$0xff]  ;;  %v12027_v0 = vcombine.low %v4369_v15, %v4373_v34 }
 0x1fd   : > { %9246 = vmatpush1.bf16.msra.mxu1 %v11997_v25  ;;  %v12021_v25 = vcombine.low %v4362_v55, %v4366_v52  ;;  %v12029_v13 = vcombine.low %v4370_v57, %v4374_v22  ;;  %v11851_v12 = vrot.slane %v14050_v26, 9  ;;  %v14208_v55 = vrot.slane %v14009_v48, %v14196_v61  ;;  %v14220_v34 = vld [vmem:[%s13633_s24 + $0x400] sm:$0xff] }
 0x1fe   : > { %9247 = vmatprep.subr.bf16.mxu1 %v12006_v31  ;;  %v12030_v31 = vcombine.high %v4370_v57, %v4374_v22  ;;  %16459 = vst [vmem:[#allocation15_spill] sm:$0xff] %v14199_v47  ;;  %v11853_v52 = vrot.slane %v14052_v28, 9  ;;  %v14217_v15 = vrot.slane %v14009_v48, %v14199_v47  ;;  %16460 = vst [vmem:[#allocation16_spill] sm:$0xff] %v14220_v34  ;;  %v14223_v57 = vld [vmem:[%s13633_s24 + $0x420] sm:$0xff]  ;;  %v11875_v47 = vrot.slane %v14094_v62, 9 }
 0x1ff   : > { %8930 = vmatpush1.bf16.msra.mxu0 %v12003_v53  ;;  %v4381_v53 = vld [vmem:[%s13633_s24 + $0x3e0] sm:$0xff]  ;;  %16461 = vst [vmem:[#allocation17_spill] sm:$0xff] %v14223_v57 }
 0x200   : > { %8931 = vmatprep.subr.bf16.mxu0 %v12012_v17  ;;  %v4382_v17 = vld [vmem:[%s13633_s24 + $0x3e8] sm:$0xff]  ;;  %v12035_v22 = vcombine.low %v4377_v49, %v4381_v53 }
 0x201   : > { %9248 = vmatpush1.bf16.msra.mxu1 %v12005_v27  ;;  %v4378_v27 = vld [vmem:[%s13633_s24 + $0x3c8] sm:$0xff] }
 0x202   : > { %9249 = vmatprep.subr.bf16.mxu1 %v12014_v37  ;;  %v12036_v37 = vcombine.high %v4377_v49, %v4381_v53  ;;  %v12038_v43 = vcombine.high %v4378_v27, %v4382_v17  ;;  %v11863_v49 = vrot.slane %v14066_v45, 9  ;;  %v11865_v53 = vrot.slane %v14068_v46, 9 }
 0x203   : > { %8932 = vmatpush1.bf16.msra.mxu0 %v12011_v33  ;;  %v16465_v33 = vsub.s32 7, %v13996_v23 }
 0x204   : > { %8933 = vmatprep.subr.bf16.mxu0 %v12020_v36  ;;  %v11855_v36 = vrot.slane %v14054_v30, 9 }
 0x205   : > { %9250 = vmatpush1.bf16.msra.mxu1 %v12013_v3 }
 0x206   : > { %9251 = vmatprep.subr.bf16.mxu1 %v12022_v56  ;;  %v11857_v56 = vrot.slane %v14056_v35, 9 }
 0x207   : > { %8934 = vmatpush1.bf16.msra.mxu0 %v12019_v4  ;;  %v14226_v4 = vld [vmem:[%s13633_s24 + $0x408] sm:$0xff] }
 0x208   : > { %8935 = vmatprep.subr.bf16.mxu0 %v12028_v60  ;;  %16462 = vst [vmem:[#allocation18_spill] sm:$0xff] %v14226_v4  ;;  %v12037_v60 = vcombine.low %v4378_v27, %v4382_v17  ;;  %v11867_v27 = vrot.slane %v14082_v38, 9  ;;  %v11871_v17 = vrot.slane %v14086_v40, 9 }
 0x209   : > { %9252 = vmatpush1.bf16.msra.mxu1 %v12021_v25  ;;  %v11859_v25 = vrot.slane %v14062_v63, 9 }
 0x20a   : > { %9253 = vmatprep.subr.bf16.mxu1 %v12030_v31  ;;  %v12044_v31 = vcombine.high %v14220_v34, %v14223_v57  ;;  %v14261_v57 = vmax.f32 %v14052_v28, %v11853_v52  ;;  %v14264_v34 = vmax.f32 %v14054_v30, %v11855_v36  ;;  %v14278_v28 = vmax.f32 %v14066_v45, %v11863_v49 }
 0x20b   : > { %8936 = vmatpush1.bf16.msra.mxu0 %v12027_v0  ;;  %v12046_v0 = vcombine.high %v14226_v4, %v14232_v32  ;;  %v14255_v32 = vrot.slane %v14009_v48, %v16465_v33  ;;  %v14258_v4 = vmax.f32 %v14050_v26, %v11851_v12  ;;  %v11877_v26 = vrot.slane %v14096_v10, 9 }
 0x20c   : > { %8937 = vmatprep.subr.bf16.mxu0 %v12036_v37  ;;  %v11873_v37 = vrot.slane %v14088_v41, 9  ;;  %v14281_v30 = vmax.f32 %v14068_v46, %v11865_v53  ;;  %v14284_v12 = vmax.f32 %v14082_v38, %v11867_v27  ;;  %v11881_v45 = vrot.slane %v14100_v2, 9 }
 0x20d   : > { %9254 = vmatpush1.bf16.msra.mxu1 %v12029_v13  ;;  %v11869_v13 = vrot.slane %v14084_v39, 9  ;;  %v14298_v33 = vmax.f32 %v14094_v62, %v11875_v47  ;;  %v11883_v46 = vrot.slane %v14114_v54, 9  ;;  %v11885_v38 = vrot.slane %v14116_v42, 9 }
 0x20e   : > { %9255 = vmatprep.subr.bf16.mxu1 %v12038_v43  ;;  %v16464_v43 = vsub.s32 5, %v13996_v23  ;;  %v14271_v23 = vmax.f32 %v14062_v63, %v11859_v25  ;;  %v14290_v63 = vmax.f32 %v14086_v40, %v11871_v17  ;;  %v14304_v52 = vmax.f32 %v14096_v10, %v11877_v26 }
 0x20f   : > { %8938 = vmatpush1.bf16.msra.mxu0 %v12035_v22  ;;  %v11889_v40 = vrot.slane %v14120_v9, 9  ;;  %v11893_v36 = vrot.slane %v14128_v5, 9  ;;  %v11897_v62 = vrot.slane %v14132_v21, 9  ;;  %v11899_v47 = vrot.slane %v14146_v16, 9 }
 0x210   : > { %v14250_v3 = vrot.slane %v14009_v48, %v16464_v43  ;;  %v14268_v43 = vmax.f32 %v14056_v35, %v11857_v56  ;;  %v14274_v48 = vmax.f32 %v14064_v44, %v11861_v7  ;;  %8960 = vmatprep.subr.bf16.mxu0 %v12044_v31  ;;  %v14287_v35 = vmax.f32 %v14084_v39, %v11869_v13 }
 0x211   : > { %9256 = vmatpush1.bf16.msra.mxu1 %v12037_v60  ;;  %v14293_v7 = vmax.f32 %v14088_v41, %v11873_v37  ;;  %v11879_v44 = vrot.slane %v14098_v1, 9  ;;  %v11887_v39 = vrot.slane %v14118_v6, 9  ;;  %v11891_v41 = vrot.slane %v14126_v19, 9 }
 0x212   : > { %9278 = vmatprep.subr.bf16.mxu1 %v12046_v0  ;;  %v11895_v56 = vrot.slane %v14130_v20, 9  ;;  %v11901_v25 = vrot.slane %v14148_v14, 9  ;;  %v14317_v10 = vmax.f32 %v14100_v2, %v11881_v45  ;;  %v11903_v60 = vrot.slane %v14150_v18, 9 }
 0x213   : > { %v14314_v22 = vmax.f32 %v14098_v1, %v11879_v44  ;;  %v11905_v31 = vrot.slane %v14152_v58, 9  ;;  %v14322_v0 = vmax.f32 %v14114_v54, %v11883_v46  ;;  %v14325_v49 = vmax.f32 %v14116_v42, %v11885_v38 }
 0x214   : > { %v14328_v53 = vmax.f32 %v14118_v6, %v11887_v39  ;;  %v11907_v27 = vrot.slane %v14160_v50, 9  ;;  %v14332_v1 = vmax.f32 %v14120_v9, %v11889_v40  ;;  %v14335_v2 = vmax.f32 %v14126_v19, %v11891_v41 }
 0x215   : > { %16466 = vst [vmem:[#allocation20_spill] sm:$0xff] %v14322_v0  ;;  %16467 = vst [vmem:[#allocation21_spill] sm:$0xff] %v14325_v49  ;;  %v14338_v13 = vmax.f32 %v14128_v5, %v11893_v36  ;;  %v11909_v54 = vrot.slane %v14162_v11, 9  ;;  %v14342_v17 = vmax.f32 %v14130_v20, %v11895_v56  ;;  %v14345_v42 = vmax.f32 %v14132_v21, %v11897_v62 }
 0x216   : > { %16468 = vst [vmem:[#allocation22_spill] sm:$0xff] %v14328_v53  ;;  %16469 = vst [vmem:[#allocation23_spill] sm:$0xff] %v14332_v1  ;;  %v14348_v6 = vmax.f32 %v14146_v16, %v11899_v47  ;;  %v14351_v9 = vmax.f32 %v14148_v14, %v11901_v25  ;;  %v14354_v19 = vmax.f32 %v14150_v18, %v11903_v60  ;;  %v11911_v26 = vrot.slane %v14164_v51, 9 }
 0x217   : > { %16470 = vst [vmem:[#allocation24_spill] sm:$0xff] %v14335_v2  ;;  %16471 = vst [vmem:[#allocation25_spill] sm:$0xff] %v14338_v13  ;;  %v14357_v5 = vmax.f32 %v14152_v58, %v11905_v31  ;;  %v11913_v45 = vrot.slane %v14166_v8, 9  ;;  %v14363_v16 = vmax.f32 %v14160_v50, %v11907_v27  ;;  %v14368_v58 = vmax.f32 %v14162_v11, %v11909_v54 }
 0x218   : > { %16472 = vst [vmem:[#allocation26_spill] sm:$0xff] %v14342_v17  ;;  %16473 = vst [vmem:[#allocation27_spill] sm:$0xff] %v14345_v42  ;;  %v14375_v31 = vmax.f32 %v14164_v51, %v11911_v26 }
 0x219   : > { %16474 = vst [vmem:[#allocation28_spill] sm:$0xff] %v14348_v6  ;;  %16475 = vst [vmem:[#allocation29_spill] sm:$0xff] %v14351_v9 }
 0x21a   : > { %16476 = vst [vmem:[#allocation30_spill] sm:$0xff] %v14354_v19  ;;  %16477 = vst [vmem:[#allocation31_spill] sm:$0xff] %v14357_v5 }
 0x21b   : > { %16478 = vst [vmem:[#allocation32_spill] sm:$0xff] %v14363_v16  ;;  %16479 = vst [vmem:[#allocation33_spill] sm:$0xff] %v14368_v58 }
 0x21c   : > { %16480 = vst [vmem:[#allocation34_spill] sm:$0xff] %v14375_v31 }
 0x22b   : > { %v2072_v37 = vpop.f32.mrb[16].mxu0  ;;  %v2218_v44 = vpop.f32.mrb[16].mxu1 }
 0x22c   : > { %v12817_v20 = vadd.f32 %v2072_v37, %v14208_v55  ;;  %v2074_v21 = vpop.f32.mrb[17].mxu0  ;;  %v12833_v14 = vadd.f32 %v2218_v44, %v14217_v15  ;;  %v2220_v18 = vpop.f32.mrb[17].mxu1 }
 0x22d   : > { %v12818_v46 = vadd.f32 %v2074_v21, %v14250_v3  ;;  %v2076_v38 = vpop.f32.mrb[18].mxu0  ;;  %v12834_v40 = vadd.f32 %v2220_v18, %v14255_v32  ;;  %v2222_v36 = vpop.f32.mrb[18].mxu1  ;;  %v14379_v18 = vmax.f32 %v14166_v8, %v11913_v45 }
 0x22e   : > { %v2261_v39 = vmax.f32 %v12817_v20, 0.0  ;;  %v12819_v41 = vadd.f32 %v2076_v38, %v14208_v55  ;;  %v2078_v56 = vpop.f32.mrb[19].mxu0  ;;  %v2263_v62 = vmax.f32 %v12833_v14, 0.0  ;;  %v12835_v50 = vadd.f32 %v2222_v36, %v14217_v15  ;;  %v2224_v60 = vpop.f32.mrb[19].mxu1 }
 0x22f   : > { %v2262_v47 = vmax.f32 %v12818_v46, 0.0  ;;  %v12820_v25 = vadd.f32 %v2078_v56, %v14250_v3  ;;  %v2264_v27 = vmax.f32 %v12834_v40, 0.0  ;;  %v12836_v54 = vadd.f32 %v2224_v60, %v14255_v32  ;;  %16481 = vst [vmem:[#allocation35_spill] sm:$0xff] %v14379_v18 }
 0x230   : > { %v2269_v11 = vmax.f32 %v12819_v41, 0.0  ;;  %v2271_v44 = vmax.f32 %v12835_v50, 0.0 }
 0x231   : > { %v2421_v37 = vcombine.low %v2261_v39, %v2262_v47  ;;  %v2422_v20 = vcombine.high %v2261_v39, %v2262_v47  ;;  %v2270_v21 = vmax.f32 %v12820_v25, 0.0  ;;  %v2423_v14 = vcombine.low %v2263_v62, %v2264_v27 }
 0x232   : > { %v2424_v46 = vcombine.high %v2263_v62, %v2264_v27  ;;  %v2272_v38 = vmax.f32 %v12836_v54, 0.0 }
 0x233   : > { %v2431_v36 = vrot.slane %v2421_v37, %v14035_v29  ;;  %v2438_v56 = vrot.slane %v2422_v20, %v14035_v29  ;;  %v2493_v51 = vcombine.low %v2269_v11, %v2270_v21  ;;  %v2494_v26 = vcombine.high %v2269_v11, %v2270_v21  ;;  %v2082_v40 = vpop.f32.mrb[20].mxu0  ;;  %v2228_v50 = vpop.f32.mrb[20].mxu1 }
 0x234   : > { %v2445_v41 = vrot.slane %v2423_v14, %v14035_v29  ;;  %v2452_v60 = vrot.slane %v2424_v46, %v14035_v29  ;;  %v2495_v39 = vcombine.low %v2271_v44, %v2272_v38  ;;  %v2496_v47 = vcombine.high %v2271_v44, %v2272_v38  ;;  %v14385_v25 = vpop.f32.mrb[21].mxu0  ;;  %v14395_v11 = vpop.f32.mrb[21].mxu1 }
 0x235   : > { %v2503_v8 = vrot.slane %v2493_v51, %v14035_v29  ;;  %v2510_v45 = vrot.slane %v2494_v26, %v14035_v29  ;;  %v14390_v62 = vadd.f32 %v2082_v40, %v14208_v55  ;;  %v14393_v27 = vadd.f32 %v2228_v50, %v14217_v15  ;;  %v14397_v54 = vpop.f32.mrb[22].mxu0  ;;  %v14399_v14 = vpop.f32.mrb[22].mxu1 }
 0x236   : > { %v2453_v37 = vcombine.low %v2431_v36, %v2445_v41  ;;  %v2454_v20 = vcombine.high %v2431_v36, %v2445_v41  ;;  %v2455_v44 = vcombine.low %v2438_v56, %v2452_v60  ;;  %v2456_v21 = vcombine.high %v2438_v56, %v2452_v60  ;;  %v14401_v46 = vpop.f32.mrb[23].mxu0  ;;  %v14407_v50 = vpop.f32.mrb[23].mxu1 }
 0x237   : > { %v2517_v38 = vrot.slane %v2495_v39, %v14035_v29  ;;  %v2524_v51 = vrot.slane %v2496_v47, %v14035_v29 }
 0x238   : > { %v11852_v18 = vrot.slane %v2453_v37, 9  ;;  %v11854_v31 = vrot.slane %v2454_v20, 9  ;;  %v11856_v36 = vrot.slane %v2455_v44, 9  ;;  %v11858_v41 = vrot.slane %v2456_v21, 9 }
 0x239   : > { %v2525_v56 = vcombine.low %v2503_v8, %v2517_v38  ;;  %v2526_v60 = vcombine.high %v2503_v8, %v2517_v38  ;;  %v2527_v58 = vcombine.low %v2510_v45, %v2524_v51  ;;  %v2528_v16 = vcombine.high %v2510_v45, %v2524_v51 }
 0x23a   : > { %v3218_v5 = vmax.f32 %v2453_v37, %v11852_v18  ;;  %v3220_v39 = vmax.f32 %v2454_v20, %v11854_v31  ;;  %v3222_v19 = vmax.f32 %v2455_v44, %v11856_v36  ;;  %v3224_v47 = vmax.f32 %v2456_v21, %v11858_v41 }
 0x23b   : > { %v11860_v9 = vrot.slane %v2525_v56, 9  ;;  %v11862_v26 = vrot.slane %v2526_v60, 9  ;;  %v11864_v6 = vrot.slane %v2527_v58, 9  ;;  %v11866_v40 = vrot.slane %v2528_v16, 9  ;;  %v14409_v42 = vpop.f32.mrb[24].mxu0  ;;  %v14415_v38 = vpop.f32.mrb[24].mxu1 }
 0x23c   : > { %v3281_v17 = vmax.f32 %v14258_v4, %v3218_v5  ;;  %v3282_v13 = vmax.f32 %v14261_v57, %v3220_v39  ;;  %v3283_v2 = vmax.f32 %v14264_v34, %v3222_v19  ;;  %v3284_v8 = vmax.f32 %v14268_v43, %v3224_v47  ;;  %v14417_v18 = vpop.f32.mrb[25].mxu0  ;;  %v14419_v44 = vpop.f32.mrb[25].mxu1  ;;  %v16482_v19 = vld [vmem:[#allocation15_spill] sm:$0xff] }
 0x23d   : > { %v3226_v31 = vmax.f32 %v2525_v56, %v11860_v9  ;;  %v3228_v45 = vmax.f32 %v2526_v60, %v11862_v26  ;;  %v3230_v37 = vmax.f32 %v2527_v58, %v11864_v6  ;;  %v3232_v20 = vmax.f32 %v2528_v16, %v11866_v40  ;;  %v14421_v21 = vpop.f32.mrb[26].mxu0  ;;  %v14427_v5 = vpop.f32.mrb[26].mxu1 }
 0x23e   : > { %v3363_v4 = vrot.slane %v3281_v17, %v14002_v59  ;;  %v3367_v57 = vrot.slane %v3281_v17, %v14005_v24  ;;  %v3371_v34 = vrot.slane %v3281_v17, %v14196_v61  ;;  %v3375_v43 = vrot.slane %v3281_v17, %v16482_v19  ;;  %16483 = vst [vmem:[#allocation15_spill] sm:$0xff] %v14427_v5  ;;  %v14429_v51 = vpop.f32.mrb[27].mxu0  ;;  %v14435_v26 = vpop.f32.mrb[27].mxu1 }
 0x23f   : > { %16484 = vst [vmem:[#allocation36_spill] sm:$0xff] %v14429_v51  ;;  %v3379_v9 = vrot.slane %v3282_v13, %v14002_v59  ;;  %v3383_v6 = vrot.slane %v3282_v13, %v14005_v24  ;;  %v3387_v16 = vrot.slane %v3282_v13, %v14196_v61  ;;  %v3391_v58 = vrot.slane %v3282_v13, %v16482_v19 }
 0x240   : > { %16485 = vst [vmem:[#allocation37_spill] sm:$0xff] %v14435_v26  ;;  %v3395_v40 = vrot.slane %v3283_v2, %v14002_v59  ;;  %v3399_v36 = vrot.slane %v3283_v2, %v14005_v24  ;;  %v3403_v17 = vrot.slane %v3283_v2, %v14196_v61  ;;  %v3407_v41 = vrot.slane %v3283_v2, %v16482_v19 }
 0x241   : > { %v3411_v56 = vrot.slane %v3284_v8, %v14002_v59  ;;  %v3415_v60 = vrot.slane %v3284_v8, %v14005_v24  ;;  %v3419_v39 = vrot.slane %v3284_v8, %v14196_v61  ;;  %v3423_v47 = vrot.slane %v3284_v8, %v16482_v19 }
 0x242   : > { %v3873_v13 = vsel %vm3872_vm1, %v3379_v9, %v3363_v4  ;;  %v3884_v1 = vsel %vm3872_vm1, %v3383_v6, %v3367_v57  ;;  %v3890_v53 = vsel %vm3872_vm1, %v3387_v16, %v3371_v34  ;;  %v3896_v49 = vsel %vm3872_vm1, %v3391_v58, %v3375_v43 }
 0x243   : > { %v3875_v2 = vsel %vm3874_vm2, %v3395_v40, %v3873_v13  ;;  %v3885_v0 = vsel %vm3874_vm2, %v3399_v36, %v3884_v1  ;;  %v3891_v26 = vsel %vm3874_vm2, %v3403_v17, %v3890_v53  ;;  %v3897_v51 = vsel %vm3874_vm2, %v3407_v41, %v3896_v49  ;;  %v14453_v5 = vpop.f32.mrb[28].mxu0  ;;  %v14459_v43 = vpop.f32.mrb[28].mxu1 }
 0x244   : > { %v3877_v8 = vsel %vm3876_vm3, %v3411_v56, %v3875_v2  ;;  %v3886_v4 = vsel %vm3876_vm3, %v3415_v60, %v3885_v0  ;;  %v3892_v57 = vsel %vm3876_vm3, %v3419_v39, %v3891_v26  ;;  %v3898_v34 = vsel %vm3876_vm3, %v3423_v47, %v3897_v51  ;;  %v14461_v9 = vpop.f32.mrb[29].mxu0  ;;  %v14469_v16 = vpop.f32.mrb[29].mxu1 }
 0x245   : > { %v3285_v1 = vmax.f32 %v14271_v23, %v3226_v31  ;;  %v3286_v53 = vmax.f32 %v14274_v48, %v3228_v45  ;;  %v3287_v49 = vmax.f32 %v14278_v28, %v3230_v37  ;;  %v14467_v6 = vmax.f32 %v14281_v30, %v3232_v20  ;;  %v14471_v0 = vpop.f32.mrb[30].mxu0  ;;  %v14481_v28 = vpop.f32.mrb[30].mxu1 }
 0x246   : > { %v12822_v51 = vadd.f32 %v14385_v25, %v14250_v3  ;;  %v12838_v58 = vadd.f32 %v14395_v11, %v14255_v32  ;;  %v12823_v23 = vadd.f32 %v14397_v54, %v14208_v55  ;;  %v12839_v48 = vadd.f32 %v14399_v14, %v14217_v15  ;;  %v14483_v30 = vpop.f32.mrb[31].mxu0  ;;  %v14489_v20 = vpop.f32.mrb[31].mxu1 }
 0x247   : > { %v3427_v31 = vrot.slane %v3285_v1, %v14002_v59  ;;  %v3431_v45 = vrot.slane %v3285_v1, %v14005_v24  ;;  %v3435_v37 = vrot.slane %v3285_v1, %v14196_v61  ;;  %v3439_v25 = vrot.slane %v3285_v1, %v16482_v19  ;;  %16486 = vst [vmem:[#allocation38_spill] sm:$0xff] %v14489_v20 }
 0x248   : > { %v3443_v11 = vrot.slane %v3286_v53, %v14002_v59  ;;  %v3447_v54 = vrot.slane %v3286_v53, %v14005_v24  ;;  %v3451_v14 = vrot.slane %v3286_v53, %v14196_v61  ;;  %v3455_v26 = vrot.slane %v3286_v53, %v16482_v19 }
 0x249   : > { %v3459_v40 = vrot.slane %v3287_v49, %v14002_v59  ;;  %v3463_v36 = vrot.slane %v3287_v49, %v14005_v24  ;;  %v3467_v17 = vrot.slane %v3287_v49, %v14196_v61  ;;  %v3471_v41 = vrot.slane %v3287_v49, %v16482_v19 }
 0x24a   : > { %v3879_v13 = vsel %vm3878_vm4, %v3427_v31, %v3877_v8  ;;  %v3887_v2 = vsel %vm3878_vm4, %v3431_v45, %v3886_v4  ;;  %v3893_v1 = vsel %vm3878_vm4, %v3435_v37, %v3892_v57  ;;  %v3899_v53 = vsel %vm3878_vm4, %v3439_v25, %v3898_v34 }
 0x24b   : > { %v3881_v49 = vsel %vm3880_vm5, %v3443_v11, %v3879_v13  ;;  %v3888_v56 = vsel %vm3880_vm5, %v3447_v54, %v3887_v2  ;;  %v3894_v60 = vsel %vm3880_vm5, %v3451_v14, %v3893_v1  ;;  %v3900_v20 = vsel %vm3880_vm5, %v3455_v26, %v3899_v53 }
 0x24c   : > { %v3883_v39 = vsel %vm3882_vm6, %v3459_v40, %v3881_v49  ;;  %v3889_v47 = vsel %vm3882_vm6, %v3463_v36, %v3888_v56  ;;  %v3895_v8 = vsel %vm3882_vm6, %v3467_v17, %v3894_v60  ;;  %v3901_v4 = vsel %vm3882_vm6, %v3471_v41, %v3900_v20 }
 0x24d   : > { %4007 = vst [vmem:[#allocation3] sm:$0xfe] %v3883_v39  ;;  %4008 = vst [vmem:[#allocation3 + $0x8] sm:$0xfe] %v3889_v47  ;;  %v2278_v57 = vmax.f32 %v12822_v51, 0.0  ;;  %v2280_v34 = vmax.f32 %v12838_v58, 0.0  ;;  %v12824_v37 = vadd.f32 %v14401_v46, %v14250_v3  ;;  %v12840_v25 = vadd.f32 %v14407_v50, %v14255_v32 }
 0x24e   : > { %4009 = vst [vmem:[#allocation3 + $0x10] sm:$0xfe] %v3895_v8  ;;  %4010 = vst [vmem:[#allocation3 + $0x18] sm:$0xfe] %v3901_v4  ;;  %v2285_v31 = vmax.f32 %v12823_v23, 0.0  ;;  %v2287_v45 = vmax.f32 %v12839_v48, 0.0  ;;  %v14525_v11 = vadd.f32 %v14409_v42, %v14208_v55  ;;  %v14529_v20 = vadd.f32 %v14415_v38, %v14217_v15 }
 0x24f   : > { %v16487_v54 = vmax.f32 %v14390_v62, 0.0  ;;  %v16489_v48 = vmax.f32 %v14393_v27, 0.0  ;;  %v2286_v26 = vmax.f32 %v12824_v37, 0.0  ;;  %v2288_v40 = vmax.f32 %v12840_v25, 0.0 }
 0x250   : > { %v2293_v42 = vmax.f32 %v14525_v11, 0.0  ;;  %v2295_v36 = vmax.f32 %v14529_v20, 0.0 }
 0x251   : > { %v2565_v51 = vcombine.low %v16487_v54, %v2278_v57  ;;  %v16488_v58 = vmov %v16487_v54  ;;  %v2567_v46 = vcombine.low %v16489_v48, %v2280_v34  ;;  %v16490_v14 = vmov %v16489_v48 }
 0x252   : > { %v2566_v23 = vcombine.high %v16488_v58, %v2278_v57  ;;  %v2568_v50 = vcombine.high %v16490_v14, %v2280_v34  ;;  %v2637_v56 = vcombine.low %v2285_v31, %v2286_v26  ;;  %v2638_v60 = vcombine.high %v2285_v31, %v2286_v26 }
 0x253   : > { %v2575_v38 = vrot.slane %v2565_v51, %v14035_v29  ;;  %v2589_v41 = vrot.slane %v2567_v46, %v14035_v29  ;;  %v2639_v39 = vcombine.low %v2287_v45, %v2288_v40  ;;  %v2640_v47 = vcombine.high %v2287_v45, %v2288_v40 }
 0x254   : > { %v2582_v17 = vrot.slane %v2566_v23, %v14035_v29  ;;  %v2596_v62 = vrot.slane %v2568_v50, %v14035_v29  ;;  %v2647_v53 = vrot.slane %v2637_v56, %v14035_v29  ;;  %v2654_v49 = vrot.slane %v2638_v60, %v14035_v29 }
 0x255   : > { %v2597_v27 = vcombine.low %v2575_v38, %v2589_v41  ;;  %v2598_v13 = vcombine.high %v2575_v38, %v2589_v41  ;;  %v2661_v8 = vrot.slane %v2639_v39, %v14035_v29  ;;  %v2668_v4 = vrot.slane %v2640_v47, %v14035_v29 }
 0x256   : > { %v2599_v2 = vcombine.low %v2582_v17, %v2596_v62  ;;  %v2600_v1 = vcombine.high %v2582_v17, %v2596_v62 }
 0x257   : > { %v11868_v57 = vrot.slane %v2597_v27, 9  ;;  %v11870_v34 = vrot.slane %v2598_v13, 9  ;;  %v2669_v31 = vcombine.low %v2647_v53, %v2661_v8  ;;  %v2670_v54 = vcombine.high %v2647_v53, %v2661_v8 }
 0x258   : > { %v11872_v37 = vrot.slane %v2599_v2, 9  ;;  %v11874_v25 = vrot.slane %v2600_v1, 9  ;;  %v2671_v45 = vcombine.low %v2654_v49, %v2668_v4  ;;  %v2672_v51 = vcombine.high %v2654_v49, %v2668_v4 }
 0x259   : > { %v3234_v58 = vmax.f32 %v2597_v27, %v11868_v57  ;;  %v3236_v23 = vmax.f32 %v2598_v13, %v11870_v34  ;;  %v11876_v14 = vrot.slane %v2669_v31, 9  ;;  %v11878_v50 = vrot.slane %v2670_v54, 9 }
 0x25a   : > { %v3238_v48 = vmax.f32 %v2599_v2, %v11872_v37  ;;  %v3240_v46 = vmax.f32 %v2600_v1, %v11874_v25  ;;  %v11880_v26 = vrot.slane %v2671_v45, 9  ;;  %v11882_v40 = vrot.slane %v2672_v51, 9 }
 0x25b   : > { %v3289_v38 = vmax.f32 %v14284_v12, %v3234_v58  ;;  %v3290_v17 = vmax.f32 %v14287_v35, %v3236_v23  ;;  %v3242_v56 = vmax.f32 %v2669_v31, %v11876_v14  ;;  %v3244_v60 = vmax.f32 %v2670_v54, %v11878_v50 }
 0x25c   : > { %v3291_v41 = vmax.f32 %v14290_v63, %v3238_v48  ;;  %v3292_v62 = vmax.f32 %v14293_v7, %v3240_v46  ;;  %v3246_v39 = vmax.f32 %v2671_v45, %v11880_v26  ;;  %v3248_v47 = vmax.f32 %v2672_v51, %v11882_v40 }
 0x25d   : > { %v3491_v27 = vrot.slane %v3289_v38, %v14002_v59  ;;  %v3495_v13 = vrot.slane %v3289_v38, %v14005_v24  ;;  %v3499_v2 = vrot.slane %v3289_v38, %v14196_v61  ;;  %v3503_v1 = vrot.slane %v3289_v38, %v16482_v19 }
 0x25e   : > { %v3507_v12 = vrot.slane %v3290_v17, %v14002_v59  ;;  %v3511_v35 = vrot.slane %v3290_v17, %v14005_v24  ;;  %v3515_v63 = vrot.slane %v3290_v17, %v14196_v61  ;;  %v3519_v7 = vrot.slane %v3290_v17, %v16482_v19 }
 0x25f   : > { %v3523_v53 = vrot.slane %v3291_v41, %v14002_v59  ;;  %v3527_v49 = vrot.slane %v3291_v41, %v14005_v24  ;;  %v3531_v8 = vrot.slane %v3291_v41, %v14196_v61  ;;  %v3535_v4 = vrot.slane %v3291_v41, %v16482_v19 }
 0x260   : > { %v3539_v57 = vrot.slane %v3292_v62, %v14002_v59  ;;  %v3543_v34 = vrot.slane %v3292_v62, %v14005_v24  ;;  %v3547_v37 = vrot.slane %v3292_v62, %v14196_v61  ;;  %v3551_v25 = vrot.slane %v3292_v62, %v16482_v19 }
 0x261   : > { %v16491_v31 = vrot.slane %v14467_v6, %v14002_v59  ;;  %v16492_v45 = vrot.slane %v14467_v6, %v14005_v24  ;;  %v16493_v58 = vrot.slane %v14467_v6, %v14196_v61  ;;  %v16494_v48 = vrot.slane %v14467_v6, %v16482_v19 }
 0x263   : > { %v3903_v54 = vsel %vm3902_vm7, %v3491_v27, %v16491_v31  ;;  %v3910_v51 = vsel %vm3902_vm7, %v3495_v13, %v16492_v45  ;;  %v3917_v23 = vsel %vm3902_vm7, %v3499_v2, %v16493_v58  ;;  %v3924_v46 = vsel %vm3902_vm7, %v3503_v1, %v16494_v48  ;;  %v14633_v48 = vld [vmem:[%s13633_s24 + $0x460] sm:$0xff] }
 0x264   : > { %v3904_v14 = vsel %vm3872_vm1, %v3507_v12, %v3903_v54  ;;  %v3911_v50 = vsel %vm3872_vm1, %v3511_v35, %v3910_v51  ;;  %v3918_v26 = vsel %vm3872_vm1, %v3515_v63, %v3917_v23  ;;  %v3925_v40 = vsel %vm3872_vm1, %v3519_v7, %v3924_v46  ;;  %v14630_v23 = vld [vmem:[%s13633_s24 + $0x440] sm:$0xff] }
 0x265   : > { %v3905_v38 = vsel %vm3874_vm2, %v3523_v53, %v3904_v14  ;;  %v3912_v17 = vsel %vm3874_vm2, %v3527_v49, %v3911_v50  ;;  %v3919_v41 = vsel %vm3874_vm2, %v3531_v8, %v3918_v26  ;;  %v3926_v62 = vsel %vm3874_vm2, %v3535_v4, %v3925_v40  ;;  %v16495_v8 = vld [vmem:[#allocation15_spill] sm:$0xff] }
 0x266   : > { %v3906_v6 = vsel %vm3876_vm3, %v3539_v57, %v3905_v38  ;;  %v3913_v27 = vsel %vm3876_vm3, %v3543_v34, %v3912_v17  ;;  %v3920_v13 = vsel %vm3876_vm3, %v3547_v37, %v3919_v41  ;;  %v3927_v2 = vsel %vm3876_vm3, %v3551_v25, %v3926_v62 }
 0x267   : > { %v3293_v1 = vmax.f32 %v14298_v33, %v3242_v56  ;;  %v3294_v12 = vmax.f32 %v14304_v52, %v3244_v60  ;;  %v3295_v35 = vmax.f32 %v14314_v22, %v3246_v39  ;;  %v3296_v63 = vmax.f32 %v14317_v10, %v3248_v47 }
 0x268   : > { %v12826_v7 = vadd.f32 %v14417_v18, %v14250_v3  ;;  %v12842_v53 = vadd.f32 %v14419_v44, %v14255_v32  ;;  %v12827_v49 = vadd.f32 %v14421_v21, %v14208_v55  ;;  %v12843_v4 = vadd.f32 %v16495_v8, %v14217_v15 }
 0x269   : > { %v3555_v33 = vrot.slane %v3293_v1, %v14002_v59  ;;  %v3559_v52 = vrot.slane %v3293_v1, %v14005_v24  ;;  %v3563_v22 = vrot.slane %v3293_v1, %v14196_v61  ;;  %v3567_v10 = vrot.slane %v3293_v1, %v16482_v19 }
 0x26a   : > { %v3571_v56 = vrot.slane %v3294_v12, %v14002_v59  ;;  %v3575_v18 = vrot.slane %v3294_v12, %v14005_v24  ;;  %v3579_v44 = vrot.slane %v3294_v12, %v14196_v61  ;;  %v3583_v21 = vrot.slane %v3294_v12, %v16482_v19  ;;  %v16496_v12 = vld [vmem:[#allocation36_spill] sm:$0xff] }
 0x26b   : > { %v3587_v60 = vrot.slane %v3295_v35, %v14002_v59  ;;  %v3591_v39 = vrot.slane %v3295_v35, %v14005_v24  ;;  %v3595_v47 = vrot.slane %v3295_v35, %v14196_v61  ;;  %v3599_v57 = vrot.slane %v3295_v35, %v16482_v19 }
 0x26c   : > { %v3603_v34 = vrot.slane %v3296_v63, %v14002_v59  ;;  %v3607_v37 = vrot.slane %v3296_v63, %v14005_v24  ;;  %v3611_v25 = vrot.slane %v3296_v63, %v14196_v61  ;;  %v3615_v31 = vrot.slane %v3296_v63, %v16482_v19  ;;  %v16497_v63 = vld [vmem:[#allocation37_spill] sm:$0xff] }
 0x26d   : > { %v3907_v54 = vsel %vm3878_vm4, %v3555_v33, %v3906_v6  ;;  %v3914_v45 = vsel %vm3878_vm4, %v3559_v52, %v3913_v27  ;;  %v3921_v51 = vsel %vm3878_vm4, %v3563_v22, %v3920_v13  ;;  %v3928_v58 = vsel %vm3878_vm4, %v3567_v10, %v3927_v2 }
 0x26e   : > { %v3908_v46 = vsel %vm3880_vm5, %v3571_v56, %v3907_v54  ;;  %v3915_v14 = vsel %vm3880_vm5, %v3575_v18, %v3914_v45  ;;  %v3922_v50 = vsel %vm3880_vm5, %v3579_v44, %v3921_v51  ;;  %v3929_v26 = vsel %vm3880_vm5, %v3583_v21, %v3928_v58  ;;  %4015 = vst [vmem:[#allocation3 + $0x40] sm:$0x1] %v3603_v34 }
 0x26f   : > { %4016 = vst [vmem:[#allocation3 + $0x48] sm:$0x1] %v3607_v37  ;;  %4017 = vst [vmem:[#allocation3 + $0x50] sm:$0x1] %v3611_v25  ;;  %v14640_v40 = vsel %vm3882_vm6, %v3587_v60, %v3908_v46  ;;  %v14643_v38 = vsel %vm3882_vm6, %v3591_v39, %v3915_v14  ;;  %v3923_v17 = vsel %vm3882_vm6, %v3595_v47, %v3922_v50  ;;  %v2294_v62 = vmax.f32 %v12826_v7, 0.0 }
 0x270   : > { %4018 = vst [vmem:[#allocation3 + $0x58] sm:$0x1] %v3615_v31  ;;  %v14647_v41 = vsel %vm3882_vm6, %v3599_v57, %v3929_v26  ;;  %4011 = vst [vmem:[#allocation3 + $0x20] sm:$0xff] %v14640_v40  ;;  %v2296_v6 = vmax.f32 %v12842_v53, 0.0  ;;  %v12051_v27 = vcombine.low %v14630_v23, %v14633_v48  ;;  %v12052_v13 = vcombine.high %v14630_v23, %v14633_v48  ;;  %v4417_v48 = vld [vmem:[%s13633_s24 + $0x500] sm:$0xff] }
 0x271   : > { %4012 = vst [vmem:[#allocation3 + $0x28] sm:$0xff] %v14643_v38  ;;  %4013 = vst [vmem:[#allocation3 + $0x30] sm:$0xff] %v3923_v17  ;;  %v2301_v2 = vmax.f32 %v12827_v49, 0.0  ;;  %v2303_v1 = vmax.f32 %v12843_v4, 0.0  ;;  %v12828_v35 = vadd.f32 %v16496_v12, %v14250_v3  ;;  %v12844_v8 = vadd.f32 %v16497_v63, %v14255_v32 }
 0x272   : > { %v2709_v33 = vcombine.low %v2293_v42, %v2294_v62  ;;  %v2710_v7 = vcombine.high %v2293_v42, %v2294_v62  ;;  %v2711_v53 = vcombine.low %v2295_v36, %v2296_v6  ;;  %v2712_v52 = vcombine.high %v2295_v36, %v2296_v6 }
 0x273   : > { %v2302_v49 = vmax.f32 %v12828_v35, 0.0  ;;  %v2304_v4 = vmax.f32 %v12844_v8, 0.0  ;;  %v14669_v22 = vadd.f32 %v14453_v5, %v14208_v55  ;;  %v14673_v10 = vadd.f32 %v14459_v43, %v14217_v15  ;;  %v16498_v35 = vld [vmem:[#allocation20_spill] sm:$0xff]  ;;  %v16499_v8 = vld [vmem:[#allocation21_spill] sm:$0xff] }
 0x274   : > { %v2719_v56 = vrot.slane %v2709_v33, %v14035_v29  ;;  %v2726_v11 = vrot.slane %v2710_v7, %v14035_v29  ;;  %v2733_v42 = vrot.slane %v2711_v53, %v14035_v29  ;;  %v2740_v18 = vrot.slane %v2712_v52, %v14035_v29  ;;  %v16500_v7 = vld [vmem:[#allocation22_spill] sm:$0xff]  ;;  %v16501_v52 = vld [vmem:[#allocation23_spill] sm:$0xff] }
 0x275   : > { %v2781_v20 = vcombine.low %v2301_v2, %v2302_v49  ;;  %v2782_v36 = vcombine.high %v2301_v2, %v2302_v49  ;;  %v2783_v44 = vcombine.low %v2303_v1, %v2304_v4  ;;  %v2784_v21 = vcombine.high %v2303_v1, %v2304_v4 }
 0x276   : > { %v2741_v60 = vcombine.low %v2719_v56, %v2733_v42  ;;  %v2742_v39 = vcombine.high %v2719_v56, %v2733_v42  ;;  %v2743_v5 = vcombine.low %v2726_v11, %v2740_v18  ;;  %v2744_v47 = vcombine.high %v2726_v11, %v2740_v18 }
 0x277   : > { %v2791_v57 = vrot.slane %v2781_v20, %v14035_v29  ;;  %v2798_v43 = vrot.slane %v2782_v36, %v14035_v29  ;;  %v2805_v34 = vrot.slane %v2783_v44, %v14035_v29  ;;  %v2812_v37 = vrot.slane %v2784_v21, %v14035_v29 }
 0x278   : > { %v11884_v25 = vrot.slane %v2741_v60, 9  ;;  %v11886_v31 = vrot.slane %v2742_v39, 9  ;;  %v11888_v54 = vrot.slane %v2743_v5, 9  ;;  %v11890_v45 = vrot.slane %v2744_v47, 9 }
 0x279   : > { %v2813_v51 = vcombine.low %v2791_v57, %v2805_v34  ;;  %v2814_v58 = vcombine.high %v2791_v57, %v2805_v34  ;;  %v2815_v46 = vcombine.low %v2798_v43, %v2812_v37  ;;  %v2816_v14 = vcombine.high %v2798_v43, %v2812_v37 }
 0x27a   : > { %v3250_v50 = vmax.f32 %v2741_v60, %v11884_v25  ;;  %v3252_v26 = vmax.f32 %v2742_v39, %v11886_v31  ;;  %v3254_v17 = vmax.f32 %v2743_v5, %v11888_v54  ;;  %v3256_v62 = vmax.f32 %v2744_v47, %v11890_v45 }
 0x27b   : > { %v11892_v6 = vrot.slane %v2813_v51, 9  ;;  %v11894_v2 = vrot.slane %v2814_v58, 9  ;;  %v11896_v1 = vrot.slane %v2815_v46, 9  ;;  %v11898_v12 = vrot.slane %v2816_v14, 9 }
 0x27c   : > { %v3297_v63 = vmax.f32 %v16498_v35, %v3250_v50  ;;  %v3298_v33 = vmax.f32 %v16499_v8, %v3252_v26  ;;  %v3299_v53 = vmax.f32 %v16500_v7, %v3254_v17  ;;  %v3300_v49 = vmax.f32 %v16501_v52, %v3256_v62  ;;  %v14712_v62 = vld [vmem:[%s13633_s24 + $0x448] sm:$0xff] }
 0x27d   : > { %v3258_v4 = vmax.f32 %v2813_v51, %v11892_v6  ;;  %v3260_v56 = vmax.f32 %v2814_v58, %v11894_v2  ;;  %v3262_v11 = vmax.f32 %v2815_v46, %v11896_v1  ;;  %v3264_v42 = vmax.f32 %v2816_v14, %v11898_v12  ;;  %v14715_v6 = vld [vmem:[%s13633_s24 + $0x468] sm:$0xff] }
 0x27e   : > { %v3619_v18 = vrot.slane %v3297_v63, %v14002_v59  ;;  %v3623_v20 = vrot.slane %v3297_v63, %v14005_v24  ;;  %v3627_v36 = vrot.slane %v3297_v63, %v14196_v61  ;;  %v3631_v44 = vrot.slane %v3297_v63, %v16482_v19  ;;  %v16502_v63 = vld [vmem:[#allocation24_spill] sm:$0xff] }
 0x27f   : > { %v3635_v21 = vrot.slane %v3298_v33, %v14002_v59  ;;  %v3639_v60 = vrot.slane %v3298_v33, %v14005_v24  ;;  %v3643_v39 = vrot.slane %v3298_v33, %v14196_v61  ;;  %v3647_v5 = vrot.slane %v3298_v33, %v16482_v19  ;;  %v16503_v33 = vld [vmem:[#allocation25_spill] sm:$0xff] }
 0x280   : > { %v3651_v47 = vrot.slane %v3299_v53, %v14002_v59  ;;  %v3655_v57 = vrot.slane %v3299_v53, %v14005_v24  ;;  %v3659_v43 = vrot.slane %v3299_v53, %v14196_v61  ;;  %v3663_v34 = vrot.slane %v3299_v53, %v16482_v19  ;;  %v16504_v53 = vld [vmem:[#allocation26_spill] sm:$0xff] }
 0x281   : > { %v3667_v37 = vrot.slane %v3300_v49, %v14002_v59  ;;  %v3671_v25 = vrot.slane %v3300_v49, %v14005_v24  ;;  %v3675_v31 = vrot.slane %v3300_v49, %v14196_v61  ;;  %v3679_v54 = vrot.slane %v3300_v49, %v16482_v19  ;;  %v16505_v49 = vld [vmem:[#allocation27_spill] sm:$0xff] }
 0x282   : > { %v3931_v45 = vsel %vm3872_vm1, %v3635_v21, %v3619_v18  ;;  %v3937_v51 = vsel %vm3872_vm1, %v3639_v60, %v3623_v20  ;;  %v3943_v58 = vsel %vm3872_vm1, %v3643_v39, %v3627_v36  ;;  %v3949_v46 = vsel %vm3872_vm1, %v3647_v5, %v3631_v44 }
 0x283   : > { %v3932_v14 = vsel %vm3874_vm2, %v3651_v47, %v3931_v45  ;;  %v3938_v50 = vsel %vm3874_vm2, %v3655_v57, %v3937_v51  ;;  %v3944_v26 = vsel %vm3874_vm2, %v3659_v43, %v3943_v58  ;;  %v3950_v17 = vsel %vm3874_vm2, %v3663_v34, %v3949_v46 }
 0x284   : > { %v3933_v2 = vsel %vm3876_vm3, %v3667_v37, %v3932_v14  ;;  %v3939_v1 = vsel %vm3876_vm3, %v3671_v25, %v3938_v50  ;;  %v3945_v12 = vsel %vm3876_vm3, %v3675_v31, %v3944_v26  ;;  %v3951_v35 = vsel %vm3876_vm3, %v3679_v54, %v3950_v17 }
 0x285   : > { %v3301_v8 = vmax.f32 %v16502_v63, %v3258_v4  ;;  %v3302_v7 = vmax.f32 %v16503_v33, %v3260_v56  ;;  %v3303_v52 = vmax.f32 %v16504_v53, %v3262_v11  ;;  %v14725_v18 = vmax.f32 %v16505_v49, %v3264_v42 }
 0x286   : > { %v2309_v20 = vmax.f32 %v14669_v22, 0.0  ;;  %v2311_v36 = vmax.f32 %v14673_v10, 0.0  ;;  %v12830_v44 = vadd.f32 %v14461_v9, %v14250_v3  ;;  %v12053_v21 = vcombine.low %v14712_v62, %v14715_v6 }
 0x287   : > { %v3683_v60 = vrot.slane %v3301_v8, %v14002_v59  ;;  %v3687_v4 = vrot.slane %v3301_v8, %v14005_v24  ;;  %v3691_v56 = vrot.slane %v3301_v8, %v14196_v61  ;;  %v3695_v11 = vrot.slane %v3301_v8, %v16482_v19  ;;  %v16506_v8 = vld [vmem:[#allocation38_spill] sm:$0xff] }
 0x288   : > { %v3699_v42 = vrot.slane %v3302_v7, %v14002_v59  ;;  %v12846_v22 = vadd.f32 %v14469_v16, %v14255_v32  ;;  %v12831_v10 = vadd.f32 %v14471_v0, %v14208_v55  ;;  %v12847_v9 = vadd.f32 %v14481_v28, %v14217_v15 }
 0x289   : > { %v3703_v39 = vrot.slane %v3302_v7, %v14005_v24  ;;  %v3707_v5 = vrot.slane %v3302_v7, %v14196_v61  ;;  %v3711_v47 = vrot.slane %v3302_v7, %v16482_v19  ;;  %v3715_v57 = vrot.slane %v3303_v52, %v14002_v59 }
 0x28a   : > { %v3719_v43 = vrot.slane %v3303_v52, %v14005_v24  ;;  %v3723_v34 = vrot.slane %v3303_v52, %v14196_v61  ;;  %v3727_v16 = vrot.slane %v3303_v52, %v16482_v19  ;;  %v3731_v55 = vrot.slane %v14725_v18, %v14002_v59 }
 0x28b   : > { %v3934_v0 = vsel %vm3878_vm4, %v3683_v60, %v3933_v2  ;;  %v3940_v15 = vsel %vm3878_vm4, %v3687_v4, %v3939_v1  ;;  %v3946_v28 = vsel %vm3878_vm4, %v3691_v56, %v3945_v12  ;;  %v3952_v37 = vsel %vm3878_vm4, %v3695_v11, %v3951_v35  ;;  %v4032_v1 = vld [vmem:[#allocation3 + $0x8] sm:$0xff] }
 0x28c   : > { %v3935_v25 = vsel %vm3880_vm5, %v3699_v42, %v3934_v0  ;;  %v3941_v31 = vsel %vm3880_vm5, %v3703_v39, %v3940_v15  ;;  %v3947_v54 = vsel %vm3880_vm5, %v3707_v5, %v3946_v28  ;;  %v3953_v45 = vsel %vm3880_vm5, %v3711_v47, %v3952_v37 }
 0x28d   : > { %v3936_v51 = vsel %vm3882_vm6, %v3715_v57, %v3935_v25  ;;  %v3942_v58 = vsel %vm3882_vm6, %v3719_v43, %v3941_v31  ;;  %v3948_v46 = vsel %vm3882_vm6, %v3723_v34, %v3947_v54  ;;  %v3954_v14 = vsel %vm3882_vm6, %v3727_v16, %v3953_v45 }
 0x28e   : > { %v3735_v50 = vrot.slane %v14725_v18, %v14005_v24  ;;  %v3739_v26 = vrot.slane %v14725_v18, %v14196_v61  ;;  %4019 = vst [vmem:[#allocation3 + $0x60] sm:$0xfe] %v3936_v51  ;;  %4020 = vst [vmem:[#allocation3 + $0x68] sm:$0xfe] %v3942_v58  ;;  %v2310_v17 = vmax.f32 %v12830_v44, 0.0  ;;  %v2312_v2 = vmax.f32 %v12846_v22, 0.0 }
 0x28f   : > { %4021 = vst [vmem:[#allocation3 + $0x70] sm:$0xfe] %v3948_v46  ;;  %4022 = vst [vmem:[#allocation3 + $0x78] sm:$0xfe] %v3954_v14  ;;  %v2317_v12 = vmax.f32 %v12831_v10, 0.0  ;;  %v2319_v35 = vmax.f32 %v12847_v9, 0.0  ;;  %v12832_v63 = vadd.f32 %v14483_v30, %v14250_v3  ;;  %v12848_v33 = vadd.f32 %v16506_v8, %v14255_v32 }
 0x290   : > { %v2853_v7 = vcombine.low %v2309_v20, %v2310_v17  ;;  %v2854_v53 = vcombine.high %v2309_v20, %v2310_v17  ;;  %v2855_v52 = vcombine.low %v2311_v36, %v2312_v2  ;;  %v2856_v49 = vcombine.high %v2311_v36, %v2312_v2 }
 0x291   : > { %v3743_v60 = vrot.slane %v14725_v18, %v16482_v19  ;;  %v2318_v4 = vmax.f32 %v12832_v63, 0.0  ;;  %v2320_v56 = vmax.f32 %v12848_v33, 0.0  ;;  %v14776_v44 = vpack.c.bf16 %v14643_v38, %v4032_v1  ;;  %v16508_v63 = vld [vmem:[#allocation29_spill] sm:$0xff]  ;;  %v16509_v33 = vld [vmem:[#allocation30_spill] sm:$0xff] }
 0x292   : > { %v2863_v11 = vrot.slane %v2853_v7, %v14035_v29  ;;  %v2870_v42 = vrot.slane %v2854_v53, %v14035_v29  ;;  %v2877_v3 = vrot.slane %v2855_v52, %v14035_v29  ;;  %v2884_v32 = vrot.slane %v2856_v49, %v14035_v29  ;;  %v16510_v53 = vld [vmem:[#allocation31_spill] sm:$0xff] }
 0x293   : > { %v2925_v30 = vcombine.low %v2317_v12, %v2318_v4  ;;  %v2926_v20 = vcombine.high %v2317_v12, %v2318_v4  ;;  %v2927_v22 = vcombine.low %v2319_v35, %v2320_v56  ;;  %v2928_v36 = vcombine.high %v2319_v35, %v2320_v56  ;;  %8939 = vmatprep.mubr.bf16.mxu0 %v14776_v44  ;;  %v16507_v12 = vld [vmem:[#allocation28_spill] sm:$0xff] }
 0x294   : > { %v2885_v10 = vcombine.low %v2863_v11, %v2877_v3  ;;  %v2886_v9 = vcombine.high %v2863_v11, %v2877_v3  ;;  %v2887_v39 = vcombine.low %v2870_v42, %v2884_v32  ;;  %v2888_v5 = vcombine.high %v2870_v42, %v2884_v32  ;;  %9257 = vmatprep.mubr.bf16.mxu1 %v14776_v44 }
 0x295   : > { %v2935_v47 = vrot.slane %v2925_v30, %v14035_v29  ;;  %v2942_v57 = vrot.slane %v2926_v20, %v14035_v29  ;;  %v2949_v43 = vrot.slane %v2927_v22, %v14035_v29  ;;  %v2956_v34 = vrot.slane %v2928_v36, %v14035_v29 }
 0x296   : > { %v11900_v16 = vrot.slane %v2885_v10, 9  ;;  %v11902_v0 = vrot.slane %v2886_v9, 9  ;;  %v11904_v15 = vrot.slane %v2887_v39, 9  ;;  %v11906_v28 = vrot.slane %v2888_v5, 9 }
 0x297   : > { %v2957_v37 = vcombine.low %v2935_v47, %v2949_v43  ;;  %v2958_v25 = vcombine.high %v2935_v47, %v2949_v43  ;;  %v2959_v31 = vcombine.low %v2942_v57, %v2956_v34  ;;  %v2960_v54 = vcombine.high %v2942_v57, %v2956_v34 }
 0x298   : > { %v3266_v45 = vmax.f32 %v2885_v10, %v11900_v16  ;;  %v3268_v51 = vmax.f32 %v2886_v9, %v11902_v0  ;;  %v3270_v58 = vmax.f32 %v2887_v39, %v11904_v15  ;;  %v3272_v46 = vmax.f32 %v2888_v5, %v11906_v28 }
 0x299   : > { %v11908_v14 = vrot.slane %v2957_v37, 9  ;;  %v11910_v17 = vrot.slane %v2958_v25, 9  ;;  %v11912_v2 = vrot.slane %v2959_v31, 9  ;;  %v11914_v1 = vrot.slane %v2960_v54, 9 }
 0x29a   : > { %v3305_v35 = vmax.f32 %v16507_v12, %v3266_v45  ;;  %v3306_v8 = vmax.f32 %v16508_v63, %v3268_v51  ;;  %v3307_v7 = vmax.f32 %v16509_v33, %v3270_v58  ;;  %v3308_v52 = vmax.f32 %v16510_v53, %v3272_v46  ;;  %v14829_v45 = vld [vmem:[%s13633_s24 + $0x480] sm:$0xff]  ;;  %v4031_v58 = vld [vmem:[#allocation3] sm:$0xff]  ;;  %v14839_v46 = vld [vmem:[%s13633_s24 + $0x488] sm:$0xff] }
 0x29b   : > { %v3274_v49 = vmax.f32 %v2957_v37, %v11908_v14  ;;  %v3276_v4 = vmax.f32 %v2958_v25, %v11910_v17  ;;  %v3278_v56 = vmax.f32 %v2959_v31, %v11912_v2  ;;  %v3280_v11 = vmax.f32 %v2960_v54, %v11914_v1  ;;  %v14842_v14 = vld [vmem:[%s13633_s24 + $0x4a8] sm:$0xff] }
 0x29c   : > { %v3747_v42 = vrot.slane %v3305_v35, %v14002_v59  ;;  %v3751_v3 = vrot.slane %v3305_v35, %v14005_v24  ;;  %v3755_v32 = vrot.slane %v3305_v35, %v14196_v61  ;;  %v3759_v30 = vrot.slane %v3305_v35, %v16482_v19  ;;  %v16511_v35 = vld [vmem:[#allocation32_spill] sm:$0xff] }
 0x29d   : > { %v3763_v20 = vrot.slane %v3306_v8, %v14002_v59  ;;  %v3767_v22 = vrot.slane %v3306_v8, %v14005_v24  ;;  %v3771_v36 = vrot.slane %v3306_v8, %v14196_v61  ;;  %v3775_v10 = vrot.slane %v3306_v8, %v16482_v19  ;;  %v16512_v8 = vld [vmem:[#allocation33_spill] sm:$0xff] }
 0x29e   : > { %v3779_v9 = vrot.slane %v3307_v7, %v14002_v59  ;;  %v3783_v39 = vrot.slane %v3307_v7, %v14005_v24  ;;  %v3787_v5 = vrot.slane %v3307_v7, %v14196_v61  ;;  %v3791_v47 = vrot.slane %v3307_v7, %v16482_v19  ;;  %v16513_v7 = vld [vmem:[#allocation34_spill] sm:$0xff] }
 0x29f   : > { %v3795_v57 = vrot.slane %v3308_v52, %v14002_v59  ;;  %v3799_v43 = vrot.slane %v3308_v52, %v14005_v24  ;;  %v3803_v34 = vrot.slane %v3308_v52, %v14196_v61  ;;  %v3807_v16 = vrot.slane %v3308_v52, %v16482_v19  ;;  %v16514_v52 = vld [vmem:[#allocation35_spill] sm:$0xff] }
 0x2a0   : > { %v3955_v0 = vsel %vm3902_vm7, %v3747_v42, %v3731_v55  ;;  %v3962_v15 = vsel %vm3902_vm7, %v3751_v3, %v3735_v50  ;;  %v3969_v28 = vsel %vm3902_vm7, %v3755_v32, %v3739_v26  ;;  %v3976_v37 = vsel %vm3902_vm7, %v3759_v30, %v3743_v60  ;;  %v14832_v50 = vld [vmem:[%s13633_s24 + $0x4a0] sm:$0xff] }
 0x2a1   : > { %v3956_v25 = vsel %vm3872_vm1, %v3763_v20, %v3955_v0  ;;  %v3963_v55 = vsel %vm3872_vm1, %v3767_v22, %v3962_v15  ;;  %v3970_v31 = vsel %vm3872_vm1, %v3771_v36, %v3969_v28  ;;  %v3977_v54 = vsel %vm3872_vm1, %v3775_v10, %v3976_v37 }
 0x2a2   : > { %v3957_v51 = vsel %vm3874_vm2, %v3779_v9, %v3956_v25  ;;  %v3964_v26 = vsel %vm3874_vm2, %v3783_v39, %v3963_v55  ;;  %v3971_v18 = vsel %vm3874_vm2, %v3787_v5, %v3970_v31  ;;  %v3978_v60 = vsel %vm3874_vm2, %v3791_v47, %v3977_v54  ;;  %v16518_v54 = vld [vmem:[#allocation18_spill] sm:$0xff] }
 0x2a3   : > { %v3958_v17 = vsel %vm3876_vm3, %v3795_v57, %v3957_v51  ;;  %v3965_v2 = vsel %vm3876_vm3, %v3799_v43, %v3964_v26  ;;  %v3972_v1 = vsel %vm3876_vm3, %v3803_v34, %v3971_v18  ;;  %v3979_v12 = vsel %vm3876_vm3, %v3807_v16, %v3978_v60  ;;  %v16515_v57 = vld [vmem:[#allocation16_spill] sm:$0xff]  ;;  %v16516_v43 = vld [vmem:[#allocation17_spill] sm:$0xff]  ;;  %v16519_v51 = vld [vmem:[#allocation19_spill] sm:$0xff] }
 0x2a4   : > { %v3309_v63 = vmax.f32 %v16511_v35, %v3274_v49  ;;  %v3310_v33 = vmax.f32 %v16512_v8, %v3276_v4  ;;  %v3311_v53 = vmax.f32 %v16513_v7, %v3278_v56  ;;  %v3312_v42 = vmax.f32 %v16514_v52, %v3280_v11  ;;  %v4040_v18 = vld [vmem:[#allocation3 + $0x68] sm:$0xff]  ;;  %v4410_v7 = vld [vmem:[%s13633_s24 + $0x4c8] sm:$0xff] }
 0x2a5   : > { %v14853_v3 = vpack.c.bf16 %v14640_v40, %v4031_v58  ;;  %v12054_v32 = vcombine.high %v14712_v62, %v14715_v6  ;;  %v12060_v30 = vcombine.high %v14829_v45, %v14832_v50  ;;  %v12062_v20 = vcombine.high %v14839_v46, %v14842_v14  ;;  %v4418_v62 = vld [vmem:[%s13633_s24 + $0x508] sm:$0xff] }
 0x2a6   : > { %v3811_v49 = vrot.slane %v3309_v63, %v14002_v59  ;;  %v3815_v4 = vrot.slane %v3309_v63, %v14005_v24  ;;  %v3819_v56 = vrot.slane %v3309_v63, %v14196_v61  ;;  %v3823_v11 = vrot.slane %v3309_v63, %v16482_v19  ;;  %v4422_v6 = vld [vmem:[%s13633_s24 + $0x528] sm:$0xff] }
 0x2a7   : > { %v3827_v40 = vrot.slane %v3310_v33, %v14002_v59  ;;  %v3831_v22 = vrot.slane %v3310_v33, %v14005_v24  ;;  %v3835_v36 = vrot.slane %v3310_v33, %v14196_v61  ;;  %v3839_v10 = vrot.slane %v3310_v33, %v16482_v19  ;;  %8940 = vmatmul.mubr.bf16.vlgmr.msra.gmra.mrb[32].mxu0 %v14853_v3 }
 0x2a8   : > { %v3843_v9 = vrot.slane %v3311_v53, %v14002_v59  ;;  %v3847_v39 = vrot.slane %v3311_v53, %v14005_v24  ;;  %v3851_v5 = vrot.slane %v3311_v53, %v14196_v61  ;;  %v3855_v47 = vrot.slane %v3311_v53, %v16482_v19  ;;  %9258 = vmatmul.mubr.bf16.vlgmr.msra.gmra.mrb[32].mxu1 %v14853_v3  ;;  %v4414_v53 = vld [vmem:[%s13633_s24 + $0x4e8] sm:$0xff] }
 0x2a9   : > { %v16517_v34 = vcombine.low %v16515_v57, %v16516_v43  ;;  %v3859_v16 = vrot.slane %v3312_v42, %v14002_v59  ;;  %v3863_v0 = vrot.slane %v3312_v42, %v14005_v24  ;;  %v3867_v15 = vrot.slane %v3312_v42, %v14196_v61  ;;  %v4438_v57 = vld [vmem:[%s13633_s24 + $0x5a8] sm:$0xff] }
 0x2aa   : > { %v3871_v28 = vrot.slane %v3312_v42, %v16482_v19  ;;  %v3959_v37 = vsel %vm3878_vm4, %v3811_v49, %v3958_v17  ;;  %v3966_v25 = vsel %vm3878_vm4, %v3815_v4, %v3965_v2  ;;  %v3973_v55 = vsel %vm3878_vm4, %v3819_v56, %v3972_v1  ;;  %v4409_v2 = vld [vmem:[%s13633_s24 + $0x4c0] sm:$0xff] }
 0x2ab   : > { %8961 = vmatpush1.bf16.msra.mxu0 %v16517_v34  ;;  %v3980_v31 = vsel %vm3878_vm4, %v3823_v11, %v3979_v12  ;;  %v16520_v26 = vcombine.low %v16518_v54, %v16519_v51  ;;  %v3960_v60 = vsel %vm3880_vm5, %v3827_v40, %v3959_v37  ;;  %v3967_v58 = vsel %vm3880_vm5, %v3831_v22, %v3966_v25  ;;  %v4413_v1 = vld [vmem:[%s13633_s24 + $0x4e0] sm:$0xff]  ;;  %v4426_v11 = vld [vmem:[%s13633_s24 + $0x548] sm:$0xff] }
 0x2ac   : > { %v3974_v17 = vsel %vm3880_vm5, %v3835_v36, %v3973_v55  ;;  %v3981_v35 = vsel %vm3880_vm5, %v3839_v10, %v3980_v31  ;;  %4027 = vst [vmem:[#allocation3 + $0xa0] sm:$0x1] %v3859_v16  ;;  %4028 = vst [vmem:[#allocation3 + $0xa8] sm:$0x1] %v3863_v0  ;;  %8962 = vmatprep.subr.bf16.mxu0 %v12052_v13  ;;  %v14899_v12 = vsel %vm3882_vm6, %v3843_v9, %v3960_v60  ;;  %v4039_v13 = vld [vmem:[#allocation3 + $0x60] sm:$0xff]  ;;  %v4425_v4 = vld [vmem:[%s13633_s24 + $0x540] sm:$0xff] }
 0x2ad   : > { %9279 = vmatpush1.bf16.msra.mxu1 %v16520_v26  ;;  %4029 = vst [vmem:[#allocation3 + $0xb0] sm:$0x1] %v3867_v15  ;;  %4030 = vst [vmem:[#allocation3 + $0xb8] sm:$0x1] %v3871_v28  ;;  %v14902_v63 = vsel %vm3882_vm6, %v3847_v39, %v3967_v58  ;;  %v14905_v8 = vsel %vm3882_vm6, %v3851_v5, %v3974_v17  ;;  %v14908_v33 = vsel %vm3882_vm6, %v3855_v47, %v3981_v35  ;;  %v4429_v56 = vld [vmem:[%s13633_s24 + $0x560] sm:$0xff]  ;;  %v4430_v40 = vld [vmem:[%s13633_s24 + $0x568] sm:$0xff] }
 0x2ae   : > { %9280 = vmatprep.subr.bf16.mxu1 %v12054_v32  ;;  %4024 = vst [vmem:[#allocation3 + $0x88] sm:$0xff] %v14902_v63  ;;  %v12059_v52 = vcombine.low %v14829_v45, %v14832_v50  ;;  %v14919_v42 = vpack.c.bf16 %v14902_v63, %v4040_v18  ;;  %v12061_v32 = vcombine.low %v14839_v46, %v14842_v14  ;;  %v4034_v50 = vld [vmem:[#allocation3 + $0x18] sm:$0xff]  ;;  %v4433_v39 = vld [vmem:[%s13633_s24 + $0x580] sm:$0xff] }
 0x2af   : > { %8963 = vmatpush1.bf16.msra.mxu0 %v12051_v27  ;;  %v12068_v49 = vcombine.high %v4409_v2, %v4413_v1  ;;  %v12070_v23 = vcombine.high %v4410_v7, %v4414_v53  ;;  %v4421_v27 = vld [vmem:[%s13633_s24 + $0x520] sm:$0xff]  ;;  %v14930_v45 = vpack.c.bf16 %v14899_v12, %v4039_v13  ;;  %v12069_v46 = vcombine.low %v4410_v7, %v4414_v53  ;;  %v4434_v47 = vld [vmem:[%s13633_s24 + $0x588] sm:$0xff] }
 0x2b0   : > { %8964 = vmatprep.subr.bf16.mxu0 %v12060_v30  ;;  %8949 = vmatprep.mubr.bf16.mxu0 %v14919_v42  ;;  %v12076_v14 = vcombine.high %v4417_v48, %v4421_v27  ;;  %v14937_v30 = vpack.c.bf16 %v14647_v41, %v4034_v50  ;;  %v12075_v22 = vcombine.low %v4417_v48, %v4421_v27  ;;  %v4437_v5 = vld [vmem:[%s13633_s24 + $0x5a0] sm:$0xff]  ;;  %v4442_v37 = vld [vmem:[%s13633_s24 + $0x5c8] sm:$0xff] }
 0x2b1   : > { %9281 = vmatpush1.bf16.msra.mxu1 %v12053_v21  ;;  %9267 = vmatprep.mubr.bf16.mxu1 %v14919_v42  ;;  %v12067_v21 = vcombine.low %v4409_v2, %v4413_v1  ;;  %v12077_v36 = vcombine.low %v4418_v62, %v4422_v6  ;;  %v12084_v10 = vcombine.high %v4425_v4, %v4429_v56  ;;  %v4441_v15 = vld [vmem:[%s13633_s24 + $0x5c0] sm:$0xff]  ;;  %v4446_v25 = vld [vmem:[%s13633_s24 + $0x5e8] sm:$0xff] }
 0x2b2   : > { %9282 = vmatprep.subr.bf16.mxu1 %v12062_v20  ;;  %9268 = vmatmul.mubr.bf16.gmra.mrb[36].mxu1 %v14930_v45  ;;  %v12078_v20 = vcombine.high %v4418_v62, %v4422_v6  ;;  %v12086_v9 = vcombine.high %v4426_v11, %v4430_v40  ;;  %v12083_v43 = vcombine.low %v4425_v4, %v4429_v56  ;;  %v4445_v28 = vld [vmem:[%s13633_s24 + $0x5e0] sm:$0xff]  ;;  %v4450_v60 = vld [vmem:[%s13633_s24 + $0x608] sm:$0xff] }
 0x2b3   : > { %8965 = vmatpush1.bf16.msra.mxu0 %v12059_v52  ;;  %9310 = vmatprep.mubr.bf16.mxu1 %v14937_v30  ;;  %v12085_v34 = vcombine.low %v4426_v11, %v4430_v40  ;;  %v12092_v16 = vcombine.high %v4433_v39, %v4437_v5  ;;  %v12094_v0 = vcombine.high %v4434_v47, %v4438_v57  ;;  %v4449_v26 = vld [vmem:[%s13633_s24 + $0x600] sm:$0xff]  ;;  %v4454_v58 = vld [vmem:[%s13633_s24 + $0x628] sm:$0xff] }
 0x2b4   : > { %8966 = vmatprep.subr.bf16.mxu0 %v12068_v49  ;;  %8950 = vmatmul.mubr.bf16.gmra.mrb[36].mxu0 %v14930_v45  ;;  %v12091_v55 = vcombine.low %v4433_v39, %v4437_v5  ;;  %v12093_v31 = vcombine.low %v4434_v47, %v4438_v57  ;;  %v12100_v54 = vcombine.high %v4441_v15, %v4445_v28  ;;  %v4453_v18 = vld [vmem:[%s13633_s24 + $0x620] sm:$0xff]  ;;  %v4458_v13 = vld [vmem:[%s13633_s24 + $0x648] sm:$0xff]  ;;  %v4055_v47 = vld [vmem:[#allocation3 + $0x60] sm:$0xfe]  ;;  %v4125_v57 = vrot.slane %v14899_v12, 1 }
 0x2b5   : > { %9283 = vmatpush1.bf16.msra.mxu1 %v12061_v32  ;;  %8992 = vmatprep.mubr.bf16.mxu0 %v14937_v30  ;;  %v12102_v51 = vcombine.high %v4442_v37, %v4446_v25  ;;  %v12099_v17 = vcombine.low %v4441_v15, %v4445_v28  ;;  %v12101_v35 = vcombine.low %v4442_v37, %v4446_v25  ;;  %v4457_v7 = vld [vmem:[%s13633_s24 + $0x640] sm:$0xff]  ;;  %v4462_v52 = vld [vmem:[%s13633_s24 + $0x668] sm:$0xff]  ;;  %v4124_v37 = vrot.slane %v4055_v47, 1 }
 0x2b6   : > { %9284 = vmatprep.subr.bf16.mxu1 %v12070_v23  ;;  %v12108_v2 = vcombine.high %v4449_v26, %v4453_v18  ;;  %v12110_v1 = vcombine.high %v4450_v60, %v4454_v58  ;;  %v4461_v53 = vld [vmem:[%s13633_s24 + $0x660] sm:$0xff]  ;;  %v12107_v32 = vcombine.low %v4449_v26, %v4453_v18  ;;  %v12109_v49 = vcombine.low %v4450_v60, %v4454_v58  ;;  %v4466_v62 = vld [vmem:[%s13633_s24 + $0x688] sm:$0xff] }
 0x2b7   : > { %8967 = vmatpush1.bf16.msra.mxu0 %v12067_v21  ;;  %v12116_v23 = vcombine.high %v4457_v7, %v4461_v53  ;;  %v12118_v48 = vcombine.high %v4458_v13, %v4462_v52  ;;  %v4465_v27 = vld [vmem:[%s13633_s24 + $0x680] sm:$0xff]  ;;  %v4470_v6 = vld [vmem:[%s13633_s24 + $0x6a8] sm:$0xff]  ;;  %v12115_v21 = vcombine.low %v4457_v7, %v4461_v53 }
 0x2b8   : > { %8968 = vmatprep.subr.bf16.mxu0 %v12076_v14  ;;  %v4469_v50 = vld [vmem:[%s13633_s24 + $0x6a0] sm:$0xff]  ;;  %v4474_v11 = vld [vmem:[%s13633_s24 + $0x6c8] sm:$0xff] }
 0x2b9   : > { %9285 = vmatpush1.bf16.msra.mxu1 %v12069_v46  ;;  %v12117_v46 = vcombine.low %v4458_v13, %v4462_v52  ;;  %v12124_v14 = vcombine.high %v4465_v27, %v4469_v50  ;;  %v4473_v4 = vld [vmem:[%s13633_s24 + $0x6c0] sm:$0xff]  ;;  %v4478_v40 = vld [vmem:[%s13633_s24 + $0x6e8] sm:$0xff] }
 0x2ba   : > { %9286 = vmatprep.subr.bf16.mxu1 %v12078_v20  ;;  %v12126_v20 = vcombine.high %v4466_v62, %v4470_v6  ;;  %v4477_v56 = vld [vmem:[%s13633_s24 + $0x6e0] sm:$0xff]  ;;  %v12133_v15 = vcombine.low %v4474_v11, %v4478_v40  ;;  %v4050_v25 = vld [vmem:[#allocation3 + $0x18] sm:$0xfe] }
 0x2bb   : > { %8969 = vmatpush1.bf16.msra.mxu0 %v12075_v22  ;;  %v12123_v22 = vcombine.low %v4465_v27, %v4469_v50  ;;  %v4481_v39 = vld [vmem:[%s13633_s24 + $0x700] sm:$0xff]  ;;  %v4490_v60 = vld [vmem:[%s13633_s24 + $0x748] sm:$0xff] }
 0x2bc   : > { %8970 = vmatprep.subr.bf16.mxu0 %v12084_v10  ;;  %v12132_v10 = vcombine.high %v4473_v4, %v4477_v56  ;;  %v4485_v5 = vld [vmem:[%s13633_s24 + $0x720] sm:$0xff]  ;;  %v4494_v58 = vld [vmem:[%s13633_s24 + $0x768] sm:$0xff] }
 0x2bd   : > { %9287 = vmatpush1.bf16.msra.mxu1 %v12077_v36  ;;  %v12125_v36 = vcombine.low %v4466_v62, %v4470_v6  ;;  %v12140_v28 = vcombine.high %v4481_v39, %v4485_v5  ;;  %v4493_v26 = vld [vmem:[%s13633_s24 + $0x760] sm:$0xff]  ;;  %v4498_v50 = vld [vmem:[%s13633_s24 + $0x788] sm:$0xff] }
 0x2be   : > { %9288 = vmatprep.subr.bf16.mxu1 %v12086_v9  ;;  %v12134_v9 = vcombine.high %v4474_v11, %v4478_v40  ;;  %v4502_v62 = vld [vmem:[%s13633_s24 + $0x7a8] sm:$0xff]  ;;  %v4049_v47 = vld [vmem:[#allocation3 + $0x10] sm:$0xfe] }
 0x2bf   : > { %8971 = vmatpush1.bf16.msra.mxu0 %v12083_v43  ;;  %v4482_v43 = vld [vmem:[%s13633_s24 + $0x708] sm:$0xff] }
 0x2c0   : > { %8972 = vmatprep.subr.bf16.mxu0 %v12092_v16  ;;  %v4059_v16 = vld [vmem:[#allocation3 + $0xa0] sm:$0x1]  ;;  %v4506_v11 = vld [vmem:[%s13633_s24 + $0x7c8] sm:$0xff] }
 0x2c1   : > { %9289 = vmatpush1.bf16.msra.mxu1 %v12085_v34  ;;  %v4486_v34 = vld [vmem:[%s13633_s24 + $0x728] sm:$0xff]  ;;  %v4136_v18 = vrot.slane %v4059_v16, 1 }
 0x2c2   : > { %9290 = vmatprep.subr.bf16.mxu1 %v12094_v0  ;;  %v12131_v0 = vcombine.low %v4473_v4, %v4477_v56  ;;  %v12141_v53 = vcombine.low %v4482_v43, %v4486_v34  ;;  %v4505_v4 = vld [vmem:[%s13633_s24 + $0x7c0] sm:$0xff]  ;;  %v4510_v40 = vld [vmem:[%s13633_s24 + $0x7e8] sm:$0xff] }
 0x2c3   : > { %8973 = vmatpush1.bf16.msra.mxu0 %v12091_v55  ;;  %v4054_v55 = vld [vmem:[#allocation3 + $0x58] sm:$0x1]  ;;  %v4509_v56 = vld [vmem:[%s13633_s24 + $0x7e0] sm:$0xff] }
 0x2c4   : > { %8974 = vmatprep.subr.bf16.mxu0 %v12100_v54  ;;  %v12142_v54 = vcombine.high %v4482_v43, %v4486_v34  ;;  %v4122_v7 = vrot.slane %v4054_v55, 1  ;;  %v15002_v43 = vld [vmem:[%s13633_s24 + $0x820] sm:$0xff]  ;;  %v4062_v16 = vld [vmem:[#allocation3 + $0xb8] sm:$0x1]  ;;  %v12163_v55 = vcombine.low %v4505_v4, %v4509_v56 }
 0x2c5   : > { %9291 = vmatpush1.bf16.msra.mxu1 %v12093_v31  ;;  %v4114_v31 = vrot.slane %v14647_v41, 1  ;;  %v4053_v34 = vld [vmem:[#allocation3 + $0x50] sm:$0x1] }
 0x2c6   : > { %9292 = vmatprep.subr.bf16.mxu1 %v12102_v51  ;;  %v4489_v51 = vld [vmem:[%s13633_s24 + $0x740] sm:$0xff] }
 0x2c7   : > { %8975 = vmatpush1.bf16.msra.mxu0 %v12099_v17  ;;  %v4126_v17 = vsel %vm4103_vm8, %v4124_v37, %v4125_v57  ;;  %v12148_v13 = vcombine.high %v4489_v51, %v4493_v26  ;;  %v4123_v27 = vsel %vm4103_vm8, %v4114_v31, %v4122_v7  ;;  %v4134_v37 = vrot.slane %v14908_v33, 1  ;;  %v15018_v7 = vld [vmem:[%s13633_s24 + $0x840] sm:$0xff] }
 0x2c8   : > { %8976 = vmatprep.subr.bf16.mxu0 %v12108_v2  ;;  %v4137_v2 = vsel %vm4103_vm8, %v4125_v57, %v4136_v18  ;;  %v12166_v57 = vcombine.high %v4506_v11, %v4510_v40  ;;  %v4142_v18 = vrot.slane %v4062_v16, 1 }
 0x2c9   : > { %9293 = vmatpush1.bf16.msra.mxu1 %v12101_v35  ;;  %v12139_v35 = vcombine.low %v4481_v39, %v4485_v5  ;;  %v14982_v52 = vpack.c.bf16 %v4137_v2, %v4126_v17  ;;  %v12164_v39 = vcombine.high %v4505_v4, %v4509_v56  ;;  %v14999_v5 = vld [vmem:[%s13633_s24 + $0x800] sm:$0xff]  ;;  %v4131_v17 = vrot.slane %v14905_v8, 1 }
 0x2ca   : > { %9294 = vmatprep.subr.bf16.mxu1 %v12110_v1  ;;  %v4113_v1 = vrot.slane %v4050_v25, 1  ;;  %v4061_v2 = vld [vmem:[#allocation3 + $0xb0] sm:$0x1]  ;;  %v12171_v4 = vcombine.low %v14999_v5, %v15002_v43 }
 0x2cb   : > { %8977 = vmatpush1.bf16.msra.mxu0 %v12107_v32  ;;  %v12150_v32 = vcombine.high %v4490_v60, %v4494_v58 }
 0x2cc   : > { %8978 = vmatprep.subr.bf16.mxu0 %v12116_v23  ;;  %v4501_v23 = vld [vmem:[%s13633_s24 + $0x7a0] sm:$0xff] }
 0x2cd   : > { %9295 = vmatpush1.bf16.msra.mxu1 %v12109_v49  ;;  %v4497_v49 = vld [vmem:[%s13633_s24 + $0x780] sm:$0xff] }
 0x2ce   : > { %9296 = vmatprep.subr.bf16.mxu1 %v12118_v48  ;;  %v4115_v48 = vsel %vm4103_vm8, %v4113_v1, %v4114_v31  ;;  %v12165_v31 = vcombine.low %v4506_v11, %v4510_v40  ;;  %v4042_v1 = vld [vmem:[#allocation3 + $0x78] sm:$0xff]  ;;  %v4140_v11 = vrot.slane %v4061_v2, 1  ;;  %v4187_v40 = vrot.slane %v14647_v41, 2 }
 0x2cf   : > { %8979 = vmatpush1.bf16.msra.mxu0 %v12115_v21  ;;  %v14990_v6 = vpack.c.bf16 %v4123_v27, %v4115_v48  ;;  %v12147_v21 = vcombine.low %v4489_v51, %v4493_v26  ;;  %v4110_v51 = vrot.slane %v4049_v47, 1  ;;  %v4120_v26 = vrot.slane %v4053_v34, 1  ;;  %v4048_v47 = vld [vmem:[#allocation3 + $0x8] sm:$0xfe]  ;;  %v15059_v34 = vld [vmem:[%s13633_s24 + $0x8a0] sm:$0xff] }
 0x2d0   : > { %8980 = vmatprep.subr.bf16.mxu0 %v12124_v14  ;;  %v12156_v14 = vcombine.high %v4497_v49, %v4501_v23  ;;  %v4108_v48 = vrot.slane %v14643_v38, 1  ;;  %v4198_v27 = vrot.slane %v14899_v12, 2  ;;  %v4066_v2 = vld [vmem:[#allocation3 + $0x18] sm:$0xfc]  ;;  %v4077_v12 = vld [vmem:[#allocation3 + $0xb0] sm:$0x3] }
 0x2d1   : > { %9297 = vmatpush1.bf16.msra.mxu1 %v12117_v46  ;;  %v12149_v46 = vcombine.low %v4490_v60, %v4494_v58  ;;  %v4033_v60 = vld [vmem:[#allocation3 + $0x10] sm:$0xff] }
 0x2d2   : > { %9298 = vmatprep.subr.bf16.mxu1 %v12126_v20  ;;  %v12158_v20 = vcombine.high %v4498_v50, %v4502_v62 }
 0x2d3   : > { %8981 = vmatpush1.bf16.msra.mxu0 %v12123_v22  ;;  %v12155_v22 = vcombine.low %v4497_v49, %v4501_v23  ;;  %v4143_v23 = vsel %vm4103_vm8, %v4134_v37, %v4142_v18 }
 0x2d4   : > { %8982 = vmatprep.subr.bf16.mxu0 %v12132_v10  ;;  %v4058_v10 = vld [vmem:[#allocation3 + $0x78] sm:$0xfe] }
 0x2d5   : > { %9299 = vmatpush1.bf16.msra.mxu1 %v12125_v36  ;;  %v14996_v36 = vld [vmem:[#allocation3 + $0x30] sm:$0xff]  ;;  %v4133_v25 = vrot.slane %v4058_v10, 1  ;;  %v15048_v10 = vpack.c.bf16 %v14908_v33, %v4042_v1 }
 0x2d6   : > { %9300 = vmatprep.subr.bf16.mxu1 %v12134_v9  ;;  %v12157_v9 = vcombine.low %v4498_v50, %v4502_v62  ;;  %v15030_v50 = vld [vmem:[%s13633_s24 + $0x848] sm:$0xff] }
 0x2d7   : > { %8983 = vmatpush1.bf16.msra.mxu0 %v12131_v0  ;;  %v4111_v0 = vrot.slane %v14996_v36, 1  ;;  %v4135_v49 = vsel %vm4103_vm8, %v4133_v25, %v4134_v37  ;;  %v15033_v62 = vld [vmem:[%s13633_s24 + $0x868] sm:$0xff]  ;;  %v4184_v37 = vrot.slane %v14996_v36, 2  ;;  %v4207_v25 = vrot.slane %v14908_v33, 2 }
 0x2d8   : > { %8984 = vmatprep.subr.bf16.mxu0 %v12140_v28  ;;  %v15009_v28 = vld [vmem:[%s13633_s24 + $0x828] sm:$0xff]  ;;  %v12181_v18 = vcombine.low %v15030_v50, %v15033_v62 }
 0x2d9   : > { %9301 = vmatpush1.bf16.msra.mxu1 %v12133_v15  ;;  %v15006_v15 = vld [vmem:[%s13633_s24 + $0x808] sm:$0xff] }
 0x2da   : > { %9302 = vmatprep.subr.bf16.mxu1 %v12142_v54  ;;  %v12172_v54 = vcombine.high %v14999_v5, %v15002_v43  ;;  %v12174_v58 = vcombine.high %v15006_v15, %v15009_v28  ;;  %v4071_v5 = vld [vmem:[#allocation3 + $0x60] sm:$0xfc]  ;;  %v4041_v43 = vld [vmem:[#allocation3 + $0x70] sm:$0xff] }
 0x2db   : > { %8985 = vmatpush1.bf16.msra.mxu0 %v12139_v35  ;;  %v4057_v35 = vld [vmem:[#allocation3 + $0x70] sm:$0xfe]  ;;  %v15088_v1 = vpack.c.bf16 %v14905_v8, %v4041_v43 }
 0x2dc   : > { %8986 = vmatprep.subr.bf16.mxu0 %v12148_v13  ;;  %v4112_v13 = vsel %vm4103_vm8, %v4110_v51, %v4111_v0  ;;  %v4130_v56 = vrot.slane %v4057_v35, 1  ;;  %v4197_v35 = vrot.slane %v4071_v5, 2  ;;  %v4078_v5 = vld [vmem:[#allocation3 + $0xb8] sm:$0x3] }
 0x2dd   : > { %9303 = vmatpush1.bf16.msra.mxu1 %v12141_v53  ;;  %v15021_v53 = vld [vmem:[%s13633_s24 + $0x860] sm:$0xff] }
 0x2de   : > { %9304 = vmatprep.subr.bf16.mxu1 %v12150_v32  ;;  %v4121_v32 = vsel %vm4103_vm8, %v4111_v0, %v4120_v26  ;;  %v4132_v0 = vsel %vm4103_vm8, %v4130_v56, %v4131_v17  ;;  %v12179_v26 = vcombine.low %v15018_v7, %v15021_v53  ;;  %v4069_v56 = vld [vmem:[#allocation3 + $0x50] sm:$0x3] }
 0x2df   : > { %8987 = vmatpush1.bf16.msra.mxu0 %v12147_v21  ;;  %v4052_v21 = vld [vmem:[#allocation3 + $0x48] sm:$0x1] }
 0x2e0   : > { %8988 = vmatprep.subr.bf16.mxu0 %v12156_v14  ;;  %v15037_v14 = vpack.c.bf16 %v4143_v23, %v4135_v49  ;;  %v4118_v16 = vrot.slane %v4052_v21, 1  ;;  %v4065_v49 = vld [vmem:[#allocation3 + $0x10] sm:$0xfc]  ;;  %v4538_v21 = vld [vmem:[%s13633_s24 + $0x8c8] sm:$0xff] }
 0x2e1   : > { %9305 = vmatpush1.bf16.msra.mxu1 %v12149_v46  ;;  %v15035_v46 = vpack.c.bf16 %v4121_v32, %v4112_v13  ;;  %v4070_v32 = vld [vmem:[#allocation3 + $0x58] sm:$0x3] }
 0x2e2   : > { %9306 = vmatprep.subr.bf16.mxu1 %v12158_v20  ;;  %v15040_v20 = vpack.c.bf16 %v14996_v36, %v4033_v60  ;;  %v4107_v60 = vrot.slane %v4048_v47, 1  ;;  %v4074_v47 = vld [vmem:[#allocation3 + $0x78] sm:$0xfc]  ;;  %v4553_v36 = vld [vmem:[%s13633_s24 + $0x940] sm:$0xff] }
 0x2e3   : > { %8989 = vmatpush1.bf16.msra.mxu0 %v12155_v22  ;;  %v12173_v22 = vcombine.low %v15006_v15, %v15009_v28  ;;  %v4141_v15 = vsel %vm4103_vm8, %v4131_v17, %v4140_v11  ;;  %v4075_v28 = vld [vmem:[#allocation3 + $0xa0] sm:$0x3]  ;;  %v15085_v17 = vld [vmem:[%s13633_s24 + $0x8e0] sm:$0xff] }
 0x2e4   : > { %8990 = vmatprep.subr.bf16.mxu0 %v12164_v39  ;;  %v15053_v39 = vld [vmem:[%s13633_s24 + $0x880] sm:$0xff]  ;;  %v15074_v51 = vpack.c.bf16 %v4141_v15, %v4132_v0  ;;  %v4209_v13 = vrot.slane %v4075_v28, 2 }
 0x2e5   : > { %9307 = vmatpush1.bf16.msra.mxu1 %v12157_v9  ;;  %v12180_v9 = vcombine.high %v15018_v7, %v15021_v53  ;;  %v12187_v7 = vcombine.low %v15053_v39, %v15059_v34  ;;  %v12188_v53 = vcombine.high %v15053_v39, %v15059_v34  ;;  %v4186_v39 = vrot.slane %v4066_v2, 2  ;;  %v4073_v0 = vld [vmem:[#allocation3 + $0x70] sm:$0xfc] }
 0x2e6   : > { %9308 = vmatprep.subr.bf16.mxu1 %v12166_v57  ;;  %v12182_v57 = vcombine.high %v15030_v50, %v15033_v62  ;;  %v4119_v62 = vsel %vm4103_vm8, %v4108_v48, %v4118_v16  ;;  %v4195_v16 = vrot.slane %v4070_v32, 2  ;;  %v4545_v28 = vld [vmem:[%s13633_s24 + $0x900] sm:$0xff]  ;;  %v4203_v41 = vrot.slane %v4073_v0, 2 }
 0x2e7   : > { %8991 = vmatpush1.bf16.msra.mxu0 %v12163_v55  ;;  %v4204_v55 = vrot.slane %v14905_v8, 2  ;;  %v4188_v38 = vsel %vm4176_vm9, %v4186_v39, %v4187_v40  ;;  %v4566_v8 = vld [vmem:[%s13633_s24 + $0x9a8] sm:$0xff] }
 0x2e8   : > { %9013 = vmatprep.subr.bf16.mxu0 %v12172_v54  ;;  %v15072_v54 = vld [vmem:[%s13633_s24 + $0x8a8] sm:$0xff] }
 0x2e9   : > { %9309 = vmatpush1.bf16.msra.mxu1 %v12165_v31  ;;  %v15069_v31 = vld [vmem:[%s13633_s24 + $0x888] sm:$0xff]  ;;  %v4205_v33 = vsel %vm4176_vm9, %v4203_v41, %v4204_v55 }
 0x2ea   : > { %9331 = vmatprep.subr.bf16.mxu1 %v12174_v58  ;;  %8993 = vmatmul.mubr.bf16.vlgmr.msra.gmra.mrb[32].mxu0 %v15040_v20  ;;  %v15082_v58 = vld [vmem:[%s13633_s24 + $0x8c0] sm:$0xff]  ;;  %v12189_v23 = vcombine.low %v15069_v31, %v15072_v54  ;;  %v12190_v50 = vcombine.high %v15069_v31, %v15072_v54  ;;  %v4196_v54 = vsel %vm4176_vm9, %v4187_v40, %v4195_v16 }
 0x2eb   : > { %9002 = vmatprep.mubr.bf16.mxu0 %v15048_v10  ;;  %9014 = vmatpush1.bf16.msra.mxu0 %v12171_v4  ;;  %v4542_v4 = vld [vmem:[%s13633_s24 + $0x8e8] sm:$0xff]  ;;  %v12195_v11 = vcombine.low %v15082_v58, %v15085_v17  ;;  %v12196_v43 = vcombine.high %v15082_v58, %v15085_v17  ;;  %v4549_v31 = vld [vmem:[%s13633_s24 + $0x920] sm:$0xff] }
 0x2ec   : > { %9311 = vmatmul.mubr.bf16.vlgmr.msra.gmra.mrb[32].mxu1 %v15040_v20  ;;  %9015 = vmatprep.subr.bf16.mxu0 %v12180_v9  ;;  %v4210_v9 = vsel %vm4176_vm9, %v4198_v27, %v4209_v13  ;;  %v12198_v15 = vcombine.high %v4538_v21, %v4542_v4  ;;  %v4546_v58 = vld [vmem:[%s13633_s24 + $0x908] sm:$0xff] }
 0x2ed   : > { %9320 = vmatprep.mubr.bf16.mxu1 %v15048_v10  ;;  %9332 = vmatpush1.bf16.msra.mxu1 %v12173_v22  ;;  %v4199_v22 = vsel %vm4176_vm9, %v4197_v35, %v4198_v27  ;;  %v4550_v17 = vld [vmem:[%s13633_s24 + $0x928] sm:$0xff]  ;;  %v15133_v35 = vpack.c.bf16 %v4196_v54, %v4188_v38 }
 0x2ee   : > { %9333 = vmatprep.subr.bf16.mxu1 %v12182_v57  ;;  %v4109_v57 = vsel %vm4103_vm8, %v4107_v60, %v4108_v48  ;;  %v15116_v34 = vpack.c.bf16 %v4210_v9, %v4199_v22  ;;  %v4183_v48 = vrot.slane %v4065_v49, 2  ;;  %v4215_v60 = vrot.slane %v4078_v5, 2  ;;  %v4561_v5 = vld [vmem:[%s13633_s24 + $0x980] sm:$0xff]  ;;  %v4570_v38 = vld [vmem:[%s13633_s24 + $0x9c8] sm:$0xff] }
 0x2ef   : > { %9016 = vmatpush1.bf16.msra.mxu0 %v12179_v26  ;;  %v15118_v27 = vpack.c.bf16 %v4119_v62, %v4109_v57  ;;  %v4193_v26 = vrot.slane %v4069_v56, 2  ;;  %v12197_v49 = vcombine.low %v4538_v21, %v4542_v4  ;;  %v12206_v62 = vcombine.high %v4546_v58, %v4550_v17  ;;  %v4557_v56 = vld [vmem:[%s13633_s24 + $0x960] sm:$0xff] }
 0x2f0   : > { %9017 = vmatprep.subr.bf16.mxu0 %v12188_v53  ;;  %v4185_v2 = vsel %vm4176_vm9, %v4183_v48, %v4184_v37  ;;  %v4213_v53 = vrot.slane %v4077_v12, 2  ;;  %v4216_v32 = vsel %vm4176_vm9, %v4207_v25, %v4215_v60  ;;  %v12203_v4 = vcombine.low %v4545_v28, %v4549_v31  ;;  %v4565_v57 = vld [vmem:[%s13633_s24 + $0x9a0] sm:$0xff]  ;;  %v4574_v48 = vld [vmem:[%s13633_s24 + $0x9e8] sm:$0xff] }
 0x2f1   : > { %9334 = vmatpush1.bf16.msra.mxu1 %v12181_v18  ;;  %v4206_v18 = vrot.slane %v4074_v47, 2  ;;  %v4194_v40 = vsel %vm4176_vm9, %v4184_v37, %v4193_v26  ;;  %v12205_v9 = vcombine.low %v4546_v58, %v4550_v17  ;;  %v12212_v39 = vcombine.high %v4553_v36, %v4557_v56  ;;  %v4569_v12 = vld [vmem:[%s13633_s24 + $0x9c0] sm:$0xff]  ;;  %v4578_v58 = vld [vmem:[%s13633_s24 + $0xa08] sm:$0xff] }
 0x2f2   : > { %9003 = vmatmul.mubr.bf16.gmra.mrb[36].mxu0 %v15088_v1  ;;  %9335 = vmatprep.subr.bf16.mxu1 %v12190_v50  ;;  %v15148_v50 = vpack.c.bf16 %v4194_v40, %v4185_v2  ;;  %v4214_v21 = vsel %vm4176_vm9, %v4204_v55, %v4213_v53  ;;  %v12211_v55 = vcombine.low %v4553_v36, %v4557_v56  ;;  %v4581_v60 = vld [vmem:[%s13633_s24 + $0xa20] sm:$0xff]  ;;  %v4582_v17 = vld [vmem:[%s13633_s24 + $0xa28] sm:$0xff] }
 0x2f3   : > { %9045 = vmatprep.mubr.bf16.mxu0 %v15118_v27  ;;  %9018 = vmatpush1.bf16.msra.mxu0 %v12187_v7  ;;  %v4208_v13 = vsel %vm4176_vm9, %v4206_v18, %v4207_v25  ;;  %v12204_v7 = vcombine.high %v4545_v28, %v4549_v31  ;;  %v4554_v25 = vld [vmem:[%s13633_s24 + $0x948] sm:$0xff]  ;;  %v15162_v22 = vpack.c.bf16 %v4214_v21, %v4205_v33  ;;  %v4577_v18 = vld [vmem:[%s13633_s24 + $0xa00] sm:$0xff] }
 0x2f4   : > { %9321 = vmatmul.mubr.bf16.gmra.mrb[36].mxu1 %v15088_v1  ;;  %9019 = vmatprep.subr.bf16.mxu0 %v12196_v43  ;;  %v15152_v37 = vpack.c.bf16 %v4216_v32, %v4208_v13  ;;  %v4562_v43 = vld [vmem:[%s13633_s24 + $0x988] sm:$0xff]  ;;  %v12220_v16 = vcombine.high %v4561_v5, %v4565_v57  ;;  %v12219_v28 = vcombine.low %v4561_v5, %v4565_v57  ;;  %v4585_v13 = vld [vmem:[%s13633_s24 + $0xa40] sm:$0xff] }
 0x2f5   : > { %9363 = vmatprep.mubr.bf16.mxu1 %v15118_v27  ;;  %9336 = vmatpush1.bf16.msra.mxu1 %v12189_v23  ;;  %v4558_v23 = vld [vmem:[%s13633_s24 + $0x968] sm:$0xff]  ;;  %v12222_v0 = vcombine.high %v4562_v43, %v4566_v8  ;;  %v12221_v31 = vcombine.low %v4562_v43, %v4566_v8  ;;  %v12230_v26 = vcombine.high %v4570_v38, %v4574_v48  ;;  %v4589_v32 = vld [vmem:[%s13633_s24 + $0xa60] sm:$0xff] }
 0x2f6   : > { %9337 = vmatprep.subr.bf16.mxu1 %v12198_v15  ;;  %v12214_v47 = vcombine.high %v4554_v25, %v4558_v23  ;;  %v4573_v15 = vld [vmem:[%s13633_s24 + $0x9e0] sm:$0xff]  ;;  %v12229_v41 = vcombine.low %v4570_v38, %v4574_v48  ;;  %v12236_v53 = vcombine.high %v4577_v18, %v4581_v60  ;;  %v12238_v40 = vcombine.high %v4578_v58, %v4582_v17  ;;  %v4594_v21 = vld [vmem:[%s13633_s24 + $0xa88] sm:$0xff] }
 0x2f7   : > { %9020 = vmatpush1.bf16.msra.mxu0 %v12195_v11  ;;  %v12213_v11 = vcombine.low %v4554_v25, %v4558_v23  ;;  %v12228_v54 = vcombine.high %v4569_v12, %v4573_v15  ;;  %v12227_v2 = vcombine.low %v4569_v12, %v4573_v15  ;;  %v12237_v36 = vcombine.low %v4578_v58, %v4582_v17  ;;  %v4593_v25 = vld [vmem:[%s13633_s24 + $0xa80] sm:$0xff]  ;;  %v4602_v8 = vld [vmem:[%s13633_s24 + $0xac8] sm:$0xff] }
 0x2f8   : > { %9021 = vmatprep.subr.bf16.mxu0 %v12204_v7  ;;  %v4590_v7 = vld [vmem:[%s13633_s24 + $0xa68] sm:$0xff]  ;;  %v12244_v56 = vcombine.high %v4585_v13, %v4589_v32  ;;  %v4597_v23 = vld [vmem:[%s13633_s24 + $0xaa0] sm:$0xff] }
 0x2f9   : > { %9338 = vmatpush1.bf16.msra.mxu1 %v12197_v49  ;;  %v4586_v49 = vld [vmem:[%s13633_s24 + $0xa48] sm:$0xff]  ;;  %v4601_v57 = vld [vmem:[%s13633_s24 + $0xac0] sm:$0xff] }
 0x2fa   : > { %9339 = vmatprep.subr.bf16.mxu1 %v12206_v62  ;;  %v12235_v62 = vcombine.low %v4577_v18, %v4581_v60  ;;  %v12246_v33 = vcombine.high %v4586_v49, %v4590_v7  ;;  %v4605_v43 = vld [vmem:[%s13633_s24 + $0xae0] sm:$0xff]  ;;  %v4610_v48 = vld [vmem:[%s13633_s24 + $0xb08] sm:$0xff] }
 0x2fb   : > { %9022 = vmatpush1.bf16.msra.mxu0 %v12203_v4  ;;  %v4598_v4 = vld [vmem:[%s13633_s24 + $0xaa8] sm:$0xff]  ;;  %v4609_v15 = vld [vmem:[%s13633_s24 + $0xb00] sm:$0xff] }
 0x2fc   : > { %9023 = vmatprep.subr.bf16.mxu0 %v12212_v39  ;;  %v12245_v39 = vcombine.low %v4586_v49, %v4590_v7  ;;  %v12254_v5 = vcombine.high %v4594_v21, %v4598_v4  ;;  %v4613_v38 = vld [vmem:[%s13633_s24 + $0xb20] sm:$0xff]  ;;  %v4618_v17 = vld [vmem:[%s13633_s24 + $0xb48] sm:$0xff] }
 0x2fd   : > { %9340 = vmatpush1.bf16.msra.mxu1 %v12205_v9  ;;  %v12243_v9 = vcombine.low %v4585_v13, %v4589_v32  ;;  %v4617_v60 = vld [vmem:[%s13633_s24 + $0xb40] sm:$0xff]  ;;  %v4626_v7 = vld [vmem:[%s13633_s24 + $0xb88] sm:$0xff] }
 0x2fe   : > { %9341 = vmatprep.subr.bf16.mxu1 %v12214_v47  ;;  %v12252_v47 = vcombine.high %v4593_v25, %v4597_v23  ;;  %v4621_v58 = vld [vmem:[%s13633_s24 + $0xb60] sm:$0xff] }
 0x2ff   : > { %9024 = vmatpush1.bf16.msra.mxu0 %v12211_v55  ;;  %v4606_v55 = vld [vmem:[%s13633_s24 + $0xae8] sm:$0xff]  ;;  %v4625_v32 = vld [vmem:[%s13633_s24 + $0xb80] sm:$0xff] }
 0x300   : > { %9025 = vmatprep.subr.bf16.mxu0 %v12220_v16  ;;  %v12253_v16 = vcombine.low %v4594_v21, %v4598_v4  ;;  %v12262_v12 = vcombine.high %v4602_v8, %v4606_v55  ;;  %v4629_v49 = vld [vmem:[%s13633_s24 + $0xba0] sm:$0xff]  ;;  %v4634_v4 = vld [vmem:[%s13633_s24 + $0xbc8] sm:$0xff] }
 0x301   : > { %9342 = vmatpush1.bf16.msra.mxu1 %v12213_v11  ;;  %v12251_v11 = vcombine.low %v4593_v25, %v4597_v23  ;;  %v4633_v23 = vld [vmem:[%s13633_s24 + $0xbc0] sm:$0xff] }
 0x302   : > { %9343 = vmatprep.subr.bf16.mxu1 %v12222_v0  ;;  %v12260_v0 = vcombine.high %v4601_v57, %v4605_v43  ;;  %v4637_v21 = vld [vmem:[%s13633_s24 + $0xbe0] sm:$0xff] }
 0x303   : > { %9026 = vmatpush1.bf16.msra.mxu0 %v12219_v28  ;;  %v4614_v28 = vld [vmem:[%s13633_s24 + $0xb28] sm:$0xff] }
 0x304   : > { %9027 = vmatprep.subr.bf16.mxu0 %v12228_v54  ;;  %v12261_v54 = vcombine.low %v4602_v8, %v4606_v55  ;;  %v12270_v18 = vcombine.high %v4610_v48, %v4614_v28  ;;  %v4047_v8 = vld [vmem:[#allocation3] sm:$0xfe] }
 0x305   : > { %9344 = vmatpush1.bf16.msra.mxu1 %v12221_v31  ;;  %v12259_v31 = vcombine.low %v4601_v57, %v4605_v43  ;;  %v12292_v43 = vcombine.high %v4633_v23, %v4637_v21 }
 0x306   : > { %9345 = vmatprep.subr.bf16.mxu1 %v12230_v26  ;;  %v12268_v26 = vcombine.high %v4609_v15, %v4613_v38 }
 0x307   : > { %9028 = vmatpush1.bf16.msra.mxu0 %v12227_v2  ;;  %v4622_v2 = vld [vmem:[%s13633_s24 + $0xb68] sm:$0xff] }
 0x308   : > { %9029 = vmatprep.subr.bf16.mxu0 %v12236_v53  ;;  %v12269_v53 = vcombine.low %v4610_v48, %v4614_v28  ;;  %v12278_v13 = vcombine.high %v4618_v17, %v4622_v2  ;;  %v15208_v28 = vld [vmem:[#allocation3 + $0x20] sm:$0xff] }
 0x309   : > { %9346 = vmatpush1.bf16.msra.mxu1 %v12229_v41  ;;  %v12267_v41 = vcombine.low %v4609_v15, %v4613_v38  ;;  %v4642_v15 = vld [vmem:[%s13633_s24 + $0xc08] sm:$0xff] }
 0x30a   : > { %9347 = vmatprep.subr.bf16.mxu1 %v12238_v40  ;;  %v12276_v40 = vcombine.high %v4617_v60, %v4621_v58  ;;  %v4646_v38 = vld [vmem:[%s13633_s24 + $0xc28] sm:$0xff] }
 0x30b   : > { %9030 = vmatpush1.bf16.msra.mxu0 %v12235_v62  ;;  %v4630_v62 = vld [vmem:[%s13633_s24 + $0xba8] sm:$0xff] }
 0x30c   : > { %9031 = vmatprep.subr.bf16.mxu0 %v12244_v56  ;;  %v12277_v56 = vcombine.low %v4618_v17, %v4622_v2  ;;  %v12286_v25 = vcombine.high %v4626_v7, %v4630_v62  ;;  %v12285_v57 = vcombine.low %v4626_v7, %v4630_v62 }
 0x30d   : > { %9348 = vmatpush1.bf16.msra.mxu1 %v12237_v36  ;;  %v12275_v36 = vcombine.low %v4617_v60, %v4621_v58 }
 0x30e   : > { %9349 = vmatprep.subr.bf16.mxu1 %v12246_v33  ;;  %v12284_v33 = vcombine.high %v4625_v32, %v4629_v49 }
 0x30f   : > { %9032 = vmatpush1.bf16.msra.mxu0 %v12243_v9  ;;  %v4638_v9 = vld [vmem:[%s13633_s24 + $0xbe8] sm:$0xff] }
 0x310   : > { %9033 = vmatprep.subr.bf16.mxu0 %v12252_v47  ;;  %v12283_v47 = vcombine.low %v4625_v32, %v4629_v49  ;;  %v12294_v55 = vcombine.high %v4634_v4, %v4638_v9  ;;  %v12293_v60 = vcombine.low %v4634_v4, %v4638_v9  ;;  %v4650_v49 = vld [vmem:[%s13633_s24 + $0xc48] sm:$0xff]  ;;  %v4661_v4 = vld [vmem:[%s13633_s24 + $0xca0] sm:$0xff] }
 0x311   : > { %9350 = vmatpush1.bf16.msra.mxu1 %v12245_v39  ;;  %v4051_v39 = vld [vmem:[#allocation3 + $0x40] sm:$0x1]  ;;  %v4658_v9 = vld [vmem:[%s13633_s24 + $0xc88] sm:$0xff] }
 0x312   : > { %9351 = vmatprep.subr.bf16.mxu1 %v12254_v5  ;;  %v4060_v5 = vld [vmem:[#allocation3 + $0xa8] sm:$0x1] }
 0x313   : > { %9034 = vmatpush1.bf16.msra.mxu0 %v12251_v11  ;;  %v4116_v11 = vrot.slane %v4051_v39, 1  ;;  %v4138_v48 = vrot.slane %v4060_v5, 1  ;;  %v4662_v39 = vld [vmem:[%s13633_s24 + $0xca8] sm:$0xff] }
 0x314   : > { %9035 = vmatprep.subr.bf16.mxu0 %v12260_v0  ;;  %v4645_v0 = vld [vmem:[%s13633_s24 + $0xc20] sm:$0xff] }
 0x315   : > { %9352 = vmatpush1.bf16.msra.mxu1 %v12253_v16  ;;  %v4641_v16 = vld [vmem:[%s13633_s24 + $0xc00] sm:$0xff] }
 0x316   : > { %9353 = vmatprep.subr.bf16.mxu1 %v12262_v12  ;;  %v4056_v12 = vld [vmem:[#allocation3 + $0x68] sm:$0xfe]  ;;  %v12300_v58 = vcombine.high %v4641_v16, %v4645_v0  ;;  %v12299_v62 = vcombine.low %v4641_v16, %v4645_v0  ;;  %v4670_v16 = vld [vmem:[%s13633_s24 + $0xce8] sm:$0xff] }
 0x317   : > { %9036 = vmatpush1.bf16.msra.mxu0 %v12259_v31  ;;  %v4105_v31 = vrot.slane %v15208_v28, 1  ;;  %v4127_v17 = vrot.slane %v4056_v12, 1  ;;  %v12317_v12 = vcombine.low %v4658_v9, %v4662_v39 }
 0x318   : > { %9037 = vmatprep.subr.bf16.mxu0 %v12268_v26  ;;  %v4104_v26 = vrot.slane %v4047_v8, 1  ;;  %v4665_v8 = vld [vmem:[%s13633_s24 + $0xcc0] sm:$0xff] }
 0x319   : > { %9354 = vmatpush1.bf16.msra.mxu1 %v12261_v54  ;;  %v12291_v54 = vcombine.low %v4633_v23, %v4637_v21  ;;  %v4117_v2 = vsel %vm4103_vm8, %v4105_v31, %v4116_v11  ;;  %v4657_v21 = vld [vmem:[%s13633_s24 + $0xc80] sm:$0xff]  ;;  %v4666_v11 = vld [vmem:[%s13633_s24 + $0xcc8] sm:$0xff] }
 0x31a   : > { %9355 = vmatprep.subr.bf16.mxu1 %v12270_v18  ;;  %v4128_v18 = vrot.slane %v14902_v63, 1  ;;  %v4106_v32 = vsel %vm4103_vm8, %v4104_v26, %v4105_v31  ;;  %v4654_v63 = vld [vmem:[%s13633_s24 + $0xc68] sm:$0xff]  ;;  %v12315_v0 = vcombine.low %v4657_v21, %v4661_v4  ;;  %v4677_v31 = vld [vmem:[%s13633_s24 + $0xd20] sm:$0xff] }
 0x31b   : > { %9038 = vmatpush1.bf16.msra.mxu0 %v12267_v41  ;;  %v12302_v41 = vcombine.high %v4642_v15, %v4646_v38  ;;  %v15219_v7 = vpack.c.bf16 %v4117_v2, %v4106_v32  ;;  %v12310_v23 = vcombine.high %v4650_v49, %v4654_v63  ;;  %v12309_v5 = vcombine.low %v4650_v49, %v4654_v63  ;;  %v4678_v26 = vld [vmem:[%s13633_s24 + $0xd28] sm:$0xff]  ;;  %v4681_v2 = vld [vmem:[%s13633_s24 + $0xd40] sm:$0xff] }
 0x31c   : > { %9039 = vmatprep.subr.bf16.mxu0 %v12276_v40  ;;  %v4649_v40 = vld [vmem:[%s13633_s24 + $0xc40] sm:$0xff] }
 0x31d   : > { %9356 = vmatpush1.bf16.msra.mxu1 %v12269_v53  ;;  %v4139_v53 = vsel %vm4103_vm8, %v4128_v18, %v4138_v48  ;;  %v4673_v48 = vld [vmem:[%s13633_s24 + $0xd00] sm:$0xff] }
 0x31e   : > { %9357 = vmatprep.subr.bf16.mxu1 %v12278_v13  ;;  %v4653_v13 = vld [vmem:[%s13633_s24 + $0xc60] sm:$0xff] }
 0x31f   : > { %9040 = vmatpush1.bf16.msra.mxu0 %v12275_v36  ;;  %v4129_v36 = vsel %vm4103_vm8, %v4127_v17, %v4128_v18 }
 0x320   : > { %9041 = vmatprep.subr.bf16.mxu0 %v12284_v33  ;;  %v15222_v33 = vpack.c.bf16 %v4139_v53, %v4129_v36  ;;  %v4682_v53 = vld [vmem:[%s13633_s24 + $0xd48] sm:$0xff]  ;;  %v4693_v36 = vld [vmem:[%s13633_s24 + $0xda0] sm:$0xff] }
 0x321   : > { %9358 = vmatpush1.bf16.msra.mxu1 %v12277_v56  ;;  %v12301_v56 = vcombine.low %v4642_v15, %v4646_v38  ;;  %v12326_v38 = vcombine.high %v4666_v11, %v4670_v16 }
 0x322   : > { %9359 = vmatprep.subr.bf16.mxu1 %v12286_v25  ;;  %v12308_v25 = vcombine.high %v4649_v40, %v4653_v13 }
 0x323   : > { %9042 = vmatpush1.bf16.msra.mxu0 %v12283_v47  ;;  %v12307_v47 = vcombine.low %v4649_v40, %v4653_v13  ;;  %v4686_v40 = vld [vmem:[%s13633_s24 + $0xd68] sm:$0xff]  ;;  %v12331_v13 = vcombine.low %v4673_v48, %v4677_v31 }
 0x324   : > { %9043 = vmatprep.subr.bf16.mxu0 %v12292_v43  ;;  %v12318_v43 = vcombine.high %v4658_v9, %v4662_v39  ;;  %v12342_v63 = vcombine.high %v4682_v53, %v4686_v40  ;;  %v4697_v39 = vld [vmem:[%s13633_s24 + $0xdc0] sm:$0xff] }
 0x325   : > { %9360 = vmatpush1.bf16.msra.mxu1 %v12285_v57  ;;  %v12316_v57 = vcombine.high %v4657_v21, %v4661_v4  ;;  %v12341_v21 = vcombine.low %v4682_v53, %v4686_v40  ;;  %v4721_v40 = vld [vmem:[%s13633_s24 + $0xe80] sm:$0xff] }
 0x326   : > { %9361 = vmatprep.subr.bf16.mxu1 %v12294_v55  ;;  %v4669_v55 = vld [vmem:[%s13633_s24 + $0xce0] sm:$0xff] }
 0x327   : > { %9044 = vmatpush1.bf16.msra.mxu0 %v12291_v54  ;;  %v12324_v15 = vcombine.high %v4665_v8, %v4669_v55  ;;  %v4674_v54 = vld [vmem:[%s13633_s24 + $0xd08] sm:$0xff]  ;;  %v12323_v18 = vcombine.low %v4665_v8, %v4669_v55 }
 0x328   : > { %9066 = vmatprep.subr.bf16.mxu0 %v12300_v58  ;;  %v12332_v58 = vcombine.high %v4673_v48, %v4677_v31  ;;  %v12334_v17 = vcombine.high %v4674_v54, %v4678_v26  ;;  %v12333_v32 = vcombine.low %v4674_v54, %v4678_v26  ;;  %v4713_v26 = vld [vmem:[%s13633_s24 + $0xe40] sm:$0xff] }
 0x329   : > { %9362 = vmatpush1.bf16.msra.mxu1 %v12293_v60  ;;  %v12325_v60 = vcombine.low %v4666_v11, %v4670_v16  ;;  %v4705_v16 = vld [vmem:[%s13633_s24 + $0xe00] sm:$0xff] }
 0x32a   : > { %9384 = vmatprep.subr.bf16.mxu1 %v12302_v41  ;;  %9046 = vmatmul.mubr.bf16.vlgmr.msra.gmra.mrb[32].mxu0 %v15219_v7  ;;  %v4685_v41 = vld [vmem:[%s13633_s24 + $0xd60] sm:$0xff] }
 0x32b   : > { %9055 = vmatprep.mubr.bf16.mxu0 %v15222_v33  ;;  %9067 = vmatpush1.bf16.msra.mxu0 %v12299_v62  ;;  %v12340_v49 = vcombine.high %v4681_v2, %v4685_v41  ;;  %v4689_v62 = vld [vmem:[%s13633_s24 + $0xd80] sm:$0xff] }
 0x32c   : > { %9364 = vmatmul.mubr.bf16.vlgmr.msra.gmra.mrb[32].mxu1 %v15219_v7  ;;  %9068 = vmatprep.subr.bf16.mxu0 %v12308_v25  ;;  %v4694_v25 = vld [vmem:[%s13633_s24 + $0xda8] sm:$0xff]  ;;  %v12348_v4 = vcombine.high %v4689_v62, %v4693_v36 }
 0x32d   : > { %9373 = vmatprep.mubr.bf16.mxu1 %v15222_v33  ;;  %9385 = vmatpush1.bf16.msra.mxu1 %v12301_v56  ;;  %v4690_v56 = vld [vmem:[%s13633_s24 + $0xd88] sm:$0xff] }
 0x32e   : > { %9386 = vmatprep.subr.bf16.mxu1 %v12310_v23  ;;  %v12339_v23 = vcombine.low %v4681_v2, %v4685_v41  ;;  %v12350_v9 = vcombine.high %v4690_v56, %v4694_v25  ;;  %v12349_v8 = vcombine.low %v4690_v56, %v4694_v25  ;;  %v4729_v25 = vld [vmem:[%s13633_s24 + $0xec0] sm:$0xff] }
 0x32f   : > { %9069 = vmatpush1.bf16.msra.mxu0 %v12307_v47  ;;  %v4701_v47 = vld [vmem:[%s13633_s24 + $0xde0] sm:$0xff] }
 0x330   : > { %9070 = vmatprep.subr.bf16.mxu0 %v12316_v57  ;;  %v4702_v57 = vld [vmem:[%s13633_s24 + $0xde8] sm:$0xff]  ;;  %v12356_v55 = vcombine.high %v4697_v39, %v4701_v47 }
 0x331   : > { %9387 = vmatpush1.bf16.msra.mxu1 %v12309_v5  ;;  %v4698_v5 = vld [vmem:[%s13633_s24 + $0xdc8] sm:$0xff] }
 0x332   : > { %9056 = vmatmul.mubr.bf16.gmra.mrb[36].mxu0 %v14982_v52  ;;  %9388 = vmatprep.subr.bf16.mxu1 %v12318_v43  ;;  %v12347_v43 = vcombine.low %v4689_v62, %v4693_v36  ;;  %v12358_v11 = vcombine.high %v4698_v5, %v4702_v57  ;;  %v12357_v48 = vcombine.low %v4698_v5, %v4702_v57  ;;  %v4737_v57 = vld [vmem:[%s13633_s24 + $0xf00] sm:$0xff] }
 0x333   : > { %9098 = vmatprep.mubr.bf16.mxu0 %v14990_v6  ;;  %9071 = vmatpush1.bf16.msra.mxu0 %v12315_v0  ;;  %v4709_v0 = vld [vmem:[%s13633_s24 + $0xe20] sm:$0xff] }
 0x334   : > { %9374 = vmatmul.mubr.bf16.gmra.mrb[36].mxu1 %v14982_v52  ;;  %9072 = vmatprep.subr.bf16.mxu0 %v12324_v15  ;;  %v4710_v15 = vld [vmem:[%s13633_s24 + $0xe28] sm:$0xff]  ;;  %v12364_v31 = vcombine.high %v4705_v16, %v4709_v0 }
 0x335   : > { %9416 = vmatprep.mubr.bf16.mxu1 %v14990_v6  ;;  %9389 = vmatpush1.bf16.msra.mxu1 %v12317_v12  ;;  %v4706_v12 = vld [vmem:[%s13633_s24 + $0xe08] sm:$0xff] }
 0x336   : > { %9390 = vmatprep.subr.bf16.mxu1 %v12326_v38  ;;  %v12355_v38 = vcombine.low %v4697_v39, %v4701_v47  ;;  %v12366_v54 = vcombine.high %v4706_v12, %v4710_v15  ;;  %v12365_v2 = vcombine.low %v4706_v12, %v4710_v15  ;;  %v4745_v15 = vld [vmem:[%s13633_s24 + $0xf40] sm:$0xff] }
 0x337   : > { %9073 = vmatpush1.bf16.msra.mxu0 %v12323_v18  ;;  %v4717_v18 = vld [vmem:[%s13633_s24 + $0xe60] sm:$0xff] }
 0x338   : > { %9074 = vmatprep.subr.bf16.mxu0 %v12332_v58  ;;  %v4718_v58 = vld [vmem:[%s13633_s24 + $0xe68] sm:$0xff]  ;;  %v12372_v41 = vcombine.high %v4713_v26, %v4717_v18 }
 0x339   : > { %9391 = vmatpush1.bf16.msra.mxu1 %v12325_v60  ;;  %v4714_v60 = vld [vmem:[%s13633_s24 + $0xe48] sm:$0xff] }
 0x33a   : > { %9392 = vmatprep.subr.bf16.mxu1 %v12334_v17  ;;  %v12363_v17 = vcombine.low %v4705_v16, %v4709_v0  ;;  %v12374_v53 = vcombine.high %v4714_v60, %v4718_v58  ;;  %v12373_v62 = vcombine.low %v4714_v60, %v4718_v58  ;;  %v4753_v58 = vld [vmem:[%s13633_s24 + $0xf80] sm:$0xff] }
 0x33b   : > { %9075 = vmatpush1.bf16.msra.mxu0 %v12331_v13  ;;  %v4725_v13 = vld [vmem:[%s13633_s24 + $0xea0] sm:$0xff] }
 0x33c   : > { %9076 = vmatprep.subr.bf16.mxu0 %v12340_v49  ;;  %v4726_v49 = vld [vmem:[%s13633_s24 + $0xea8] sm:$0xff]  ;;  %v12380_v36 = vcombine.high %v4721_v40, %v4725_v13 }
 0x33d   : > { %9393 = vmatpush1.bf16.msra.mxu1 %v12333_v32  ;;  %v4722_v32 = vld [vmem:[%s13633_s24 + $0xe88] sm:$0xff] }
 0x33e   : > { %9394 = vmatprep.subr.bf16.mxu1 %v12342_v63  ;;  %v12371_v63 = vcombine.low %v4713_v26, %v4717_v18  ;;  %v12382_v56 = vcombine.high %v4722_v32, %v4726_v49  ;;  %v12381_v39 = vcombine.low %v4722_v32, %v4726_v49  ;;  %v4761_v49 = vld [vmem:[%s13633_s24 + $0xfc0] sm:$0xff] }
 0x33f   : > { %9077 = vmatpush1.bf16.msra.mxu0 %v12339_v23  ;;  %v4733_v23 = vld [vmem:[%s13633_s24 + $0xee0] sm:$0xff] }
 0x340   : > { %9078 = vmatprep.subr.bf16.mxu0 %v12348_v4  ;;  %v4734_v4 = vld [vmem:[%s13633_s24 + $0xee8] sm:$0xff]  ;;  %v12388_v47 = vcombine.high %v4729_v25, %v4733_v23 }
 0x341   : > { %9395 = vmatpush1.bf16.msra.mxu1 %v12341_v21  ;;  %v4730_v21 = vld [vmem:[%s13633_s24 + $0xec8] sm:$0xff] }
 0x342   : > { %9396 = vmatprep.subr.bf16.mxu1 %v12350_v9  ;;  %v12379_v9 = vcombine.low %v4721_v40, %v4725_v13  ;;  %v12390_v5 = vcombine.high %v4730_v21, %v4734_v4  ;;  %v12389_v16 = vcombine.low %v4730_v21, %v4734_v4  ;;  %v4769_v4 = vld [vmem:[%s13633_s24 + $0x1000] sm:$0xff] }
 0x343   : > { %9079 = vmatpush1.bf16.msra.mxu0 %v12347_v43  ;;  %v4741_v43 = vld [vmem:[%s13633_s24 + $0xf20] sm:$0xff] }
 0x344   : > { %9080 = vmatprep.subr.bf16.mxu0 %v12356_v55  ;;  %v4742_v55 = vld [vmem:[%s13633_s24 + $0xf28] sm:$0xff]  ;;  %v12396_v0 = vcombine.high %v4737_v57, %v4741_v43 }
 0x345   : > { %9397 = vmatpush1.bf16.msra.mxu1 %v12349_v8  ;;  %v4738_v8 = vld [vmem:[%s13633_s24 + $0xf08] sm:$0xff] }
 0x346   : > { %9398 = vmatprep.subr.bf16.mxu1 %v12358_v11  ;;  %v12387_v11 = vcombine.low %v4729_v25, %v4733_v23  ;;  %v12398_v12 = vcombine.high %v4738_v8, %v4742_v55  ;;  %v12397_v26 = vcombine.low %v4738_v8, %v4742_v55  ;;  %v4777_v55 = vld [vmem:[%s13633_s24 + $0x1040] sm:$0xff] }
 0x347   : > { %9081 = vmatpush1.bf16.msra.mxu0 %v12355_v38  ;;  %v4749_v38 = vld [vmem:[%s13633_s24 + $0xf60] sm:$0xff] }
 0x348   : > { %9082 = vmatprep.subr.bf16.mxu0 %v12364_v31  ;;  %v4750_v31 = vld [vmem:[%s13633_s24 + $0xf68] sm:$0xff]  ;;  %v12404_v18 = vcombine.high %v4745_v15, %v4749_v38 }
 0x349   : > { %9399 = vmatpush1.bf16.msra.mxu1 %v12357_v48  ;;  %v4746_v48 = vld [vmem:[%s13633_s24 + $0xf48] sm:$0xff] }
 0x34a   : > { %9400 = vmatprep.subr.bf16.mxu1 %v12366_v54  ;;  %v12395_v54 = vcombine.low %v4737_v57, %v4741_v43  ;;  %v12406_v60 = vcombine.high %v4746_v48, %v4750_v31  ;;  %v12405_v40 = vcombine.low %v4746_v48, %v4750_v31  ;;  %v4064_v31 = vld [vmem:[#allocation3 + $0x8] sm:$0xfc] }
 0x34b   : > { %9083 = vmatpush1.bf16.msra.mxu0 %v12363_v17  ;;  %v4757_v17 = vld [vmem:[%s13633_s24 + $0xfa0] sm:$0xff] }
 0x34c   : > { %9084 = vmatprep.subr.bf16.mxu0 %v12372_v41  ;;  %v4758_v41 = vld [vmem:[%s13633_s24 + $0xfa8] sm:$0xff]  ;;  %v12412_v13 = vcombine.high %v4753_v58, %v4757_v17 }
 0x34d   : > { %9401 = vmatpush1.bf16.msra.mxu1 %v12365_v2  ;;  %v4754_v2 = vld [vmem:[%s13633_s24 + $0xf88] sm:$0xff] }
 0x34e   : > { %9402 = vmatprep.subr.bf16.mxu1 %v12374_v53  ;;  %v12403_v53 = vcombine.low %v4745_v15, %v4749_v38  ;;  %v12414_v32 = vcombine.high %v4754_v2, %v4758_v41  ;;  %v12413_v25 = vcombine.low %v4754_v2, %v4758_v41  ;;  %v13187_v2 = vld [vmem:[#allocation3 + $0x28] sm:$0xff] }
 0x34f   : > { %9085 = vmatpush1.bf16.msra.mxu0 %v12371_v63  ;;  %v4765_v63 = vld [vmem:[%s13633_s24 + $0xfe0] sm:$0xff]  ;;  %v4181_v41 = vrot.slane %v13187_v2, 2  ;;  %v4822_v2 = vld [vmem:[%s13633_s24 + $0x11a8] sm:$0xff] }
 0x350   : > { %9086 = vmatprep.subr.bf16.mxu0 %v12380_v36  ;;  %v4766_v36 = vld [vmem:[%s13633_s24 + $0xfe8] sm:$0xff]  ;;  %v12420_v23 = vcombine.high %v4761_v49, %v4765_v63 }
 0x351   : > { %9403 = vmatpush1.bf16.msra.mxu1 %v12373_v62  ;;  %v4762_v62 = vld [vmem:[%s13633_s24 + $0xfc8] sm:$0xff] }
 0x352   : > { %9404 = vmatprep.subr.bf16.mxu1 %v12382_v56  ;;  %v12411_v56 = vcombine.low %v4753_v58, %v4757_v17  ;;  %v12422_v21 = vcombine.high %v4762_v62, %v4766_v36  ;;  %v12421_v57 = vcombine.low %v4762_v62, %v4766_v36  ;;  %v4786_v58 = vld [vmem:[%s13633_s24 + $0x1088] sm:$0xff]  ;;  %v4793_v62 = vld [vmem:[%s13633_s24 + $0x10c0] sm:$0xff] }
 0x353   : > { %9087 = vmatpush1.bf16.msra.mxu0 %v12379_v9  ;;  %v4773_v9 = vld [vmem:[%s13633_s24 + $0x1020] sm:$0xff]  ;;  %v4790_v17 = vld [vmem:[%s13633_s24 + $0x10a8] sm:$0xff] }
 0x354   : > { %9088 = vmatprep.subr.bf16.mxu0 %v12388_v47  ;;  %v4774_v47 = vld [vmem:[%s13633_s24 + $0x1028] sm:$0xff]  ;;  %v12428_v43 = vcombine.high %v4769_v4, %v4773_v9  ;;  %v12427_v15 = vcombine.low %v4769_v4, %v4773_v9  ;;  %v4797_v36 = vld [vmem:[%s13633_s24 + $0x10e0] sm:$0xff]  ;;  %v12445_v4 = vcombine.low %v4786_v58, %v4790_v17 }
 0x355   : > { %9405 = vmatpush1.bf16.msra.mxu1 %v12381_v39  ;;  %v4770_v39 = vld [vmem:[%s13633_s24 + $0x1008] sm:$0xff] }
 0x356   : > { %9406 = vmatprep.subr.bf16.mxu1 %v12390_v5  ;;  %v12419_v5 = vcombine.low %v4761_v49, %v4765_v63  ;;  %v12430_v8 = vcombine.high %v4770_v39, %v4774_v47  ;;  %v12429_v38 = vcombine.low %v4770_v39, %v4774_v47  ;;  %v12446_v49 = vcombine.high %v4786_v58, %v4790_v17  ;;  %v4821_v58 = vld [vmem:[%s13633_s24 + $0x11a0] sm:$0xff]  ;;  %v4818_v17 = vld [vmem:[%s13633_s24 + $0x1188] sm:$0xff] }
 0x357   : > { %9089 = vmatpush1.bf16.msra.mxu0 %v12387_v11  ;;  %v4781_v11 = vld [vmem:[%s13633_s24 + $0x1060] sm:$0xff]  ;;  %v12452_v39 = vcombine.high %v4793_v62, %v4797_v36 }
 0x358   : > { %9090 = vmatprep.subr.bf16.mxu0 %v12396_v0  ;;  %v4782_v0 = vld [vmem:[%s13633_s24 + $0x1068] sm:$0xff]  ;;  %v12436_v48 = vcombine.high %v4777_v55, %v4781_v11 }
 0x359   : > { %9407 = vmatpush1.bf16.msra.mxu1 %v12389_v16  ;;  %v4778_v16 = vld [vmem:[%s13633_s24 + $0x1048] sm:$0xff] }
 0x35a   : > { %9408 = vmatprep.subr.bf16.mxu1 %v12398_v12  ;;  %v4068_v12 = vld [vmem:[#allocation3 + $0x48] sm:$0x3] }
 0x35b   : > { %9091 = vmatpush1.bf16.msra.mxu0 %v12395_v54  ;;  %v12438_v54 = vcombine.high %v4778_v16, %v4782_v0 }
 0x35c   : > { %9092 = vmatprep.subr.bf16.mxu0 %v12404_v18  ;;  %v4789_v18 = vld [vmem:[%s13633_s24 + $0x10a0] sm:$0xff] }
 0x35d   : > { %9409 = vmatpush1.bf16.msra.mxu1 %v12397_v26  ;;  %v4785_v26 = vld [vmem:[%s13633_s24 + $0x1080] sm:$0xff] }
 0x35e   : > { %9410 = vmatprep.subr.bf16.mxu1 %v12406_v60  ;;  %v4191_v60 = vrot.slane %v4068_v12, 2  ;;  %v4809_v12 = vld [vmem:[%s13633_s24 + $0x1140] sm:$0xff] }
 0x35f   : > { %9093 = vmatpush1.bf16.msra.mxu0 %v12403_v53  ;;  %v12435_v53 = vcombine.low %v4777_v55, %v4781_v11  ;;  %v12451_v55 = vcombine.low %v4793_v62, %v4797_v36  ;;  %v4830_v62 = vld [vmem:[%s13633_s24 + $0x11e8] sm:$0xff] }
 0x360   : > { %9094 = vmatprep.subr.bf16.mxu0 %v12412_v13  ;;  %v12437_v13 = vcombine.low %v4778_v16, %v4782_v0  ;;  %v4192_v63 = vsel %vm4176_vm9, %v4181_v41, %v4191_v60  ;;  %v4817_v60 = vld [vmem:[%s13633_s24 + $0x1180] sm:$0xff] }
 0x361   : > { %9411 = vmatpush1.bf16.msra.mxu1 %v12405_v40  ;;  %v4180_v40 = vrot.slane %v4064_v31, 2  ;;  %v12475_v36 = vcombine.low %v4817_v60, %v4821_v58 }
 0x362   : > { %9412 = vmatprep.subr.bf16.mxu1 %v12414_v32  ;;  %v12444_v32 = vcombine.high %v4785_v26, %v4789_v18 }
 0x363   : > { %9095 = vmatpush1.bf16.msra.mxu0 %v12411_v56  ;;  %v4794_v56 = vld [vmem:[%s13633_s24 + $0x10c8] sm:$0xff] }
 0x364   : > { %9096 = vmatprep.subr.bf16.mxu0 %v12420_v23  ;;  %v12443_v23 = vcombine.low %v4785_v26, %v4789_v18 }
 0x365   : > { %9413 = vmatpush1.bf16.msra.mxu1 %v12413_v25  ;;  %v4798_v25 = vld [vmem:[%s13633_s24 + $0x10e8] sm:$0xff] }
 0x366   : > { %9414 = vmatprep.subr.bf16.mxu1 %v12422_v21  ;;  %v4182_v21 = vsel %vm4176_vm9, %v4180_v40, %v4181_v41  ;;  %v12454_v47 = vcombine.high %v4794_v56, %v4798_v25  ;;  %v12453_v11 = vcombine.low %v4794_v56, %v4798_v25  ;;  %v12476_v40 = vcombine.high %v4817_v60, %v4821_v58 }
 0x367   : > { %9097 = vmatpush1.bf16.msra.mxu0 %v12419_v5  ;;  %v15310_v9 = vpack.c.bf16 %v4192_v63, %v4182_v21  ;;  %v4801_v5 = vld [vmem:[%s13633_s24 + $0x1100] sm:$0xff]  ;;  %v4826_v63 = vld [vmem:[%s13633_s24 + $0x11c8] sm:$0xff]  ;;  %v12477_v56 = vcombine.low %v4818_v17, %v4822_v2 }
 0x368   : > { %9119 = vmatprep.subr.bf16.mxu0 %v12428_v43  ;;  %v4802_v43 = vld [vmem:[%s13633_s24 + $0x1108] sm:$0xff]  ;;  %v4833_v21 = vld [vmem:[%s13633_s24 + $0x1200] sm:$0xff] }
 0x369   : > { %9415 = vmatpush1.bf16.msra.mxu1 %v12421_v57  ;;  %v4805_v57 = vld [vmem:[%s13633_s24 + $0x1120] sm:$0xff] }
 0x36a   : > { %9437 = vmatprep.subr.bf16.mxu1 %v12430_v8  ;;  %9099 = vmatmul.mubr.bf16.vlgmr.msra.gmra.mrb[32].mxu0 %v15035_v46  ;;  %v4806_v8 = vld [vmem:[%s13633_s24 + $0x1128] sm:$0xff]  ;;  %v12460_v16 = vcombine.high %v4801_v5, %v4805_v57  ;;  %v12459_v31 = vcombine.low %v4801_v5, %v4805_v57  ;;  %v12485_v57 = vcombine.low %v4826_v63, %v4830_v62 }
 0x36b   : > { %9108 = vmatprep.mubr.bf16.mxu0 %v15037_v14  ;;  %9120 = vmatpush1.bf16.msra.mxu0 %v12427_v15  ;;  %v12462_v0 = vcombine.high %v4802_v43, %v4806_v8  ;;  %v4813_v15 = vld [vmem:[%s13633_s24 + $0x1160] sm:$0xff] }
 0x36c   : > { %9417 = vmatmul.mubr.bf16.vlgmr.msra.gmra.mrb[32].mxu1 %v15035_v46  ;;  %9121 = vmatprep.subr.bf16.mxu0 %v12436_v48  ;;  %v4814_v48 = vld [vmem:[%s13633_s24 + $0x1168] sm:$0xff]  ;;  %v12468_v26 = vcombine.high %v4809_v12, %v4813_v15  ;;  %v12467_v41 = vcombine.low %v4809_v12, %v4813_v15 }
 0x36d   : > { %9426 = vmatprep.mubr.bf16.mxu1 %v15037_v14  ;;  %9438 = vmatpush1.bf16.msra.mxu1 %v12429_v38  ;;  %v4810_v38 = vld [vmem:[%s13633_s24 + $0x1148] sm:$0xff] }
 0x36e   : > { %9439 = vmatprep.subr.bf16.mxu1 %v12438_v54  ;;  %v12461_v54 = vcombine.low %v4802_v43, %v4806_v8  ;;  %v12470_v18 = vcombine.high %v4810_v38, %v4814_v48 }
 0x36f   : > { %9122 = vmatpush1.bf16.msra.mxu0 %v12435_v53  ;;  %v12469_v53 = vcombine.low %v4810_v38, %v4814_v48 }
 0x370   : > { %9123 = vmatprep.subr.bf16.mxu0 %v12444_v32  ;;  %v4825_v32 = vld [vmem:[%s13633_s24 + $0x11c0] sm:$0xff] }
 0x371   : > { %9440 = vmatpush1.bf16.msra.mxu1 %v12437_v13  ;;  %v12478_v13 = vcombine.high %v4818_v17, %v4822_v2 }
 0x372   : > { %9109 = vmatmul.mubr.bf16.gmra.mrb[36].mxu0 %v15074_v51  ;;  %9441 = vmatprep.subr.bf16.mxu1 %v12446_v49  ;;  %v4829_v49 = vld [vmem:[%s13633_s24 + $0x11e0] sm:$0xff] }
 0x373   : > { %9151 = vmatprep.mubr.bf16.mxu0 %v15310_v9  ;;  %9124 = vmatpush1.bf16.msra.mxu0 %v12443_v23  ;;  %v12484_v25 = vcombine.high %v4825_v32, %v4829_v49  ;;  %v12486_v23 = vcombine.high %v4826_v63, %v4830_v62  ;;  %v12483_v5 = vcombine.low %v4825_v32, %v4829_v49 }
 0x374   : > { %9427 = vmatmul.mubr.bf16.gmra.mrb[36].mxu1 %v15074_v51  ;;  %9125 = vmatprep.subr.bf16.mxu0 %v12452_v39  ;;  %v4834_v39 = vld [vmem:[%s13633_s24 + $0x1208] sm:$0xff] }
 0x375   : > { %9469 = vmatprep.mubr.bf16.mxu1 %v15310_v9  ;;  %9442 = vmatpush1.bf16.msra.mxu1 %v12445_v4  ;;  %v4837_v4 = vld [vmem:[%s13633_s24 + $0x1220] sm:$0xff] }
 0x376   : > { %9443 = vmatprep.subr.bf16.mxu1 %v12454_v47  ;;  %v4838_v47 = vld [vmem:[%s13633_s24 + $0x1228] sm:$0xff]  ;;  %v12492_v43 = vcombine.high %v4833_v21, %v4837_v4  ;;  %v12491_v12 = vcombine.low %v4833_v21, %v4837_v4 }
 0x377   : > { %9126 = vmatpush1.bf16.msra.mxu0 %v12451_v55  ;;  %v12494_v8 = vcombine.high %v4834_v39, %v4838_v47  ;;  %v4841_v55 = vld [vmem:[%s13633_s24 + $0x1240] sm:$0xff]  ;;  %v12493_v15 = vcombine.low %v4834_v39, %v4838_v47 }
 0x378   : > { %9127 = vmatprep.subr.bf16.mxu0 %v12460_v16  ;;  %v4842_v16 = vld [vmem:[%s13633_s24 + $0x1248] sm:$0xff] }
 0x379   : > { %9444 = vmatpush1.bf16.msra.mxu1 %v12453_v11  ;;  %v4845_v11 = vld [vmem:[%s13633_s24 + $0x1260] sm:$0xff] }
 0x37a   : > { %9445 = vmatprep.subr.bf16.mxu1 %v12462_v0  ;;  %v4846_v0 = vld [vmem:[%s13633_s24 + $0x1268] sm:$0xff]  ;;  %v12500_v38 = vcombine.high %v4841_v55, %v4845_v11  ;;  %v12499_v60 = vcombine.low %v4841_v55, %v4845_v11 }
 0x37b   : > { %9128 = vmatpush1.bf16.msra.mxu0 %v12459_v31  ;;  %v12502_v48 = vcombine.high %v4842_v16, %v4846_v0  ;;  %v4849_v31 = vld [vmem:[%s13633_s24 + $0x1280] sm:$0xff]  ;;  %v12501_v58 = vcombine.low %v4842_v16, %v4846_v0 }
 0x37c   : > { %9129 = vmatprep.subr.bf16.mxu0 %v12468_v26  ;;  %v4850_v26 = vld [vmem:[%s13633_s24 + $0x1288] sm:$0xff] }
 0x37d   : > { %9446 = vmatpush1.bf16.msra.mxu1 %v12461_v54  ;;  %v4853_v54 = vld [vmem:[%s13633_s24 + $0x12a0] sm:$0xff] }
 0x37e   : > { %9447 = vmatprep.subr.bf16.mxu1 %v12470_v18  ;;  %v4854_v18 = vld [vmem:[%s13633_s24 + $0x12a8] sm:$0xff]  ;;  %v12508_v17 = vcombine.high %v4849_v31, %v4853_v54  ;;  %v12507_v32 = vcombine.low %v4849_v31, %v4853_v54 }
 0x37f   : > { %9130 = vmatpush1.bf16.msra.mxu0 %v12467_v41  ;;  %v12510_v2 = vcombine.high %v4850_v26, %v4854_v18  ;;  %v4857_v41 = vld [vmem:[%s13633_s24 + $0x12c0] sm:$0xff]  ;;  %v12509_v49 = vcombine.low %v4850_v26, %v4854_v18 }
 0x380   : > { %9131 = vmatprep.subr.bf16.mxu0 %v12476_v40  ;;  %v4858_v40 = vld [vmem:[%s13633_s24 + $0x12c8] sm:$0xff] }
 0x381   : > { %9448 = vmatpush1.bf16.msra.mxu1 %v12469_v53  ;;  %v4861_v53 = vld [vmem:[%s13633_s24 + $0x12e0] sm:$0xff] }
 0x382   : > { %9449 = vmatprep.subr.bf16.mxu1 %v12478_v13  ;;  %v4862_v13 = vld [vmem:[%s13633_s24 + $0x12e8] sm:$0xff]  ;;  %v12516_v63 = vcombine.high %v4857_v41, %v4861_v53  ;;  %v12515_v21 = vcombine.low %v4857_v41, %v4861_v53  ;;  %v4067_v41 = vld [vmem:[#allocation3 + $0x40] sm:$0x3] }
 0x383   : > { %9132 = vmatpush1.bf16.msra.mxu0 %v12475_v36  ;;  %v12518_v62 = vcombine.high %v4858_v40, %v4862_v13  ;;  %v4865_v36 = vld [vmem:[%s13633_s24 + $0x1300] sm:$0xff]  ;;  %v12517_v4 = vcombine.low %v4858_v40, %v4862_v13  ;;  %v4076_v40 = vld [vmem:[#allocation3 + $0xa8] sm:$0x3] }
 0x384   : > { %9133 = vmatprep.subr.bf16.mxu0 %v12484_v25  ;;  %v4866_v25 = vld [vmem:[%s13633_s24 + $0x1308] sm:$0xff] }
 0x385   : > { %9450 = vmatpush1.bf16.msra.mxu1 %v12477_v56  ;;  %v4869_v56 = vld [vmem:[%s13633_s24 + $0x1320] sm:$0xff] }
 0x386   : > { %9451 = vmatprep.subr.bf16.mxu1 %v12486_v23  ;;  %v4870_v23 = vld [vmem:[%s13633_s24 + $0x1328] sm:$0xff]  ;;  %v12524_v39 = vcombine.high %v4865_v36, %v4869_v56  ;;  %v12523_v55 = vcombine.low %v4865_v36, %v4869_v56  ;;  %v4897_v36 = vld [vmem:[%s13633_s24 + $0x1400] sm:$0xff] }
 0x387   : > { %9134 = vmatpush1.bf16.msra.mxu0 %v12483_v5  ;;  %v12526_v47 = vcombine.high %v4866_v25, %v4870_v23  ;;  %v4873_v5 = vld [vmem:[%s13633_s24 + $0x1340] sm:$0xff]  ;;  %v12525_v11 = vcombine.low %v4866_v25, %v4870_v23  ;;  %v4072_v25 = vld [vmem:[#allocation3 + $0x68] sm:$0xfc]  ;;  %v4898_v23 = vld [vmem:[%s13633_s24 + $0x1408] sm:$0xff] }
 0x388   : > { %9135 = vmatprep.subr.bf16.mxu0 %v12492_v43  ;;  %v4874_v43 = vld [vmem:[%s13633_s24 + $0x1348] sm:$0xff]  ;;  %v4901_v56 = vld [vmem:[%s13633_s24 + $0x1420] sm:$0xff] }
 0x389   : > { %9452 = vmatpush1.bf16.msra.mxu1 %v12485_v57  ;;  %v4877_v57 = vld [vmem:[%s13633_s24 + $0x1360] sm:$0xff] }
 0x38a   : > { %9453 = vmatprep.subr.bf16.mxu1 %v12494_v8  ;;  %v4878_v8 = vld [vmem:[%s13633_s24 + $0x1368] sm:$0xff]  ;;  %v12532_v16 = vcombine.high %v4873_v5, %v4877_v57  ;;  %v12531_v31 = vcombine.low %v4873_v5, %v4877_v57  ;;  %v13188_v57 = vld [vmem:[#allocation3 + $0x88] sm:$0xff] }
 0x38b   : > { %9136 = vmatpush1.bf16.msra.mxu0 %v12491_v12  ;;  %v12534_v0 = vcombine.high %v4874_v43, %v4878_v8  ;;  %v4881_v12 = vld [vmem:[%s13633_s24 + $0x1380] sm:$0xff]  ;;  %v12533_v54 = vcombine.low %v4874_v43, %v4878_v8  ;;  %v4201_v43 = vrot.slane %v13188_v57, 2 }
 0x38c   : > { %9137 = vmatprep.subr.bf16.mxu0 %v12500_v38  ;;  %v4882_v38 = vld [vmem:[%s13633_s24 + $0x1388] sm:$0xff]  ;;  %v4933_v57 = vld [vmem:[%s13633_s24 + $0x1520] sm:$0xff] }
 0x38d   : > { %9454 = vmatpush1.bf16.msra.mxu1 %v12493_v15  ;;  %v4885_v15 = vld [vmem:[%s13633_s24 + $0x13a0] sm:$0xff] }
 0x38e   : > { %9455 = vmatprep.subr.bf16.mxu1 %v12502_v48  ;;  %v4886_v48 = vld [vmem:[%s13633_s24 + $0x13a8] sm:$0xff]  ;;  %v12540_v26 = vcombine.high %v4881_v12, %v4885_v15  ;;  %v12539_v53 = vcombine.low %v4881_v12, %v4885_v15  ;;  %v4909_v15 = vld [vmem:[%s13633_s24 + $0x1460] sm:$0xff] }
 0x38f   : > { %9138 = vmatpush1.bf16.msra.mxu0 %v12499_v60  ;;  %v12542_v18 = vcombine.high %v4882_v38, %v4886_v48  ;;  %v4889_v60 = vld [vmem:[%s13633_s24 + $0x13c0] sm:$0xff]  ;;  %v12541_v13 = vcombine.low %v4882_v38, %v4886_v48  ;;  %v4906_v48 = vld [vmem:[%s13633_s24 + $0x1448] sm:$0xff] }
 0x390   : > { %9139 = vmatprep.subr.bf16.mxu0 %v12508_v17  ;;  %v4890_v17 = vld [vmem:[%s13633_s24 + $0x13c8] sm:$0xff] }
 0x391   : > { %9456 = vmatpush1.bf16.msra.mxu1 %v12501_v58  ;;  %v4893_v58 = vld [vmem:[%s13633_s24 + $0x13e0] sm:$0xff] }
 0x392   : > { %9457 = vmatprep.subr.bf16.mxu1 %v12510_v2  ;;  %v4894_v2 = vld [vmem:[%s13633_s24 + $0x13e8] sm:$0xff] }
 0x393   : > { %9140 = vmatpush1.bf16.msra.mxu0 %v12507_v32  ;;  %v12548_v32 = vcombine.high %v4889_v60, %v4893_v58  ;;  %v12549_v8 = vcombine.low %v4890_v17, %v4894_v2 }
 0x394   : > { %9141 = vmatprep.subr.bf16.mxu0 %v12516_v63  ;;  %v12550_v63 = vcombine.high %v4890_v17, %v4894_v2 }
 0x395   : > { %9458 = vmatpush1.bf16.msra.mxu1 %v12509_v49  ;;  %v4063_v49 = vld [vmem:[#allocation3] sm:$0xfc] }
 0x396   : > { %9459 = vmatprep.subr.bf16.mxu1 %v12518_v62  ;;  %v4189_v62 = vrot.slane %v4067_v41, 2  ;;  %v4177_v5 = vrot.slane %v4063_v49, 2  ;;  %v4913_v41 = vld [vmem:[%s13633_s24 + $0x1480] sm:$0xff] }
 0x397   : > { %9142 = vmatpush1.bf16.msra.mxu0 %v12515_v21  ;;  %v4902_v21 = vld [vmem:[%s13633_s24 + $0x1428] sm:$0xff] }
 0x398   : > { %9143 = vmatprep.subr.bf16.mxu0 %v12524_v39  ;;  %v4178_v39 = vrot.slane %v15208_v28, 2  ;;  %v4905_v28 = vld [vmem:[%s13633_s24 + $0x1440] sm:$0xff] }
 0x399   : > { %9460 = vmatpush1.bf16.msra.mxu1 %v12517_v4  ;;  %v4211_v4 = vrot.slane %v4076_v40, 2  ;;  %v12564_v17 = vcombine.high %v4905_v28, %v4909_v15  ;;  %v4914_v40 = vld [vmem:[%s13633_s24 + $0x1488] sm:$0xff] }
 0x39a   : > { %9461 = vmatprep.subr.bf16.mxu1 %v12526_v47  ;;  %v12547_v47 = vcombine.low %v4889_v60, %v4893_v58  ;;  %v4179_v38 = vsel %vm4176_vm9, %v4177_v5, %v4178_v39  ;;  %v12557_v60 = vcombine.low %v4898_v23, %v4902_v21  ;;  %v4929_v5 = vld [vmem:[%s13633_s24 + $0x1500] sm:$0xff] }
 0x39b   : > { %9144 = vmatpush1.bf16.msra.mxu0 %v12523_v55  ;;  %v12556_v55 = vcombine.high %v4897_v36, %v4901_v56  ;;  %v4212_v12 = vsel %vm4176_vm9, %v4201_v43, %v4211_v4 }
 0x39c   : > { %9145 = vmatprep.subr.bf16.mxu0 %v12532_v16  ;;  %v4190_v16 = vsel %vm4176_vm9, %v4178_v39, %v4189_v62 }
 0x39d   : > { %9462 = vmatpush1.bf16.msra.mxu1 %v12525_v11  ;;  %v4200_v11 = vrot.slane %v4072_v25, 2  ;;  %v4922_v25 = vld [vmem:[%s13633_s24 + $0x14c8] sm:$0xff] }
 0x39e   : > { %9463 = vmatprep.subr.bf16.mxu1 %v12534_v0  ;;  %v12558_v0 = vcombine.high %v4898_v23, %v4902_v21  ;;  %v4926_v23 = vld [vmem:[%s13633_s24 + $0x14e8] sm:$0xff] }
 0x39f   : > { %9146 = vmatpush1.bf16.msra.mxu0 %v12531_v31  ;;  %v4910_v31 = vld [vmem:[%s13633_s24 + $0x1468] sm:$0xff] }
 0x3a0   : > { %9147 = vmatprep.subr.bf16.mxu0 %v12540_v26  ;;  %v12555_v26 = vcombine.low %v4897_v36, %v4901_v56  ;;  %v12566_v2 = vcombine.high %v4906_v48, %v4910_v31  ;;  %v12565_v49 = vcombine.low %v4906_v48, %v4910_v31  ;;  %v4921_v36 = vld [vmem:[%s13633_s24 + $0x14c0] sm:$0xff]  ;;  %v12587_v48 = vcombine.low %v4929_v5, %v4933_v57 }
 0x3a1   : > { %9464 = vmatpush1.bf16.msra.mxu1 %v12533_v54  ;;  %v15376_v54 = vpack.c.bf16 %v4190_v16, %v4179_v38  ;;  %v4925_v56 = vld [vmem:[%s13633_s24 + $0x14e0] sm:$0xff]  ;;  %v12588_v16 = vcombine.high %v4929_v5, %v4933_v57  ;;  %v4942_v38 = vld [vmem:[%s13633_s24 + $0x1568] sm:$0xff] }
 0x3a2   : > { %9465 = vmatprep.subr.bf16.mxu1 %v12542_v18  ;;  %v4202_v18 = vsel %vm4176_vm9, %v4200_v11, %v4201_v43  ;;  %v12580_v39 = vcombine.high %v4921_v36, %v4925_v56  ;;  %v4930_v43 = vld [vmem:[%s13633_s24 + $0x1508] sm:$0xff]  ;;  %v12581_v11 = vcombine.low %v4922_v25, %v4926_v23 }
 0x3a3   : > { %9148 = vmatpush1.bf16.msra.mxu0 %v12539_v53  ;;  %v15379_v58 = vpack.c.bf16 %v4212_v12, %v4202_v18  ;;  %v4917_v53 = vld [vmem:[%s13633_s24 + $0x14a0] sm:$0xff]  ;;  %v4966_v5 = vld [vmem:[%s13633_s24 + $0x1628] sm:$0xff] }
 0x3a4   : > { %9149 = vmatprep.subr.bf16.mxu0 %v12548_v32  ;;  %v12563_v32 = vcombine.low %v4905_v28, %v4909_v15  ;;  %v12571_v21 = vcombine.low %v4913_v41, %v4917_v53  ;;  %v4937_v12 = vld [vmem:[%s13633_s24 + $0x1540] sm:$0xff]  ;;  %v4938_v15 = vld [vmem:[%s13633_s24 + $0x1548] sm:$0xff] }
 0x3a5   : > { %9466 = vmatpush1.bf16.msra.mxu1 %v12541_v13  ;;  %v4918_v13 = vld [vmem:[%s13633_s24 + $0x14a8] sm:$0xff]  ;;  %v4941_v28 = vld [vmem:[%s13633_s24 + $0x1560] sm:$0xff]  ;;  %v12598_v18 = vcombine.high %v4938_v15, %v4942_v38 }
 0x3a6   : > { %9467 = vmatprep.subr.bf16.mxu1 %v12550_v63  ;;  %v12572_v63 = vcombine.high %v4913_v41, %v4917_v53  ;;  %v12574_v62 = vcombine.high %v4914_v40, %v4918_v13  ;;  %v12573_v4 = vcombine.low %v4914_v40, %v4918_v13  ;;  %v4950_v41 = vld [vmem:[%s13633_s24 + $0x15a8] sm:$0xff]  ;;  %v12595_v53 = vcombine.low %v4937_v12, %v4941_v28 }
 0x3a7   : > { %9150 = vmatpush1.bf16.msra.mxu0 %v12547_v47  ;;  %v12582_v47 = vcombine.high %v4922_v25, %v4926_v23  ;;  %v12597_v40 = vcombine.low %v4938_v15, %v4942_v38 }
 0x3a8   : > { %9172 = vmatprep.subr.bf16.mxu0 %v12556_v55  ;;  %v12579_v55 = vcombine.low %v4921_v36, %v4925_v56  ;;  %v4958_v36 = vld [vmem:[%s13633_s24 + $0x15e8] sm:$0xff] }
 0x3a9   : > { %9468 = vmatpush1.bf16.msra.mxu1 %v12549_v8  ;;  %v4934_v8 = vld [vmem:[%s13633_s24 + $0x1528] sm:$0xff] }
 0x3aa   : > { %9490 = vmatprep.subr.bf16.mxu1 %v12558_v0  ;;  %9152 = vmatmul.mubr.bf16.vlgmr.msra.gmra.mrb[32].mxu0 %v15376_v54  ;;  %v12590_v0 = vcombine.high %v4930_v43, %v4934_v8  ;;  %v12589_v31 = vcombine.low %v4930_v43, %v4934_v8 }
 0x3ab   : > { %9161 = vmatprep.mubr.bf16.mxu0 %v15379_v58  ;;  %9173 = vmatpush1.bf16.msra.mxu0 %v12555_v26  ;;  %v12596_v26 = vcombine.high %v4937_v12, %v4941_v28  ;;  %v4974_v12 = vld [vmem:[%s13633_s24 + $0x1668] sm:$0xff] }
 0x3ac   : > { %9470 = vmatmul.mubr.bf16.vlgmr.msra.gmra.mrb[32].mxu1 %v15376_v54  ;;  %9174 = vmatprep.subr.bf16.mxu0 %v12564_v17  ;;  %v4949_v17 = vld [vmem:[%s13633_s24 + $0x15a0] sm:$0xff] }
 0x3ad   : > { %9479 = vmatprep.mubr.bf16.mxu1 %v15379_v58  ;;  %9491 = vmatpush1.bf16.msra.mxu1 %v12557_v60  ;;  %v4945_v60 = vld [vmem:[%s13633_s24 + $0x1580] sm:$0xff] }
 0x3ae   : > { %9492 = vmatprep.subr.bf16.mxu1 %v12566_v2  ;;  %v4946_v2 = vld [vmem:[%s13633_s24 + $0x1588] sm:$0xff]  ;;  %v12604_v13 = vcombine.high %v4945_v60, %v4949_v17  ;;  %v12603_v56 = vcombine.low %v4945_v60, %v4949_v17 }
 0x3af   : > { %9175 = vmatpush1.bf16.msra.mxu0 %v12563_v32  ;;  %v12606_v32 = vcombine.high %v4946_v2, %v4950_v41  ;;  %v12605_v25 = vcombine.low %v4946_v2, %v4950_v41  ;;  %v4982_v60 = vld [vmem:[%s13633_s24 + $0x16a8] sm:$0xff] }
 0x3b0   : > { %9176 = vmatprep.subr.bf16.mxu0 %v12572_v63  ;;  %v4957_v63 = vld [vmem:[%s13633_s24 + $0x15e0] sm:$0xff] }
 0x3b1   : > { %9493 = vmatpush1.bf16.msra.mxu1 %v12565_v49  ;;  %v4953_v49 = vld [vmem:[%s13633_s24 + $0x15c0] sm:$0xff] }
 0x3b2   : > { %9162 = vmatmul.mubr.bf16.gmra.mrb[36].mxu0 %v15116_v34  ;;  %9494 = vmatprep.subr.bf16.mxu1 %v12574_v62  ;;  %v4954_v62 = vld [vmem:[%s13633_s24 + $0x15c8] sm:$0xff]  ;;  %v12612_v23 = vcombine.high %v4953_v49, %v4957_v63  ;;  %v12611_v57 = vcombine.low %v4953_v49, %v4957_v63 }
 0x3b3   : > { %9204 = vmatprep.mubr.bf16.mxu0 %v15133_v35  ;;  %9177 = vmatpush1.bf16.msra.mxu0 %v12571_v21  ;;  %v12614_v21 = vcombine.high %v4954_v62, %v4958_v36  ;;  %v12613_v43 = vcombine.low %v4954_v62, %v4958_v36  ;;  %v4990_v49 = vld [vmem:[%s13633_s24 + $0x16e8] sm:$0xff] }
 0x3b4   : > { %9480 = vmatmul.mubr.bf16.gmra.mrb[36].mxu1 %v15116_v34  ;;  %9178 = vmatprep.subr.bf16.mxu0 %v12580_v39  ;;  %v4965_v39 = vld [vmem:[%s13633_s24 + $0x1620] sm:$0xff] }
 0x3b5   : > { %9522 = vmatprep.mubr.bf16.mxu1 %v15133_v35  ;;  %9495 = vmatpush1.bf16.msra.mxu1 %v12573_v4  ;;  %v4961_v4 = vld [vmem:[%s13633_s24 + $0x1600] sm:$0xff] }
 0x3b6   : > { %9496 = vmatprep.subr.bf16.mxu1 %v12582_v47  ;;  %v4962_v47 = vld [vmem:[%s13633_s24 + $0x1608] sm:$0xff]  ;;  %v12620_v8 = vcombine.high %v4961_v4, %v4965_v39  ;;  %v12619_v28 = vcombine.low %v4961_v4, %v4965_v39 }
 0x3b7   : > { %9179 = vmatpush1.bf16.msra.mxu0 %v12579_v55  ;;  %v12622_v55 = vcombine.high %v4962_v47, %v4966_v5  ;;  %v12621_v15 = vcombine.low %v4962_v47, %v4966_v5  ;;  %v4998_v4 = vld [vmem:[%s13633_s24 + $0x1728] sm:$0xff] }
 0x3b8   : > { %9180 = vmatprep.subr.bf16.mxu0 %v12588_v16  ;;  %v4973_v16 = vld [vmem:[%s13633_s24 + $0x1660] sm:$0xff] }
 0x3b9   : > { %9497 = vmatpush1.bf16.msra.mxu1 %v12581_v11  ;;  %v4969_v11 = vld [vmem:[%s13633_s24 + $0x1640] sm:$0xff] }
 0x3ba   : > { %9498 = vmatprep.subr.bf16.mxu1 %v12590_v0  ;;  %v4970_v0 = vld [vmem:[%s13633_s24 + $0x1648] sm:$0xff]  ;;  %v12628_v38 = vcombine.high %v4969_v11, %v4973_v16  ;;  %v12627_v17 = vcombine.low %v4969_v11, %v4973_v16 }
 0x3bb   : > { %9181 = vmatpush1.bf16.msra.mxu0 %v12587_v48  ;;  %v12630_v48 = vcombine.high %v4970_v0, %v4974_v12  ;;  %v12629_v2 = vcombine.low %v4970_v0, %v4974_v12  ;;  %v5006_v11 = vld [vmem:[%s13633_s24 + $0x1768] sm:$0xff] }
 0x3bc   : > { %9182 = vmatprep.subr.bf16.mxu0 %v12596_v26  ;;  %v4981_v26 = vld [vmem:[%s13633_s24 + $0x16a0] sm:$0xff] }
 0x3bd   : > { %9499 = vmatpush1.bf16.msra.mxu1 %v12589_v31  ;;  %v4977_v31 = vld [vmem:[%s13633_s24 + $0x1680] sm:$0xff] }
 0x3be   : > { %9500 = vmatprep.subr.bf16.mxu1 %v12598_v18  ;;  %v4978_v18 = vld [vmem:[%s13633_s24 + $0x1688] sm:$0xff]  ;;  %v12636_v41 = vcombine.high %v4977_v31, %v4981_v26  ;;  %v12635_v63 = vcombine.low %v4977_v31, %v4981_v26 }
 0x3bf   : > { %9183 = vmatpush1.bf16.msra.mxu0 %v12595_v53  ;;  %v12638_v53 = vcombine.high %v4978_v18, %v4982_v60  ;;  %v12637_v62 = vcombine.low %v4978_v18, %v4982_v60  ;;  %v5014_v31 = vld [vmem:[%s13633_s24 + $0x17a8] sm:$0xff] }
 0x3c0   : > { %9184 = vmatprep.subr.bf16.mxu0 %v12604_v13  ;;  %v4989_v13 = vld [vmem:[%s13633_s24 + $0x16e0] sm:$0xff] }
 0x3c1   : > { %9501 = vmatpush1.bf16.msra.mxu1 %v12597_v40  ;;  %v4985_v40 = vld [vmem:[%s13633_s24 + $0x16c0] sm:$0xff] }
 0x3c2   : > { %9502 = vmatprep.subr.bf16.mxu1 %v12606_v32  ;;  %v4986_v32 = vld [vmem:[%s13633_s24 + $0x16c8] sm:$0xff]  ;;  %v12644_v36 = vcombine.high %v4985_v40, %v4989_v13  ;;  %v12643_v39 = vcombine.low %v4985_v40, %v4989_v13 }
 0x3c3   : > { %9185 = vmatpush1.bf16.msra.mxu0 %v12603_v56  ;;  %v12646_v56 = vcombine.high %v4986_v32, %v4990_v49  ;;  %v12645_v47 = vcombine.low %v4986_v32, %v4990_v49  ;;  %v5022_v40 = vld [vmem:[%s13633_s24 + $0x17e8] sm:$0xff] }
 0x3c4   : > { %9186 = vmatprep.subr.bf16.mxu0 %v12612_v23  ;;  %v4997_v23 = vld [vmem:[%s13633_s24 + $0x1720] sm:$0xff] }
 0x3c5   : > { %9503 = vmatpush1.bf16.msra.mxu1 %v12605_v25  ;;  %v4993_v25 = vld [vmem:[%s13633_s24 + $0x1700] sm:$0xff] }
 0x3c6   : > { %9504 = vmatprep.subr.bf16.mxu1 %v12614_v21  ;;  %v4994_v21 = vld [vmem:[%s13633_s24 + $0x1708] sm:$0xff]  ;;  %v12652_v5 = vcombine.high %v4993_v25, %v4997_v23  ;;  %v12651_v16 = vcombine.low %v4993_v25, %v4997_v23  ;;  %v4264_v25 = vld [vmem:[%s13633_s24 + $0x38] sm:$0xff] }
 0x3c7   : > { %9187 = vmatpush1.bf16.msra.mxu0 %v12611_v57  ;;  %v12654_v57 = vcombine.high %v4994_v21, %v4998_v4  ;;  %v12653_v0 = vcombine.low %v4994_v21, %v4998_v4 }
 0x3c8   : > { %9188 = vmatprep.subr.bf16.mxu0 %v12620_v8  ;;  %v5005_v8 = vld [vmem:[%s13633_s24 + $0x1760] sm:$0xff] }
 0x3c9   : > { %9505 = vmatpush1.bf16.msra.mxu1 %v12613_v43  ;;  %v5001_v43 = vld [vmem:[%s13633_s24 + $0x1740] sm:$0xff] }
 0x3ca   : > { %9506 = vmatprep.subr.bf16.mxu1 %v12622_v55  ;;  %v5002_v55 = vld [vmem:[%s13633_s24 + $0x1748] sm:$0xff]  ;;  %v12660_v12 = vcombine.high %v5001_v43, %v5005_v8  ;;  %v12659_v26 = vcombine.low %v5001_v43, %v5005_v8  ;;  %v4272_v43 = vld [vmem:[%s13633_s24 + $0x78] sm:$0xff] }
 0x3cb   : > { %9189 = vmatpush1.bf16.msra.mxu0 %v12619_v28  ;;  %v12662_v28 = vcombine.high %v5002_v55, %v5006_v11  ;;  %v12661_v18 = vcombine.low %v5002_v55, %v5006_v11 }
 0x3cc   : > { %9190 = vmatprep.subr.bf16.mxu0 %v12628_v38  ;;  %v5013_v38 = vld [vmem:[%s13633_s24 + $0x17a0] sm:$0xff] }
 0x3cd   : > { %9507 = vmatpush1.bf16.msra.mxu1 %v12621_v15  ;;  %v5009_v15 = vld [vmem:[%s13633_s24 + $0x1780] sm:$0xff] }
 0x3ce   : > { %9508 = vmatprep.subr.bf16.mxu1 %v12630_v48  ;;  %v5010_v48 = vld [vmem:[%s13633_s24 + $0x1788] sm:$0xff]  ;;  %v12668_v60 = vcombine.high %v5009_v15, %v5013_v38  ;;  %v12667_v13 = vcombine.low %v5009_v15, %v5013_v38  ;;  %v4280_v15 = vld [vmem:[%s13633_s24 + $0xb8] sm:$0xff] }
 0x3cf   : > { %9191 = vmatpush1.bf16.msra.mxu0 %v12627_v17  ;;  %v12670_v17 = vcombine.high %v5010_v48, %v5014_v31  ;;  %v12669_v32 = vcombine.low %v5010_v48, %v5014_v31 }
 0x3d0   : > { %9192 = vmatprep.subr.bf16.mxu0 %v12636_v41  ;;  %v5021_v41 = vld [vmem:[%s13633_s24 + $0x17e0] sm:$0xff] }
 0x3d1   : > { %9509 = vmatpush1.bf16.msra.mxu1 %v12629_v2  ;;  %v5017_v2 = vld [vmem:[%s13633_s24 + $0x17c0] sm:$0xff] }
 0x3d2   : > { %9510 = vmatprep.subr.bf16.mxu1 %v12638_v53  ;;  %v5018_v53 = vld [vmem:[%s13633_s24 + $0x17c8] sm:$0xff]  ;;  %v12676_v49 = vcombine.high %v5017_v2, %v5021_v41  ;;  %v12675_v23 = vcombine.low %v5017_v2, %v5021_v41  ;;  %v4288_v2 = vld [vmem:[%s13633_s24 + $0xf8] sm:$0xff] }
 0x3d3   : > { %9193 = vmatpush1.bf16.msra.mxu0 %v12635_v63  ;;  %v12678_v63 = vcombine.high %v5018_v53, %v5022_v40  ;;  %v12677_v21 = vcombine.low %v5018_v53, %v5022_v40 }
 0x3d4   : > { %9194 = vmatprep.subr.bf16.mxu0 %v12644_v36  ;;  %v4263_v36 = vld [vmem:[%s13633_s24 + $0x30] sm:$0xff] }
 0x3d5   : > { %9511 = vmatpush1.bf16.msra.mxu1 %v12637_v62  ;;  %v4259_v62 = vld [vmem:[%s13633_s24 + $0x10] sm:$0xff] }
 0x3d6   : > { %9512 = vmatprep.subr.bf16.mxu1 %v12646_v56  ;;  %v4260_v56 = vld [vmem:[%s13633_s24 + $0x18] sm:$0xff]  ;;  %v11920_v4 = vcombine.high %v4259_v62, %v4263_v36  ;;  %v11919_v8 = vcombine.low %v4259_v62, %v4263_v36 }
 0x3d7   : > { %9195 = vmatpush1.bf16.msra.mxu0 %v12643_v39  ;;  %v11922_v39 = vcombine.high %v4260_v56, %v4264_v25  ;;  %v11921_v55 = vcombine.low %v4260_v56, %v4264_v25  ;;  %v4296_v62 = vld [vmem:[%s13633_s24 + $0x138] sm:$0xff] }
 0x3d8   : > { %9196 = vmatprep.subr.bf16.mxu0 %v12652_v5  ;;  %v4271_v5 = vld [vmem:[%s13633_s24 + $0x70] sm:$0xff] }
 0x3d9   : > { %9513 = vmatpush1.bf16.msra.mxu1 %v12645_v47  ;;  %v4267_v47 = vld [vmem:[%s13633_s24 + $0x50] sm:$0xff] }
 0x3da   : > { %9514 = vmatprep.subr.bf16.mxu1 %v12654_v57  ;;  %v4268_v57 = vld [vmem:[%s13633_s24 + $0x58] sm:$0xff]  ;;  %v11928_v11 = vcombine.high %v4267_v47, %v4271_v5  ;;  %v11927_v38 = vcombine.low %v4267_v47, %v4271_v5 }
 0x3db   : > { %9197 = vmatpush1.bf16.msra.mxu0 %v12651_v16  ;;  %v11930_v16 = vcombine.high %v4268_v57, %v4272_v43  ;;  %v11929_v48 = vcombine.low %v4268_v57, %v4272_v43  ;;  %v4304_v47 = vld [vmem:[%s13633_s24 + $0x178] sm:$0xff] }
 0x3dc   : > { %9198 = vmatprep.subr.bf16.mxu0 %v12660_v12  ;;  %v4279_v12 = vld [vmem:[%s13633_s24 + $0xb0] sm:$0xff] }
 0x3dd   : > { %9515 = vmatpush1.bf16.msra.mxu1 %v12653_v0  ;;  %v4275_v0 = vld [vmem:[%s13633_s24 + $0x90] sm:$0xff] }
 0x3de   : > { %9516 = vmatprep.subr.bf16.mxu1 %v12662_v28  ;;  %v4276_v28 = vld [vmem:[%s13633_s24 + $0x98] sm:$0xff]  ;;  %v11936_v31 = vcombine.high %v4275_v0, %v4279_v12  ;;  %v11935_v41 = vcombine.low %v4275_v0, %v4279_v12 }
 0x3df   : > { %9199 = vmatpush1.bf16.msra.mxu0 %v12659_v26  ;;  %v11938_v26 = vcombine.high %v4276_v28, %v4280_v15  ;;  %v11937_v53 = vcombine.low %v4276_v28, %v4280_v15 }
 0x3e0   : > { %9200 = vmatprep.subr.bf16.mxu0 %v12668_v60  ;;  %v4287_v60 = vld [vmem:[%s13633_s24 + $0xf0] sm:$0xff] }
 0x3e1   : > { %9517 = vmatpush1.bf16.msra.mxu1 %v12661_v18  ;;  %v4283_v18 = vld [vmem:[%s13633_s24 + $0xd0] sm:$0xff] }
 0x3e2   : > { %9518 = vmatprep.subr.bf16.mxu1 %v12670_v17  ;;  %v4284_v17 = vld [vmem:[%s13633_s24 + $0xd8] sm:$0xff]  ;;  %v11944_v40 = vcombine.high %v4283_v18, %v4287_v60  ;;  %v11943_v36 = vcombine.low %v4283_v18, %v4287_v60 }
 0x3e3   : > { %9201 = vmatpush1.bf16.msra.mxu0 %v12667_v13  ;;  %v11946_v13 = vcombine.high %v4284_v17, %v4288_v2  ;;  %v11945_v56 = vcombine.low %v4284_v17, %v4288_v2 }
 0x3e4   : > { %9202 = vmatprep.subr.bf16.mxu0 %v12676_v49  ;;  %v4295_v49 = vld [vmem:[%s13633_s24 + $0x130] sm:$0xff] }
 0x3e5   : > { %9519 = vmatpush1.bf16.msra.mxu1 %v12669_v32  ;;  %v4291_v32 = vld [vmem:[%s13633_s24 + $0x110] sm:$0xff] }
 0x3e6   : > { %9520 = vmatprep.subr.bf16.mxu1 %v12678_v63  ;;  %v4292_v63 = vld [vmem:[%s13633_s24 + $0x118] sm:$0xff]  ;;  %v11952_v25 = vcombine.high %v4291_v32, %v4295_v49  ;;  %v11951_v5 = vcombine.low %v4291_v32, %v4295_v49 }
 0x3e7   : > { %9203 = vmatpush1.bf16.msra.mxu0 %v12675_v23  ;;  %v11954_v23 = vcombine.high %v4292_v63, %v4296_v62 }
 0x3e8   : > { %9543 = vmatprep.subr.bf16.mxu0 %v11920_v4  ;;  %v4303_v4 = vld [vmem:[%s13633_s24 + $0x170] sm:$0xff] }
 0x3e9   : > { %9521 = vmatpush1.bf16.msra.mxu1 %v12677_v21  ;;  %v4299_v21 = vld [vmem:[%s13633_s24 + $0x150] sm:$0xff] }
 0x3ea   : > { %9861 = vmatprep.subr.bf16.mxu1 %v11922_v39  ;;  %9205 = vmatmul.mubr.bf16.vlgmr.msra.gmra.mrb[32].mxu0 %v15148_v50  ;;  %v4300_v39 = vld [vmem:[%s13633_s24 + $0x158] sm:$0xff]  ;;  %v11960_v57 = vcombine.high %v4299_v21, %v4303_v4  ;;  %v11959_v0 = vcombine.low %v4299_v21, %v4303_v4 }
 0x3eb   : > { %9214 = vmatprep.mubr.bf16.mxu0 %v15152_v37  ;;  %9544 = vmatpush1.bf16.msra.mxu0 %v11919_v8  ;;  %v11962_v43 = vcombine.high %v4300_v39, %v4304_v47  ;;  %v4307_v8 = vld [vmem:[%s13633_s24 + $0x190] sm:$0xff]  ;;  %v11961_v12 = vcombine.low %v4300_v39, %v4304_v47 }
 0x3ec   : > { %9523 = vmatmul.mubr.bf16.vlgmr.msra.gmra.mrb[32].mxu1 %v15148_v50  ;;  %9545 = vmatprep.subr.bf16.mxu0 %v11928_v11  ;;  %v4308_v11 = vld [vmem:[%s13633_s24 + $0x198] sm:$0xff] }
 0x3ed   : > { %9532 = vmatprep.mubr.bf16.mxu1 %v15152_v37  ;;  %9862 = vmatpush1.bf16.msra.mxu1 %v11921_v55  ;;  %v4311_v55 = vld [vmem:[%s13633_s24 + $0x1b0] sm:$0xff] }
 0x3ee   : > { %9863 = vmatprep.subr.bf16.mxu1 %v11930_v16  ;;  %v4312_v16 = vld [vmem:[%s13633_s24 + $0x1b8] sm:$0xff]  ;;  %v11968_v28 = vcombine.high %v4307_v8, %v4311_v55  ;;  %v11967_v18 = vcombine.low %v4307_v8, %v4311_v55 }
 0x3ef   : > { %9546 = vmatpush1.bf16.msra.mxu0 %v11927_v38  ;;  %v11970_v15 = vcombine.high %v4308_v11, %v4312_v16  ;;  %v4315_v38 = vld [vmem:[%s13633_s24 + $0x1d0] sm:$0xff]  ;;  %v11969_v60 = vcombine.low %v4308_v11, %v4312_v16 }
 0x3f0   : > { %9547 = vmatprep.subr.bf16.mxu0 %v11936_v31  ;;  %v4316_v31 = vld [vmem:[%s13633_s24 + $0x1d8] sm:$0xff] }
 0x3f1   : > { %9864 = vmatpush1.bf16.msra.mxu1 %v11929_v48  ;;  %v4319_v48 = vld [vmem:[%s13633_s24 + $0x1f0] sm:$0xff] }
 0x3f2   : > { %9215 = vmatmul.mubr.bf16.gmra.mrb[36].mxu0 %v15162_v22  ;;  %9865 = vmatprep.subr.bf16.mxu1 %v11938_v26  ;;  %v4320_v26 = vld [vmem:[%s13633_s24 + $0x1f8] sm:$0xff]  ;;  %v11976_v17 = vcombine.high %v4315_v38, %v4319_v48  ;;  %v11975_v32 = vcombine.low %v4315_v38, %v4319_v48 }
 0x3f3   : > { %9575 = vmatprep.mubr.bf16.mxu0 %v14776_v44  ;;  %9548 = vmatpush1.bf16.msra.mxu0 %v11935_v41  ;;  %v11978_v2 = vcombine.high %v4316_v31, %v4320_v26  ;;  %v4323_v41 = vld [vmem:[%s13633_s24 + $0x210] sm:$0xff]  ;;  %v11977_v49 = vcombine.low %v4316_v31, %v4320_v26 }
 0x3f4   : > { %9533 = vmatmul.mubr.bf16.gmra.mrb[36].mxu1 %v15162_v22  ;;  %9549 = vmatprep.subr.bf16.mxu0 %v11944_v40  ;;  %v4324_v40 = vld [vmem:[%s13633_s24 + $0x218] sm:$0xff] }
 0x3f5   : > { %9893 = vmatprep.mubr.bf16.mxu1 %v14776_v44  ;;  %9866 = vmatpush1.bf16.msra.mxu1 %v11937_v53  ;;  %v11953_v44 = vcombine.low %v4292_v63, %v4296_v62  ;;  %v4327_v53 = vld [vmem:[%s13633_s24 + $0x230] sm:$0xff] }
 0x3f6   : > { %9867 = vmatprep.subr.bf16.mxu1 %v11946_v13  ;;  %v4328_v13 = vld [vmem:[%s13633_s24 + $0x238] sm:$0xff]  ;;  %v11984_v63 = vcombine.high %v4323_v41, %v4327_v53  ;;  %v11983_v21 = vcombine.low %v4323_v41, %v4327_v53 }
 0x3f7   : > { %9550 = vmatpush1.bf16.msra.mxu0 %v11943_v36  ;;  %v11986_v62 = vcombine.high %v4324_v40, %v4328_v13  ;;  %v4331_v36 = vld [vmem:[%s13633_s24 + $0x250] sm:$0xff]  ;;  %v11985_v4 = vcombine.low %v4324_v40, %v4328_v13 }
 0x3f8   : > { %9551 = vmatprep.subr.bf16.mxu0 %v11952_v25  ;;  %v4332_v25 = vld [vmem:[%s13633_s24 + $0x258] sm:$0xff] }
 0x3f9   : > { %9868 = vmatpush1.bf16.msra.mxu1 %v11945_v56  ;;  %v4335_v56 = vld [vmem:[%s13633_s24 + $0x270] sm:$0xff] }
 0x3fa   : > { %9869 = vmatprep.subr.bf16.mxu1 %v11954_v23  ;;  %v4336_v23 = vld [vmem:[%s13633_s24 + $0x278] sm:$0xff]  ;;  %v11992_v39 = vcombine.high %v4331_v36, %v4335_v56  ;;  %v11991_v8 = vcombine.low %v4331_v36, %v4335_v56 }
 0x3fb   : > { %9552 = vmatpush1.bf16.msra.mxu0 %v11951_v5  ;;  %v11994_v47 = vcombine.high %v4332_v25, %v4336_v23  ;;  %v4339_v5 = vld [vmem:[%s13633_s24 + $0x290] sm:$0xff]  ;;  %v11993_v55 = vcombine.low %v4332_v25, %v4336_v23 }
 0x3fc   : > { %9553 = vmatprep.subr.bf16.mxu0 %v11960_v57  ;;  %v4340_v57 = vld [vmem:[%s13633_s24 + $0x298] sm:$0xff] }
 0x3fd   : > { %9870 = vmatpush1.bf16.msra.mxu1 %v11953_v44  ;;  %v4343_v44 = vld [vmem:[%s13633_s24 + $0x2b0] sm:$0xff] }
 0x3fe   : > { %9871 = vmatprep.subr.bf16.mxu1 %v11962_v43  ;;  %v4344_v43 = vld [vmem:[%s13633_s24 + $0x2b8] sm:$0xff]  ;;  %v12000_v11 = vcombine.high %v4339_v5, %v4343_v44  ;;  %v11999_v38 = vcombine.low %v4339_v5, %v4343_v44 }
 0x3ff   : > { %9554 = vmatpush1.bf16.msra.mxu0 %v11959_v0  ;;  %v12002_v16 = vcombine.high %v4340_v57, %v4344_v43  ;;  %v4347_v0 = vld [vmem:[%s13633_s24 + $0x2d0] sm:$0xff]  ;;  %v12001_v48 = vcombine.low %v4340_v57, %v4344_v43 }
 0x400   : > { %9555 = vmatprep.subr.bf16.mxu0 %v11968_v28  ;;  %v4348_v28 = vld [vmem:[%s13633_s24 + $0x2d8] sm:$0xff] }
 0x401   : > { %9872 = vmatpush1.bf16.msra.mxu1 %v11961_v12  ;;  %v4351_v12 = vld [vmem:[%s13633_s24 + $0x2f0] sm:$0xff] }
 0x402   : > { %9873 = vmatprep.subr.bf16.mxu1 %v11970_v15  ;;  %v4352_v15 = vld [vmem:[%s13633_s24 + $0x2f8] sm:$0xff]  ;;  %v12008_v31 = vcombine.high %v4347_v0, %v4351_v12  ;;  %v12007_v41 = vcombine.low %v4347_v0, %v4351_v12 }
 0x403   : > { %9556 = vmatpush1.bf16.msra.mxu0 %v11967_v18  ;;  %v12010_v26 = vcombine.high %v4348_v28, %v4352_v15  ;;  %v4355_v18 = vld [vmem:[%s13633_s24 + $0x310] sm:$0xff]  ;;  %v12009_v53 = vcombine.low %v4348_v28, %v4352_v15 }
 0x404   : > { %9557 = vmatprep.subr.bf16.mxu0 %v11976_v17  ;;  %v4356_v17 = vld [vmem:[%s13633_s24 + $0x318] sm:$0xff] }
 0x405   : > { %9874 = vmatpush1.bf16.msra.mxu1 %v11969_v60  ;;  %v4359_v60 = vld [vmem:[%s13633_s24 + $0x330] sm:$0xff] }
 0x406   : > { %9875 = vmatprep.subr.bf16.mxu1 %v11978_v2  ;;  %v4360_v2 = vld [vmem:[%s13633_s24 + $0x338] sm:$0xff]  ;;  %v12016_v40 = vcombine.high %v4355_v18, %v4359_v60  ;;  %v12015_v36 = vcombine.low %v4355_v18, %v4359_v60 }
 0x407   : > { %9558 = vmatpush1.bf16.msra.mxu0 %v11975_v32  ;;  %v12018_v13 = vcombine.high %v4356_v17, %v4360_v2  ;;  %v4363_v32 = vld [vmem:[%s13633_s24 + $0x350] sm:$0xff]  ;;  %v12017_v56 = vcombine.low %v4356_v17, %v4360_v2 }
 0x408   : > { %9559 = vmatprep.subr.bf16.mxu0 %v11984_v63  ;;  %v4364_v63 = vld [vmem:[%s13633_s24 + $0x358] sm:$0xff] }
 0x409   : > { %9876 = vmatpush1.bf16.msra.mxu1 %v11977_v49  ;;  %v4367_v49 = vld [vmem:[%s13633_s24 + $0x370] sm:$0xff] }
 0x40a   : > { %9877 = vmatprep.subr.bf16.mxu1 %v11986_v62  ;;  %v4368_v62 = vld [vmem:[%s13633_s24 + $0x378] sm:$0xff]  ;;  %v12024_v25 = vcombine.high %v4363_v32, %v4367_v49  ;;  %v12023_v5 = vcombine.low %v4363_v32, %v4367_v49 }
 0x40b   : > { %9560 = vmatpush1.bf16.msra.mxu0 %v11983_v21  ;;  %v12026_v23 = vcombine.high %v4364_v63, %v4368_v62  ;;  %v4371_v21 = vld [vmem:[%s13633_s24 + $0x390] sm:$0xff]  ;;  %v12025_v44 = vcombine.low %v4364_v63, %v4368_v62 }
 0x40c   : > { %9561 = vmatprep.subr.bf16.mxu0 %v11992_v39  ;;  %v4372_v39 = vld [vmem:[%s13633_s24 + $0x398] sm:$0xff] }
 0x40d   : > { %9878 = vmatpush1.bf16.msra.mxu1 %v11985_v4  ;;  %v4375_v4 = vld [vmem:[%s13633_s24 + $0x3b0] sm:$0xff] }
 0x40e   : > { %9879 = vmatprep.subr.bf16.mxu1 %v11994_v47  ;;  %v4376_v47 = vld [vmem:[%s13633_s24 + $0x3b8] sm:$0xff]  ;;  %v12032_v57 = vcombine.high %v4371_v21, %v4375_v4  ;;  %v12031_v0 = vcombine.low %v4371_v21, %v4375_v4 }
 0x40f   : > { %9562 = vmatpush1.bf16.msra.mxu0 %v11991_v8  ;;  %v12034_v43 = vcombine.high %v4372_v39, %v4376_v47  ;;  %v4379_v8 = vld [vmem:[%s13633_s24 + $0x3d0] sm:$0xff]  ;;  %v12033_v12 = vcombine.low %v4372_v39, %v4376_v47 }
 0x410   : > { %9563 = vmatprep.subr.bf16.mxu0 %v12000_v11  ;;  %v4380_v11 = vld [vmem:[%s13633_s24 + $0x3d8] sm:$0xff] }
 0x411   : > { %9880 = vmatpush1.bf16.msra.mxu1 %v11993_v55  ;;  %v4383_v55 = vld [vmem:[%s13633_s24 + $0x3f0] sm:$0xff] }
 0x412   : > { %9881 = vmatprep.subr.bf16.mxu1 %v12002_v16  ;;  %v4384_v16 = vld [vmem:[%s13633_s24 + $0x3f8] sm:$0xff]  ;;  %v12040_v28 = vcombine.high %v4379_v8, %v4383_v55  ;;  %v12039_v18 = vcombine.low %v4379_v8, %v4383_v55 }
 0x413   : > { %9564 = vmatpush1.bf16.msra.mxu0 %v11999_v38  ;;  %v12042_v15 = vcombine.high %v4380_v11, %v4384_v16  ;;  %v4387_v38 = vld [vmem:[%s13633_s24 + $0x410] sm:$0xff]  ;;  %v12041_v60 = vcombine.low %v4380_v11, %v4384_v16 }
 0x414   : > { %9565 = vmatprep.subr.bf16.mxu0 %v12008_v31  ;;  %v4388_v31 = vld [vmem:[%s13633_s24 + $0x418] sm:$0xff]  ;;  %v4419_v11 = vld [vmem:[%s13633_s24 + $0x510] sm:$0xff] }
 0x415   : > { %9882 = vmatpush1.bf16.msra.mxu1 %v12001_v48  ;;  %v4391_v48 = vld [vmem:[%s13633_s24 + $0x430] sm:$0xff] }
 0x416   : > { %9883 = vmatprep.subr.bf16.mxu1 %v12010_v26  ;;  %v4392_v26 = vld [vmem:[%s13633_s24 + $0x438] sm:$0xff]  ;;  %v12048_v17 = vcombine.high %v4387_v38, %v4391_v48  ;;  %v12047_v32 = vcombine.low %v4387_v38, %v4391_v48  ;;  %v4423_v16 = vld [vmem:[%s13633_s24 + $0x530] sm:$0xff] }
 0x417   : > { %9566 = vmatpush1.bf16.msra.mxu0 %v12007_v41  ;;  %v12050_v2 = vcombine.high %v4388_v31, %v4392_v26  ;;  %v4395_v41 = vld [vmem:[%s13633_s24 + $0x450] sm:$0xff]  ;;  %v12049_v49 = vcombine.low %v4388_v31, %v4392_v26  ;;  %v12080_v38 = vcombine.high %v4419_v11, %v4423_v16  ;;  %v4428_v26 = vld [vmem:[%s13633_s24 + $0x558] sm:$0xff] }
 0x418   : > { %9567 = vmatprep.subr.bf16.mxu0 %v12016_v40  ;;  %v4396_v40 = vld [vmem:[%s13633_s24 + $0x458] sm:$0xff]  ;;  %v4431_v31 = vld [vmem:[%s13633_s24 + $0x570] sm:$0xff] }
 0x419   : > { %9884 = vmatpush1.bf16.msra.mxu1 %v12009_v53  ;;  %v4399_v53 = vld [vmem:[%s13633_s24 + $0x470] sm:$0xff] }
 0x41a   : > { %9885 = vmatprep.subr.bf16.mxu1 %v12018_v13  ;;  %v4400_v13 = vld [vmem:[%s13633_s24 + $0x478] sm:$0xff]  ;;  %v12056_v63 = vcombine.high %v4395_v41, %v4399_v53  ;;  %v12055_v21 = vcombine.low %v4395_v41, %v4399_v53  ;;  %v4435_v41 = vld [vmem:[%s13633_s24 + $0x590] sm:$0xff] }
 0x41b   : > { %9568 = vmatpush1.bf16.msra.mxu0 %v12015_v36  ;;  %v12058_v62 = vcombine.high %v4396_v40, %v4400_v13  ;;  %v4403_v36 = vld [vmem:[%s13633_s24 + $0x490] sm:$0xff]  ;;  %v12057_v4 = vcombine.low %v4396_v40, %v4400_v13  ;;  %v4436_v40 = vld [vmem:[%s13633_s24 + $0x598] sm:$0xff] }
 0x41c   : > { %9569 = vmatprep.subr.bf16.mxu0 %v12024_v25  ;;  %v4404_v25 = vld [vmem:[%s13633_s24 + $0x498] sm:$0xff]  ;;  %v4439_v53 = vld [vmem:[%s13633_s24 + $0x5b0] sm:$0xff] }
 0x41d   : > { %9886 = vmatpush1.bf16.msra.mxu1 %v12017_v56  ;;  %v4407_v56 = vld [vmem:[%s13633_s24 + $0x4b0] sm:$0xff]  ;;  %v4440_v13 = vld [vmem:[%s13633_s24 + $0x5b8] sm:$0xff] }
 0x41e   : > { %9887 = vmatprep.subr.bf16.mxu1 %v12026_v23  ;;  %v4408_v23 = vld [vmem:[%s13633_s24 + $0x4b8] sm:$0xff]  ;;  %v12064_v39 = vcombine.high %v4403_v36, %v4407_v56 }
 0x41f   : > { %9570 = vmatpush1.bf16.msra.mxu0 %v12023_v5  ;;  %v12066_v47 = vcombine.high %v4404_v25, %v4408_v23  ;;  %v4411_v5 = vld [vmem:[%s13633_s24 + $0x4d0] sm:$0xff] }
 0x420   : > { %9571 = vmatprep.subr.bf16.mxu0 %v12032_v57  ;;  %v4416_v57 = vld [vmem:[%s13633_s24 + $0x4f8] sm:$0xff] }
 0x421   : > { %9888 = vmatpush1.bf16.msra.mxu1 %v12025_v44  ;;  %v4415_v44 = vld [vmem:[%s13633_s24 + $0x4f0] sm:$0xff] }
 0x422   : > { %9889 = vmatprep.subr.bf16.mxu1 %v12034_v43  ;;  %v12063_v43 = vcombine.low %v4403_v36, %v4407_v56  ;;  %v12072_v8 = vcombine.high %v4411_v5, %v4415_v44  ;;  %v4443_v36 = vld [vmem:[%s13633_s24 + $0x5d0] sm:$0xff] }
 0x423   : > { %9572 = vmatpush1.bf16.msra.mxu0 %v12031_v0  ;;  %v4420_v0 = vld [vmem:[%s13633_s24 + $0x518] sm:$0xff]  ;;  %v4447_v56 = vld [vmem:[%s13633_s24 + $0x5f0] sm:$0xff] }
 0x424   : > { %9573 = vmatprep.subr.bf16.mxu0 %v12040_v28  ;;  %v12071_v28 = vcombine.low %v4411_v5, %v4415_v44  ;;  %v4451_v5 = vld [vmem:[%s13633_s24 + $0x610] sm:$0xff] }
 0x425   : > { %9890 = vmatpush1.bf16.msra.mxu1 %v12033_v12  ;;  %v4424_v12 = vld [vmem:[%s13633_s24 + $0x538] sm:$0xff]  ;;  %v4455_v44 = vld [vmem:[%s13633_s24 + $0x630] sm:$0xff] }
 0x426   : > { %9891 = vmatprep.subr.bf16.mxu1 %v12042_v15  ;;  %v12082_v48 = vcombine.high %v4420_v0, %v4424_v12 }
 0x427   : > { %9574 = vmatpush1.bf16.msra.mxu0 %v12039_v18  ;;  %v4432_v18 = vld [vmem:[%s13633_s24 + $0x578] sm:$0xff] }
 0x428   : > { %9596 = vmatprep.subr.bf16.mxu0 %v12048_v17 }
 0x429   : > { %9892 = vmatpush1.bf16.msra.mxu1 %v12041_v60  ;;  %v12079_v60 = vcombine.low %v4419_v11, %v4423_v16  ;;  %v4459_v11 = vld [vmem:[%s13633_s24 + $0x650] sm:$0xff] }
 0x42a   : > { %9914 = vmatprep.subr.bf16.mxu1 %v12050_v2  ;;  %9576 = vmatmul.mubr.bf16.vlgmr.msra.gmra.mrb[40].mxu0 %v14853_v3  ;;  %v12090_v2 = vcombine.high %v4428_v26, %v4432_v18  ;;  %v4463_v16 = vld [vmem:[%s13633_s24 + $0x670] sm:$0xff] }
 0x42b   : > { %9585 = vmatprep.mubr.bf16.mxu0 %v14919_v42  ;;  %9597 = vmatpush1.bf16.msra.mxu0 %v12047_v32 }
 0x42c   : > { %9894 = vmatmul.mubr.bf16.vlgmr.msra.gmra.mrb[40].mxu1 %v14853_v3  ;;  %9598 = vmatprep.subr.bf16.mxu0 %v12056_v63  ;;  %v4412_v3 = vld [vmem:[%s13633_s24 + $0x4d8] sm:$0xff]  ;;  %v12096_v63 = vcombine.high %v4435_v41, %v4439_v53 }
 0x42d   : > { %9903 = vmatprep.mubr.bf16.mxu1 %v14919_v42  ;;  %9915 = vmatpush1.bf16.msra.mxu1 %v12049_v49  ;;  %v12065_v42 = vcombine.low %v4404_v25, %v4408_v23  ;;  %v12074_v55 = vcombine.high %v4412_v3, %v4416_v57  ;;  %v12073_v15 = vcombine.low %v4412_v3, %v4416_v57  ;;  %v4444_v25 = vld [vmem:[%s13633_s24 + $0x5d8] sm:$0xff] }
 0x42e   : > { %9916 = vmatprep.subr.bf16.mxu1 %v12058_v62  ;;  %v12089_v49 = vcombine.low %v4428_v26, %v4432_v18  ;;  %v12098_v62 = vcombine.high %v4436_v40, %v4440_v13  ;;  %v4448_v23 = vld [vmem:[%s13633_s24 + $0x5f8] sm:$0xff] }
 0x42f   : > { %9599 = vmatpush1.bf16.msra.mxu0 %v12055_v21  ;;  %v12095_v21 = vcombine.low %v4435_v41, %v4439_v53  ;;  %v4452_v3 = vld [vmem:[%s13633_s24 + $0x618] sm:$0xff]  ;;  %v4475_v41 = vld [vmem:[%s13633_s24 + $0x6d0] sm:$0xff] }
 0x430   : > { %9600 = vmatprep.subr.bf16.mxu0 %v12064_v39  ;;  %v12104_v39 = vcombine.high %v4443_v36, %v4447_v56  ;;  %v4456_v57 = vld [vmem:[%s13633_s24 + $0x638] sm:$0xff]  ;;  %v4479_v53 = vld [vmem:[%s13633_s24 + $0x6f0] sm:$0xff] }
 0x431   : > { %9917 = vmatpush1.bf16.msra.mxu1 %v12057_v4  ;;  %v12097_v4 = vcombine.low %v4436_v40, %v4440_v13  ;;  %v4468_v26 = vld [vmem:[%s13633_s24 + $0x698] sm:$0xff] }
 0x432   : > { %9586 = vmatmul.mubr.bf16.gmra.mrb[44].mxu0 %v14930_v45  ;;  %9918 = vmatprep.subr.bf16.mxu1 %v12066_v47  ;;  %v12106_v47 = vcombine.high %v4444_v25, %v4448_v23  ;;  %v4472_v18 = vld [vmem:[%s13633_s24 + $0x6b8] sm:$0xff] }
 0x433   : > { %9628 = vmatprep.mubr.bf16.mxu0 %v14937_v30  ;;  %9601 = vmatpush1.bf16.msra.mxu0 %v12063_v43  ;;  %v12103_v43 = vcombine.low %v4443_v36, %v4447_v56  ;;  %v4476_v40 = vld [vmem:[%s13633_s24 + $0x6d8] sm:$0xff]  ;;  %v4483_v36 = vld [vmem:[%s13633_s24 + $0x710] sm:$0xff] }
 0x434   : > { %9904 = vmatmul.mubr.bf16.gmra.mrb[44].mxu1 %v14930_v45  ;;  %9602 = vmatprep.subr.bf16.mxu0 %v12072_v8  ;;  %v4427_v45 = vld [vmem:[%s13633_s24 + $0x550] sm:$0xff]  ;;  %v12112_v8 = vcombine.high %v4451_v5, %v4455_v44  ;;  %v4480_v13 = vld [vmem:[%s13633_s24 + $0x6f8] sm:$0xff] }
 0x435   : > { %9946 = vmatprep.mubr.bf16.mxu1 %v14937_v30  ;;  %9919 = vmatpush1.bf16.msra.mxu1 %v12065_v42  ;;  %v12081_v30 = vcombine.low %v4420_v0, %v4424_v12  ;;  %v12088_v17 = vcombine.high %v4427_v45, %v4431_v31  ;;  %v12087_v32 = vcombine.low %v4427_v45, %v4431_v31  ;;  %v4460_v0 = vld [vmem:[%s13633_s24 + $0x658] sm:$0xff]  ;;  %v4467_v45 = vld [vmem:[%s13633_s24 + $0x690] sm:$0xff] }
 0x436   : > { %9920 = vmatprep.subr.bf16.mxu1 %v12074_v55  ;;  %v12105_v42 = vcombine.low %v4444_v25, %v4448_v23  ;;  %v12114_v55 = vcombine.high %v4452_v3, %v4456_v57  ;;  %v4464_v12 = vld [vmem:[%s13633_s24 + $0x678] sm:$0xff]  ;;  %v4471_v31 = vld [vmem:[%s13633_s24 + $0x6b0] sm:$0xff] }
 0x437   : > { %9603 = vmatpush1.bf16.msra.mxu0 %v12071_v28  ;;  %v12111_v28 = vcombine.low %v4451_v5, %v4455_v44  ;;  %v4487_v56 = vld [vmem:[%s13633_s24 + $0x730] sm:$0xff]  ;;  %v4484_v25 = vld [vmem:[%s13633_s24 + $0x718] sm:$0xff] }
 0x438   : > { %9604 = vmatprep.subr.bf16.mxu0 %v12080_v38  ;;  %v12120_v38 = vcombine.high %v4459_v11, %v4463_v16  ;;  %v4488_v23 = vld [vmem:[%s13633_s24 + $0x738] sm:$0xff]  ;;  %v4491_v5 = vld [vmem:[%s13633_s24 + $0x750] sm:$0xff] }
 0x439   : > { %9921 = vmatpush1.bf16.msra.mxu1 %v12073_v15  ;;  %v12113_v15 = vcombine.low %v4452_v3, %v4456_v57  ;;  %v4495_v44 = vld [vmem:[%s13633_s24 + $0x770] sm:$0xff]  ;;  %v4492_v3 = vld [vmem:[%s13633_s24 + $0x758] sm:$0xff] }
 0x43a   : > { %9922 = vmatprep.subr.bf16.mxu1 %v12082_v48  ;;  %v12122_v48 = vcombine.high %v4460_v0, %v4464_v12  ;;  %v4496_v57 = vld [vmem:[%s13633_s24 + $0x778] sm:$0xff] }
 0x43b   : > { %9605 = vmatpush1.bf16.msra.mxu0 %v12079_v60  ;;  %v12119_v60 = vcombine.low %v4459_v11, %v4463_v16  ;;  %v4499_v11 = vld [vmem:[%s13633_s24 + $0x790] sm:$0xff] }
 0x43c   : > { %9606 = vmatprep.subr.bf16.mxu0 %v12088_v17  ;;  %v12128_v17 = vcombine.high %v4467_v45, %v4471_v31  ;;  %v4503_v16 = vld [vmem:[%s13633_s24 + $0x7b0] sm:$0xff] }
 0x43d   : > { %9923 = vmatpush1.bf16.msra.mxu1 %v12081_v30  ;;  %v12121_v30 = vcombine.low %v4460_v0, %v4464_v12  ;;  %v4500_v0 = vld [vmem:[%s13633_s24 + $0x798] sm:$0xff] }
 0x43e   : > { %9924 = vmatprep.subr.bf16.mxu1 %v12090_v2  ;;  %v12130_v2 = vcombine.high %v4468_v26, %v4472_v18  ;;  %v4504_v12 = vld [vmem:[%s13633_s24 + $0x7b8] sm:$0xff] }
 0x43f   : > { %9607 = vmatpush1.bf16.msra.mxu0 %v12087_v32  ;;  %v12127_v32 = vcombine.low %v4467_v45, %v4471_v31  ;;  %v4507_v45 = vld [vmem:[%s13633_s24 + $0x7d0] sm:$0xff] }
 0x440   : > { %9608 = vmatprep.subr.bf16.mxu0 %v12096_v63  ;;  %v12136_v63 = vcombine.high %v4475_v41, %v4479_v53  ;;  %v4511_v31 = vld [vmem:[%s13633_s24 + $0x7f0] sm:$0xff] }
 0x441   : > { %9925 = vmatpush1.bf16.msra.mxu1 %v12089_v49  ;;  %v12129_v49 = vcombine.low %v4468_v26, %v4472_v18  ;;  %v4508_v26 = vld [vmem:[%s13633_s24 + $0x7d8] sm:$0xff] }
 0x442   : > { %9926 = vmatprep.subr.bf16.mxu1 %v12098_v62  ;;  %v12138_v62 = vcombine.high %v4476_v40, %v4480_v13  ;;  %v4512_v18 = vld [vmem:[%s13633_s24 + $0x7f8] sm:$0xff] }
 0x443   : > { %9609 = vmatpush1.bf16.msra.mxu0 %v12095_v21  ;;  %v12135_v21 = vcombine.low %v4475_v41, %v4479_v53  ;;  %v4515_v41 = vld [vmem:[%s13633_s24 + $0x810] sm:$0xff] }
 0x444   : > { %9610 = vmatprep.subr.bf16.mxu0 %v12104_v39  ;;  %v12144_v39 = vcombine.high %v4483_v36, %v4487_v56  ;;  %v4519_v53 = vld [vmem:[%s13633_s24 + $0x830] sm:$0xff] }
 0x445   : > { %9927 = vmatpush1.bf16.msra.mxu1 %v12097_v4  ;;  %v12137_v4 = vcombine.low %v4476_v40, %v4480_v13  ;;  %v4516_v40 = vld [vmem:[%s13633_s24 + $0x818] sm:$0xff] }
 0x446   : > { %9928 = vmatprep.subr.bf16.mxu1 %v12106_v47  ;;  %v12146_v47 = vcombine.high %v4484_v25, %v4488_v23  ;;  %v4520_v13 = vld [vmem:[%s13633_s24 + $0x838] sm:$0xff] }
 0x447   : > { %9611 = vmatpush1.bf16.msra.mxu0 %v12103_v43  ;;  %v12143_v43 = vcombine.low %v4483_v36, %v4487_v56  ;;  %v4523_v36 = vld [vmem:[%s13633_s24 + $0x850] sm:$0xff] }
 0x448   : > { %9612 = vmatprep.subr.bf16.mxu0 %v12112_v8  ;;  %v12152_v8 = vcombine.high %v4491_v5, %v4495_v44  ;;  %v4527_v56 = vld [vmem:[%s13633_s24 + $0x870] sm:$0xff] }
 0x449   : > { %9929 = vmatpush1.bf16.msra.mxu1 %v12105_v42  ;;  %v12145_v42 = vcombine.low %v4484_v25, %v4488_v23  ;;  %v4524_v25 = vld [vmem:[%s13633_s24 + $0x858] sm:$0xff] }
 0x44a   : > { %9930 = vmatprep.subr.bf16.mxu1 %v12114_v55  ;;  %v12154_v55 = vcombine.high %v4492_v3, %v4496_v57  ;;  %v4528_v23 = vld [vmem:[%s13633_s24 + $0x878] sm:$0xff] }
 0x44b   : > { %9613 = vmatpush1.bf16.msra.mxu0 %v12111_v28  ;;  %v12151_v28 = vcombine.low %v4491_v5, %v4495_v44  ;;  %v4531_v5 = vld [vmem:[%s13633_s24 + $0x890] sm:$0xff] }
 0x44c   : > { %9614 = vmatprep.subr.bf16.mxu0 %v12120_v38  ;;  %v12160_v38 = vcombine.high %v4499_v11, %v4503_v16  ;;  %v4535_v44 = vld [vmem:[%s13633_s24 + $0x8b0] sm:$0xff] }
 0x44d   : > { %9931 = vmatpush1.bf16.msra.mxu1 %v12113_v15  ;;  %v12153_v15 = vcombine.low %v4492_v3, %v4496_v57  ;;  %v4532_v3 = vld [vmem:[%s13633_s24 + $0x898] sm:$0xff] }
 0x44e   : > { %9932 = vmatprep.subr.bf16.mxu1 %v12122_v48  ;;  %v12162_v48 = vcombine.high %v4500_v0, %v4504_v12  ;;  %v4536_v57 = vld [vmem:[%s13633_s24 + $0x8b8] sm:$0xff] }
 0x44f   : > { %9615 = vmatpush1.bf16.msra.mxu0 %v12119_v60  ;;  %v12159_v60 = vcombine.low %v4499_v11, %v4503_v16  ;;  %v4539_v11 = vld [vmem:[%s13633_s24 + $0x8d0] sm:$0xff] }
 0x450   : > { %9616 = vmatprep.subr.bf16.mxu0 %v12128_v17  ;;  %v12168_v17 = vcombine.high %v4507_v45, %v4511_v31  ;;  %v4543_v16 = vld [vmem:[%s13633_s24 + $0x8f0] sm:$0xff] }
 0x451   : > { %9933 = vmatpush1.bf16.msra.mxu1 %v12121_v30  ;;  %v12161_v30 = vcombine.low %v4500_v0, %v4504_v12  ;;  %v4544_v0 = vld [vmem:[%s13633_s24 + $0x8f8] sm:$0xff]  ;;  %v12191_v12 = vcombine.low %v4531_v5, %v4535_v44 }
 0x452   : > { %9934 = vmatprep.subr.bf16.mxu1 %v12130_v2  ;;  %v12170_v2 = vcombine.high %v4508_v26, %v4512_v18 }
 0x453   : > { %9617 = vmatpush1.bf16.msra.mxu0 %v12127_v32  ;;  %v12167_v32 = vcombine.low %v4507_v45, %v4511_v31  ;;  %v4548_v45 = vld [vmem:[%s13633_s24 + $0x918] sm:$0xff] }
 0x454   : > { %9618 = vmatprep.subr.bf16.mxu0 %v12136_v63  ;;  %v12176_v63 = vcombine.high %v4515_v41, %v4519_v53  ;;  %v4552_v31 = vld [vmem:[%s13633_s24 + $0x938] sm:$0xff] }
 0x455   : > { %9935 = vmatpush1.bf16.msra.mxu1 %v12129_v49  ;;  %v12169_v49 = vcombine.low %v4508_v26, %v4512_v18  ;;  %v12199_v26 = vcombine.low %v4539_v11, %v4543_v16 }
 0x456   : > { %9936 = vmatprep.subr.bf16.mxu1 %v12138_v62  ;;  %v12178_v62 = vcombine.high %v4516_v40, %v4520_v13 }
 0x457   : > { %9619 = vmatpush1.bf16.msra.mxu0 %v12135_v21  ;;  %v12175_v21 = vcombine.low %v4515_v41, %v4519_v53  ;;  %v4560_v41 = vld [vmem:[%s13633_s24 + $0x978] sm:$0xff] }
 0x458   : > { %9620 = vmatprep.subr.bf16.mxu0 %v12144_v39  ;;  %v12184_v39 = vcombine.high %v4523_v36, %v4527_v56 }
 0x459   : > { %9937 = vmatpush1.bf16.msra.mxu1 %v12137_v4  ;;  %v12177_v4 = vcombine.low %v4516_v40, %v4520_v13 }
 0x45a   : > { %9938 = vmatprep.subr.bf16.mxu1 %v12146_v47  ;;  %v12186_v47 = vcombine.high %v4524_v25, %v4528_v23 }
 0x45b   : > { %9621 = vmatpush1.bf16.msra.mxu0 %v12143_v43  ;;  %v12183_v43 = vcombine.low %v4523_v36, %v4527_v56 }
 0x45c   : > { %9622 = vmatprep.subr.bf16.mxu0 %v12152_v8  ;;  %v12192_v8 = vcombine.high %v4531_v5, %v4535_v44 }
 0x45d   : > { %9939 = vmatpush1.bf16.msra.mxu1 %v12145_v42  ;;  %v12185_v42 = vcombine.low %v4524_v25, %v4528_v23 }
 0x45e   : > { %9940 = vmatprep.subr.bf16.mxu1 %v12154_v55  ;;  %v12194_v55 = vcombine.high %v4532_v3, %v4536_v57 }
 0x45f   : > { %9623 = vmatpush1.bf16.msra.mxu0 %v12151_v28  ;;  %v12200_v28 = vcombine.high %v4539_v11, %v4543_v16 }
 0x460   : > { %9624 = vmatprep.subr.bf16.mxu0 %v12160_v38  ;;  %v4547_v38 = vld [vmem:[%s13633_s24 + $0x910] sm:$0xff] }
 0x461   : > { %9941 = vmatpush1.bf16.msra.mxu1 %v12153_v15 }
 0x462   : > { %9942 = vmatprep.subr.bf16.mxu1 %v12162_v48  ;;  %v4551_v48 = vld [vmem:[%s13633_s24 + $0x930] sm:$0xff] }
 0x463   : > { %9625 = vmatpush1.bf16.msra.mxu0 %v12159_v60  ;;  %v12208_v60 = vcombine.high %v4547_v38, %v4551_v48  ;;  %v12207_v53 = vcombine.low %v4547_v38, %v4551_v48 }
 0x464   : > { %9626 = vmatprep.subr.bf16.mxu0 %v12168_v17  ;;  %v4559_v17 = vld [vmem:[%s13633_s24 + $0x970] sm:$0xff] }
 0x465   : > { %9943 = vmatpush1.bf16.msra.mxu1 %v12161_v30  ;;  %v12210_v30 = vcombine.high %v4548_v45, %v4552_v31 }
 0x466   : > { %9944 = vmatprep.subr.bf16.mxu1 %v12170_v2  ;;  %v4556_v2 = vld [vmem:[%s13633_s24 + $0x958] sm:$0xff] }
 0x467   : > { %9627 = vmatpush1.bf16.msra.mxu0 %v12167_v32  ;;  %v12218_v13 = vcombine.high %v4556_v2, %v4560_v41  ;;  %v4563_v32 = vld [vmem:[%s13633_s24 + $0x990] sm:$0xff]  ;;  %v12217_v56 = vcombine.low %v4556_v2, %v4560_v41 }
 0x468   : > { %9649 = vmatprep.subr.bf16.mxu0 %v12176_v63  ;;  %v4564_v63 = vld [vmem:[%s13633_s24 + $0x998] sm:$0xff] }
 0x469   : > { %9945 = vmatpush1.bf16.msra.mxu1 %v12169_v49  ;;  %v4567_v49 = vld [vmem:[%s13633_s24 + $0x9b0] sm:$0xff] }
 0x46a   : > { %9967 = vmatprep.subr.bf16.mxu1 %v12178_v62  ;;  %9629 = vmatmul.mubr.bf16.vlgmr.msra.gmra.mrb[40].mxu0 %v15040_v20  ;;  %v4568_v62 = vld [vmem:[%s13633_s24 + $0x9b8] sm:$0xff]  ;;  %v12224_v25 = vcombine.high %v4563_v32, %v4567_v49  ;;  %v12223_v5 = vcombine.low %v4563_v32, %v4567_v49 }
 0x46b   : > { %9638 = vmatprep.mubr.bf16.mxu0 %v15048_v10  ;;  %9650 = vmatpush1.bf16.msra.mxu0 %v12175_v21  ;;  %v12226_v23 = vcombine.high %v4564_v63, %v4568_v62  ;;  %v4571_v21 = vld [vmem:[%s13633_s24 + $0x9d0] sm:$0xff]  ;;  %v12225_v44 = vcombine.low %v4564_v63, %v4568_v62 }
 0x46c   : > { %9947 = vmatmul.mubr.bf16.vlgmr.msra.gmra.mrb[40].mxu1 %v15040_v20  ;;  %9651 = vmatprep.subr.bf16.mxu0 %v12184_v39  ;;  %v4540_v20 = vld [vmem:[%s13633_s24 + $0x8d8] sm:$0xff] }
 0x46d   : > { %9956 = vmatprep.mubr.bf16.mxu1 %v15048_v10  ;;  %9968 = vmatpush1.bf16.msra.mxu1 %v12177_v4  ;;  %v12193_v10 = vcombine.low %v4532_v3, %v4536_v57  ;;  %v12202_v15 = vcombine.high %v4540_v20, %v4544_v0  ;;  %v12201_v18 = vcombine.low %v4540_v20, %v4544_v0  ;;  %v4575_v4 = vld [vmem:[%s13633_s24 + $0x9f0] sm:$0xff]  ;;  %v4572_v39 = vld [vmem:[%s13633_s24 + $0x9d8] sm:$0xff] }
 0x46e   : > { %9969 = vmatprep.subr.bf16.mxu1 %v12186_v47  ;;  %v4576_v47 = vld [vmem:[%s13633_s24 + $0x9f8] sm:$0xff]  ;;  %v12232_v3 = vcombine.high %v4571_v21, %v4575_v4  ;;  %v12231_v11 = vcombine.low %v4571_v21, %v4575_v4 }
 0x46f   : > { %9652 = vmatpush1.bf16.msra.mxu0 %v12183_v43  ;;  %v12234_v57 = vcombine.high %v4572_v39, %v4576_v47  ;;  %v4579_v43 = vld [vmem:[%s13633_s24 + $0xa10] sm:$0xff]  ;;  %v12233_v16 = vcombine.low %v4572_v39, %v4576_v47 }
 0x470   : > { %9653 = vmatprep.subr.bf16.mxu0 %v12192_v8  ;;  %v4580_v8 = vld [vmem:[%s13633_s24 + $0xa18] sm:$0xff] }
 0x471   : > { %9970 = vmatpush1.bf16.msra.mxu1 %v12185_v42  ;;  %v4583_v42 = vld [vmem:[%s13633_s24 + $0xa30] sm:$0xff] }
 0x472   : > { %9639 = vmatmul.mubr.bf16.gmra.mrb[44].mxu0 %v15088_v1  ;;  %9971 = vmatprep.subr.bf16.mxu1 %v12194_v55  ;;  %v4584_v55 = vld [vmem:[%s13633_s24 + $0xa38] sm:$0xff]  ;;  %v12240_v20 = vcombine.high %v4579_v43, %v4583_v42  ;;  %v12239_v38 = vcombine.low %v4579_v43, %v4583_v42 }
 0x473   : > { %9681 = vmatprep.mubr.bf16.mxu0 %v15118_v27  ;;  %9654 = vmatpush1.bf16.msra.mxu0 %v12191_v12  ;;  %v12242_v0 = vcombine.high %v4580_v8, %v4584_v55  ;;  %v4587_v12 = vld [vmem:[%s13633_s24 + $0xa50] sm:$0xff]  ;;  %v12241_v48 = vcombine.low %v4580_v8, %v4584_v55 }
 0x474   : > { %9957 = vmatmul.mubr.bf16.gmra.mrb[44].mxu1 %v15088_v1  ;;  %9655 = vmatprep.subr.bf16.mxu0 %v12200_v28  ;;  %v4555_v1 = vld [vmem:[%s13633_s24 + $0x950] sm:$0xff]  ;;  %v4588_v28 = vld [vmem:[%s13633_s24 + $0xa58] sm:$0xff] }
 0x475   : > { %9999 = vmatprep.mubr.bf16.mxu1 %v15118_v27  ;;  %9972 = vmatpush1.bf16.msra.mxu1 %v12193_v10  ;;  %v12209_v27 = vcombine.low %v4548_v45, %v4552_v31  ;;  %v12216_v40 = vcombine.high %v4555_v1, %v4559_v17  ;;  %v12215_v36 = vcombine.low %v4555_v1, %v4559_v17  ;;  %v4591_v10 = vld [vmem:[%s13633_s24 + $0xa70] sm:$0xff] }
 0x476   : > { %9973 = vmatprep.subr.bf16.mxu1 %v12202_v15  ;;  %v4592_v15 = vld [vmem:[%s13633_s24 + $0xa78] sm:$0xff]  ;;  %v12248_v45 = vcombine.high %v4587_v12, %v4591_v10  ;;  %v12247_v1 = vcombine.low %v4587_v12, %v4591_v10 }
 0x477   : > { %9656 = vmatpush1.bf16.msra.mxu0 %v12199_v26  ;;  %v12250_v31 = vcombine.high %v4588_v28, %v4592_v15  ;;  %v4595_v26 = vld [vmem:[%s13633_s24 + $0xa90] sm:$0xff]  ;;  %v12249_v17 = vcombine.low %v4588_v28, %v4592_v15 }
 0x478   : > { %9657 = vmatprep.subr.bf16.mxu0 %v12208_v60  ;;  %v4596_v60 = vld [vmem:[%s13633_s24 + $0xa98] sm:$0xff] }
 0x479   : > { %9974 = vmatpush1.bf16.msra.mxu1 %v12201_v18  ;;  %v4599_v18 = vld [vmem:[%s13633_s24 + $0xab0] sm:$0xff] }
 0x47a   : > { %9975 = vmatprep.subr.bf16.mxu1 %v12210_v30  ;;  %v4600_v30 = vld [vmem:[%s13633_s24 + $0xab8] sm:$0xff]  ;;  %v12256_v2 = vcombine.high %v4595_v26, %v4599_v18  ;;  %v12255_v32 = vcombine.low %v4595_v26, %v4599_v18 }
 0x47b   : > { %9658 = vmatpush1.bf16.msra.mxu0 %v12207_v53  ;;  %v12258_v41 = vcombine.high %v4596_v60, %v4600_v30  ;;  %v4603_v53 = vld [vmem:[%s13633_s24 + $0xad0] sm:$0xff]  ;;  %v12257_v49 = vcombine.low %v4596_v60, %v4600_v30 }
 0x47c   : > { %9659 = vmatprep.subr.bf16.mxu0 %v12216_v40  ;;  %v4604_v40 = vld [vmem:[%s13633_s24 + $0xad8] sm:$0xff] }
 0x47d   : > { %9976 = vmatpush1.bf16.msra.mxu1 %v12209_v27  ;;  %v4607_v27 = vld [vmem:[%s13633_s24 + $0xaf0] sm:$0xff] }
 0x47e   : > { %9977 = vmatprep.subr.bf16.mxu1 %v12218_v13  ;;  %v4608_v13 = vld [vmem:[%s13633_s24 + $0xaf8] sm:$0xff]  ;;  %v12264_v63 = vcombine.high %v4603_v53, %v4607_v27  ;;  %v12263_v21 = vcombine.low %v4603_v53, %v4607_v27 }
 0x47f   : > { %9660 = vmatpush1.bf16.msra.mxu0 %v12215_v36  ;;  %v12266_v62 = vcombine.high %v4604_v40, %v4608_v13  ;;  %v4611_v36 = vld [vmem:[%s13633_s24 + $0xb10] sm:$0xff]  ;;  %v12265_v4 = vcombine.low %v4604_v40, %v4608_v13 }
 0x480   : > { %9661 = vmatprep.subr.bf16.mxu0 %v12224_v25  ;;  %v4612_v25 = vld [vmem:[%s13633_s24 + $0xb18] sm:$0xff] }
 0x481   : > { %9978 = vmatpush1.bf16.msra.mxu1 %v12217_v56  ;;  %v4615_v56 = vld [vmem:[%s13633_s24 + $0xb30] sm:$0xff] }
 0x482   : > { %9979 = vmatprep.subr.bf16.mxu1 %v12226_v23  ;;  %v4616_v23 = vld [vmem:[%s13633_s24 + $0xb38] sm:$0xff]  ;;  %v12272_v39 = vcombine.high %v4611_v36, %v4615_v56  ;;  %v12271_v43 = vcombine.low %v4611_v36, %v4615_v56 }
 0x483   : > { %9662 = vmatpush1.bf16.msra.mxu0 %v12223_v5  ;;  %v12274_v47 = vcombine.high %v4612_v25, %v4616_v23  ;;  %v4619_v5 = vld [vmem:[%s13633_s24 + $0xb50] sm:$0xff]  ;;  %v12273_v42 = vcombine.low %v4612_v25, %v4616_v23 }
 0x484   : > { %9663 = vmatprep.subr.bf16.mxu0 %v12232_v3  ;;  %v4620_v3 = vld [vmem:[%s13633_s24 + $0xb58] sm:$0xff] }
 0x485   : > { %9980 = vmatpush1.bf16.msra.mxu1 %v12225_v44  ;;  %v4623_v44 = vld [vmem:[%s13633_s24 + $0xb70] sm:$0xff] }
 0x486   : > { %9981 = vmatprep.subr.bf16.mxu1 %v12234_v57  ;;  %v4624_v57 = vld [vmem:[%s13633_s24 + $0xb78] sm:$0xff]  ;;  %v12280_v8 = vcombine.high %v4619_v5, %v4623_v44  ;;  %v12279_v12 = vcombine.low %v4619_v5, %v4623_v44 }
 0x487   : > { %9664 = vmatpush1.bf16.msra.mxu0 %v12231_v11  ;;  %v12282_v55 = vcombine.high %v4620_v3, %v4624_v57  ;;  %v4627_v11 = vld [vmem:[%s13633_s24 + $0xb90] sm:$0xff]  ;;  %v12281_v10 = vcombine.low %v4620_v3, %v4624_v57 }
 0x488   : > { %9665 = vmatprep.subr.bf16.mxu0 %v12240_v20  ;;  %v4628_v20 = vld [vmem:[%s13633_s24 + $0xb98] sm:$0xff] }
 0x489   : > { %9982 = vmatpush1.bf16.msra.mxu1 %v12233_v16  ;;  %v4631_v16 = vld [vmem:[%s13633_s24 + $0xbb0] sm:$0xff] }
 0x48a   : > { %9983 = vmatprep.subr.bf16.mxu1 %v12242_v0  ;;  %v4632_v0 = vld [vmem:[%s13633_s24 + $0xbb8] sm:$0xff]  ;;  %v12288_v28 = vcombine.high %v4627_v11, %v4631_v16  ;;  %v12287_v26 = vcombine.low %v4627_v11, %v4631_v16 }
 0x48b   : > { %9666 = vmatpush1.bf16.msra.mxu0 %v12239_v38  ;;  %v12290_v15 = vcombine.high %v4628_v20, %v4632_v0  ;;  %v4635_v38 = vld [vmem:[%s13633_s24 + $0xbd0] sm:$0xff]  ;;  %v12289_v18 = vcombine.low %v4628_v20, %v4632_v0 }
 0x48c   : > { %9667 = vmatprep.subr.bf16.mxu0 %v12248_v45  ;;  %v4636_v45 = vld [vmem:[%s13633_s24 + $0xbd8] sm:$0xff]  ;;  %v4675_v20 = vld [vmem:[%s13633_s24 + $0xd10] sm:$0xff] }
 0x48d   : > { %9984 = vmatpush1.bf16.msra.mxu1 %v12241_v48  ;;  %v4639_v48 = vld [vmem:[%s13633_s24 + $0xbf0] sm:$0xff] }
 0x48e   : > { %9985 = vmatprep.subr.bf16.mxu1 %v12250_v31  ;;  %v4640_v31 = vld [vmem:[%s13633_s24 + $0xbf8] sm:$0xff]  ;;  %v12296_v60 = vcombine.high %v4635_v38, %v4639_v48  ;;  %v12295_v53 = vcombine.low %v4635_v38, %v4639_v48  ;;  %v4679_v0 = vld [vmem:[%s13633_s24 + $0xd30] sm:$0xff] }
 0x48f   : > { %9668 = vmatpush1.bf16.msra.mxu0 %v12247_v1  ;;  %v12298_v30 = vcombine.high %v4636_v45, %v4640_v31  ;;  %v4643_v1 = vld [vmem:[%s13633_s24 + $0xc10] sm:$0xff]  ;;  %v12297_v27 = vcombine.low %v4636_v45, %v4640_v31  ;;  %v12336_v48 = vcombine.high %v4675_v20, %v4679_v0 }
 0x490   : > { %9669 = vmatprep.subr.bf16.mxu0 %v12256_v2  ;;  %v4644_v2 = vld [vmem:[%s13633_s24 + $0xc18] sm:$0xff]  ;;  %v15691_v45 = vld [vmem:[%s13633_s24 + $0xd50] sm:$0xff] }
 0x491   : > { %9986 = vmatpush1.bf16.msra.mxu1 %v12249_v17  ;;  %v4647_v17 = vld [vmem:[%s13633_s24 + $0xc30] sm:$0xff] }
 0x492   : > { %9987 = vmatprep.subr.bf16.mxu1 %v12258_v41  ;;  %v4648_v41 = vld [vmem:[%s13633_s24 + $0xc38] sm:$0xff]  ;;  %v12304_v40 = vcombine.high %v4643_v1, %v4647_v17  ;;  %v12303_v36 = vcombine.low %v4643_v1, %v4647_v17  ;;  %v15694_v31 = vld [vmem:[%s13633_s24 + $0xd70] sm:$0xff]  ;;  %v12335_v1 = vcombine.low %v4675_v20, %v4679_v0 }
 0x493   : > { %9670 = vmatpush1.bf16.msra.mxu0 %v12255_v32  ;;  %v12306_v13 = vcombine.high %v4644_v2, %v4648_v41  ;;  %v4651_v32 = vld [vmem:[%s13633_s24 + $0xc50] sm:$0xff]  ;;  %v12305_v56 = vcombine.low %v4644_v2, %v4648_v41 }
 0x494   : > { %9671 = vmatprep.subr.bf16.mxu0 %v12264_v63  ;;  %v4652_v63 = vld [vmem:[%s13633_s24 + $0xc58] sm:$0xff]  ;;  %v16521_v2 = vld [vmem:[#allocation14_spill] sm:$0xff] }
 0x495   : > { %9988 = vmatpush1.bf16.msra.mxu1 %v12257_v49  ;;  %v4655_v49 = vld [vmem:[%s13633_s24 + $0xc70] sm:$0xff]  ;;  %v16522_v41 = vsub.s32 1, %v16521_v2 }
 0x496   : > { %9989 = vmatprep.subr.bf16.mxu1 %v12266_v62  ;;  %v4656_v62 = vld [vmem:[%s13633_s24 + $0xc78] sm:$0xff]  ;;  %v12312_v25 = vcombine.high %v4651_v32, %v4655_v49  ;;  %v12311_v5 = vcombine.low %v4651_v32, %v4655_v49  ;;  %v16523_v32 = vsub.s32 3, %v16521_v2 }
 0x497   : > { %9672 = vmatpush1.bf16.msra.mxu0 %v12263_v21  ;;  %v12314_v23 = vcombine.high %v4652_v63, %v4656_v62  ;;  %v4659_v21 = vld [vmem:[%s13633_s24 + $0xc90] sm:$0xff]  ;;  %v12313_v44 = vcombine.low %v4652_v63, %v4656_v62  ;;  %v12344_v63 = vcombine.high %v15691_v45, %v15694_v31 }
 0x498   : > { %9673 = vmatprep.subr.bf16.mxu0 %v12272_v39  ;;  %v4660_v39 = vld [vmem:[%s13633_s24 + $0xc98] sm:$0xff]  ;;  %v15731_v62 = vld [vmem:[%s13633_s24 + $0xdd0] sm:$0xff] }
 0x499   : > { %9990 = vmatpush1.bf16.msra.mxu1 %v12265_v4  ;;  %v4663_v4 = vld [vmem:[%s13633_s24 + $0xcb0] sm:$0xff] }
 0x49a   : > { %9991 = vmatprep.subr.bf16.mxu1 %v12274_v47  ;;  %v4664_v47 = vld [vmem:[%s13633_s24 + $0xcb8] sm:$0xff]  ;;  %v12320_v3 = vcombine.high %v4659_v21, %v4663_v4 }
 0x49b   : > { %9674 = vmatpush1.bf16.msra.mxu0 %v12271_v43  ;;  %v12322_v57 = vcombine.high %v4660_v39, %v4664_v47  ;;  %v4667_v43 = vld [vmem:[%s13633_s24 + $0xcd0] sm:$0xff] }
 0x49c   : > { %9675 = vmatprep.subr.bf16.mxu0 %v12280_v8  ;;  %v4672_v8 = vld [vmem:[%s13633_s24 + $0xcf8] sm:$0xff] }
 0x49d   : > { %9992 = vmatpush1.bf16.msra.mxu1 %v12273_v42  ;;  %v4671_v42 = vld [vmem:[%s13633_s24 + $0xcf0] sm:$0xff] }
 0x49e   : > { %9993 = vmatprep.subr.bf16.mxu1 %v12282_v55  ;;  %v12319_v55 = vcombine.low %v4659_v21, %v4663_v4  ;;  %v12328_v11 = vcombine.high %v4667_v43, %v4671_v42 }
 0x49f   : > { %9676 = vmatpush1.bf16.msra.mxu0 %v12279_v12  ;;  %v4676_v12 = vld [vmem:[%s13633_s24 + $0xd18] sm:$0xff] }
 0x4a0   : > { %9677 = vmatprep.subr.bf16.mxu0 %v12288_v28  ;;  %v12327_v28 = vcombine.low %v4667_v43, %v4671_v42 }
 0x4a1   : > { %9994 = vmatpush1.bf16.msra.mxu1 %v12281_v10  ;;  %v4680_v10 = vld [vmem:[%s13633_s24 + $0xd38] sm:$0xff] }
 0x4a2   : > { %9995 = vmatprep.subr.bf16.mxu1 %v12290_v15  ;;  %v5025_v15 = vld [vmem:[%s13635_s27] sm:$0xff] }
 0x4a3   : > { %9678 = vmatpush1.bf16.msra.mxu0 %v12287_v26  ;;  %v15697_v26 = vld [vmem:[%s13633_s24 + $0xd58] sm:$0xff]  ;;  %v15712_v17 = vrot.slane %v5025_v15, %v14005_v24  ;;  %v15726_v49 = vrot.slane %v5025_v15, %v16523_v32 }
 0x4a4   : > { %9679 = vmatprep.subr.bf16.mxu0 %v12296_v60  ;;  %v15706_v60 = vld [vmem:[%s13633_s24 + $0xd90] sm:$0xff] }
 0x4a5   : > { %9996 = vmatpush1.bf16.msra.mxu1 %v12289_v18  ;;  %v15700_v18 = vrot.slane %v5025_v15, %v14002_v59 }
 0x4a6   : > { %9997 = vmatprep.subr.bf16.mxu1 %v12298_v30  ;;  %v15709_v30 = vld [vmem:[%s13633_s24 + $0xdb0] sm:$0xff] }
 0x4a7   : > { %9680 = vmatpush1.bf16.msra.mxu0 %v12295_v53  ;;  %v15716_v53 = vrot.slane %v5025_v15, %v16522_v41  ;;  %v12351_v4 = vcombine.low %v15706_v60, %v15709_v30 }
 0x4a8   : > { %9702 = vmatprep.subr.bf16.mxu0 %v12304_v40  ;;  %v15722_v40 = vld [vmem:[%s13633_s24 + $0xdb8] sm:$0xff] }
 0x4a9   : > { %9998 = vmatpush1.bf16.msra.mxu1 %v12297_v27  ;;  %v15719_v27 = vld [vmem:[%s13633_s24 + $0xd98] sm:$0xff] }
 0x4aa   : > { %10020 = vmatprep.subr.bf16.mxu1 %v12306_v13  ;;  %9682 = vmatmul.mubr.bf16.vlgmr.msra.gmra.mrb[40].mxu0 %v15219_v7  ;;  %v12337_v13 = vcombine.low %v4676_v12, %v4680_v10  ;;  %v12353_v43 = vcombine.low %v15719_v27, %v15722_v40  ;;  %v12354_v42 = vcombine.high %v15719_v27, %v15722_v40  ;;  %v4719_v27 = vld [vmem:[%s13633_s24 + $0xe70] sm:$0xff] }
 0x4ab   : > { %9691 = vmatprep.mubr.bf16.mxu0 %v15222_v33  ;;  %9703 = vmatpush1.bf16.msra.mxu0 %v12303_v36  ;;  %v15734_v36 = vld [vmem:[%s13633_s24 + $0xdf0] sm:$0xff] }
 0x4ac   : > { %10000 = vmatmul.mubr.bf16.vlgmr.msra.gmra.mrb[40].mxu1 %v15219_v7  ;;  %9704 = vmatprep.subr.bf16.mxu0 %v12312_v25  ;;  %v4668_v7 = vld [vmem:[%s13633_s24 + $0xcd8] sm:$0xff]  ;;  %v12343_v25 = vcombine.low %v15691_v45, %v15694_v31 }
 0x4ad   : > { %10009 = vmatprep.mubr.bf16.mxu1 %v15222_v33  ;;  %10021 = vmatpush1.bf16.msra.mxu1 %v12305_v56  ;;  %v12321_v33 = vcombine.low %v4660_v39, %v4664_v47  ;;  %v12330_v16 = vcombine.high %v4668_v7, %v4672_v8  ;;  %v12329_v38 = vcombine.low %v4668_v7, %v4672_v8  ;;  %v15745_v39 = vld [vmem:[%s13633_s24 + $0xdd8] sm:$0xff] }
 0x4ae   : > { %10022 = vmatprep.subr.bf16.mxu1 %v12314_v23  ;;  %v15748_v47 = vld [vmem:[%s13633_s24 + $0xdf8] sm:$0xff] }
 0x4af   : > { %9705 = vmatpush1.bf16.msra.mxu0 %v12311_v5  ;;  %v12361_v15 = vcombine.low %v15745_v39, %v15748_v47  ;;  %v12362_v32 = vcombine.high %v15745_v39, %v15748_v47  ;;  %v15856_v39 = vld [vmem:[%s13633_s24 + $0xef0] sm:$0xff] }
 0x4b0   : > { %9706 = vmatprep.subr.bf16.mxu0 %v12320_v3 }
 0x4b1   : > { %10023 = vmatpush1.bf16.msra.mxu1 %v12313_v44 }
 0x4b2   : > { %9692 = vmatmul.mubr.bf16.gmra.mrb[44].mxu0 %v14982_v52  ;;  %10024 = vmatprep.subr.bf16.mxu1 %v12322_v57  ;;  %v12352_v57 = vcombine.high %v15706_v60, %v15709_v30 }
 0x4b3   : > { %9734 = vmatprep.mubr.bf16.mxu0 %v14990_v6  ;;  %9707 = vmatpush1.bf16.msra.mxu0 %v12319_v55 }
 0x4b4   : > { %10010 = vmatmul.mubr.bf16.gmra.mrb[44].mxu1 %v14982_v52  ;;  %9708 = vmatprep.subr.bf16.mxu0 %v12328_v11  ;;  %v12338_v52 = vcombine.high %v4676_v12, %v4680_v10  ;;  %v12359_v11 = vcombine.low %v15731_v62, %v15734_v36 }
 0x4b5   : > { %10052 = vmatprep.mubr.bf16.mxu1 %v14990_v6  ;;  %10025 = vmatpush1.bf16.msra.mxu1 %v12321_v33  ;;  %v15703_v6 = vld [vmem:[%s13633_s24 + $0xd78] sm:$0xff] }
 0x4b6   : > { %10026 = vmatprep.subr.bf16.mxu1 %v12330_v16  ;;  %v12345_v23 = vcombine.low %v15697_v26, %v15703_v6  ;;  %v12346_v21 = vcombine.high %v15697_v26, %v15703_v6  ;;  %v12360_v16 = vcombine.high %v15731_v62, %v15734_v36  ;;  %v15770_v26 = vld [vmem:[%s13633_s24 + $0xe10] sm:$0xff] }
 0x4b7   : > { %9709 = vmatpush1.bf16.msra.mxu0 %v12327_v28  ;;  %v15773_v6 = vld [vmem:[%s13633_s24 + $0xe30] sm:$0xff] }
 0x4b8   : > { %9710 = vmatprep.subr.bf16.mxu0 %v12336_v48  ;;  %v12367_v40 = vcombine.low %v15770_v26, %v15773_v6 }
 0x4b9   : > { %10027 = vmatpush1.bf16.msra.mxu1 %v12329_v38 }
 0x4ba   : > { %10028 = vmatprep.subr.bf16.mxu1 %v12338_v52 }
 0x4bb   : > { %9711 = vmatpush1.bf16.msra.mxu0 %v12335_v1 }
 0x4bc   : > { %9712 = vmatprep.subr.bf16.mxu0 %v12344_v63 }
 0x4bd   : > { %v9206_v56 = vpop.f32.mrb[32].mxu0  ;;  %10029 = vmatpush1.bf16.msra.mxu1 %v12337_v13 }
 0x4be   : > { %v12849_v5 = vadd.f32 %v9206_v56, %v15700_v18  ;;  %v9208_v3 = vpop.f32.mrb[33].mxu0  ;;  %10030 = vmatprep.subr.bf16.mxu1 %v12346_v21 }
 0x4bf   : > { %v9524_v44 = vpop.f32.mrb[32].mxu1  ;;  %v12850_v8 = vadd.f32 %v9208_v3, %v15716_v53  ;;  %v9210_v33 = vpop.f32.mrb[34].mxu0  ;;  %9713 = vmatpush1.bf16.msra.mxu0 %v12343_v25 }
 0x4c0   : > { %v12857_v7 = vadd.f32 %v9524_v44, %v15712_v17  ;;  %v9526_v55 = vpop.f32.mrb[33].mxu1  ;;  %v10179_v20 = vmax.f32 %v12849_v5, 0.0  ;;  %v12851_v12 = vadd.f32 %v9210_v33, %v15700_v18  ;;  %v9212_v28 = vpop.f32.mrb[35].mxu0  ;;  %9714 = vmatprep.subr.bf16.mxu0 %v12352_v57  ;;  %v15784_v33 = vld [vmem:[%s13633_s24 + $0xe38] sm:$0xff] }
 0x4c1   : > { %v12858_v0 = vadd.f32 %v9526_v55, %v15726_v49  ;;  %v9528_v10 = vpop.f32.mrb[34].mxu1  ;;  %v10180_v48 = vmax.f32 %v12850_v8, 0.0  ;;  %v12852_v45 = vadd.f32 %v9212_v28, %v15716_v53  ;;  %10031 = vmatpush1.bf16.msra.mxu1 %v12345_v23  ;;  %v12368_v8 = vcombine.high %v15770_v26, %v15773_v6  ;;  %v15781_v55 = vld [vmem:[%s13633_s24 + $0xe18] sm:$0xff] }
 0x4c2   : > { %v10181_v38 = vmax.f32 %v12857_v7, 0.0  ;;  %v12859_v52 = vadd.f32 %v9528_v10, %v15712_v17  ;;  %v9530_v31 = vpop.f32.mrb[35].mxu1  ;;  %v10187_v41 = vmax.f32 %v12851_v12, 0.0  ;;  %10032 = vmatprep.subr.bf16.mxu1 %v12354_v42  ;;  %v12369_v26 = vcombine.low %v15781_v55, %v15784_v33 }
 0x4c3   : > { %v10182_v1 = vmax.f32 %v12858_v0, 0.0  ;;  %v12860_v13 = vadd.f32 %v9530_v31, %v15726_v49  ;;  %v10243_v63 = vcombine.low %v10179_v20, %v10180_v48  ;;  %v10244_v56 = vcombine.high %v10179_v20, %v10180_v48  ;;  %9715 = vmatpush1.bf16.msra.mxu0 %v12351_v4 }
 0x4c4   : > { %v10189_v21 = vmax.f32 %v12859_v52, 0.0  ;;  %v10188_v5 = vmax.f32 %v12852_v45, 0.0  ;;  %9716 = vmatprep.subr.bf16.mxu0 %v12360_v16 }
 0x4c5   : > { %v10245_v44 = vcombine.low %v10181_v38, %v10182_v1  ;;  %v10246_v3 = vcombine.high %v10181_v38, %v10182_v1  ;;  %v10190_v7 = vmax.f32 %v12860_v13, 0.0  ;;  %v10253_v0 = vrot.slane %v10243_v63, %v14035_v29  ;;  %v9216_v25 = vpop.f32.mrb[36].mxu0  ;;  %10033 = vmatpush1.bf16.msra.mxu1 %v12353_v43  ;;  %v4716_v43 = vld [vmem:[%s13633_s24 + $0xe58] sm:$0xff] }
 0x4c6   : > { %v10260_v12 = vrot.slane %v10244_v56, %v14035_v29  ;;  %v10315_v20 = vcombine.low %v10187_v41, %v10188_v5  ;;  %v10316_v10 = vcombine.high %v10187_v41, %v10188_v5  ;;  %v9218_v52 = vpop.f32.mrb[37].mxu0  ;;  %v15796_v1 = vadd.f32 %v9216_v25, %v15700_v18  ;;  %10034 = vmatprep.subr.bf16.mxu1 %v12362_v32  ;;  %v15835_v32 = vld [vmem:[%s13633_s24 + $0xe90] sm:$0xff] }
 0x4c7   : > { %v10267_v28 = vrot.slane %v10245_v44, %v14035_v29  ;;  %v10274_v23 = vrot.slane %v10246_v3, %v14035_v29  ;;  %v10317_v57 = vcombine.low %v10189_v21, %v10190_v7  ;;  %v10318_v38 = vcombine.high %v10189_v21, %v10190_v7  ;;  %v9534_v48 = vpop.f32.mrb[36].mxu1  ;;  %v9220_v41 = vpop.f32.mrb[38].mxu0  ;;  %9717 = vmatpush1.bf16.msra.mxu0 %v12359_v11 }
 0x4c8   : > { %v10325_v45 = vrot.slane %v10315_v20, %v14035_v29  ;;  %v10332_v31 = vrot.slane %v10316_v10, %v14035_v29  ;;  %v9536_v42 = vpop.f32.mrb[37].mxu1  ;;  %v12370_v13 = vcombine.high %v15781_v55, %v15784_v33  ;;  %v9222_v4 = vpop.f32.mrb[39].mxu0  ;;  %v12861_v3 = vadd.f32 %v9534_v48, %v15712_v17  ;;  %9718 = vmatprep.subr.bf16.mxu0 %v12368_v8  ;;  %v15853_v48 = vld [vmem:[%s13633_s24 + $0xed0] sm:$0xff] }
 0x4c9   : > { %v15800_v63 = vcombine.low %v10253_v0, %v10267_v28  ;;  %v15802_v56 = vcombine.high %v10253_v0, %v10267_v28  ;;  %v15804_v21 = vcombine.low %v10260_v12, %v10274_v23  ;;  %v15806_v60 = vcombine.high %v10260_v12, %v10274_v23  ;;  %v9538_v30 = vpop.f32.mrb[38].mxu1  ;;  %v4715_v0 = vld [vmem:[%s13633_s24 + $0xe50] sm:$0xff]  ;;  %v4720_v12 = vld [vmem:[%s13633_s24 + $0xe78] sm:$0xff]  ;;  %10035 = vmatpush1.bf16.msra.mxu1 %v12361_v15 }
 0x4ca   : > { %v10339_v5 = vrot.slane %v10317_v57, %v14035_v29  ;;  %v10346_v44 = vrot.slane %v10318_v38, %v14035_v29  ;;  %v9540_v7 = vpop.f32.mrb[39].mxu1  ;;  %v12376_v6 = vcombine.high %v4715_v0, %v4719_v27  ;;  %v15843_v28 = vld [vmem:[%s13633_s24 + $0xeb0] sm:$0xff]  ;;  %v15846_v23 = vld [vmem:[%s13633_s24 + $0xe98] sm:$0xff]  ;;  %v10195_v62 = vmax.f32 %v15796_v1, 0.0  ;;  %10036 = vmatprep.subr.bf16.mxu1 %v12370_v13 }
 0x4cb   : > { %v15849_v57 = vld [vmem:[%s13633_s24 + $0xeb8] sm:$0xff]  ;;  %v10197_v36 = vmax.f32 %v12861_v3, 0.0  ;;  %v12375_v11 = vcombine.low %v4715_v0, %v4719_v27  ;;  %v12378_v38 = vcombine.high %v4716_v43, %v4720_v12  ;;  %v12854_v47 = vadd.f32 %v9218_v52, %v15716_v53  ;;  %9719 = vmatpush1.bf16.msra.mxu0 %v12367_v40 }
 0x4cc   : > { %v15823_v20 = vcombine.low %v10325_v45, %v10339_v5  ;;  %v15825_v10 = vcombine.high %v10325_v45, %v10339_v5  ;;  %v15827_v25 = vcombine.low %v10332_v31, %v10346_v44  ;;  %v15829_v16 = vcombine.high %v10332_v31, %v10346_v44  ;;  %9720 = vmatprep.subr.bf16.mxu0 %v12376_v6 }
 0x4cd   : > { %v12862_v15 = vadd.f32 %v9536_v42, %v15726_v49  ;;  %v12855_v55 = vadd.f32 %v9220_v41, %v15700_v18  ;;  %v12863_v33 = vadd.f32 %v9538_v30, %v15712_v17  ;;  %v12377_v45 = vcombine.low %v4716_v43, %v4720_v12  ;;  %10037 = vmatpush1.bf16.msra.mxu1 %v12369_v26  ;;  %v4732_v42 = vld [vmem:[%s13633_s24 + $0xed8] sm:$0xff] }
 0x4ce   : > { %v12383_v8 = vcombine.low %v15835_v32, %v15843_v28  ;;  %v12384_v31 = vcombine.high %v15835_v32, %v15843_v28  ;;  %v12385_v1 = vcombine.low %v15846_v23, %v15849_v57  ;;  %v10196_v13 = vmax.f32 %v12854_v47, 0.0  ;;  %v4736_v41 = vld [vmem:[%s13633_s24 + $0xef8] sm:$0xff]  ;;  %10038 = vmatprep.subr.bf16.mxu1 %v12378_v38  ;;  %v4739_v28 = vld [vmem:[%s13633_s24 + $0xf10] sm:$0xff] }
 0x4cf   : > { %v10198_v52 = vmax.f32 %v12862_v15, 0.0  ;;  %v12386_v18 = vcombine.high %v15846_v23, %v15849_v57  ;;  %v12391_v17 = vcombine.low %v15853_v48, %v15856_v39  ;;  %v10203_v30 = vmax.f32 %v12855_v55, 0.0  ;;  %9721 = vmatpush1.bf16.msra.mxu0 %v12375_v11  ;;  %v4743_v11 = vld [vmem:[%s13633_s24 + $0xf30] sm:$0xff]  ;;  %v4740_v38 = vld [vmem:[%s13633_s24 + $0xf18] sm:$0xff] }
 0x4d0   : > { %v10205_v5 = vmax.f32 %v12863_v33, 0.0  ;;  %v12856_v44 = vadd.f32 %v9222_v4, %v15716_v53  ;;  %v12864_v3 = vadd.f32 %v9540_v7, %v15726_v49  ;;  %v10387_v0 = vcombine.low %v10195_v62, %v10196_v13  ;;  %9722 = vmatprep.subr.bf16.mxu0 %v12384_v31  ;;  %v4744_v47 = vld [vmem:[%s13633_s24 + $0xf38] sm:$0xff] }
 0x4d1   : > { %v10388_v27 = vcombine.high %v10195_v62, %v10196_v13  ;;  %v10389_v40 = vcombine.low %v10197_v36, %v10198_v52  ;;  %v10390_v43 = vcombine.high %v10197_v36, %v10198_v52  ;;  %v12392_v26 = vcombine.high %v15853_v48, %v15856_v39  ;;  %10039 = vmatpush1.bf16.msra.mxu1 %v12377_v45 }
 0x4d2   : > { %v10204_v12 = vmax.f32 %v12856_v44, 0.0  ;;  %v10206_v32 = vmax.f32 %v12864_v3, 0.0  ;;  %v12394_v6 = vcombine.high %v4732_v42, %v4736_v41  ;;  %v10397_v53 = vrot.slane %v10387_v0, %v14035_v29  ;;  %10040 = vmatprep.subr.bf16.mxu1 %v12386_v18 }
 0x4d3   : > { %v10404_v49 = vrot.slane %v10388_v27, %v14035_v29  ;;  %v10411_v4 = vrot.slane %v10389_v40, %v14035_v29  ;;  %v10418_v7 = vrot.slane %v10390_v43, %v14035_v29  ;;  %9723 = vmatpush1.bf16.msra.mxu0 %v12383_v8  ;;  %v12393_v52 = vcombine.low %v4732_v42, %v4736_v41  ;;  %v4747_v27 = vld [vmem:[%s13633_s24 + $0xf50] sm:$0xff]  ;;  %v4752_v40 = vld [vmem:[%s13633_s24 + $0xf78] sm:$0xff] }
 0x4d4   : > { %v10459_v23 = vcombine.low %v10203_v30, %v10204_v12  ;;  %v10460_v57 = vcombine.high %v10203_v30, %v10204_v12  ;;  %v10461_v62 = vcombine.low %v10205_v5, %v10206_v32  ;;  %v10462_v36 = vcombine.high %v10205_v5, %v10206_v32  ;;  %9724 = vmatprep.subr.bf16.mxu0 %v12392_v26  ;;  %v4751_v8 = vld [vmem:[%s13633_s24 + $0xf70] sm:$0xff] }
 0x4d5   : > { %v15886_v48 = vcombine.low %v10397_v53, %v10411_v4  ;;  %v15888_v39 = vcombine.high %v10397_v53, %v10411_v4  ;;  %v15890_v15 = vcombine.low %v10404_v49, %v10418_v7  ;;  %v15892_v55 = vcombine.high %v10404_v49, %v10418_v7  ;;  %10041 = vmatpush1.bf16.msra.mxu1 %v12385_v1  ;;  %v4748_v1 = vld [vmem:[%s13633_s24 + $0xf58] sm:$0xff]  ;;  %v4755_v32 = vld [vmem:[%s13633_s24 + $0xf90] sm:$0xff] }
 0x4d6   : > { %v10469_v33 = vrot.slane %v10459_v23, %v14035_v29  ;;  %v10476_v45 = vrot.slane %v10460_v57, %v14035_v29  ;;  %v10483_v31 = vrot.slane %v10461_v62, %v14035_v29  ;;  %v10490_v13 = vrot.slane %v10462_v36, %v14035_v29  ;;  %10042 = vmatprep.subr.bf16.mxu1 %v12394_v6  ;;  %v4759_v26 = vld [vmem:[%s13633_s24 + $0xfb0] sm:$0xff]  ;;  %v4756_v6 = vld [vmem:[%s13633_s24 + $0xf98] sm:$0xff] }
 0x4d7   : > { %v12400_v30 = vcombine.high %v4739_v28, %v4743_v11  ;;  %v12402_v5 = vcombine.high %v4740_v38, %v4744_v47  ;;  %9725 = vmatpush1.bf16.msra.mxu0 %v12391_v17  ;;  %v12399_v42 = vcombine.low %v4739_v28, %v4743_v11  ;;  %v12401_v41 = vcombine.low %v4740_v38, %v4744_v47  ;;  %v4760_v53 = vld [vmem:[%s13633_s24 + $0xfb8] sm:$0xff]  ;;  %v4763_v28 = vld [vmem:[%s13633_s24 + $0xfd0] sm:$0xff] }
 0x4d8   : > { %v15898_v44 = vcombine.low %v10469_v33, %v10483_v31  ;;  %v15900_v18 = vcombine.high %v10469_v33, %v10483_v31  ;;  %v15902_v3 = vcombine.low %v10476_v45, %v10490_v13  ;;  %v15904_v0 = vcombine.high %v10476_v45, %v10490_v13  ;;  %v4767_v23 = vld [vmem:[%s13633_s24 + $0xff0] sm:$0xff]  ;;  %v4764_v57 = vld [vmem:[%s13633_s24 + $0xfd8] sm:$0xff] }
 0x4d9   : > { %10043 = vmatpush1.bf16.msra.mxu1 %v12393_v52  ;;  %9726 = vmatprep.subr.bf16.mxu0 %v12400_v30  ;;  %v12408_v43 = vcombine.high %v4747_v27, %v4751_v8  ;;  %v12410_v12 = vcombine.high %v4748_v1, %v4752_v40  ;;  %v12407_v49 = vcombine.low %v4747_v27, %v4751_v8  ;;  %v4768_v62 = vld [vmem:[%s13633_s24 + $0xff8] sm:$0xff]  ;;  %v4771_v33 = vld [vmem:[%s13633_s24 + $0x1010] sm:$0xff] }
 0x4da   : > { %10044 = vmatprep.subr.bf16.mxu1 %v12402_v5  ;;  %v12409_v17 = vcombine.low %v4748_v1, %v4752_v40  ;;  %v12416_v4 = vcombine.high %v4755_v32, %v4759_v26  ;;  %v12418_v7 = vcombine.high %v4756_v6, %v4760_v53  ;;  %v12415_v36 = vcombine.low %v4755_v32, %v4759_v26  ;;  %v4775_v45 = vld [vmem:[%s13633_s24 + $0x1030] sm:$0xff]  ;;  %v4772_v31 = vld [vmem:[%s13633_s24 + $0x1018] sm:$0xff] }
 0x4db   : > { %9727 = vmatpush1.bf16.msra.mxu0 %v12399_v42  ;;  %v12417_v11 = vcombine.low %v4756_v6, %v4760_v53  ;;  %v12424_v38 = vcombine.high %v4763_v28, %v4767_v23  ;;  %v12426_v47 = vcombine.high %v4764_v57, %v4768_v62  ;;  %v4776_v13 = vld [vmem:[%s13633_s24 + $0x1038] sm:$0xff]  ;;  %v12423_v52 = vcombine.low %v4763_v28, %v4767_v23  ;;  %v4779_v8 = vld [vmem:[%s13633_s24 + $0x1050] sm:$0xff] }
 0x4dc   : > { %9728 = vmatprep.subr.bf16.mxu0 %v12408_v43  ;;  %v12425_v30 = vcombine.low %v4764_v57, %v4768_v62  ;;  %v12432_v5 = vcombine.high %v4771_v33, %v4775_v45  ;;  %v12434_v27 = vcombine.high %v4772_v31, %v4776_v13  ;;  %v4783_v1 = vld [vmem:[%s13633_s24 + $0x1070] sm:$0xff]  ;;  %v4780_v40 = vld [vmem:[%s13633_s24 + $0x1058] sm:$0xff]  ;;  %v12433_v43 = vcombine.low %v4772_v31, %v4776_v13 }
 0x4dd   : > { %10045 = vmatpush1.bf16.msra.mxu1 %v12401_v41  ;;  %v4784_v42 = vld [vmem:[%s13633_s24 + $0x1078] sm:$0xff]  ;;  %v12431_v41 = vcombine.low %v4771_v33, %v4775_v45  ;;  %v4787_v26 = vld [vmem:[%s13633_s24 + $0x1090] sm:$0xff] }
 0x4de   : > { %10046 = vmatprep.subr.bf16.mxu1 %v12410_v12  ;;  %v12440_v12 = vcombine.high %v4779_v8, %v4783_v1  ;;  %v12442_v32 = vcombine.high %v4780_v40, %v4784_v42  ;;  %v4791_v6 = vld [vmem:[%s13633_s24 + $0x10b0] sm:$0xff]  ;;  %v4788_v53 = vld [vmem:[%s13633_s24 + $0x1098] sm:$0xff] }
 0x4df   : > { %9729 = vmatpush1.bf16.msra.mxu0 %v12407_v49  ;;  %v4792_v49 = vld [vmem:[%s13633_s24 + $0x10b8] sm:$0xff]  ;;  %v4795_v23 = vld [vmem:[%s13633_s24 + $0x10d0] sm:$0xff] }
 0x4e0   : > { %9730 = vmatprep.subr.bf16.mxu0 %v12416_v4  ;;  %v12441_v4 = vcombine.low %v4780_v40, %v4784_v42  ;;  %v12450_v28 = vcombine.high %v4788_v53, %v4792_v49  ;;  %v4799_v57 = vld [vmem:[%s13633_s24 + $0x10f0] sm:$0xff]  ;;  %v4800_v62 = vld [vmem:[%s13633_s24 + $0x10f8] sm:$0xff] }
 0x4e1   : > { %10047 = vmatpush1.bf16.msra.mxu1 %v12409_v17  ;;  %v12439_v17 = vcombine.low %v4779_v8, %v4783_v1  ;;  %v4807_v33 = vld [vmem:[%s13633_s24 + $0x1130] sm:$0xff]  ;;  %v4804_v45 = vld [vmem:[%s13633_s24 + $0x1118] sm:$0xff]  ;;  %v12455_v13 = vcombine.low %v4795_v23, %v4799_v57 }
 0x4e2   : > { %10048 = vmatprep.subr.bf16.mxu1 %v12418_v7  ;;  %v12448_v7 = vcombine.high %v4787_v26, %v4791_v6  ;;  %v4808_v31 = vld [vmem:[%s13633_s24 + $0x1138] sm:$0xff] }
 0x4e3   : > { %9731 = vmatpush1.bf16.msra.mxu0 %v12415_v36  ;;  %v12447_v36 = vcombine.low %v4787_v26, %v4791_v6  ;;  %v4812_v8 = vld [vmem:[%s13633_s24 + $0x1158] sm:$0xff] }
 0x4e4   : > { %9732 = vmatprep.subr.bf16.mxu0 %v12424_v38  ;;  %v4816_v1 = vld [vmem:[%s13633_s24 + $0x1178] sm:$0xff] }
 0x4e5   : > { %10049 = vmatpush1.bf16.msra.mxu1 %v12417_v11  ;;  %v12456_v11 = vcombine.high %v4795_v23, %v4799_v57  ;;  %v4824_v26 = vld [vmem:[%s13633_s24 + $0x11b8] sm:$0xff] }
 0x4e6   : > { %10050 = vmatprep.subr.bf16.mxu1 %v12426_v47  ;;  %v4803_v47 = vld [vmem:[%s13633_s24 + $0x1110] sm:$0xff]  ;;  %v4832_v23 = vld [vmem:[%s13633_s24 + $0x11f8] sm:$0xff] }
 0x4e7   : > { %9733 = vmatpush1.bf16.msra.mxu0 %v12423_v52  ;;  %v12463_v40 = vcombine.low %v4803_v47, %v4807_v33 }
 0x4e8   : > { %9755 = vmatprep.subr.bf16.mxu0 %v12432_v5  ;;  %v12466_v5 = vcombine.high %v4804_v45, %v4808_v31 }
 0x4e9   : > { %10051 = vmatpush1.bf16.msra.mxu1 %v12425_v30  ;;  %v12464_v30 = vcombine.high %v4803_v47, %v4807_v33  ;;  %v4840_v47 = vld [vmem:[%s13633_s24 + $0x1238] sm:$0xff] }
 0x4ea   : > { %10073 = vmatprep.subr.bf16.mxu1 %v12434_v27  ;;  %9735 = vmatmul.mubr.bf16.vlgmr.msra.gmra.mrb[40].mxu0 %v15035_v46  ;;  %v4815_v27 = vld [vmem:[%s13633_s24 + $0x1170] sm:$0xff] }
 0x4eb   : > { %9744 = vmatprep.mubr.bf16.mxu0 %v15037_v14  ;;  %9756 = vmatpush1.bf16.msra.mxu0 %v12431_v41  ;;  %v12474_v41 = vcombine.high %v4812_v8, %v4816_v1 }
 0x4ec   : > { %10053 = vmatmul.mubr.bf16.vlgmr.msra.gmra.mrb[40].mxu1 %v15035_v46  ;;  %9757 = vmatprep.subr.bf16.mxu0 %v12440_v12  ;;  %v4796_v46 = vld [vmem:[%s13633_s24 + $0x10d8] sm:$0xff]  ;;  %v4823_v12 = vld [vmem:[%s13633_s24 + $0x11b0] sm:$0xff] }
 0x4ed   : > { %10062 = vmatprep.mubr.bf16.mxu1 %v15037_v14  ;;  %10074 = vmatpush1.bf16.msra.mxu1 %v12433_v43  ;;  %v12449_v14 = vcombine.low %v4788_v53, %v4792_v49  ;;  %v12458_v38 = vcombine.high %v4796_v46, %v4800_v62  ;;  %v12457_v52 = vcombine.low %v4796_v46, %v4800_v62  ;;  %v4819_v43 = vld [vmem:[%s13633_s24 + $0x1190] sm:$0xff] }
 0x4ee   : > { %10075 = vmatprep.subr.bf16.mxu1 %v12442_v32  ;;  %v4820_v32 = vld [vmem:[%s13633_s24 + $0x1198] sm:$0xff]  ;;  %v12473_v53 = vcombine.low %v4812_v8, %v4816_v1  ;;  %v12480_v49 = vcombine.high %v4819_v43, %v4823_v12  ;;  %v12479_v57 = vcombine.low %v4819_v43, %v4823_v12 }
 0x4ef   : > { %9758 = vmatpush1.bf16.msra.mxu0 %v12439_v17  ;;  %v12482_v17 = vcombine.high %v4820_v32, %v4824_v26  ;;  %v12481_v46 = vcombine.low %v4820_v32, %v4824_v26  ;;  %v4856_v43 = vld [vmem:[%s13633_s24 + $0x12b8] sm:$0xff] }
 0x4f0   : > { %9759 = vmatprep.subr.bf16.mxu0 %v12448_v7  ;;  %v4831_v7 = vld [vmem:[%s13633_s24 + $0x11f0] sm:$0xff] }
 0x4f1   : > { %10076 = vmatpush1.bf16.msra.mxu1 %v12441_v4  ;;  %v4827_v4 = vld [vmem:[%s13633_s24 + $0x11d0] sm:$0xff] }
 0x4f2   : > { %9745 = vmatmul.mubr.bf16.gmra.mrb[44].mxu0 %v15074_v51  ;;  %10077 = vmatprep.subr.bf16.mxu1 %v12450_v28  ;;  %v4828_v28 = vld [vmem:[%s13633_s24 + $0x11d8] sm:$0xff]  ;;  %v12488_v62 = vcombine.high %v4827_v4, %v4831_v7  ;;  %v12487_v33 = vcombine.low %v4827_v4, %v4831_v7 }
 0x4f3   : > { %9787 = vmatprep.mubr.bf16.mxu0 %v15310_v9  ;;  %9760 = vmatpush1.bf16.msra.mxu0 %v12447_v36  ;;  %v12490_v36 = vcombine.high %v4828_v28, %v4832_v23  ;;  %v4864_v4 = vld [vmem:[%s13633_s24 + $0x12f8] sm:$0xff] }
 0x4f4   : > { %10063 = vmatmul.mubr.bf16.gmra.mrb[44].mxu1 %v15074_v51  ;;  %9761 = vmatprep.subr.bf16.mxu0 %v12456_v11  ;;  %v4811_v51 = vld [vmem:[%s13633_s24 + $0x1150] sm:$0xff] }
 0x4f5   : > { %10105 = vmatprep.mubr.bf16.mxu1 %v15310_v9  ;;  %10078 = vmatpush1.bf16.msra.mxu1 %v12449_v14  ;;  %v12465_v9 = vcombine.low %v4804_v45, %v4808_v31  ;;  %v12472_v42 = vcombine.high %v4811_v51, %v4815_v27  ;;  %v12471_v6 = vcombine.low %v4811_v51, %v4815_v27  ;;  %v4835_v14 = vld [vmem:[%s13633_s24 + $0x1210] sm:$0xff]  ;;  %v4848_v51 = vld [vmem:[%s13633_s24 + $0x1278] sm:$0xff] }
 0x4f6   : > { %10079 = vmatprep.subr.bf16.mxu1 %v12458_v38  ;;  %v4839_v11 = vld [vmem:[%s13633_s24 + $0x1230] sm:$0xff]  ;;  %v4836_v38 = vld [vmem:[%s13633_s24 + $0x1218] sm:$0xff]  ;;  %v12489_v45 = vcombine.low %v4828_v28, %v4832_v23 }
 0x4f7   : > { %9762 = vmatpush1.bf16.msra.mxu0 %v12455_v13  ;;  %v12496_v31 = vcombine.high %v4835_v14, %v4839_v11  ;;  %v12498_v13 = vcombine.high %v4836_v38, %v4840_v47  ;;  %v12495_v27 = vcombine.low %v4835_v14, %v4839_v11  ;;  %v12497_v8 = vcombine.low %v4836_v38, %v4840_v47  ;;  %v4872_v14 = vld [vmem:[%s13633_s24 + $0x1338] sm:$0xff] }
 0x4f8   : > { %9763 = vmatprep.subr.bf16.mxu0 %v12464_v30  ;;  %v4847_v30 = vld [vmem:[%s13633_s24 + $0x1270] sm:$0xff] }
 0x4f9   : > { %10080 = vmatpush1.bf16.msra.mxu1 %v12457_v52  ;;  %v4843_v52 = vld [vmem:[%s13633_s24 + $0x1250] sm:$0xff] }
 0x4fa   : > { %10081 = vmatprep.subr.bf16.mxu1 %v12466_v5  ;;  %v4844_v5 = vld [vmem:[%s13633_s24 + $0x1258] sm:$0xff]  ;;  %v12504_v1 = vcombine.high %v4843_v52, %v4847_v30  ;;  %v12503_v12 = vcombine.low %v4843_v52, %v4847_v30 }
 0x4fb   : > { %9764 = vmatpush1.bf16.msra.mxu0 %v12463_v40  ;;  %v12506_v40 = vcombine.high %v4844_v5, %v4848_v51  ;;  %v12505_v32 = vcombine.low %v4844_v5, %v4848_v51  ;;  %v4880_v52 = vld [vmem:[%s13633_s24 + $0x1378] sm:$0xff] }
 0x4fc   : > { %9765 = vmatprep.subr.bf16.mxu0 %v12472_v42  ;;  %v4855_v42 = vld [vmem:[%s13633_s24 + $0x12b0] sm:$0xff] }
 0x4fd   : > { %10082 = vmatpush1.bf16.msra.mxu1 %v12465_v9  ;;  %v4851_v9 = vld [vmem:[%s13633_s24 + $0x1290] sm:$0xff] }
 0x4fe   : > { %10083 = vmatprep.subr.bf16.mxu1 %v12474_v41  ;;  %v4852_v41 = vld [vmem:[%s13633_s24 + $0x1298] sm:$0xff]  ;;  %v12512_v26 = vcombine.high %v4851_v9, %v4855_v42  ;;  %v12511_v7 = vcombine.low %v4851_v9, %v4855_v42 }
 0x4ff   : > { %9766 = vmatpush1.bf16.msra.mxu0 %v12471_v6  ;;  %v12514_v6 = vcombine.high %v4852_v41, %v4856_v43  ;;  %v12513_v28 = vcombine.low %v4852_v41, %v4856_v43  ;;  %v4888_v9 = vld [vmem:[%s13633_s24 + $0x13b8] sm:$0xff] }
 0x500   : > { %9767 = vmatprep.subr.bf16.mxu0 %v12480_v49  ;;  %v4863_v49 = vld [vmem:[%s13633_s24 + $0x12f0] sm:$0xff] }
 0x501   : > { %10084 = vmatpush1.bf16.msra.mxu1 %v12473_v53  ;;  %v4859_v53 = vld [vmem:[%s13633_s24 + $0x12d0] sm:$0xff] }
 0x502   : > { %10085 = vmatprep.subr.bf16.mxu1 %v12482_v17  ;;  %v4860_v17 = vld [vmem:[%s13633_s24 + $0x12d8] sm:$0xff]  ;;  %v12520_v23 = vcombine.high %v4859_v53, %v4863_v49  ;;  %v12519_v11 = vcombine.low %v4859_v53, %v4863_v49 }
 0x503   : > { %9768 = vmatpush1.bf16.msra.mxu0 %v12479_v57  ;;  %v12522_v57 = vcombine.high %v4860_v17, %v4864_v4  ;;  %v12521_v38 = vcombine.low %v4860_v17, %v4864_v4  ;;  %v4896_v53 = vld [vmem:[%s13633_s24 + $0x13f8] sm:$0xff] }
 0x504   : > { %9769 = vmatprep.subr.bf16.mxu0 %v12488_v62  ;;  %v4871_v62 = vld [vmem:[%s13633_s24 + $0x1330] sm:$0xff] }
 0x505   : > { %10086 = vmatpush1.bf16.msra.mxu1 %v12481_v46  ;;  %v4867_v46 = vld [vmem:[%s13633_s24 + $0x1310] sm:$0xff] }
 0x506   : > { %10087 = vmatprep.subr.bf16.mxu1 %v12490_v36  ;;  %v4868_v36 = vld [vmem:[%s13633_s24 + $0x1318] sm:$0xff]  ;;  %v12528_v47 = vcombine.high %v4867_v46, %v4871_v62  ;;  %v12527_v30 = vcombine.low %v4867_v46, %v4871_v62 }
 0x507   : > { %9770 = vmatpush1.bf16.msra.mxu0 %v12487_v33  ;;  %v12530_v33 = vcombine.high %v4868_v36, %v4872_v14  ;;  %v12529_v5 = vcombine.low %v4868_v36, %v4872_v14  ;;  %v4904_v46 = vld [vmem:[%s13633_s24 + $0x1438] sm:$0xff] }
 0x508   : > { %9771 = vmatprep.subr.bf16.mxu0 %v12496_v31  ;;  %v4879_v31 = vld [vmem:[%s13633_s24 + $0x1370] sm:$0xff] }
 0x509   : > { %10088 = vmatpush1.bf16.msra.mxu1 %v12489_v45  ;;  %v4875_v45 = vld [vmem:[%s13633_s24 + $0x1350] sm:$0xff] }
 0x50a   : > { %10089 = vmatprep.subr.bf16.mxu1 %v12498_v13  ;;  %v4876_v13 = vld [vmem:[%s13633_s24 + $0x1358] sm:$0xff]  ;;  %v12536_v51 = vcombine.high %v4875_v45, %v4879_v31  ;;  %v12535_v42 = vcombine.low %v4875_v45, %v4879_v31 }
 0x50b   : > { %9772 = vmatpush1.bf16.msra.mxu0 %v12495_v27  ;;  %v12538_v27 = vcombine.high %v4876_v13, %v4880_v52  ;;  %v12537_v41 = vcombine.low %v4876_v13, %v4880_v52  ;;  %v4912_v45 = vld [vmem:[%s13633_s24 + $0x1478] sm:$0xff] }
 0x50c   : > { %9773 = vmatprep.subr.bf16.mxu0 %v12504_v1  ;;  %v4887_v1 = vld [vmem:[%s13633_s24 + $0x13b0] sm:$0xff] }
 0x50d   : > { %10090 = vmatpush1.bf16.msra.mxu1 %v12497_v8  ;;  %v4883_v8 = vld [vmem:[%s13633_s24 + $0x1390] sm:$0xff] }
 0x50e   : > { %10091 = vmatprep.subr.bf16.mxu1 %v12506_v40  ;;  %v4884_v40 = vld [vmem:[%s13633_s24 + $0x1398] sm:$0xff]  ;;  %v12544_v43 = vcombine.high %v4883_v8, %v4887_v1  ;;  %v12543_v49 = vcombine.low %v4883_v8, %v4887_v1 }
 0x50f   : > { %9774 = vmatpush1.bf16.msra.mxu0 %v12503_v12  ;;  %v12546_v12 = vcombine.high %v4884_v40, %v4888_v9  ;;  %v12545_v17 = vcombine.low %v4884_v40, %v4888_v9  ;;  %v4920_v8 = vld [vmem:[%s13633_s24 + $0x14b8] sm:$0xff] }
 0x510   : > { %9775 = vmatprep.subr.bf16.mxu0 %v12512_v26  ;;  %v4895_v26 = vld [vmem:[%s13633_s24 + $0x13f0] sm:$0xff] }
 0x511   : > { %10092 = vmatpush1.bf16.msra.mxu1 %v12505_v32  ;;  %v4891_v32 = vld [vmem:[%s13633_s24 + $0x13d0] sm:$0xff] }
 0x512   : > { %10093 = vmatprep.subr.bf16.mxu1 %v12514_v6  ;;  %v4892_v6 = vld [vmem:[%s13633_s24 + $0x13d8] sm:$0xff]  ;;  %v12552_v4 = vcombine.high %v4891_v32, %v4895_v26  ;;  %v12551_v62 = vcombine.low %v4891_v32, %v4895_v26 }
 0x513   : > { %9776 = vmatpush1.bf16.msra.mxu0 %v12511_v7  ;;  %v12554_v7 = vcombine.high %v4892_v6, %v4896_v53  ;;  %v12553_v36 = vcombine.low %v4892_v6, %v4896_v53  ;;  %v4931_v53 = vld [vmem:[%s13633_s24 + $0x1510] sm:$0xff] }
 0x514   : > { %9777 = vmatprep.subr.bf16.mxu0 %v12520_v23  ;;  %v4903_v23 = vld [vmem:[%s13633_s24 + $0x1430] sm:$0xff] }
 0x515   : > { %10094 = vmatpush1.bf16.msra.mxu1 %v12513_v28  ;;  %v4899_v28 = vld [vmem:[%s13633_s24 + $0x1410] sm:$0xff] }
 0x516   : > { %10095 = vmatprep.subr.bf16.mxu1 %v12522_v57  ;;  %v4900_v57 = vld [vmem:[%s13633_s24 + $0x1418] sm:$0xff]  ;;  %v12560_v14 = vcombine.high %v4899_v28, %v4903_v23  ;;  %v12559_v31 = vcombine.low %v4899_v28, %v4903_v23 }
 0x517   : > { %9778 = vmatpush1.bf16.msra.mxu0 %v12519_v11  ;;  %v12562_v11 = vcombine.high %v4900_v57, %v4904_v46  ;;  %v12561_v13 = vcombine.low %v4900_v57, %v4904_v46  ;;  %v4943_v46 = vld [vmem:[%s13633_s24 + $0x1570] sm:$0xff] }
 0x518   : > { %9779 = vmatprep.subr.bf16.mxu0 %v12528_v47  ;;  %v4911_v47 = vld [vmem:[%s13633_s24 + $0x1470] sm:$0xff] }
 0x519   : > { %10096 = vmatpush1.bf16.msra.mxu1 %v12521_v38  ;;  %v4907_v38 = vld [vmem:[%s13633_s24 + $0x1450] sm:$0xff] }
 0x51a   : > { %10097 = vmatprep.subr.bf16.mxu1 %v12530_v33  ;;  %v4908_v33 = vld [vmem:[%s13633_s24 + $0x1458] sm:$0xff]  ;;  %v12568_v52 = vcombine.high %v4907_v38, %v4911_v47  ;;  %v12567_v1 = vcombine.low %v4907_v38, %v4911_v47  ;;  %v4947_v47 = vld [vmem:[%s13633_s24 + $0x1590] sm:$0xff] }
 0x51b   : > { %9780 = vmatpush1.bf16.msra.mxu0 %v12527_v30  ;;  %v12570_v30 = vcombine.high %v4908_v33, %v4912_v45  ;;  %v12569_v40 = vcombine.low %v4908_v33, %v4912_v45  ;;  %v4951_v33 = vld [vmem:[%s13633_s24 + $0x15b0] sm:$0xff]  ;;  %v4948_v45 = vld [vmem:[%s13633_s24 + $0x1598] sm:$0xff] }
 0x51c   : > { %9781 = vmatprep.subr.bf16.mxu0 %v12536_v51  ;;  %v4919_v51 = vld [vmem:[%s13633_s24 + $0x14b0] sm:$0xff] }
 0x51d   : > { %10098 = vmatpush1.bf16.msra.mxu1 %v12529_v5  ;;  %v4915_v5 = vld [vmem:[%s13633_s24 + $0x1490] sm:$0xff] }
 0x51e   : > { %10099 = vmatprep.subr.bf16.mxu1 %v12538_v27  ;;  %v4916_v27 = vld [vmem:[%s13633_s24 + $0x1498] sm:$0xff]  ;;  %v12576_v9 = vcombine.high %v4915_v5, %v4919_v51  ;;  %v12575_v32 = vcombine.low %v4915_v5, %v4919_v51  ;;  %v4955_v51 = vld [vmem:[%s13633_s24 + $0x15d0] sm:$0xff] }
 0x51f   : > { %9782 = vmatpush1.bf16.msra.mxu0 %v12535_v42  ;;  %v12578_v42 = vcombine.high %v4916_v27, %v4920_v8 }
 0x520   : > { %9783 = vmatprep.subr.bf16.mxu0 %v12544_v43  ;;  %v4927_v43 = vld [vmem:[%s13633_s24 + $0x14f0] sm:$0xff] }
 0x521   : > { %10100 = vmatpush1.bf16.msra.mxu1 %v12537_v41  ;;  %v4923_v41 = vld [vmem:[%s13633_s24 + $0x14d0] sm:$0xff] }
 0x522   : > { %10101 = vmatprep.subr.bf16.mxu1 %v12546_v12  ;;  %v4928_v12 = vld [vmem:[%s13633_s24 + $0x14f8] sm:$0xff]  ;;  %v12584_v26 = vcombine.high %v4923_v41, %v4927_v43 }
 0x523   : > { %9784 = vmatpush1.bf16.msra.mxu0 %v12543_v49  ;;  %v4935_v49 = vld [vmem:[%s13633_s24 + $0x1530] sm:$0xff] }
 0x524   : > { %9785 = vmatprep.subr.bf16.mxu0 %v12552_v4  ;;  %v4936_v4 = vld [vmem:[%s13633_s24 + $0x1538] sm:$0xff]  ;;  %v12592_v23 = vcombine.high %v4931_v53, %v4935_v49 }
 0x525   : > { %10102 = vmatpush1.bf16.msra.mxu1 %v12545_v17  ;;  %v4932_v17 = vld [vmem:[%s13633_s24 + $0x1518] sm:$0xff] }
 0x526   : > { %10103 = vmatprep.subr.bf16.mxu1 %v12554_v7  ;;  %v12583_v7 = vcombine.low %v4923_v41, %v4927_v43  ;;  %v12594_v57 = vcombine.high %v4932_v17, %v4936_v4  ;;  %v4963_v43 = vld [vmem:[%s13633_s24 + $0x1610] sm:$0xff] }
 0x527   : > { %9786 = vmatpush1.bf16.msra.mxu0 %v12551_v62  ;;  %v4940_v62 = vld [vmem:[%s13633_s24 + $0x1558] sm:$0xff] }
 0x528   : > { %9808 = vmatprep.subr.bf16.mxu0 %v12560_v14  ;;  %v12591_v14 = vcombine.low %v4931_v53, %v4935_v49  ;;  %v4971_v49 = vld [vmem:[%s13633_s24 + $0x1650] sm:$0xff] }
 0x529   : > { %10104 = vmatpush1.bf16.msra.mxu1 %v12553_v36  ;;  %v4944_v36 = vld [vmem:[%s13633_s24 + $0x1578] sm:$0xff] }
 0x52a   : > { %10126 = vmatprep.subr.bf16.mxu1 %v12562_v11  ;;  %9788 = vmatmul.mubr.bf16.vlgmr.msra.gmra.mrb[40].mxu0 %v15376_v54  ;;  %v12602_v38 = vcombine.high %v4940_v62, %v4944_v36 }
 0x52b   : > { %9797 = vmatprep.mubr.bf16.mxu0 %v15379_v58  ;;  %9809 = vmatpush1.bf16.msra.mxu0 %v12559_v31  ;;  %v4952_v31 = vld [vmem:[%s13633_s24 + $0x15b8] sm:$0xff] }
 0x52c   : > { %10106 = vmatmul.mubr.bf16.vlgmr.msra.gmra.mrb[40].mxu1 %v15376_v54  ;;  %9810 = vmatprep.subr.bf16.mxu0 %v12568_v52  ;;  %v4924_v54 = vld [vmem:[%s13633_s24 + $0x14d8] sm:$0xff]  ;;  %v12601_v52 = vcombine.low %v4940_v62, %v4944_v36  ;;  %v12610_v5 = vcombine.high %v4948_v45, %v4952_v31  ;;  %v4983_v62 = vld [vmem:[%s13633_s24 + $0x16b0] sm:$0xff] }
 0x52d   : > { %10115 = vmatprep.mubr.bf16.mxu1 %v15379_v58  ;;  %10127 = vmatpush1.bf16.msra.mxu1 %v12561_v13  ;;  %v12577_v58 = vcombine.low %v4916_v27, %v4920_v8  ;;  %v12586_v6 = vcombine.high %v4924_v54, %v4928_v12  ;;  %v12585_v28 = vcombine.low %v4924_v54, %v4928_v12  ;;  %v4959_v27 = vld [vmem:[%s13633_s24 + $0x15f0] sm:$0xff]  ;;  %v4956_v8 = vld [vmem:[%s13633_s24 + $0x15d8] sm:$0xff] }
 0x52e   : > { %10128 = vmatprep.subr.bf16.mxu1 %v12570_v30  ;;  %v12608_v30 = vcombine.high %v4947_v47, %v4951_v33  ;;  %v4967_v54 = vld [vmem:[%s13633_s24 + $0x1630] sm:$0xff]  ;;  %v4964_v12 = vld [vmem:[%s13633_s24 + $0x1618] sm:$0xff] }
 0x52f   : > { %9811 = vmatpush1.bf16.msra.mxu0 %v12567_v1  ;;  %v4960_v1 = vld [vmem:[%s13633_s24 + $0x15f8] sm:$0xff] }
 0x530   : > { %9812 = vmatprep.subr.bf16.mxu0 %v12576_v9  ;;  %v12609_v9 = vcombine.low %v4948_v45, %v4952_v31  ;;  %v12618_v41 = vcombine.high %v4956_v8, %v4960_v1  ;;  %v4980_v36 = vld [vmem:[%s13633_s24 + $0x1698] sm:$0xff]  ;;  %v4991_v45 = vld [vmem:[%s13633_s24 + $0x16f0] sm:$0xff] }
 0x531   : > { %10129 = vmatpush1.bf16.msra.mxu1 %v12569_v40  ;;  %v12607_v40 = vcombine.low %v4947_v47, %v4951_v33  ;;  %v4987_v33 = vld [vmem:[%s13633_s24 + $0x16d0] sm:$0xff]  ;;  %v4988_v31 = vld [vmem:[%s13633_s24 + $0x16d8] sm:$0xff] }
 0x532   : > { %9798 = vmatmul.mubr.bf16.gmra.mrb[44].mxu0 %v15116_v34  ;;  %10130 = vmatprep.subr.bf16.mxu1 %v12578_v42  ;;  %v12616_v42 = vcombine.high %v4955_v51, %v4959_v27 }
 0x533   : > { %9840 = vmatprep.mubr.bf16.mxu0 %v15133_v35  ;;  %9813 = vmatpush1.bf16.msra.mxu0 %v12575_v32  ;;  %v4968_v32 = vld [vmem:[%s13633_s24 + $0x1638] sm:$0xff] }
 0x534   : > { %10116 = vmatmul.mubr.bf16.gmra.mrb[44].mxu1 %v15116_v34  ;;  %9814 = vmatprep.subr.bf16.mxu0 %v12584_v26  ;;  %v4939_v34 = vld [vmem:[%s13633_s24 + $0x1550] sm:$0xff]  ;;  %v12617_v26 = vcombine.low %v4956_v8, %v4960_v1  ;;  %v12626_v53 = vcombine.high %v4964_v12, %v4968_v32  ;;  %v4996_v1 = vld [vmem:[%s13633_s24 + $0x1718] sm:$0xff] }
 0x535   : > { %10158 = vmatprep.mubr.bf16.mxu1 %v15133_v35  ;;  %10131 = vmatpush1.bf16.msra.mxu1 %v12577_v58  ;;  %v12593_v35 = vcombine.low %v4932_v17, %v4936_v4  ;;  %v12600_v11 = vcombine.high %v4939_v34, %v4943_v46  ;;  %v12599_v13 = vcombine.low %v4939_v34, %v4943_v46  ;;  %v4975_v17 = vld [vmem:[%s13633_s24 + $0x1670] sm:$0xff]  ;;  %v4972_v4 = vld [vmem:[%s13633_s24 + $0x1658] sm:$0xff] }
 0x536   : > { %10132 = vmatprep.subr.bf16.mxu1 %v12586_v6  ;;  %v12615_v58 = vcombine.low %v4955_v51, %v4959_v27  ;;  %v12624_v6 = vcombine.high %v4963_v43, %v4967_v54  ;;  %v4979_v46 = vld [vmem:[%s13633_s24 + $0x1690] sm:$0xff] }
 0x537   : > { %9815 = vmatpush1.bf16.msra.mxu0 %v12583_v7  ;;  %v4976_v7 = vld [vmem:[%s13633_s24 + $0x1678] sm:$0xff]  ;;  %v4995_v27 = vld [vmem:[%s13633_s24 + $0x1710] sm:$0xff] }
 0x538   : > { %9816 = vmatprep.subr.bf16.mxu0 %v12592_v23  ;;  %v12625_v23 = vcombine.low %v4964_v12, %v4968_v32  ;;  %v12634_v34 = vcombine.high %v4972_v4, %v4976_v7  ;;  %v4999_v8 = vld [vmem:[%s13633_s24 + $0x1730] sm:$0xff]  ;;  %v5004_v32 = vld [vmem:[%s13633_s24 + $0x1758] sm:$0xff] }
 0x539   : > { %10133 = vmatpush1.bf16.msra.mxu1 %v12585_v28  ;;  %v12623_v28 = vcombine.low %v4963_v43, %v4967_v54  ;;  %v5003_v54 = vld [vmem:[%s13633_s24 + $0x1750] sm:$0xff] }
 0x53a   : > { %10134 = vmatprep.subr.bf16.mxu1 %v12594_v57  ;;  %v12632_v57 = vcombine.high %v4971_v49, %v4975_v17  ;;  %v5007_v12 = vld [vmem:[%s13633_s24 + $0x1770] sm:$0xff] }
 0x53b   : > { %9817 = vmatpush1.bf16.msra.mxu0 %v12591_v14  ;;  %v4984_v14 = vld [vmem:[%s13633_s24 + $0x16b8] sm:$0xff] }
 0x53c   : > { %9818 = vmatprep.subr.bf16.mxu0 %v12600_v11  ;;  %v12633_v11 = vcombine.low %v4972_v4, %v4976_v7  ;;  %v12642_v47 = vcombine.high %v4980_v36, %v4984_v14  ;;  %v5015_v4 = vld [vmem:[%s13633_s24 + $0x17b0] sm:$0xff]  ;;  %v5012_v7 = vld [vmem:[%s13633_s24 + $0x1798] sm:$0xff] }
 0x53d   : > { %10135 = vmatpush1.bf16.msra.mxu1 %v12593_v35  ;;  %v12631_v35 = vcombine.low %v4971_v49, %v4975_v17  ;;  %v5011_v17 = vld [vmem:[%s13633_s24 + $0x1790] sm:$0xff] }
 0x53e   : > { %10136 = vmatprep.subr.bf16.mxu1 %v12602_v38  ;;  %v12640_v38 = vcombine.high %v4979_v46, %v4983_v62 }
 0x53f   : > { %9819 = vmatpush1.bf16.msra.mxu0 %v12599_v13  ;;  %v4992_v13 = vld [vmem:[%s13633_s24 + $0x16f8] sm:$0xff] }
 0x540   : > { %9820 = vmatprep.subr.bf16.mxu0 %v12608_v30  ;;  %v12641_v30 = vcombine.low %v4980_v36, %v4984_v14  ;;  %v12650_v51 = vcombine.high %v4988_v31, %v4992_v13  ;;  %v5023_v36 = vld [vmem:[%s13633_s24 + $0x17f0] sm:$0xff]  ;;  %v5020_v14 = vld [vmem:[%s13633_s24 + $0x17d8] sm:$0xff] }
 0x541   : > { %10137 = vmatpush1.bf16.msra.mxu1 %v12601_v52  ;;  %v12639_v52 = vcombine.low %v4979_v46, %v4983_v62  ;;  %v5019_v62 = vld [vmem:[%s13633_s24 + $0x17d0] sm:$0xff] }
 0x542   : > { %10138 = vmatprep.subr.bf16.mxu1 %v12610_v5  ;;  %v12648_v5 = vcombine.high %v4987_v33, %v4991_v45 }
 0x543   : > { %9821 = vmatpush1.bf16.msra.mxu0 %v12607_v40  ;;  %v5000_v40 = vld [vmem:[%s13633_s24 + $0x1738] sm:$0xff] }
 0x544   : > { %9822 = vmatprep.subr.bf16.mxu0 %v12616_v42  ;;  %v12649_v42 = vcombine.low %v4988_v31, %v4992_v13  ;;  %v12658_v43 = vcombine.high %v4996_v1, %v5000_v40  ;;  %v12683_v13 = vrot.slane %v15800_v63, 9 }
 0x545   : > { %10139 = vmatpush1.bf16.msra.mxu1 %v12609_v9  ;;  %v12647_v9 = vcombine.low %v4987_v33, %v4991_v45  ;;  %v12679_v45 = vcombine.low %v5019_v62, %v5023_v36 }
 0x546   : > { %10140 = vmatprep.subr.bf16.mxu1 %v12618_v41  ;;  %v12656_v41 = vcombine.high %v4995_v27, %v4999_v8 }
 0x547   : > { %9823 = vmatpush1.bf16.msra.mxu0 %v12615_v58  ;;  %v5008_v58 = vld [vmem:[%s13633_s24 + $0x1778] sm:$0xff] }
 0x548   : > { %9824 = vmatprep.subr.bf16.mxu0 %v12624_v6  ;;  %v12657_v6 = vcombine.low %v4996_v1, %v5000_v40  ;;  %v12666_v49 = vcombine.high %v5004_v32, %v5008_v58  ;;  %v16079_v1 = vmax.f32 %v15800_v63, %v12683_v13  ;;  %v12703_v40 = vrot.slane %v15890_v15, 9 }
 0x549   : > { %10141 = vmatpush1.bf16.msra.mxu1 %v12617_v26  ;;  %v12655_v26 = vcombine.low %v4995_v27, %v4999_v8  ;;  %v12695_v27 = vrot.slane %v15827_v25, 9  ;;  %v12699_v8 = vrot.slane %v15886_v48, 9  ;;  %v16524_v63 = vsub.s32 5, %v16521_v2 }
 0x54a   : > { %10142 = vmatprep.subr.bf16.mxu1 %v12626_v53  ;;  %v12664_v53 = vcombine.high %v5003_v54, %v5007_v12 }
 0x54b   : > { %9825 = vmatpush1.bf16.msra.mxu0 %v12623_v28  ;;  %v5016_v28 = vld [vmem:[%s13633_s24 + $0x17b8] sm:$0xff] }
 0x54c   : > { %9826 = vmatprep.subr.bf16.mxu0 %v12632_v57  ;;  %v12665_v57 = vcombine.low %v5004_v32, %v5008_v58  ;;  %v12674_v46 = vcombine.high %v5012_v7, %v5016_v28 }
 0x54d   : > { %10143 = vmatpush1.bf16.msra.mxu1 %v12625_v23  ;;  %v12663_v23 = vcombine.low %v5003_v54, %v5007_v12 }
 0x54e   : > { %10144 = vmatprep.subr.bf16.mxu1 %v12634_v34  ;;  %v12672_v34 = vcombine.high %v5011_v17, %v5015_v4 }
 0x54f   : > { %9827 = vmatpush1.bf16.msra.mxu0 %v12631_v35  ;;  %v5024_v35 = vld [vmem:[%s13633_s24 + $0x17f8] sm:$0xff] }
 0x550   : > { %9828 = vmatprep.subr.bf16.mxu0 %v12640_v38  ;;  %v12673_v38 = vcombine.low %v5012_v7, %v5016_v28  ;;  %v12682_v33 = vcombine.high %v5020_v14, %v5024_v35  ;;  %v12681_v31 = vcombine.low %v5020_v14, %v5024_v35  ;;  %v12709_v28 = vrot.slane %v15900_v18, 9 }
 0x551   : > { %10145 = vmatpush1.bf16.msra.mxu1 %v12633_v11  ;;  %v12671_v11 = vcombine.low %v5011_v17, %v5015_v4  ;;  %v16120_v17 = vmax.f32 %v15886_v48, %v12699_v8  ;;  %v12707_v4 = vrot.slane %v15898_v44, 9 }
 0x552   : > { %10146 = vmatprep.subr.bf16.mxu1 %v12642_v47  ;;  %v12680_v47 = vcombine.high %v5019_v62, %v5023_v36 }
 0x553   : > { %9829 = vmatpush1.bf16.msra.mxu0 %v12639_v52  ;;  %v12685_v52 = vrot.slane %v15802_v56, 9 }
 0x554   : > { %9830 = vmatprep.subr.bf16.mxu0 %v12648_v5  ;;  %v12689_v5 = vrot.slane %v15806_v60, 9 }
 0x555   : > { %10147 = vmatpush1.bf16.msra.mxu1 %v12641_v30  ;;  %v12687_v30 = vrot.slane %v15804_v21, 9 }
 0x556   : > { %10148 = vmatprep.subr.bf16.mxu1 %v12650_v51  ;;  %v12691_v51 = vrot.slane %v15823_v20, 9  ;;  %v16101_v58 = vmax.f32 %v15806_v60, %v12689_v5 }
 0x557   : > { %9831 = vmatpush1.bf16.msra.mxu0 %v12647_v9  ;;  %v12705_v9 = vrot.slane %v15892_v55, 9  ;;  %v16091_v54 = vmax.f32 %v15804_v21, %v12687_v30 }
 0x558   : > { %9832 = vmatprep.subr.bf16.mxu0 %v12656_v41 }
 0x559   : > { %10149 = vmatpush1.bf16.msra.mxu1 %v12649_v42  ;;  %v13189_v42 = vld [vmem:[%s13635_s27] sm:$0xff] }
 0x55a   : > { %10150 = vmatprep.subr.bf16.mxu1 %v12658_v43  ;;  %v16085_v41 = vrot.slane %v13189_v42, %v14196_v61  ;;  %v16088_v43 = vmax.f32 %v15802_v56, %v12685_v52  ;;  %v16094_v12 = vrot.slane %v13189_v42, %v16482_v19  ;;  %v16098_v32 = vrot.slane %v13189_v42, %v16524_v63 }
 0x55b   : > { %9833 = vmatpush1.bf16.msra.mxu0 %v12655_v26  ;;  %v16104_v26 = vmax.f32 %v15823_v20, %v12691_v51  ;;  %v16525_v56 = vsub.s32 7, %v16521_v2  ;;  %v16129_v2 = vmax.f32 %v15892_v55, %v12705_v9 }
 0x55c   : > { %9834 = vmatprep.subr.bf16.mxu0 %v12664_v53  ;;  %v16114_v53 = vmax.f32 %v15827_v25, %v12695_v27  ;;  %v16147_v27 = vmax.f32 %v15900_v18, %v12709_v28 }
 0x55d   : > { %10151 = vmatpush1.bf16.msra.mxu1 %v12657_v6  ;;  %v16111_v21 = vrot.slane %v13189_v42, %v16525_v56  ;;  %16528 = vst [vmem:[#allocation37_spill] sm:$0xff] %v16129_v2 }
 0x55e   : > { %10152 = vmatprep.subr.bf16.mxu1 %v12666_v49  ;;  %16530 = vst [vmem:[#allocation21_spill] sm:$0xff] %v16147_v27 }
 0x55f   : > { %9835 = vmatpush1.bf16.msra.mxu0 %v12663_v23 }
 0x560   : > { %9836 = vmatprep.subr.bf16.mxu0 %v12672_v34 }
 0x561   : > { %10153 = vmatpush1.bf16.msra.mxu1 %v12665_v57 }
 0x562   : > { %10154 = vmatprep.subr.bf16.mxu1 %v12674_v46 }
 0x563   : > { %9837 = vmatpush1.bf16.msra.mxu0 %v12671_v11 }
 0x564   : > { %9838 = vmatprep.subr.bf16.mxu0 %v12680_v47 }
 0x565   : > { %10155 = vmatpush1.bf16.msra.mxu1 %v12673_v38 }
 0x566   : > { %10156 = vmatprep.subr.bf16.mxu1 %v12682_v33 }
 0x567   : > { %9839 = vmatpush1.bf16.msra.mxu0 %v12679_v45  ;;  %v16143_v45 = vmax.f32 %v15898_v44, %v12707_v4 }
 0x569   : > { %10157 = vmatpush1.bf16.msra.mxu1 %v12681_v31  ;;  %16529 = vst [vmem:[#allocation20_spill] sm:$0xff] %v16143_v45 }
 0x56a   : > { %9841 = vmatmul.mubr.bf16.vlgmr.msra.gmra.mrb[40].mxu0 %v15148_v50 }
 0x56b   : > { %9850 = vmatprep.mubr.bf16.mxu0 %v15152_v37 }
 0x56c   : > { %10159 = vmatmul.mubr.bf16.vlgmr.msra.gmra.mrb[40].mxu1 %v15148_v50  ;;  %v12693_v50 = vrot.slane %v15825_v10, 9 }
 0x56d   : > { %10168 = vmatprep.mubr.bf16.mxu1 %v15152_v37  ;;  %v12697_v37 = vrot.slane %v15829_v16, 9 }
 0x56e   : > { %v16107_v6 = vmax.f32 %v15825_v10, %v12693_v50  ;;  %v16126_v10 = vmax.f32 %v15890_v15, %v12703_v40 }
 0x56f   : > { %v16117_v49 = vmax.f32 %v15829_v16, %v12697_v37 }
 0x570   : > { %16527 = vst [vmem:[#allocation36_spill] sm:$0xff] %v16126_v10 }
 0x572   : > { %9851 = vmatmul.mubr.bf16.gmra.mrb[44].mxu0 %v15162_v22 }
 0x574   : > { %10169 = vmatmul.mubr.bf16.gmra.mrb[44].mxu1 %v15162_v22  ;;  %v12701_v22 = vrot.slane %v15888_v39, 9 }
 0x576   : > { %v16123_v60 = vmax.f32 %v15888_v39, %v12701_v22 }
 0x578   : > { %16526 = vst [vmem:[#allocation15_spill] sm:$0xff] %v16123_v60 }
 0x63d   : > { %v9842_v20 = vpop.f32.mrb[40].mxu0 }
 0x63e   : > { %v12865_v25 = vadd.f32 %v9842_v20, %v16085_v41  ;;  %v9844_v16 = vpop.f32.mrb[41].mxu0 }
 0x63f   : > { %v10160_v7 = vpop.f32.mrb[40].mxu1  ;;  %v12866_v23 = vadd.f32 %v9844_v16, %v16098_v32  ;;  %v9846_v15 = vpop.f32.mrb[42].mxu0 }
 0x640   : > { %v12873_v39 = vadd.f32 %v10160_v7, %v16094_v12  ;;  %v10162_v57 = vpop.f32.mrb[41].mxu1  ;;  %v10183_v55 = vmax.f32 %v12865_v25, 0.0  ;;  %v12867_v62 = vadd.f32 %v9846_v15, %v16085_v41  ;;  %v9848_v14 = vpop.f32.mrb[43].mxu0 }
 0x641   : > { %v12874_v46 = vadd.f32 %v10162_v57, %v16111_v21  ;;  %v10164_v36 = vpop.f32.mrb[42].mxu1  ;;  %v10184_v11 = vmax.f32 %v12866_v23, 0.0  ;;  %v12868_v47 = vadd.f32 %v9848_v14, %v16098_v32 }
 0x642   : > { %v10185_v35 = vmax.f32 %v12873_v39, 0.0  ;;  %v12875_v38 = vadd.f32 %v10164_v36, %v16094_v12  ;;  %v10166_v33 = vpop.f32.mrb[43].mxu1  ;;  %v10191_v13 = vmax.f32 %v12867_v62, 0.0 }
 0x643   : > { %v10186_v31 = vmax.f32 %v12874_v46, 0.0  ;;  %v12876_v52 = vadd.f32 %v10166_v33, %v16111_v21  ;;  %v10279_v30 = vcombine.low %v10183_v55, %v10184_v11  ;;  %v10280_v5 = vcombine.high %v10183_v55, %v10184_v11 }
 0x644   : > { %v10193_v51 = vmax.f32 %v12875_v38, 0.0  ;;  %v10192_v50 = vmax.f32 %v12868_v47, 0.0 }
 0x645   : > { %v10281_v37 = vcombine.low %v10185_v35, %v10186_v31  ;;  %v10282_v8 = vcombine.high %v10185_v35, %v10186_v31  ;;  %v10194_v22 = vmax.f32 %v12876_v52, 0.0  ;;  %v10289_v40 = vrot.slane %v10279_v30, %v14035_v29  ;;  %v9852_v63 = vpop.f32.mrb[44].mxu0 }
 0x646   : > { %v10296_v9 = vrot.slane %v10280_v5, %v14035_v29  ;;  %v10351_v44 = vcombine.low %v10191_v13, %v10192_v50  ;;  %v10352_v42 = vcombine.high %v10191_v13, %v10192_v50  ;;  %v16153_v16 = vpop.f32.mrb[45].mxu0  ;;  %v16158_v39 = vadd.f32 %v9852_v63, %v16085_v41 }
 0x647   : > { %v10303_v56 = vrot.slane %v10281_v37, %v14035_v29  ;;  %v10310_v20 = vrot.slane %v10282_v8, %v14035_v29  ;;  %v10353_v4 = vcombine.low %v10193_v51, %v10194_v22  ;;  %v10354_v25 = vcombine.high %v10193_v51, %v10194_v22  ;;  %v10170_v7 = vpop.f32.mrb[44].mxu1  ;;  %v16165_v15 = vpop.f32.mrb[46].mxu0 }
 0x648   : > { %v10361_v18 = vrot.slane %v10351_v44, %v14035_v29  ;;  %v10368_v28 = vrot.slane %v10352_v42, %v14035_v29  ;;  %v16161_v23 = vadd.f32 %v10170_v7, %v16094_v12  ;;  %v16163_v57 = vpop.f32.mrb[45].mxu1  ;;  %v16169_v35 = vpop.f32.mrb[47].mxu0 }
 0x649   : > { %v10311_v55 = vcombine.low %v10289_v40, %v10303_v56  ;;  %v10312_v46 = vcombine.high %v10289_v40, %v10303_v56  ;;  %v10313_v62 = vcombine.low %v10296_v9, %v10310_v20  ;;  %v10314_v36 = vcombine.high %v10296_v9, %v10310_v20  ;;  %v16167_v14 = vpop.f32.mrb[46].mxu1 }
 0x64a   : > { %v10375_v11 = vrot.slane %v10353_v4, %v14035_v29  ;;  %v10382_v38 = vrot.slane %v10354_v25, %v14035_v29  ;;  %v16175_v31 = vpop.f32.mrb[47].mxu1 }
 0x64b   : > { %v12684_v13 = vrot.slane %v10311_v55, 9  ;;  %v12686_v52 = vrot.slane %v10312_v46, 9  ;;  %v12688_v30 = vrot.slane %v10313_v62, 9  ;;  %v12690_v5 = vrot.slane %v10314_v36, 9 }
 0x64c   : > { %v10383_v51 = vcombine.low %v10361_v18, %v10375_v11  ;;  %v10384_v50 = vcombine.high %v10361_v18, %v10375_v11  ;;  %v10385_v37 = vcombine.low %v10368_v28, %v10382_v38  ;;  %v10386_v8 = vcombine.high %v10368_v28, %v10382_v38 }
 0x64d   : > { %v10660_v22 = vmax.f32 %v10311_v55, %v12684_v13  ;;  %v10662_v40 = vmax.f32 %v10312_v46, %v12686_v52  ;;  %v10664_v9 = vmax.f32 %v10313_v62, %v12688_v30  ;;  %v10666_v44 = vmax.f32 %v10314_v36, %v12690_v5 }
 0x64e   : > { %v12692_v42 = vrot.slane %v10383_v51, 9  ;;  %v12694_v63 = vrot.slane %v10384_v50, 9  ;;  %v12696_v56 = vrot.slane %v10385_v37, 9  ;;  %v12698_v20 = vrot.slane %v10386_v8, 9 }
 0x64f   : > { %v10691_v4 = vmax.f32 %v16079_v1, %v10660_v22  ;;  %v10692_v25 = vmax.f32 %v16088_v43, %v10662_v40  ;;  %v10693_v7 = vmax.f32 %v16091_v54, %v10664_v9  ;;  %v10694_v34 = vmax.f32 %v16101_v58, %v10666_v44 }
 0x650   : > { %v16181_v48 = vmax.f32 %v10383_v51, %v12692_v42  ;;  %v16183_v18 = vmax.f32 %v10384_v50, %v12694_v63  ;;  %v16185_v28 = vmax.f32 %v10385_v37, %v12696_v56  ;;  %v16187_v55 = vmax.f32 %v10386_v8, %v12698_v20 }
 0x651   : > { %v10726_v46 = vrot.slane %v10691_v4, %v14002_v59  ;;  %v10730_v62 = vrot.slane %v10691_v4, %v14005_v24  ;;  %v10734_v1 = vrot.slane %v10691_v4, %v14196_v61  ;;  %v10738_v43 = vrot.slane %v10691_v4, %v16482_v19 }
 0x652   : > { %v10742_v54 = vrot.slane %v10692_v25, %v14002_v59  ;;  %v10746_v58 = vrot.slane %v10692_v25, %v14005_v24  ;;  %v10750_v36 = vrot.slane %v10692_v25, %v14196_v61  ;;  %v10754_v11 = vrot.slane %v10692_v25, %v16482_v19 }
 0x653   : > { %v10758_v38 = vrot.slane %v10693_v7, %v14002_v59  ;;  %v10762_v13 = vrot.slane %v10693_v7, %v14005_v24  ;;  %v10766_v52 = vrot.slane %v10693_v7, %v14196_v61  ;;  %v10770_v30 = vrot.slane %v10693_v7, %v16482_v19 }
 0x654   : > { %v10774_v5 = vrot.slane %v10694_v34, %v14002_v59  ;;  %v10778_v51 = vrot.slane %v10694_v34, %v14005_v24  ;;  %v10782_v50 = vrot.slane %v10694_v34, %v14196_v61  ;;  %v10786_v37 = vrot.slane %v10694_v34, %v16482_v19 }
 0x655   : > { %v12753_v8 = vpack.c.bf16 %v10730_v62, %v10726_v46  ;;  %v12754_v22 = vpack.c.bf16 %v10738_v43, %v10734_v1  ;;  %v12755_v40 = vpack.c.bf16 %v10746_v58, %v10742_v54  ;;  %v12756_v9 = vpack.c.bf16 %v10754_v11, %v10750_v36 }
 0x656   : > { %v12757_v44 = vpack.c.bf16 %v10762_v13, %v10758_v38  ;;  %v12758_v42 = vpack.c.bf16 %v10770_v30, %v10766_v52  ;;  %v12759_v63 = vpack.c.bf16 %v10778_v51, %v10774_v5  ;;  %v12760_v56 = vpack.c.bf16 %v10786_v37, %v10782_v50 }
 0x657   : > { %v11267_v20 = vunpack.c.l.b16 %v12753_v8  ;;  %v11268_v4 = vunpack.c.h.b16 %v12753_v8  ;;  %v11269_v25 = vunpack.c.l.b16 %v12754_v22  ;;  %v11270_v7 = vunpack.c.h.b16 %v12754_v22 }
 0x658   : > { %v11271_v33 = vunpack.c.l.b16 %v12755_v40  ;;  %v11272_v47 = vunpack.c.h.b16 %v12755_v40  ;;  %v11273_v27 = vunpack.c.l.b16 %v12756_v9  ;;  %v11274_v45 = vunpack.c.h.b16 %v12756_v9 }
 0x659   : > { %v11275_v2 = vunpack.c.l.b16 %v12757_v44  ;;  %v11276_v10 = vunpack.c.h.b16 %v12757_v44  ;;  %v11277_v60 = vunpack.c.l.b16 %v12758_v42  ;;  %v11278_v34 = vunpack.c.h.b16 %v12758_v42 }
 0x65a   : > { %v11279_v46 = vunpack.c.l.b16 %v12759_v63  ;;  %v11280_v62 = vunpack.c.h.b16 %v12759_v63  ;;  %v11281_v1 = vunpack.c.l.b16 %v12760_v56  ;;  %v11282_v43 = vunpack.c.h.b16 %v12760_v56 }
 0x65b   : > { %v11331_v54 = vrot.slane %v11271_v33, 7  ;;  %v11333_v58 = vrot.slane %v11275_v2, 6  ;;  %v11345_v36 = vrot.slane %v11272_v47, 7  ;;  %v11347_v11 = vrot.slane %v11276_v10, 6 }
 0x65c   : > { %v11335_v38 = vrot.slane %v11279_v46, 5  ;;  %v11349_v13 = vrot.slane %v11280_v62, 5  ;;  %v11359_v52 = vrot.slane %v11273_v27, 7  ;;  %v11361_v30 = vrot.slane %v11277_v60, 6 }
 0x65d   : > { %v11332_v5 = vsel %vm3902_vm7, %v11331_v54, %v11267_v20  ;;  %v11346_v51 = vsel %vm3902_vm7, %v11345_v36, %v11268_v4  ;;  %v11363_v50 = vrot.slane %v11281_v1, 5  ;;  %v11373_v37 = vrot.slane %v11274_v45, 7 }
 0x65e   : > { %v11334_v8 = vsel %vm3872_vm1, %v11333_v58, %v11332_v5  ;;  %v11348_v22 = vsel %vm3872_vm1, %v11347_v11, %v11346_v51  ;;  %v11360_v40 = vsel %vm3902_vm7, %v11359_v52, %v11269_v25  ;;  %v11375_v33 = vrot.slane %v11278_v34, 6 }
 0x65f   : > { %v11336_v2 = vsel %vm3874_vm2, %v11335_v38, %v11334_v8  ;;  %v16212_v10 = vsel %vm3874_vm2, %v11349_v13, %v11348_v22  ;;  %v11362_v60 = vsel %vm3872_vm1, %v11361_v30, %v11360_v40  ;;  %v11374_v27 = vsel %vm3902_vm7, %v11373_v37, %v11270_v7 }
 0x660   : > { %v16217_v47 = vsel %vm3874_vm2, %v11363_v50, %v11362_v60  ;;  %v11376_v45 = vsel %vm3872_vm1, %v11375_v33, %v11374_v27  ;;  %v11377_v9 = vrot.slane %v11282_v43, 5  ;;  %v10695_v44 = vmax.f32 %v16104_v26, %v16181_v48 }
 0x661   : > { %v10696_v42 = vmax.f32 %v16107_v6, %v16183_v18  ;;  %v10697_v63 = vmax.f32 %v16114_v53, %v16185_v28  ;;  %v10698_v56 = vmax.f32 %v16117_v49, %v16187_v55  ;;  %v16230_v20 = vadd.f32 %v16153_v16, %v16098_v32 }
 0x662   : > { %v16233_v4 = vsel %vm3874_vm2, %v11377_v9, %v11376_v45  ;;  %v10790_v25 = vrot.slane %v10695_v44, %v14002_v59  ;;  %v10794_v26 = vrot.slane %v10695_v44, %v14005_v24  ;;  %v10798_v48 = vrot.slane %v10695_v44, %v14196_v61 }
 0x663   : > { %v10802_v6 = vrot.slane %v10695_v44, %v16482_v19  ;;  %v10806_v53 = vrot.slane %v10696_v42, %v14002_v59  ;;  %v10810_v18 = vrot.slane %v10696_v42, %v14005_v24  ;;  %v10814_v49 = vrot.slane %v10696_v42, %v14196_v61 }
 0x664   : > { %v10818_v16 = vrot.slane %v10696_v42, %v16482_v19  ;;  %v10822_v28 = vrot.slane %v10697_v63, %v14002_v59  ;;  %v10826_v55 = vrot.slane %v10697_v63, %v14005_v24  ;;  %v10830_v7 = vrot.slane %v10697_v63, %v14196_v61 }
 0x665   : > { %v10834_v34 = vrot.slane %v10697_v63, %v16482_v19  ;;  %v10838_v46 = vrot.slane %v10698_v56, %v14002_v59  ;;  %v10842_v62 = vrot.slane %v10698_v56, %v14005_v24  ;;  %v10846_v1 = vrot.slane %v10698_v56, %v14196_v61 }
 0x666   : > { %v10850_v43 = vrot.slane %v10698_v56, %v16482_v19  ;;  %v12761_v54 = vpack.c.bf16 %v10794_v26, %v10790_v25  ;;  %v12762_v58 = vpack.c.bf16 %v10802_v6, %v10798_v48  ;;  %v12763_v36 = vpack.c.bf16 %v10810_v18, %v10806_v53 }
 0x667   : > { %v12764_v11 = vpack.c.bf16 %v10818_v16, %v10814_v49  ;;  %v12765_v38 = vpack.c.bf16 %v10826_v55, %v10822_v28  ;;  %v12766_v13 = vpack.c.bf16 %v10834_v34, %v10830_v7  ;;  %v12767_v52 = vpack.c.bf16 %v10842_v62, %v10838_v46 }
 0x668   : > { %v12768_v30 = vpack.c.bf16 %v10850_v43, %v10846_v1  ;;  %v11283_v5 = vunpack.c.l.b16 %v12761_v54  ;;  %v11284_v51 = vunpack.c.h.b16 %v12761_v54  ;;  %v11285_v50 = vunpack.c.l.b16 %v12762_v58 }
 0x669   : > { %v11286_v37 = vunpack.c.h.b16 %v12762_v58  ;;  %v11287_v8 = vunpack.c.l.b16 %v12763_v36  ;;  %v11288_v22 = vunpack.c.h.b16 %v12763_v36  ;;  %v11289_v40 = vunpack.c.l.b16 %v12764_v11 }
 0x66a   : > { %v11290_v33 = vunpack.c.h.b16 %v12764_v11  ;;  %v11291_v60 = vunpack.c.l.b16 %v12765_v38  ;;  %v11292_v27 = vunpack.c.h.b16 %v12765_v38  ;;  %v11293_v45 = vunpack.c.l.b16 %v12766_v13 }
 0x66b   : > { %v11294_v9 = vunpack.c.h.b16 %v12766_v13  ;;  %v11295_v44 = vunpack.c.l.b16 %v12767_v52  ;;  %v11296_v42 = vunpack.c.h.b16 %v12767_v52  ;;  %v11297_v63 = vunpack.c.l.b16 %v12768_v30 }
 0x66c   : > { %v11298_v56 = vunpack.c.h.b16 %v12768_v30  ;;  %v11337_v25 = vrot.slane %v11283_v5, 4  ;;  %v11339_v26 = vrot.slane %v11287_v8, 3  ;;  %v11341_v48 = vrot.slane %v11291_v60, 2 }
 0x66d   : > { %v11343_v6 = vrot.slane %v11295_v44, 1  ;;  %v11351_v53 = vrot.slane %v11284_v51, 4  ;;  %v11353_v18 = vrot.slane %v11288_v22, 3  ;;  %v11355_v49 = vrot.slane %v11292_v27, 2 }
 0x66e   : > { %v11338_v16 = vsel %vm3876_vm3, %v11337_v25, %v11336_v2  ;;  %v11357_v28 = vrot.slane %v11296_v42, 1  ;;  %v11365_v55 = vrot.slane %v11285_v50, 4  ;;  %v11367_v7 = vrot.slane %v11289_v40, 3 }
 0x66f   : > { %v11340_v34 = vsel %vm3878_vm4, %v11339_v26, %v11338_v16  ;;  %v11352_v46 = vsel %vm3876_vm3, %v11351_v53, %v16212_v10  ;;  %v11369_v62 = vrot.slane %v11293_v45, 2  ;;  %v11371_v1 = vrot.slane %v11297_v63, 1 }
 0x670   : > { %v11342_v43 = vsel %vm3880_vm5, %v11341_v48, %v11340_v34  ;;  %v11354_v54 = vsel %vm3878_vm4, %v11353_v18, %v11352_v46  ;;  %v11366_v58 = vsel %vm3876_vm3, %v11365_v55, %v16217_v47  ;;  %v11379_v36 = vrot.slane %v11286_v37, 4 }
 0x671   : > { %v11344_v2 = vsel %vm3882_vm6, %v11343_v6, %v11342_v43  ;;  %v11356_v11 = vsel %vm3880_vm5, %v11355_v49, %v11354_v54  ;;  %v11368_v38 = vsel %vm3878_vm4, %v11367_v7, %v11366_v58  ;;  %v11381_v13 = vrot.slane %v11290_v33, 3 }
 0x672   : > { %v11358_v10 = vsel %vm3882_vm6, %v11357_v28, %v11356_v11  ;;  %v11370_v52 = vsel %vm3880_vm5, %v11369_v62, %v11368_v38  ;;  %v11380_v47 = vsel %vm3876_vm3, %v11379_v36, %v16233_v4  ;;  %v11383_v30 = vrot.slane %v11294_v9, 2 }
 0x673   : > { %v11372_v5 = vsel %vm3882_vm6, %v11371_v1, %v11370_v52  ;;  %v11382_v51 = vsel %vm3878_vm4, %v11381_v13, %v11380_v47  ;;  %v11385_v50 = vrot.slane %v11298_v56, 1  ;;  %v11443_v37 = vpack.c.b16 %v11358_v10, %v11344_v2 }
 0x674   : > { %v11384_v8 = vsel %vm3880_vm5, %v11383_v30, %v11382_v51  ;;  %v10200_v22 = vmax.f32 %v16230_v20, 0.0  ;;  %v12878_v40 = vadd.f32 %v16163_v57, %v16111_v21  ;;  %v12871_v33 = vadd.f32 %v16165_v15, %v16085_v41 }
 0x675   : > { %v11386_v4 = vsel %vm3882_vm6, %v11385_v50, %v11384_v8  ;;  %11451 = vst [vmem:[%s16266_s17] sm:$0xff] %v11443_v37  ;;  %v12879_v60 = vadd.f32 %v16167_v14, %v16094_v12  ;;  %v12872_v27 = vadd.f32 %v16169_v35, %v16098_v32  ;;  %v12880_v45 = vadd.f32 %v16175_v31, %v16111_v21 }
 0x676   : > { %v11444_v20 = vpack.c.b16 %v11386_v4, %v11372_v5  ;;  %v16531_v9 = vmax.f32 %v16158_v39, 0.0  ;;  %v10202_v41 = vmax.f32 %v12878_v40, 0.0  ;;  %v10207_v15 = vmax.f32 %v12871_v33, 0.0  ;;  %v16537_v4 = vld [vmem:[#allocation15_spill] sm:$0xff] }
 0x677   : > { %v10209_v63 = vmax.f32 %v12879_v60, 0.0  ;;  %v10208_v56 = vmax.f32 %v12872_v27, 0.0  ;;  %v10210_v25 = vmax.f32 %v12880_v45, 0.0  ;;  %v16533_v14 = vmax.f32 %v16161_v23, 0.0  ;;  %v16538_v27 = vld [vmem:[#allocation36_spill] sm:$0xff] }
 0x678   : > { %v10423_v44 = vcombine.low %v16531_v9, %v10200_v22  ;;  %v16532_v57 = vmov %v16531_v9  ;;  %11452 = vst [vmem:[%s16266_s17 + $0x8] sm:$0xff] %v11444_v20  ;;  %v16535_v53 = vrot.slane %v15902_v3, 9  ;;  %v16536_v49 = vrot.slane %v15904_v0, 9  ;;  %v16539_v20 = vld [vmem:[#allocation37_spill] sm:$0xff] }
 0x679   : > { %v10424_v42 = vcombine.high %v16532_v57, %v10200_v22  ;;  %v10425_v21 = vcombine.low %v16533_v14, %v10202_v41  ;;  %v16534_v35 = vmov %v16533_v14  ;;  %v10495_v26 = vcombine.low %v10207_v15, %v10208_v56 }
 0x67a   : > { %v10433_v12 = vrot.slane %v10423_v44, %v14035_v29  ;;  %v10426_v31 = vcombine.high %v16534_v35, %v10202_v41  ;;  %v10496_v48 = vcombine.high %v10207_v15, %v10208_v56  ;;  %v10497_v39 = vcombine.low %v10209_v63, %v10210_v25  ;;  %v16540_v44 = vld [vmem:[#allocation20_spill] sm:$0xff] }
 0x67b   : > { %v10440_v32 = vrot.slane %v10424_v42, %v14035_v29  ;;  %v10498_v6 = vcombine.high %v10209_v63, %v10210_v25  ;;  %v10687_v18 = vmax.f32 %v15902_v3, %v16535_v53  ;;  %v10689_v16 = vmax.f32 %v15904_v0, %v16536_v49  ;;  %v16541_v42 = vld [vmem:[#allocation21_spill] sm:$0xff] }
 0x67c   : > { %v10447_v28 = vrot.slane %v10425_v21, %v14035_v29  ;;  %v10454_v55 = vrot.slane %v10426_v31, %v14035_v29  ;;  %v10505_v7 = vrot.slane %v10495_v26, %v14035_v29  ;;  %v10512_v23 = vrot.slane %v10496_v48, %v14035_v29 }
 0x67d   : > { %v10519_v34 = vrot.slane %v10497_v39, %v14035_v29  ;;  %v10526_v46 = vrot.slane %v10498_v6, %v14035_v29 }
 0x67e   : > { %v10455_v62 = vcombine.low %v10433_v12, %v10447_v28  ;;  %v10456_v1 = vcombine.high %v10433_v12, %v10447_v28  ;;  %v10457_v43 = vcombine.low %v10440_v32, %v10454_v55  ;;  %v10458_v3 = vcombine.high %v10440_v32, %v10454_v55 }
 0x67f   : > { %v10527_v54 = vcombine.low %v10505_v7, %v10519_v34  ;;  %v10528_v58 = vcombine.high %v10505_v7, %v10519_v34  ;;  %v10529_v36 = vcombine.low %v10512_v23, %v10526_v46  ;;  %v10530_v0 = vcombine.high %v10512_v23, %v10526_v46 }
 0x680   : > { %v12700_v2 = vrot.slane %v10455_v62, 9  ;;  %v12702_v11 = vrot.slane %v10456_v1, 9  ;;  %v12704_v38 = vrot.slane %v10457_v43, 9  ;;  %v12706_v13 = vrot.slane %v10458_v3, 9 }
 0x681   : > { %v12708_v10 = vrot.slane %v10527_v54, 9  ;;  %v12710_v52 = vrot.slane %v10528_v58, 9  ;;  %v12712_v47 = vrot.slane %v10529_v36, 9  ;;  %v12714_v30 = vrot.slane %v10530_v0, 9 }
 0x682   : > { %v10676_v5 = vmax.f32 %v10455_v62, %v12700_v2  ;;  %v10678_v51 = vmax.f32 %v10456_v1, %v12702_v11  ;;  %v10680_v50 = vmax.f32 %v10457_v43, %v12704_v38  ;;  %v10682_v29 = vmax.f32 %v10458_v3, %v12706_v13 }
 0x683   : > { %v10684_v37 = vmax.f32 %v10527_v54, %v12708_v10  ;;  %v10686_v8 = vmax.f32 %v10528_v58, %v12710_v52  ;;  %v10688_v22 = vmax.f32 %v10529_v36, %v12712_v47  ;;  %v10690_v40 = vmax.f32 %v10530_v0, %v12714_v30 }
 0x684   : > { %v10699_v33 = vmax.f32 %v16120_v17, %v10676_v5  ;;  %v10700_v60 = vmax.f32 %v16537_v4, %v10678_v51  ;;  %v10701_v45 = vmax.f32 %v16538_v27, %v10680_v50  ;;  %v10702_v9 = vmax.f32 %v16539_v20, %v10682_v29 }
 0x685   : > { %v16316_v57 = vmax.f32 %v16540_v44, %v10684_v37  ;;  %v16319_v41 = vmax.f32 %v16541_v42, %v10686_v8  ;;  %v16321_v15 = vmax.f32 %v10687_v18, %v10688_v22  ;;  %v16323_v63 = vmax.f32 %v10689_v16, %v10690_v40 }
 0x686   : > { %v10854_v56 = vrot.slane %v10699_v33, %v14002_v59  ;;  %v10858_v17 = vrot.slane %v10699_v33, %v14005_v24  ;;  %v10862_v25 = vrot.slane %v10699_v33, %v14196_v61  ;;  %v10866_v12 = vrot.slane %v10699_v33, %v16482_v19 }
 0x687   : > { %v10870_v32 = vrot.slane %v10700_v60, %v14002_v59  ;;  %v10874_v14 = vrot.slane %v10700_v60, %v14005_v24  ;;  %v10878_v21 = vrot.slane %v10700_v60, %v14196_v61  ;;  %v10882_v35 = vrot.slane %v10700_v60, %v16482_v19 }
 0x688   : > { %v10886_v31 = vrot.slane %v10701_v45, %v14002_v59  ;;  %v10890_v26 = vrot.slane %v10701_v45, %v14005_v24  ;;  %v10894_v48 = vrot.slane %v10701_v45, %v14196_v61  ;;  %v10898_v39 = vrot.slane %v10701_v45, %v16482_v19 }
 0x689   : > { %v10902_v6 = vrot.slane %v10702_v9, %v14002_v59  ;;  %v10906_v53 = vrot.slane %v10702_v9, %v14005_v24  ;;  %v10910_v18 = vrot.slane %v10702_v9, %v14196_v61  ;;  %v10914_v49 = vrot.slane %v10702_v9, %v16482_v19 }
 0x68a   : > { %v12769_v16 = vpack.c.bf16 %v10858_v17, %v10854_v56  ;;  %v12770_v28 = vpack.c.bf16 %v10866_v12, %v10862_v25  ;;  %v12771_v55 = vpack.c.bf16 %v10874_v14, %v10870_v32  ;;  %v12772_v7 = vpack.c.bf16 %v10882_v35, %v10878_v21 }
 0x68b   : > { %v12773_v23 = vpack.c.bf16 %v10890_v26, %v10886_v31  ;;  %v12774_v34 = vpack.c.bf16 %v10898_v39, %v10894_v48  ;;  %v12775_v46 = vpack.c.bf16 %v10906_v53, %v10902_v6  ;;  %v12776_v62 = vpack.c.bf16 %v10914_v49, %v10910_v18 }
 0x68c   : > { %v11299_v1 = vunpack.c.l.b16 %v12769_v16  ;;  %v11300_v43 = vunpack.c.h.b16 %v12769_v16  ;;  %v11301_v3 = vunpack.c.l.b16 %v12770_v28  ;;  %v11302_v54 = vunpack.c.h.b16 %v12770_v28 }
 0x68d   : > { %v11303_v58 = vunpack.c.l.b16 %v12771_v55  ;;  %v11304_v36 = vunpack.c.h.b16 %v12771_v55  ;;  %v11305_v0 = vunpack.c.l.b16 %v12772_v7  ;;  %v11306_v2 = vunpack.c.h.b16 %v12772_v7 }
 0x68e   : > { %v11307_v11 = vunpack.c.l.b16 %v12773_v23  ;;  %v11308_v38 = vunpack.c.h.b16 %v12773_v23  ;;  %v11309_v13 = vunpack.c.l.b16 %v12774_v34  ;;  %v11310_v10 = vunpack.c.h.b16 %v12774_v34 }
 0x68f   : > { %v11311_v52 = vunpack.c.l.b16 %v12775_v46  ;;  %v11312_v47 = vunpack.c.h.b16 %v12775_v46  ;;  %v11313_v30 = vunpack.c.l.b16 %v12776_v62  ;;  %v11314_v5 = vunpack.c.h.b16 %v12776_v62 }
 0x690   : > { %v11387_v51 = vrot.slane %v11303_v58, 7  ;;  %v11389_v50 = vrot.slane %v11307_v11, 6  ;;  %v11401_v29 = vrot.slane %v11304_v36, 7  ;;  %v11403_v37 = vrot.slane %v11308_v38, 6 }
 0x691   : > { %v11391_v8 = vrot.slane %v11311_v52, 5  ;;  %v11405_v22 = vrot.slane %v11312_v47, 5  ;;  %v11415_v40 = vrot.slane %v11305_v0, 7  ;;  %v11417_v33 = vrot.slane %v11309_v13, 6 }
 0x692   : > { %v11388_v4 = vsel %vm3902_vm7, %v11387_v51, %v11299_v1  ;;  %v11402_v60 = vsel %vm3902_vm7, %v11401_v29, %v11300_v43  ;;  %v11419_v27 = vrot.slane %v11313_v30, 5  ;;  %v11429_v45 = vrot.slane %v11306_v2, 7 }
 0x693   : > { %v11390_v20 = vsel %vm3872_vm1, %v11389_v50, %v11388_v4  ;;  %v11404_v9 = vsel %vm3872_vm1, %v11403_v37, %v11402_v60  ;;  %v11416_v44 = vsel %vm3902_vm7, %v11415_v40, %v11301_v3  ;;  %v11431_v42 = vrot.slane %v11310_v10, 6 }
 0x694   : > { %v11392_v56 = vsel %vm3874_vm2, %v11391_v8, %v11390_v20  ;;  %v11406_v17 = vsel %vm3874_vm2, %v11405_v22, %v11404_v9  ;;  %v11418_v25 = vsel %vm3872_vm1, %v11417_v33, %v11416_v44  ;;  %v11430_v12 = vsel %vm3902_vm7, %v11429_v45, %v11302_v54 }
 0x695   : > { %v16351_v32 = vsel %vm3874_vm2, %v11419_v27, %v11418_v25  ;;  %v11432_v14 = vsel %vm3872_vm1, %v11431_v42, %v11430_v12  ;;  %v11433_v21 = vrot.slane %v11314_v5, 5  ;;  %v10918_v35 = vrot.slane %v16316_v57, %v14002_v59 }
 0x696   : > { %v10922_v31 = vrot.slane %v16316_v57, %v14005_v24  ;;  %v10926_v26 = vrot.slane %v16316_v57, %v14196_v61  ;;  %v10930_v48 = vrot.slane %v16316_v57, %v16482_v19  ;;  %v10934_v39 = vrot.slane %v16319_v41, %v14002_v59 }
 0x697   : > { %v11434_v6 = vsel %vm3874_vm2, %v11433_v21, %v11432_v14  ;;  %v10938_v53 = vrot.slane %v16319_v41, %v14005_v24  ;;  %v10942_v18 = vrot.slane %v16319_v41, %v14196_v61  ;;  %v10946_v49 = vrot.slane %v16319_v41, %v16482_v19 }
 0x698   : > { %v10950_v16 = vrot.slane %v16321_v15, %v14002_v59  ;;  %v10954_v57 = vrot.slane %v16321_v15, %v14005_v24  ;;  %v10958_v28 = vrot.slane %v16321_v15, %v14196_v61  ;;  %v10962_v55 = vrot.slane %v16321_v15, %v16482_v19 }
 0x699   : > { %v10966_v7 = vrot.slane %v16323_v63, %v14002_v59  ;;  %v10970_v23 = vrot.slane %v16323_v63, %v14005_v24  ;;  %v10974_v41 = vrot.slane %v16323_v63, %v14196_v61  ;;  %v10978_v34 = vrot.slane %v16323_v63, %v16482_v19 }
 0x69a   : > { %v12777_v46 = vpack.c.bf16 %v10922_v31, %v10918_v35  ;;  %v12778_v62 = vpack.c.bf16 %v10930_v48, %v10926_v26  ;;  %v12779_v1 = vpack.c.bf16 %v10938_v53, %v10934_v39  ;;  %v12780_v43 = vpack.c.bf16 %v10946_v49, %v10942_v18 }
 0x69b   : > { %v12781_v3 = vpack.c.bf16 %v10954_v57, %v10950_v16  ;;  %v12782_v54 = vpack.c.bf16 %v10962_v55, %v10958_v28  ;;  %v12783_v58 = vpack.c.bf16 %v10970_v23, %v10966_v7  ;;  %v12784_v15 = vpack.c.bf16 %v10978_v34, %v10974_v41 }
 0x69c   : > { %v11315_v36 = vunpack.c.l.b16 %v12777_v46  ;;  %v11316_v0 = vunpack.c.h.b16 %v12777_v46  ;;  %v11317_v59 = vunpack.c.l.b16 %v12778_v62  ;;  %v11318_v2 = vunpack.c.h.b16 %v12778_v62 }
 0x69d   : > { %v11319_v11 = vunpack.c.l.b16 %v12779_v1  ;;  %v11320_v24 = vunpack.c.h.b16 %v12779_v1  ;;  %v11321_v38 = vunpack.c.l.b16 %v12780_v43  ;;  %v11322_v13 = vunpack.c.h.b16 %v12780_v43 }
 0x69e   : > { %v11323_v61 = vunpack.c.l.b16 %v12781_v3  ;;  %v11324_v10 = vunpack.c.h.b16 %v12781_v3  ;;  %v11325_v52 = vunpack.c.l.b16 %v12782_v54  ;;  %v11326_v19 = vunpack.c.h.b16 %v12782_v54 }
 0x69f   : > { %v11327_v63 = vunpack.c.l.b16 %v12783_v58  ;;  %v11328_v47 = vunpack.c.h.b16 %v12783_v58  ;;  %v11329_v30 = vunpack.c.l.b16 %v12784_v15  ;;  %v11330_v5 = vunpack.c.h.b16 %v12784_v15 }
 0x6a0   : > { %v11393_v51 = vrot.slane %v11315_v36, 4  ;;  %v11395_v50 = vrot.slane %v11319_v11, 3  ;;  %v11397_v29 = vrot.slane %v11323_v61, 2  ;;  %v11407_v37 = vrot.slane %v11316_v0, 4 }
 0x6a1   : > { %v11399_v8 = vrot.slane %v11327_v63, 1  ;;  %v11409_v22 = vrot.slane %v11320_v24, 3  ;;  %v11411_v40 = vrot.slane %v11324_v10, 2  ;;  %v11413_v33 = vrot.slane %v11328_v47, 1 }
 0x6a2   : > { %v11394_v4 = vsel %vm3876_vm3, %v11393_v51, %v11392_v56  ;;  %v11408_v60 = vsel %vm3876_vm3, %v11407_v37, %v11406_v17  ;;  %v11421_v27 = vrot.slane %v11317_v59, 4  ;;  %v11423_v45 = vrot.slane %v11321_v38, 3 }
 0x6a3   : > { %v11396_v20 = vsel %vm3878_vm4, %v11395_v50, %v11394_v4  ;;  %v11410_v9 = vsel %vm3878_vm4, %v11409_v22, %v11408_v60  ;;  %v11425_v44 = vrot.slane %v11325_v52, 2  ;;  %v11427_v42 = vrot.slane %v11329_v30, 1 }
 0x6a4   : > { %v11398_v25 = vsel %vm3880_vm5, %v11397_v29, %v11396_v20  ;;  %v11412_v12 = vsel %vm3880_vm5, %v11411_v40, %v11410_v9  ;;  %v11422_v14 = vsel %vm3876_vm3, %v11421_v27, %v16351_v32  ;;  %v11435_v21 = vrot.slane %v11318_v2, 4 }
 0x6a5   : > { %v11400_v56 = vsel %vm3882_vm6, %v11399_v8, %v11398_v25  ;;  %v11414_v17 = vsel %vm3882_vm6, %v11413_v33, %v11412_v12  ;;  %v11424_v35 = vsel %vm3878_vm4, %v11423_v45, %v11422_v14  ;;  %v11437_v31 = vrot.slane %v11322_v13, 3 }
 0x6a6   : > { %v11426_v26 = vsel %vm3880_vm5, %v11425_v44, %v11424_v35  ;;  %v11436_v48 = vsel %vm3876_vm3, %v11435_v21, %v11434_v6  ;;  %v11439_v39 = vrot.slane %v11326_v19, 2  ;;  %v11441_v49 = vrot.slane %v11330_v5, 1 }
 0x6a7   : > { %v11428_v53 = vsel %vm3882_vm6, %v11427_v42, %v11426_v26  ;;  %v11438_v18 = vsel %vm3878_vm4, %v11437_v31, %v11436_v48  ;;  %v11445_v32 = vpack.c.b16 %v11414_v17, %v11400_v56 }
 0x6a8   : > { %v11440_v16 = vsel %vm3880_vm5, %v11439_v39, %v11438_v18 }
 0x6a9   : > { %v11442_v57 = vsel %vm3882_vm6, %v11441_v49, %v11440_v16  ;;  %11453 = vst [vmem:[%s16266_s17 + $0x10] sm:$0xff] %v11445_v32 }
 0x6aa   : > { %v11446_v28 = vpack.c.b16 %v11442_v57, %v11428_v53 }
 0x6ac   : > { %11454 = vst [vmem:[%s16266_s17 + $0x18] sm:$0xff] %v11446_v28 }
 0x6ad PF: > { %s24_s23 = sadd.s32 1, %s13368_s23   ;;  %s16542_s18 = smov %s13352_s19 }
 0x6ae   : > { %p21_p10 = scmp.ge.s32.totalorder %s24_s23, 4   ;;  %s16543_s19 = smov %s13356_s20 }
 0x6af   : > { %s16544_s20 = smov %s13456_s29  ;;  %s16545_s21 = smov %s13364_s22 }
 0x6b0   : > { %s16546_s22 = smov %s16548_s25  ;;  %23 = sbr.rel (!%p21_p10) target bundleno = 10 (0xa), region = 123 }
 0x6b7   :  { %11487 = vsyncpa [#allocation5], 1 }
 0x6b8   :  { %11489 = vsyncpa [#allocation5 + $0x1], 1 }
 0x6b9   :  { %11490 = vsyncpa [#allocation7], 1 }
 0x6ba   :  { %11492 = vsyncpa [#allocation7 + $0x1], 1 }
 0x6bb   :  { %11493 = vsyncpa [#allocation10], 1 }
 0x6bc   :  { %11495 = vsyncpa [#allocation10 + $0x1], 1 }

</bundles_post_ra>
